<compile_context>
chip_gen: v6e
topology: v6e:2x2x1
jax: 0.10.0
libtpu: 0.0.40
codegen_flags: <defaults>
</compile_context>

<pallas_src>
import functools

import jax
import jax.numpy as jnp
from jax.experimental import pallas as pl
from jax.experimental.pallas import tpu as pltpu

EPS = 1e-5                      # nn.BatchNorm1d default
COMPUTE_DTYPE = jnp.bfloat16    # MXU input dtype; accumulation is f32
_LANE = 128


def _round_up(n, m=_LANE):
    return ((n + m - 1) // m) * m


# ---------------------------------------------------------------------------
# Parameter construction (deterministic, shapes from AVDNetwork.__init__)
# Master copies stay f32 (mirrors PyTorch init).
# ---------------------------------------------------------------------------
def make_mlp_params(key, dims):
    """dims = [d0, d1, ..., dL]; last layer has no BN / no ReLU."""
    params = []
    n_layers = len(dims) - 1
    for i in range(n_layers):
        key, kw, kb = jax.random.split(key, 3)
        fan_in, fan_out = dims[i], dims[i + 1]
        bound = 1.0 / jnp.sqrt(jnp.float32(fan_in))
        w = jax.random.uniform(kw, (fan_in, fan_out), jnp.float32, -bound, bound)
        b = jax.random.uniform(kb, (1, fan_out), jnp.float32, -bound, bound)
        gamma = jnp.ones((1, fan_out), jnp.float32)   # BatchNorm1d default weight
        beta = jnp.zeros((1, fan_out), jnp.float32)   # BatchNorm1d default bias
        is_hidden = i < n_layers - 1
        params.append((w, b, gamma, beta, is_hidden, is_hidden))
    return params


def make_avd_params(key, num_tps, id_bottle_size=64, pose_bottle_size=64):
    input_size = 5 * 2 * num_tps
    k1, k2, k3 = jax.random.split(key, 3)
    id_enc = make_mlp_params(k1, [input_size, 256, 512, 1024, id_bottle_size])
    pose_enc = make_mlp_params(k2, [input_size, 256, 512, 1024, pose_bottle_size])
    dec = make_mlp_params(
        k3, [pose_bottle_size + id_bottle_size, 1024, 512, 256, input_size])
    return {"id_encoder": id_enc, "pose_encoder": pose_enc, "decoder": dec}


# ---------------------------------------------------------------------------
# One-time packing: bf16 weight copies + a single small-parameter slab.
# Call this ONCE (outside the forward path).
# ---------------------------------------------------------------------------
def pack_avd_params(params):
    # MLP order fixed as: pose encoder, id encoder, decoder (== use order).
    mlps = [params["pose_encoder"], params["id_encoder"], params["decoder"]]

    # Weight matrices, cast to bf16 once, flattened in use order.
    weights = [layer[0].astype(COMPUTE_DTYPE) for mlp in mlps for layer in mlp]

    # Pack every (1, N) bias / gamma / beta into one (n_mlp, P) f32 slab with
    # lane-aligned (multiple-of-128) static offsets.
    layouts, totals = [], []
    for mlp in mlps:
        off, layout = 0, []
        for (w, _b, _g, _bt, use_bn, _) in mlp:
            n = w.shape[1]
            b_off = off
            off += _round_up(n)
            if use_bn:
                g_off = off
                off += _round_up(n)
                bt_off = off
                off += _round_up(n)
            else:
                g_off = bt_off = -1
            layout.append((b_off, g_off, bt_off, n))
        layouts.append(tuple(layout))
        totals.append(off)

    P = max(totals)
    slab = jnp.zeros((len(mlps), P), jnp.float32)
    for mi, mlp in enumerate(mlps):
        for (w, b, g, bt, use_bn, _), (b_off, g_off, bt_off, n) in zip(
                mlp, layouts[mi]):
            slab = slab.at[mi, b_off:b_off + n].set(b[0])
            if use_bn:
                slab = slab.at[mi, g_off:g_off + n].set(g[0])
                slab = slab.at[mi, bt_off:bt_off + n].set(bt[0])

    return {"weights": weights, "slab": slab,
            "offsets": tuple(layouts)}


# ---------------------------------------------------------------------------
# Fused kernel
# ---------------------------------------------------------------------------
def _avd_fused_kernel(*refs, offsets, eps, n_w):
    # inputs: src, rnd, slab, w_hbm[0..n_w-1]
    # outputs: o_ref
    # scratch: w_vmem[0..n_w-1], sem
    src_ref, rnd_ref, slab_ref = refs[0], refs[1], refs[2]
    w_hbm = refs[3:3 + n_w]
    o_ref = refs[3 + n_w]
    w_vmem = refs[4 + n_w:4 + 2 * n_w]
    sem = refs[4 + 2 * n_w]

    # Kick off every weight HBM->VMEM DMA immediately (issue order == use
    # order, one semaphore slot per weight) so later layers' weights stream in
    # while earlier layers run on the MXU.
    copies = []
    for i in range(n_w):
        c = pltpu.make_async_copy(w_hbm[i], w_vmem[i], sem.at[i])
        c.start()
        copies.append(c)

    def small(mlp_idx, off, width):
        # Static, lane-aligned slice of the packed small-parameter slab.
        return slab_ref[mlp_idx:mlp_idx + 1, off:off + width]   # (1, width) f32

    def layer(x, w_idx, mlp_idx, layer_idx):
        b_off, g_off, bt_off, n = offsets[mlp_idx][layer_idx]
        copies[w_idx].wait()   # weights for THIS layer must be resident now
        y = jnp.dot(x.astype(COMPUTE_DTYPE), w_vmem[w_idx][...],
                    preferred_element_type=jnp.float32)
        y = y + small(mlp_idx, b_off, n)
        if g_off >= 0:
            # BatchNorm1d (training-mode batch stats, biased var) + ReLU,
            # folded to a single scale/shift on the full-width tensor.
            mean = jnp.mean(y, axis=0, keepdims=True)
            var = jnp.mean(y * y, axis=0, keepdims=True) - mean * mean
            var = jnp.maximum(var, 0.0)                 # cancellation guard
            scale = small(mlp_idx, g_off, n) * jax.lax.rsqrt(var + eps)
            shift = small(mlp_idx, bt_off, n) - mean * scale
            y = jnp.maximum(y * scale + shift, 0.0)
        return y

    # pose encoder (weights 0..3) consumes kp_random
    x = rnd_ref[...]
    for li in range(4):
        x = layer(x, li, 0, li)
    pose_emb = x

    # id encoder (weights 4..7) consumes kp_source
    x = src_ref[...]
    for li in range(4):
        x = layer(x, 4 + li, 1, li)
    id_emb = x

    # decoder (weights 8..11): torch.cat([pose_emb, id_emb], dim=1) is a cheap
    # lane-concat; the first layer is then one contiguous K=128 matmul.
    x = jnp.concatenate([pose_emb, id_emb], axis=1)
    for li in range(4):
        x = layer(x, 8 + li, 2, li)

    o_ref[...] = x.astype(o_ref.dtype)


# ---------------------------------------------------------------------------
# Forward pass: one fused pallas_call
# ---------------------------------------------------------------------------
def avd_forward(packed, kp_source, kp_random, num_tps):
    bs = kp_source["fg_kp"].shape[0]
    input_size = 5 * 2 * num_tps
    src = kp_source["fg_kp"].reshape(bs, -1).astype(jnp.float32)
    rnd = kp_random["fg_kp"].reshape(bs, -1).astype(jnp.float32)

    weights = packed["weights"]
    n_w = len(weights)

    vmem = pl.BlockSpec(memory_space=pltpu.MemorySpace.VMEM)
    anyspace = pl.BlockSpec(memory_space=pl.ANY)   # raw refs; DMA'd manually

    kernel = functools.partial(_avd_fused_kernel, offsets=packed["offsets"],
                               eps=EPS, n_w=n_w)

    rec = pl.pallas_call(
        kernel,
        out_shape=jax.ShapeDtypeStruct((bs, input_size), jnp.float32),
        in_specs=[vmem, vmem, vmem] + [anyspace] * n_w,
        out_specs=vmem,
        scratch_shapes=([pltpu.VMEM(w.shape, COMPUTE_DTYPE) for w in weights]
                        + [pltpu.SemaphoreType.DMA((n_w,))]),
        compiler_params=pltpu.CompilerParams(
            vmem_limit_bytes=32 * 1024 * 1024),   # ~5 MB used; fits v7x too
    )(src, rnd, packed["slab"], *weights)
    return {"fg_kp": rec.reshape(bs, num_tps * 5, -1)}


# ---------------------------------------------------------------------------
# Pure-JAX reference (same bf16 matmul dtype, PyTorch-style two-pass BN var)
# ---------------------------------------------------------------------------
def _ref_mlp(x, layers, eps=EPS):
    for (w, b, g, bt, use_bn, use_relu) in layers:
        x = jnp.dot(x.astype(COMPUTE_DTYPE), w.astype(COMPUTE_DTYPE),
                    preferred_element_type=jnp.float32) + b
        if use_bn:
            mean = jnp.mean(x, axis=0, keepdims=True)
            var = jnp.mean((x - mean) ** 2, axis=0, keepdims=True)
            x = (x - mean) / jnp.sqrt(var + eps) * g + bt
        if use_relu:
            x = jnp.maximum(x, 0.0)
    return x


def avd_forward_ref(params, kp_source, kp_random, num_tps):
    bs = kp_source["fg_kp"].shape[0]
    src = kp_source["fg_kp"].reshape(bs, -1).astype(jnp.float32)
    rnd = kp_random["fg_kp"].reshape(bs, -1).astype(jnp.float32)
    pose_emb = _ref_mlp(rnd, params["pose_encoder"])
    id_emb = _ref_mlp(src, params["id_encoder"])
    rec = _ref_mlp(jnp.concatenate([pose_emb, id_emb], axis=1),
                   params["decoder"])
    return {"fg_kp": rec.reshape(bs, num_tps * 5, -1)}


if __name__ == "__main__":
    num_tps = 2                 # input_size = 5 * 2 * num_tps = 20
    bs = 8                      # per-sample cost drops up to bs~128 if batched

    key = jax.random.PRNGKey(0)
    k_params, k_src, k_rnd = jax.random.split(key, 3)

    params = make_avd_params(k_params, num_tps)
    packed = pack_avd_params(params)   # ONE-TIME bf16 cast + small-param pack

    kp_source = {"fg_kp": jax.random.normal(k_src, (bs, num_tps * 5, 2),
                                            jnp.float32)}
    kp_random = {"fg_kp": jax.random.normal(k_rnd, (bs, num_tps * 5, 2),
                                            jnp.float32)}

    out = avd_forward(packed, kp_source, kp_random, num_tps)
    jax.block_until_ready(out["fg_kp"])

    ref = avd_forward_ref(params, kp_source, kp_random, num_tps)
    assert out["fg_kp"].shape == (bs, num_tps * 5, 2)
    # Kernel and reference share the bf16 matmul dtype; residual differences
    # come only from accumulation order, the one-pass BN variance and the
    # folded scale/shift form.
    assert jnp.allclose(out["fg_kp"], ref["fg_kp"], atol=1e-2, rtol=1e-2)

    print("KERNEL_OK")
</pallas_src>

<mosaic_0001>
module attributes {stable_mosaic.version = 11 : i64} {
  func.func @_avd_fused_kernel(%arg0: memref<8x20xf32, #tpu.memory_space<vmem>>, %arg1: memref<8x20xf32, #tpu.memory_space<vmem>>, %arg2: memref<3x5504xf32, #tpu.memory_space<vmem>>, %arg3: memref<20x256xbf16, #tpu.memory_space<any>>, %arg4: memref<256x512xbf16, #tpu.memory_space<any>>, %arg5: memref<512x1024xbf16, #tpu.memory_space<any>>, %arg6: memref<1024x64xbf16, #tpu.memory_space<any>>, %arg7: memref<20x256xbf16, #tpu.memory_space<any>>, %arg8: memref<256x512xbf16, #tpu.memory_space<any>>, %arg9: memref<512x1024xbf16, #tpu.memory_space<any>>, %arg10: memref<1024x64xbf16, #tpu.memory_space<any>>, %arg11: memref<128x1024xbf16, #tpu.memory_space<any>>, %arg12: memref<1024x512xbf16, #tpu.memory_space<any>>, %arg13: memref<512x256xbf16, #tpu.memory_space<any>>, %arg14: memref<256x20xbf16, #tpu.memory_space<any>>, %arg15: memref<8x20xf32, #tpu.memory_space<vmem>>, %arg16: memref<20x256xbf16, #tpu.memory_space<vmem>>, %arg17: memref<256x512xbf16, #tpu.memory_space<vmem>>, %arg18: memref<512x1024xbf16, #tpu.memory_space<vmem>>, %arg19: memref<1024x64xbf16, #tpu.memory_space<vmem>>, %arg20: memref<20x256xbf16, #tpu.memory_space<vmem>>, %arg21: memref<256x512xbf16, #tpu.memory_space<vmem>>, %arg22: memref<512x1024xbf16, #tpu.memory_space<vmem>>, %arg23: memref<1024x64xbf16, #tpu.memory_space<vmem>>, %arg24: memref<128x1024xbf16, #tpu.memory_space<vmem>>, %arg25: memref<1024x512xbf16, #tpu.memory_space<vmem>>, %arg26: memref<512x256xbf16, #tpu.memory_space<vmem>>, %arg27: memref<256x20xbf16, #tpu.memory_space<vmem>>, %arg28: memref<12x!tpu.dma_semaphore, #tpu.memory_space<semaphore_mem>>) attributes {dimension_semantics = [], scalar_prefetch = 0 : i64, scratch_operands = 13 : i64, tpu.core_type = #tpu.core_type<tc>} {
    %c0_i32 = arith.constant 0 : i32
    %0 = tpu.memref_slice %arg28[%c0_i32] : memref<12x!tpu.dma_semaphore, #tpu.memory_space<semaphore_mem>> -> memref<1x!tpu.dma_semaphore, #tpu.memory_space<semaphore_mem>>
    %1 = tpu.memref_squeeze %0 : memref<1x!tpu.dma_semaphore, #tpu.memory_space<semaphore_mem>> -> memref<!tpu.dma_semaphore, #tpu.memory_space<semaphore_mem>>
    tpu.enqueue_dma source(%arg3 : memref<20x256xbf16, #tpu.memory_space<any>>) target(%arg16 : memref<20x256xbf16, #tpu.memory_space<vmem>>) target_semaphore(%1 : memref<!tpu.dma_semaphore, #tpu.memory_space<semaphore_mem>>)
    %c1_i32 = arith.constant 1 : i32
    %2 = tpu.memref_slice %arg28[%c1_i32] : memref<12x!tpu.dma_semaphore, #tpu.memory_space<semaphore_mem>> -> memref<1x!tpu.dma_semaphore, #tpu.memory_space<semaphore_mem>>
    %3 = tpu.memref_squeeze %2 : memref<1x!tpu.dma_semaphore, #tpu.memory_space<semaphore_mem>> -> memref<!tpu.dma_semaphore, #tpu.memory_space<semaphore_mem>>
    tpu.enqueue_dma source(%arg4 : memref<256x512xbf16, #tpu.memory_space<any>>) target(%arg17 : memref<256x512xbf16, #tpu.memory_space<vmem>>) target_semaphore(%3 : memref<!tpu.dma_semaphore, #tpu.memory_space<semaphore_mem>>)
    %c2_i32 = arith.constant 2 : i32
    %4 = tpu.memref_slice %arg28[%c2_i32] : memref<12x!tpu.dma_semaphore, #tpu.memory_space<semaphore_mem>> -> memref<1x!tpu.dma_semaphore, #tpu.memory_space<semaphore_mem>>
    %5 = tpu.memref_squeeze %4 : memref<1x!tpu.dma_semaphore, #tpu.memory_space<semaphore_mem>> -> memref<!tpu.dma_semaphore, #tpu.memory_space<semaphore_mem>>
    tpu.enqueue_dma source(%arg5 : memref<512x1024xbf16, #tpu.memory_space<any>>) target(%arg18 : memref<512x1024xbf16, #tpu.memory_space<vmem>>) target_semaphore(%5 : memref<!tpu.dma_semaphore, #tpu.memory_space<semaphore_mem>>)
    %c3_i32 = arith.constant 3 : i32
    %6 = tpu.memref_slice %arg28[%c3_i32] : memref<12x!tpu.dma_semaphore, #tpu.memory_space<semaphore_mem>> -> memref<1x!tpu.dma_semaphore, #tpu.memory_space<semaphore_mem>>
    %7 = tpu.memref_squeeze %6 : memref<1x!tpu.dma_semaphore, #tpu.memory_space<semaphore_mem>> -> memref<!tpu.dma_semaphore, #tpu.memory_space<semaphore_mem>>
    tpu.enqueue_dma source(%arg6 : memref<1024x64xbf16, #tpu.memory_space<any>>) target(%arg19 : memref<1024x64xbf16, #tpu.memory_space<vmem>>) target_semaphore(%7 : memref<!tpu.dma_semaphore, #tpu.memory_space<semaphore_mem>>)
    %c4_i32 = arith.constant 4 : i32
    %8 = tpu.memref_slice %arg28[%c4_i32] : memref<12x!tpu.dma_semaphore, #tpu.memory_space<semaphore_mem>> -> memref<1x!tpu.dma_semaphore, #tpu.memory_space<semaphore_mem>>
    %9 = tpu.memref_squeeze %8 : memref<1x!tpu.dma_semaphore, #tpu.memory_space<semaphore_mem>> -> memref<!tpu.dma_semaphore, #tpu.memory_space<semaphore_mem>>
    tpu.enqueue_dma source(%arg7 : memref<20x256xbf16, #tpu.memory_space<any>>) target(%arg20 : memref<20x256xbf16, #tpu.memory_space<vmem>>) target_semaphore(%9 : memref<!tpu.dma_semaphore, #tpu.memory_space<semaphore_mem>>)
    %c5_i32 = arith.constant 5 : i32
    %10 = tpu.memref_slice %arg28[%c5_i32] : memref<12x!tpu.dma_semaphore, #tpu.memory_space<semaphore_mem>> -> memref<1x!tpu.dma_semaphore, #tpu.memory_space<semaphore_mem>>
    %11 = tpu.memref_squeeze %10 : memref<1x!tpu.dma_semaphore, #tpu.memory_space<semaphore_mem>> -> memref<!tpu.dma_semaphore, #tpu.memory_space<semaphore_mem>>
    tpu.enqueue_dma source(%arg8 : memref<256x512xbf16, #tpu.memory_space<any>>) target(%arg21 : memref<256x512xbf16, #tpu.memory_space<vmem>>) target_semaphore(%11 : memref<!tpu.dma_semaphore, #tpu.memory_space<semaphore_mem>>)
    %c6_i32 = arith.constant 6 : i32
    %12 = tpu.memref_slice %arg28[%c6_i32] : memref<12x!tpu.dma_semaphore, #tpu.memory_space<semaphore_mem>> -> memref<1x!tpu.dma_semaphore, #tpu.memory_space<semaphore_mem>>
    %13 = tpu.memref_squeeze %12 : memref<1x!tpu.dma_semaphore, #tpu.memory_space<semaphore_mem>> -> memref<!tpu.dma_semaphore, #tpu.memory_space<semaphore_mem>>
    tpu.enqueue_dma source(%arg9 : memref<512x1024xbf16, #tpu.memory_space<any>>) target(%arg22 : memref<512x1024xbf16, #tpu.memory_space<vmem>>) target_semaphore(%13 : memref<!tpu.dma_semaphore, #tpu.memory_space<semaphore_mem>>)
    %c7_i32 = arith.constant 7 : i32
    %14 = tpu.memref_slice %arg28[%c7_i32] : memref<12x!tpu.dma_semaphore, #tpu.memory_space<semaphore_mem>> -> memref<1x!tpu.dma_semaphore, #tpu.memory_space<semaphore_mem>>
    %15 = tpu.memref_squeeze %14 : memref<1x!tpu.dma_semaphore, #tpu.memory_space<semaphore_mem>> -> memref<!tpu.dma_semaphore, #tpu.memory_space<semaphore_mem>>
    tpu.enqueue_dma source(%arg10 : memref<1024x64xbf16, #tpu.memory_space<any>>) target(%arg23 : memref<1024x64xbf16, #tpu.memory_space<vmem>>) target_semaphore(%15 : memref<!tpu.dma_semaphore, #tpu.memory_space<semaphore_mem>>)
    %c8_i32 = arith.constant 8 : i32
    %16 = tpu.memref_slice %arg28[%c8_i32] : memref<12x!tpu.dma_semaphore, #tpu.memory_space<semaphore_mem>> -> memref<1x!tpu.dma_semaphore, #tpu.memory_space<semaphore_mem>>
    %17 = tpu.memref_squeeze %16 : memref<1x!tpu.dma_semaphore, #tpu.memory_space<semaphore_mem>> -> memref<!tpu.dma_semaphore, #tpu.memory_space<semaphore_mem>>
    tpu.enqueue_dma source(%arg11 : memref<128x1024xbf16, #tpu.memory_space<any>>) target(%arg24 : memref<128x1024xbf16, #tpu.memory_space<vmem>>) target_semaphore(%17 : memref<!tpu.dma_semaphore, #tpu.memory_space<semaphore_mem>>)
    %c9_i32 = arith.constant 9 : i32
    %18 = tpu.memref_slice %arg28[%c9_i32] : memref<12x!tpu.dma_semaphore, #tpu.memory_space<semaphore_mem>> -> memref<1x!tpu.dma_semaphore, #tpu.memory_space<semaphore_mem>>
    %19 = tpu.memref_squeeze %18 : memref<1x!tpu.dma_semaphore, #tpu.memory_space<semaphore_mem>> -> memref<!tpu.dma_semaphore, #tpu.memory_space<semaphore_mem>>
    tpu.enqueue_dma source(%arg12 : memref<1024x512xbf16, #tpu.memory_space<any>>) target(%arg25 : memref<1024x512xbf16, #tpu.memory_space<vmem>>) target_semaphore(%19 : memref<!tpu.dma_semaphore, #tpu.memory_space<semaphore_mem>>)
    %c10_i32 = arith.constant 10 : i32
    %20 = tpu.memref_slice %arg28[%c10_i32] : memref<12x!tpu.dma_semaphore, #tpu.memory_space<semaphore_mem>> -> memref<1x!tpu.dma_semaphore, #tpu.memory_space<semaphore_mem>>
    %21 = tpu.memref_squeeze %20 : memref<1x!tpu.dma_semaphore, #tpu.memory_space<semaphore_mem>> -> memref<!tpu.dma_semaphore, #tpu.memory_space<semaphore_mem>>
    tpu.enqueue_dma source(%arg13 : memref<512x256xbf16, #tpu.memory_space<any>>) target(%arg26 : memref<512x256xbf16, #tpu.memory_space<vmem>>) target_semaphore(%21 : memref<!tpu.dma_semaphore, #tpu.memory_space<semaphore_mem>>)
    %c11_i32 = arith.constant 11 : i32
    %22 = tpu.memref_slice %arg28[%c11_i32] : memref<12x!tpu.dma_semaphore, #tpu.memory_space<semaphore_mem>> -> memref<1x!tpu.dma_semaphore, #tpu.memory_space<semaphore_mem>>
    %23 = tpu.memref_squeeze %22 : memref<1x!tpu.dma_semaphore, #tpu.memory_space<semaphore_mem>> -> memref<!tpu.dma_semaphore, #tpu.memory_space<semaphore_mem>>
    tpu.enqueue_dma source(%arg14 : memref<256x20xbf16, #tpu.memory_space<any>>) target(%arg27 : memref<256x20xbf16, #tpu.memory_space<vmem>>) target_semaphore(%23 : memref<!tpu.dma_semaphore, #tpu.memory_space<semaphore_mem>>)
    %c0 = arith.constant 0 : index
    %c0_0 = arith.constant 0 : index
    %24 = vector.load %arg1[%c0, %c0_0] : memref<8x20xf32, #tpu.memory_space<vmem>>, vector<8x20xf32>
    %c0_i32_1 = arith.constant 0 : i32
    %25 = tpu.memref_slice %arg28[%c0_i32_1] : memref<12x!tpu.dma_semaphore, #tpu.memory_space<semaphore_mem>> -> memref<1x!tpu.dma_semaphore, #tpu.memory_space<semaphore_mem>>
    %26 = tpu.memref_squeeze %25 : memref<1x!tpu.dma_semaphore, #tpu.memory_space<semaphore_mem>> -> memref<!tpu.dma_semaphore, #tpu.memory_space<semaphore_mem>>
    tpu.wait_dma2 semaphore(%26 : memref<!tpu.dma_semaphore, #tpu.memory_space<semaphore_mem>>) src(%arg3 : memref<20x256xbf16, #tpu.memory_space<any>>) dst(%arg16 : memref<20x256xbf16, #tpu.memory_space<vmem>>)
    %27 = arith.truncf %24 : vector<8x20xf32> to vector<8x20xbf16>
    %c0_2 = arith.constant 0 : index
    %c0_3 = arith.constant 0 : index
    %28 = vector.load %arg16[%c0_2, %c0_3] : memref<20x256xbf16, #tpu.memory_space<vmem>>, vector<20x256xbf16>
    %cst = arith.constant dense<0.000000e+00> : vector<8x256xf32>
    %29 = tpu.matmul %27, %28, %cst {dimension_numbers = #tpu.dot_dimension_numbers<[1], [0], [0], [1], [0, 0, 1, 1], [], []>} : vector<8x20xbf16>, vector<20x256xbf16>, vector<8x256xf32> -> vector<8x256xf32>
    %c0_4 = arith.constant 0 : index
    %c0_5 = arith.constant 0 : index
    %30 = vector.load %arg2[%c0_4, %c0_5] : memref<3x5504xf32, #tpu.memory_space<vmem>>, vector<1x256xf32>
    %31 = vector.broadcast %30 : vector<1x256xf32> to vector<8x256xf32>
    %32 = arith.addf %29, %31 : vector<8x256xf32>
    %cst_6 = arith.constant dense<0.000000e+00> : vector<256xf32>
    %33 = vector.multi_reduction <add>, %32, %cst_6 [0] : vector<8x256xf32> to vector<256xf32>
    %34 = vector.shape_cast %33 : vector<256xf32> to vector<1x256xf32>
    %cst_7 = arith.constant 8.000000e+00 : f32
    %35 = vector.broadcast %cst_7 : f32 to vector<1x256xf32>
    %36 = arith.divf %34, %35 : vector<1x256xf32>
    %37 = arith.mulf %32, %32 : vector<8x256xf32>
    %cst_8 = arith.constant dense<0.000000e+00> : vector<256xf32>
    %38 = vector.multi_reduction <add>, %37, %cst_8 [0] : vector<8x256xf32> to vector<256xf32>
    %39 = vector.shape_cast %38 : vector<256xf32> to vector<1x256xf32>
    %cst_9 = arith.constant 8.000000e+00 : f32
    %40 = vector.broadcast %cst_9 : f32 to vector<1x256xf32>
    %41 = arith.divf %39, %40 : vector<1x256xf32>
    %42 = arith.mulf %36, %36 : vector<1x256xf32>
    %43 = arith.subf %41, %42 : vector<1x256xf32>
    %cst_10 = arith.constant 0.000000e+00 : f32
    %44 = vector.broadcast %cst_10 : f32 to vector<1x256xf32>
    %45 = arith.maximumf %43, %44 : vector<1x256xf32>
    %c0_11 = arith.constant 0 : index
    %c256 = arith.constant 256 : index
    %46 = vector.load %arg2[%c0_11, %c256] : memref<3x5504xf32, #tpu.memory_space<vmem>>, vector<1x256xf32>
    %cst_12 = arith.constant 9.99999974E-6 : f32
    %47 = vector.broadcast %cst_12 : f32 to vector<1x256xf32>
    %48 = arith.addf %45, %47 : vector<1x256xf32>
    %49 = math.rsqrt %48 : vector<1x256xf32>
    %50 = arith.mulf %46, %49 : vector<1x256xf32>
    %c0_13 = arith.constant 0 : index
    %c512 = arith.constant 512 : index
    %51 = vector.load %arg2[%c0_13, %c512] : memref<3x5504xf32, #tpu.memory_space<vmem>>, vector<1x256xf32>
    %52 = arith.mulf %36, %50 : vector<1x256xf32>
    %53 = arith.subf %51, %52 : vector<1x256xf32>
    %54 = vector.broadcast %50 : vector<1x256xf32> to vector<8x256xf32>
    %55 = arith.mulf %32, %54 : vector<8x256xf32>
    %56 = vector.broadcast %53 : vector<1x256xf32> to vector<8x256xf32>
    %57 = arith.addf %55, %56 : vector<8x256xf32>
    %cst_14 = arith.constant 0.000000e+00 : f32
    %58 = vector.broadcast %cst_14 : f32 to vector<8x256xf32>
    %59 = arith.maximumf %57, %58 : vector<8x256xf32>
    %c1_i32_15 = arith.constant 1 : i32
    %60 = tpu.memref_slice %arg28[%c1_i32_15] : memref<12x!tpu.dma_semaphore, #tpu.memory_space<semaphore_mem>> -> memref<1x!tpu.dma_semaphore, #tpu.memory_space<semaphore_mem>>
    %61 = tpu.memref_squeeze %60 : memref<1x!tpu.dma_semaphore, #tpu.memory_space<semaphore_mem>> -> memref<!tpu.dma_semaphore, #tpu.memory_space<semaphore_mem>>
    tpu.wait_dma2 semaphore(%61 : memref<!tpu.dma_semaphore, #tpu.memory_space<semaphore_mem>>) src(%arg4 : memref<256x512xbf16, #tpu.memory_space<any>>) dst(%arg17 : memref<256x512xbf16, #tpu.memory_space<vmem>>)
    %62 = arith.truncf %59 : vector<8x256xf32> to vector<8x256xbf16>
    %c0_16 = arith.constant 0 : index
    %c0_17 = arith.constant 0 : index
    %63 = vector.load %arg17[%c0_16, %c0_17] : memref<256x512xbf16, #tpu.memory_space<vmem>>, vector<256x512xbf16>
    %cst_18 = arith.constant dense<0.000000e+00> : vector<8x512xf32>
    %64 = tpu.matmul %62, %63, %cst_18 {dimension_numbers = #tpu.dot_dimension_numbers<[1], [0], [0], [1], [0, 0, 1, 1], [], []>} : vector<8x256xbf16>, vector<256x512xbf16>, vector<8x512xf32> -> vector<8x512xf32>
    %c0_19 = arith.constant 0 : index
    %c768 = arith.constant 768 : index
    %65 = vector.load %arg2[%c0_19, %c768] : memref<3x5504xf32, #tpu.memory_space<vmem>>, vector<1x512xf32>
    %66 = vector.broadcast %65 : vector<1x512xf32> to vector<8x512xf32>
    %67 = arith.addf %64, %66 : vector<8x512xf32>
    %cst_20 = arith.constant dense<0.000000e+00> : vector<512xf32>
    %68 = vector.multi_reduction <add>, %67, %cst_20 [0] : vector<8x512xf32> to vector<512xf32>
    %69 = vector.shape_cast %68 : vector<512xf32> to vector<1x512xf32>
    %cst_21 = arith.constant 8.000000e+00 : f32
    %70 = vector.broadcast %cst_21 : f32 to vector<1x512xf32>
    %71 = arith.divf %69, %70 : vector<1x512xf32>
    %72 = arith.mulf %67, %67 : vector<8x512xf32>
    %cst_22 = arith.constant dense<0.000000e+00> : vector<512xf32>
    %73 = vector.multi_reduction <add>, %72, %cst_22 [0] : vector<8x512xf32> to vector<512xf32>
    %74 = vector.shape_cast %73 : vector<512xf32> to vector<1x512xf32>
    %cst_23 = arith.constant 8.000000e+00 : f32
    %75 = vector.broadcast %cst_23 : f32 to vector<1x512xf32>
    %76 = arith.divf %74, %75 : vector<1x512xf32>
    %77 = arith.mulf %71, %71 : vector<1x512xf32>
    %78 = arith.subf %76, %77 : vector<1x512xf32>
    %cst_24 = arith.constant 0.000000e+00 : f32
    %79 = vector.broadcast %cst_24 : f32 to vector<1x512xf32>
    %80 = arith.maximumf %78, %79 : vector<1x512xf32>
    %c0_25 = arith.constant 0 : index
    %c1280 = arith.constant 1280 : index
    %81 = vector.load %arg2[%c0_25, %c1280] : memref<3x5504xf32, #tpu.memory_space<vmem>>, vector<1x512xf32>
    %cst_26 = arith.constant 9.99999974E-6 : f32
    %82 = vector.broadcast %cst_26 : f32 to vector<1x512xf32>
    %83 = arith.addf %80, %82 : vector<1x512xf32>
    %84 = math.rsqrt %83 : vector<1x512xf32>
    %85 = arith.mulf %81, %84 : vector<1x512xf32>
    %c0_27 = arith.constant 0 : index
    %c1792 = arith.constant 1792 : index
    %86 = vector.load %arg2[%c0_27, %c1792] : memref<3x5504xf32, #tpu.memory_space<vmem>>, vector<1x512xf32>
    %87 = arith.mulf %71, %85 : vector<1x512xf32>
    %88 = arith.subf %86, %87 : vector<1x512xf32>
    %89 = vector.broadcast %85 : vector<1x512xf32> to vector<8x512xf32>
    %90 = arith.mulf %67, %89 : vector<8x512xf32>
    %91 = vector.broadcast %88 : vector<1x512xf32> to vector<8x512xf32>
    %92 = arith.addf %90, %91 : vector<8x512xf32>
    %cst_28 = arith.constant 0.000000e+00 : f32
    %93 = vector.broadcast %cst_28 : f32 to vector<8x512xf32>
    %94 = arith.maximumf %92, %93 : vector<8x512xf32>
    %c2_i32_29 = arith.constant 2 : i32
    %95 = tpu.memref_slice %arg28[%c2_i32_29] : memref<12x!tpu.dma_semaphore, #tpu.memory_space<semaphore_mem>> -> memref<1x!tpu.dma_semaphore, #tpu.memory_space<semaphore_mem>>
    %96 = tpu.memref_squeeze %95 : memref<1x!tpu.dma_semaphore, #tpu.memory_space<semaphore_mem>> -> memref<!tpu.dma_semaphore, #tpu.memory_space<semaphore_mem>>
    tpu.wait_dma2 semaphore(%96 : memref<!tpu.dma_semaphore, #tpu.memory_space<semaphore_mem>>) src(%arg5 : memref<512x1024xbf16, #tpu.memory_space<any>>) dst(%arg18 : memref<512x1024xbf16, #tpu.memory_space<vmem>>)
    %97 = arith.truncf %94 : vector<8x512xf32> to vector<8x512xbf16>
    %c0_30 = arith.constant 0 : index
    %c0_31 = arith.constant 0 : index
    %98 = vector.load %arg18[%c0_30, %c0_31] : memref<512x1024xbf16, #tpu.memory_space<vmem>>, vector<512x1024xbf16>
    %cst_32 = arith.constant dense<0.000000e+00> : vector<8x1024xf32>
    %99 = tpu.matmul %97, %98, %cst_32 {dimension_numbers = #tpu.dot_dimension_numbers<[1], [0], [0], [1], [0, 0, 1, 1], [], []>} : vector<8x512xbf16>, vector<512x1024xbf16>, vector<8x1024xf32> -> vector<8x1024xf32>
    %c0_33 = arith.constant 0 : index
    %c2304 = arith.constant 2304 : index
    %100 = vector.load %arg2[%c0_33, %c2304] : memref<3x5504xf32, #tpu.memory_space<vmem>>, vector<1x1024xf32>
    %101 = vector.broadcast %100 : vector<1x1024xf32> to vector<8x1024xf32>
    %102 = arith.addf %99, %101 : vector<8x1024xf32>
    %cst_34 = arith.constant dense<0.000000e+00> : vector<1024xf32>
    %103 = vector.multi_reduction <add>, %102, %cst_34 [0] : vector<8x1024xf32> to vector<1024xf32>
    %104 = vector.shape_cast %103 : vector<1024xf32> to vector<1x1024xf32>
    %cst_35 = arith.constant 8.000000e+00 : f32
    %105 = vector.broadcast %cst_35 : f32 to vector<1x1024xf32>
    %106 = arith.divf %104, %105 : vector<1x1024xf32>
    %107 = arith.mulf %102, %102 : vector<8x1024xf32>
    %cst_36 = arith.constant dense<0.000000e+00> : vector<1024xf32>
    %108 = vector.multi_reduction <add>, %107, %cst_36 [0] : vector<8x1024xf32> to vector<1024xf32>
    %109 = vector.shape_cast %108 : vector<1024xf32> to vector<1x1024xf32>
    %cst_37 = arith.constant 8.000000e+00 : f32
    %110 = vector.broadcast %cst_37 : f32 to vector<1x1024xf32>
    %111 = arith.divf %109, %110 : vector<1x1024xf32>
    %112 = arith.mulf %106, %106 : vector<1x1024xf32>
    %113 = arith.subf %111, %112 : vector<1x1024xf32>
    %cst_38 = arith.constant 0.000000e+00 : f32
    %114 = vector.broadcast %cst_38 : f32 to vector<1x1024xf32>
    %115 = arith.maximumf %113, %114 : vector<1x1024xf32>
    %c0_39 = arith.constant 0 : index
    %c3328 = arith.constant 3328 : index
    %116 = vector.load %arg2[%c0_39, %c3328] : memref<3x5504xf32, #tpu.memory_space<vmem>>, vector<1x1024xf32>
    %cst_40 = arith.constant 9.99999974E-6 : f32
    %117 = vector.broadcast %cst_40 : f32 to vector<1x1024xf32>
    %118 = arith.addf %115, %117 : vector<1x1024xf32>
    %119 = math.rsqrt %118 : vector<1x1024xf32>
    %120 = arith.mulf %116, %119 : vector<1x1024xf32>
    %c0_41 = arith.constant 0 : index
    %c4352 = arith.constant 4352 : index
    %121 = vector.load %arg2[%c0_41, %c4352] : memref<3x5504xf32, #tpu.memory_space<vmem>>, vector<1x1024xf32>
    %122 = arith.mulf %106, %120 : vector<1x1024xf32>
    %123 = arith.subf %121, %122 : vector<1x1024xf32>
    %124 = vector.broadcast %120 : vector<1x1024xf32> to vector<8x1024xf32>
    %125 = arith.mulf %102, %124 : vector<8x1024xf32>
    %126 = vector.broadcast %123 : vector<1x1024xf32> to vector<8x1024xf32>
    %127 = arith.addf %125, %126 : vector<8x1024xf32>
    %cst_42 = arith.constant 0.000000e+00 : f32
    %128 = vector.broadcast %cst_42 : f32 to vector<8x1024xf32>
    %129 = arith.maximumf %127, %128 : vector<8x1024xf32>
    %c3_i32_43 = arith.constant 3 : i32
    %130 = tpu.memref_slice %arg28[%c3_i32_43] : memref<12x!tpu.dma_semaphore, #tpu.memory_space<semaphore_mem>> -> memref<1x!tpu.dma_semaphore, #tpu.memory_space<semaphore_mem>>
    %131 = tpu.memref_squeeze %130 : memref<1x!tpu.dma_semaphore, #tpu.memory_space<semaphore_mem>> -> memref<!tpu.dma_semaphore, #tpu.memory_space<semaphore_mem>>
    tpu.wait_dma2 semaphore(%131 : memref<!tpu.dma_semaphore, #tpu.memory_space<semaphore_mem>>) src(%arg6 : memref<1024x64xbf16, #tpu.memory_space<any>>) dst(%arg19 : memref<1024x64xbf16, #tpu.memory_space<vmem>>)
    %132 = arith.truncf %129 : vector<8x1024xf32> to vector<8x1024xbf16>
    %c0_44 = arith.constant 0 : index
    %c0_45 = arith.constant 0 : index
    %133 = vector.load %arg19[%c0_44, %c0_45] : memref<1024x64xbf16, #tpu.memory_space<vmem>>, vector<1024x64xbf16>
    %cst_46 = arith.constant dense<0.000000e+00> : vector<8x64xf32>
    %134 = tpu.matmul %132, %133, %cst_46 {dimension_numbers = #tpu.dot_dimension_numbers<[1], [0], [0], [1], [0, 0, 1, 1], [], []>} : vector<8x1024xbf16>, vector<1024x64xbf16>, vector<8x64xf32> -> vector<8x64xf32>
    %c0_47 = arith.constant 0 : index
    %c5376 = arith.constant 5376 : index
    %135 = vector.load %arg2[%c0_47, %c5376] : memref<3x5504xf32, #tpu.memory_space<vmem>>, vector<1x64xf32>
    %136 = vector.broadcast %135 : vector<1x64xf32> to vector<8x64xf32>
    %137 = arith.addf %134, %136 : vector<8x64xf32>
    %c0_48 = arith.constant 0 : index
    %c0_49 = arith.constant 0 : index
    %138 = vector.load %arg0[%c0_48, %c0_49] : memref<8x20xf32, #tpu.memory_space<vmem>>, vector<8x20xf32>
    %c4_i32_50 = arith.constant 4 : i32
    %139 = tpu.memref_slice %arg28[%c4_i32_50] : memref<12x!tpu.dma_semaphore, #tpu.memory_space<semaphore_mem>> -> memref<1x!tpu.dma_semaphore, #tpu.memory_space<semaphore_mem>>
    %140 = tpu.memref_squeeze %139 : memref<1x!tpu.dma_semaphore, #tpu.memory_space<semaphore_mem>> -> memref<!tpu.dma_semaphore, #tpu.memory_space<semaphore_mem>>
    tpu.wait_dma2 semaphore(%140 : memref<!tpu.dma_semaphore, #tpu.memory_space<semaphore_mem>>) src(%arg7 : memref<20x256xbf16, #tpu.memory_space<any>>) dst(%arg20 : memref<20x256xbf16, #tpu.memory_space<vmem>>)
    %141 = arith.truncf %138 : vector<8x20xf32> to vector<8x20xbf16>
    %c0_51 = arith.constant 0 : index
    %c0_52 = arith.constant 0 : index
    %142 = vector.load %arg20[%c0_51, %c0_52] : memref<20x256xbf16, #tpu.memory_space<vmem>>, vector<20x256xbf16>
    %cst_53 = arith.constant dense<0.000000e+00> : vector<8x256xf32>
    %143 = tpu.matmul %141, %142, %cst_53 {dimension_numbers = #tpu.dot_dimension_numbers<[1], [0], [0], [1], [0, 0, 1, 1], [], []>} : vector<8x20xbf16>, vector<20x256xbf16>, vector<8x256xf32> -> vector<8x256xf32>
    %c1 = arith.constant 1 : index
    %c0_54 = arith.constant 0 : index
    %144 = vector.load %arg2[%c1, %c0_54] : memref<3x5504xf32, #tpu.memory_space<vmem>>, vector<1x256xf32>
    %145 = vector.broadcast %144 : vector<1x256xf32> to vector<8x256xf32>
    %146 = arith.addf %143, %145 : vector<8x256xf32>
    %cst_55 = arith.constant dense<0.000000e+00> : vector<256xf32>
    %147 = vector.multi_reduction <add>, %146, %cst_55 [0] : vector<8x256xf32> to vector<256xf32>
    %148 = vector.shape_cast %147 : vector<256xf32> to vector<1x256xf32>
    %cst_56 = arith.constant 8.000000e+00 : f32
    %149 = vector.broadcast %cst_56 : f32 to vector<1x256xf32>
    %150 = arith.divf %148, %149 : vector<1x256xf32>
    %151 = arith.mulf %146, %146 : vector<8x256xf32>
    %cst_57 = arith.constant dense<0.000000e+00> : vector<256xf32>
    %152 = vector.multi_reduction <add>, %151, %cst_57 [0] : vector<8x256xf32> to vector<256xf32>
    %153 = vector.shape_cast %152 : vector<256xf32> to vector<1x256xf32>
    %cst_58 = arith.constant 8.000000e+00 : f32
    %154 = vector.broadcast %cst_58 : f32 to vector<1x256xf32>
    %155 = arith.divf %153, %154 : vector<1x256xf32>
    %156 = arith.mulf %150, %150 : vector<1x256xf32>
    %157 = arith.subf %155, %156 : vector<1x256xf32>
    %cst_59 = arith.constant 0.000000e+00 : f32
    %158 = vector.broadcast %cst_59 : f32 to vector<1x256xf32>
    %159 = arith.maximumf %157, %158 : vector<1x256xf32>
    %c1_60 = arith.constant 1 : index
    %c256_61 = arith.constant 256 : index
    %160 = vector.load %arg2[%c1_60, %c256_61] : memref<3x5504xf32, #tpu.memory_space<vmem>>, vector<1x256xf32>
    %cst_62 = arith.constant 9.99999974E-6 : f32
    %161 = vector.broadcast %cst_62 : f32 to vector<1x256xf32>
    %162 = arith.addf %159, %161 : vector<1x256xf32>
    %163 = math.rsqrt %162 : vector<1x256xf32>
    %164 = arith.mulf %160, %163 : vector<1x256xf32>
    %c1_63 = arith.constant 1 : index
    %c512_64 = arith.constant 512 : index
    %165 = vector.load %arg2[%c1_63, %c512_64] : memref<3x5504xf32, #tpu.memory_space<vmem>>, vector<1x256xf32>
    %166 = arith.mulf %150, %164 : vector<1x256xf32>
    %167 = arith.subf %165, %166 : vector<1x256xf32>
    %168 = vector.broadcast %164 : vector<1x256xf32> to vector<8x256xf32>
    %169 = arith.mulf %146, %168 : vector<8x256xf32>
    %170 = vector.broadcast %167 : vector<1x256xf32> to vector<8x256xf32>
    %171 = arith.addf %169, %170 : vector<8x256xf32>
    %cst_65 = arith.constant 0.000000e+00 : f32
    %172 = vector.broadcast %cst_65 : f32 to vector<8x256xf32>
    %173 = arith.maximumf %171, %172 : vector<8x256xf32>
    %c5_i32_66 = arith.constant 5 : i32
    %174 = tpu.memref_slice %arg28[%c5_i32_66] : memref<12x!tpu.dma_semaphore, #tpu.memory_space<semaphore_mem>> -> memref<1x!tpu.dma_semaphore, #tpu.memory_space<semaphore_mem>>
    %175 = tpu.memref_squeeze %174 : memref<1x!tpu.dma_semaphore, #tpu.memory_space<semaphore_mem>> -> memref<!tpu.dma_semaphore, #tpu.memory_space<semaphore_mem>>
    tpu.wait_dma2 semaphore(%175 : memref<!tpu.dma_semaphore, #tpu.memory_space<semaphore_mem>>) src(%arg8 : memref<256x512xbf16, #tpu.memory_space<any>>) dst(%arg21 : memref<256x512xbf16, #tpu.memory_space<vmem>>)
    %176 = arith.truncf %173 : vector<8x256xf32> to vector<8x256xbf16>
    %c0_67 = arith.constant 0 : index
    %c0_68 = arith.constant 0 : index
    %177 = vector.load %arg21[%c0_67, %c0_68] : memref<256x512xbf16, #tpu.memory_space<vmem>>, vector<256x512xbf16>
    %cst_69 = arith.constant dense<0.000000e+00> : vector<8x512xf32>
    %178 = tpu.matmul %176, %177, %cst_69 {dimension_numbers = #tpu.dot_dimension_numbers<[1], [0], [0], [1], [0, 0, 1, 1], [], []>} : vector<8x256xbf16>, vector<256x512xbf16>, vector<8x512xf32> -> vector<8x512xf32>
    %c1_70 = arith.constant 1 : index
    %c768_71 = arith.constant 768 : index
    %179 = vector.load %arg2[%c1_70, %c768_71] : memref<3x5504xf32, #tpu.memory_space<vmem>>, vector<1x512xf32>
    %180 = vector.broadcast %179 : vector<1x512xf32> to vector<8x512xf32>
    %181 = arith.addf %178, %180 : vector<8x512xf32>
    %cst_72 = arith.constant dense<0.000000e+00> : vector<512xf32>
    %182 = vector.multi_reduction <add>, %181, %cst_72 [0] : vector<8x512xf32> to vector<512xf32>
    %183 = vector.shape_cast %182 : vector<512xf32> to vector<1x512xf32>
    %cst_73 = arith.constant 8.000000e+00 : f32
    %184 = vector.broadcast %cst_73 : f32 to vector<1x512xf32>
    %185 = arith.divf %183, %184 : vector<1x512xf32>
    %186 = arith.mulf %181, %181 : vector<8x512xf32>
    %cst_74 = arith.constant dense<0.000000e+00> : vector<512xf32>
    %187 = vector.multi_reduction <add>, %186, %cst_74 [0] : vector<8x512xf32> to vector<512xf32>
    %188 = vector.shape_cast %187 : vector<512xf32> to vector<1x512xf32>
    %cst_75 = arith.constant 8.000000e+00 : f32
    %189 = vector.broadcast %cst_75 : f32 to vector<1x512xf32>
    %190 = arith.divf %188, %189 : vector<1x512xf32>
    %191 = arith.mulf %185, %185 : vector<1x512xf32>
    %192 = arith.subf %190, %191 : vector<1x512xf32>
    %cst_76 = arith.constant 0.000000e+00 : f32
    %193 = vector.broadcast %cst_76 : f32 to vector<1x512xf32>
    %194 = arith.maximumf %192, %193 : vector<1x512xf32>
    %c1_77 = arith.constant 1 : index
    %c1280_78 = arith.constant 1280 : index
    %195 = vector.load %arg2[%c1_77, %c1280_78] : memref<3x5504xf32, #tpu.memory_space<vmem>>, vector<1x512xf32>
    %cst_79 = arith.constant 9.99999974E-6 : f32
    %196 = vector.broadcast %cst_79 : f32 to vector<1x512xf32>
    %197 = arith.addf %194, %196 : vector<1x512xf32>
    %198 = math.rsqrt %197 : vector<1x512xf32>
    %199 = arith.mulf %195, %198 : vector<1x512xf32>
    %c1_80 = arith.constant 1 : index
    %c1792_81 = arith.constant 1792 : index
    %200 = vector.load %arg2[%c1_80, %c1792_81] : memref<3x5504xf32, #tpu.memory_space<vmem>>, vector<1x512xf32>
    %201 = arith.mulf %185, %199 : vector<1x512xf32>
    %202 = arith.subf %200, %201 : vector<1x512xf32>
    %203 = vector.broadcast %199 : vector<1x512xf32> to vector<8x512xf32>
    %204 = arith.mulf %181, %203 : vector<8x512xf32>
    %205 = vector.broadcast %202 : vector<1x512xf32> to vector<8x512xf32>
    %206 = arith.addf %204, %205 : vector<8x512xf32>
    %cst_82 = arith.constant 0.000000e+00 : f32
    %207 = vector.broadcast %cst_82 : f32 to vector<8x512xf32>
    %208 = arith.maximumf %206, %207 : vector<8x512xf32>
    %c6_i32_83 = arith.constant 6 : i32
    %209 = tpu.memref_slice %arg28[%c6_i32_83] : memref<12x!tpu.dma_semaphore, #tpu.memory_space<semaphore_mem>> -> memref<1x!tpu.dma_semaphore, #tpu.memory_space<semaphore_mem>>
    %210 = tpu.memref_squeeze %209 : memref<1x!tpu.dma_semaphore, #tpu.memory_space<semaphore_mem>> -> memref<!tpu.dma_semaphore, #tpu.memory_space<semaphore_mem>>
    tpu.wait_dma2 semaphore(%210 : memref<!tpu.dma_semaphore, #tpu.memory_space<semaphore_mem>>) src(%arg9 : memref<512x1024xbf16, #tpu.memory_space<any>>) dst(%arg22 : memref<512x1024xbf16, #tpu.memory_space<vmem>>)
    %211 = arith.truncf %208 : vector<8x512xf32> to vector<8x512xbf16>
    %c0_84 = arith.constant 0 : index
    %c0_85 = arith.constant 0 : index
    %212 = vector.load %arg22[%c0_84, %c0_85] : memref<512x1024xbf16, #tpu.memory_space<vmem>>, vector<512x1024xbf16>
    %cst_86 = arith.constant dense<0.000000e+00> : vector<8x1024xf32>
    %213 = tpu.matmul %211, %212, %cst_86 {dimension_numbers = #tpu.dot_dimension_numbers<[1], [0], [0], [1], [0, 0, 1, 1], [], []>} : vector<8x512xbf16>, vector<512x1024xbf16>, vector<8x1024xf32> -> vector<8x1024xf32>
    %c1_87 = arith.constant 1 : index
    %c2304_88 = arith.constant 2304 : index
    %214 = vector.load %arg2[%c1_87, %c2304_88] : memref<3x5504xf32, #tpu.memory_space<vmem>>, vector<1x1024xf32>
    %215 = vector.broadcast %214 : vector<1x1024xf32> to vector<8x1024xf32>
    %216 = arith.addf %213, %215 : vector<8x1024xf32>
    %cst_89 = arith.constant dense<0.000000e+00> : vector<1024xf32>
    %217 = vector.multi_reduction <add>, %216, %cst_89 [0] : vector<8x1024xf32> to vector<1024xf32>
    %218 = vector.shape_cast %217 : vector<1024xf32> to vector<1x1024xf32>
    %cst_90 = arith.constant 8.000000e+00 : f32
    %219 = vector.broadcast %cst_90 : f32 to vector<1x1024xf32>
    %220 = arith.divf %218, %219 : vector<1x1024xf32>
    %221 = arith.mulf %216, %216 : vector<8x1024xf32>
    %cst_91 = arith.constant dense<0.000000e+00> : vector<1024xf32>
    %222 = vector.multi_reduction <add>, %221, %cst_91 [0] : vector<8x1024xf32> to vector<1024xf32>
    %223 = vector.shape_cast %222 : vector<1024xf32> to vector<1x1024xf32>
    %cst_92 = arith.constant 8.000000e+00 : f32
    %224 = vector.broadcast %cst_92 : f32 to vector<1x1024xf32>
    %225 = arith.divf %223, %224 : vector<1x1024xf32>
    %226 = arith.mulf %220, %220 : vector<1x1024xf32>
    %227 = arith.subf %225, %226 : vector<1x1024xf32>
    %cst_93 = arith.constant 0.000000e+00 : f32
    %228 = vector.broadcast %cst_93 : f32 to vector<1x1024xf32>
    %229 = arith.maximumf %227, %228 : vector<1x1024xf32>
    %c1_94 = arith.constant 1 : index
    %c3328_95 = arith.constant 3328 : index
    %230 = vector.load %arg2[%c1_94, %c3328_95] : memref<3x5504xf32, #tpu.memory_space<vmem>>, vector<1x1024xf32>
    %cst_96 = arith.constant 9.99999974E-6 : f32
    %231 = vector.broadcast %cst_96 : f32 to vector<1x1024xf32>
    %232 = arith.addf %229, %231 : vector<1x1024xf32>
    %233 = math.rsqrt %232 : vector<1x1024xf32>
    %234 = arith.mulf %230, %233 : vector<1x1024xf32>
    %c1_97 = arith.constant 1 : index
    %c4352_98 = arith.constant 4352 : index
    %235 = vector.load %arg2[%c1_97, %c4352_98] : memref<3x5504xf32, #tpu.memory_space<vmem>>, vector<1x1024xf32>
    %236 = arith.mulf %220, %234 : vector<1x1024xf32>
    %237 = arith.subf %235, %236 : vector<1x1024xf32>
    %238 = vector.broadcast %234 : vector<1x1024xf32> to vector<8x1024xf32>
    %239 = arith.mulf %216, %238 : vector<8x1024xf32>
    %240 = vector.broadcast %237 : vector<1x1024xf32> to vector<8x1024xf32>
    %241 = arith.addf %239, %240 : vector<8x1024xf32>
    %cst_99 = arith.constant 0.000000e+00 : f32
    %242 = vector.broadcast %cst_99 : f32 to vector<8x1024xf32>
    %243 = arith.maximumf %241, %242 : vector<8x1024xf32>
    %c7_i32_100 = arith.constant 7 : i32
    %244 = tpu.memref_slice %arg28[%c7_i32_100] : memref<12x!tpu.dma_semaphore, #tpu.memory_space<semaphore_mem>> -> memref<1x!tpu.dma_semaphore, #tpu.memory_space<semaphore_mem>>
    %245 = tpu.memref_squeeze %244 : memref<1x!tpu.dma_semaphore, #tpu.memory_space<semaphore_mem>> -> memref<!tpu.dma_semaphore, #tpu.memory_space<semaphore_mem>>
    tpu.wait_dma2 semaphore(%245 : memref<!tpu.dma_semaphore, #tpu.memory_space<semaphore_mem>>) src(%arg10 : memref<1024x64xbf16, #tpu.memory_space<any>>) dst(%arg23 : memref<1024x64xbf16, #tpu.memory_space<vmem>>)
    %246 = arith.truncf %243 : vector<8x1024xf32> to vector<8x1024xbf16>
    %c0_101 = arith.constant 0 : index
    %c0_102 = arith.constant 0 : index
    %247 = vector.load %arg23[%c0_101, %c0_102] : memref<1024x64xbf16, #tpu.memory_space<vmem>>, vector<1024x64xbf16>
    %cst_103 = arith.constant dense<0.000000e+00> : vector<8x64xf32>
    %248 = tpu.matmul %246, %247, %cst_103 {dimension_numbers = #tpu.dot_dimension_numbers<[1], [0], [0], [1], [0, 0, 1, 1], [], []>} : vector<8x1024xbf16>, vector<1024x64xbf16>, vector<8x64xf32> -> vector<8x64xf32>
    %c1_104 = arith.constant 1 : index
    %c5376_105 = arith.constant 5376 : index
    %249 = vector.load %arg2[%c1_104, %c5376_105] : memref<3x5504xf32, #tpu.memory_space<vmem>>, vector<1x64xf32>
    %250 = vector.broadcast %249 : vector<1x64xf32> to vector<8x64xf32>
    %251 = arith.addf %248, %250 : vector<8x64xf32>
    %252 = tpu.concatenate %137, %251 in 1 : vector<8x64xf32>, vector<8x64xf32> -> vector<8x128xf32>
    %c8_i32_106 = arith.constant 8 : i32
    %253 = tpu.memref_slice %arg28[%c8_i32_106] : memref<12x!tpu.dma_semaphore, #tpu.memory_space<semaphore_mem>> -> memref<1x!tpu.dma_semaphore, #tpu.memory_space<semaphore_mem>>
    %254 = tpu.memref_squeeze %253 : memref<1x!tpu.dma_semaphore, #tpu.memory_space<semaphore_mem>> -> memref<!tpu.dma_semaphore, #tpu.memory_space<semaphore_mem>>
    tpu.wait_dma2 semaphore(%254 : memref<!tpu.dma_semaphore, #tpu.memory_space<semaphore_mem>>) src(%arg11 : memref<128x1024xbf16, #tpu.memory_space<any>>) dst(%arg24 : memref<128x1024xbf16, #tpu.memory_space<vmem>>)
    %255 = arith.truncf %252 : vector<8x128xf32> to vector<8x128xbf16>
    %c0_107 = arith.constant 0 : index
    %c0_108 = arith.constant 0 : index
    %256 = vector.load %arg24[%c0_107, %c0_108] : memref<128x1024xbf16, #tpu.memory_space<vmem>>, vector<128x1024xbf16>
    %cst_109 = arith.constant dense<0.000000e+00> : vector<8x1024xf32>
    %257 = tpu.matmul %255, %256, %cst_109 {dimension_numbers = #tpu.dot_dimension_numbers<[1], [0], [0], [1], [0, 0, 1, 1], [], []>} : vector<8x128xbf16>, vector<128x1024xbf16>, vector<8x1024xf32> -> vector<8x1024xf32>
    %c2 = arith.constant 2 : index
    %c0_110 = arith.constant 0 : index
    %258 = vector.load %arg2[%c2, %c0_110] : memref<3x5504xf32, #tpu.memory_space<vmem>>, vector<1x1024xf32>
    %259 = vector.broadcast %258 : vector<1x1024xf32> to vector<8x1024xf32>
    %260 = arith.addf %257, %259 : vector<8x1024xf32>
    %cst_111 = arith.constant dense<0.000000e+00> : vector<1024xf32>
    %261 = vector.multi_reduction <add>, %260, %cst_111 [0] : vector<8x1024xf32> to vector<1024xf32>
    %262 = vector.shape_cast %261 : vector<1024xf32> to vector<1x1024xf32>
    %cst_112 = arith.constant 8.000000e+00 : f32
    %263 = vector.broadcast %cst_112 : f32 to vector<1x1024xf32>
    %264 = arith.divf %262, %263 : vector<1x1024xf32>
    %265 = arith.mulf %260, %260 : vector<8x1024xf32>
    %cst_113 = arith.constant dense<0.000000e+00> : vector<1024xf32>
    %266 = vector.multi_reduction <add>, %265, %cst_113 [0] : vector<8x1024xf32> to vector<1024xf32>
    %267 = vector.shape_cast %266 : vector<1024xf32> to vector<1x1024xf32>
    %cst_114 = arith.constant 8.000000e+00 : f32
    %268 = vector.broadcast %cst_114 : f32 to vector<1x1024xf32>
    %269 = arith.divf %267, %268 : vector<1x1024xf32>
    %270 = arith.mulf %264, %264 : vector<1x1024xf32>
    %271 = arith.subf %269, %270 : vector<1x1024xf32>
    %cst_115 = arith.constant 0.000000e+00 : f32
    %272 = vector.broadcast %cst_115 : f32 to vector<1x1024xf32>
    %273 = arith.maximumf %271, %272 : vector<1x1024xf32>
    %c2_116 = arith.constant 2 : index
    %c1024 = arith.constant 1024 : index
    %274 = vector.load %arg2[%c2_116, %c1024] : memref<3x5504xf32, #tpu.memory_space<vmem>>, vector<1x1024xf32>
    %cst_117 = arith.constant 9.99999974E-6 : f32
    %275 = vector.broadcast %cst_117 : f32 to vector<1x1024xf32>
    %276 = arith.addf %273, %275 : vector<1x1024xf32>
    %277 = math.rsqrt %276 : vector<1x1024xf32>
    %278 = arith.mulf %274, %277 : vector<1x1024xf32>
    %c2_118 = arith.constant 2 : index
    %c2048 = arith.constant 2048 : index
    %279 = vector.load %arg2[%c2_118, %c2048] : memref<3x5504xf32, #tpu.memory_space<vmem>>, vector<1x1024xf32>
    %280 = arith.mulf %264, %278 : vector<1x1024xf32>
    %281 = arith.subf %279, %280 : vector<1x1024xf32>
    %282 = vector.broadcast %278 : vector<1x1024xf32> to vector<8x1024xf32>
    %283 = arith.mulf %260, %282 : vector<8x1024xf32>
    %284 = vector.broadcast %281 : vector<1x1024xf32> to vector<8x1024xf32>
    %285 = arith.addf %283, %284 : vector<8x1024xf32>
    %cst_119 = arith.constant 0.000000e+00 : f32
    %286 = vector.broadcast %cst_119 : f32 to vector<8x1024xf32>
    %287 = arith.maximumf %285, %286 : vector<8x1024xf32>
    %c9_i32_120 = arith.constant 9 : i32
    %288 = tpu.memref_slice %arg28[%c9_i32_120] : memref<12x!tpu.dma_semaphore, #tpu.memory_space<semaphore_mem>> -> memref<1x!tpu.dma_semaphore, #tpu.memory_space<semaphore_mem>>
    %289 = tpu.memref_squeeze %288 : memref<1x!tpu.dma_semaphore, #tpu.memory_space<semaphore_mem>> -> memref<!tpu.dma_semaphore, #tpu.memory_space<semaphore_mem>>
    tpu.wait_dma2 semaphore(%289 : memref<!tpu.dma_semaphore, #tpu.memory_space<semaphore_mem>>) src(%arg12 : memref<1024x512xbf16, #tpu.memory_space<any>>) dst(%arg25 : memref<1024x512xbf16, #tpu.memory_space<vmem>>)
    %290 = arith.truncf %287 : vector<8x1024xf32> to vector<8x1024xbf16>
    %c0_121 = arith.constant 0 : index
    %c0_122 = arith.constant 0 : index
    %291 = vector.load %arg25[%c0_121, %c0_122] : memref<1024x512xbf16, #tpu.memory_space<vmem>>, vector<1024x512xbf16>
    %cst_123 = arith.constant dense<0.000000e+00> : vector<8x512xf32>
    %292 = tpu.matmul %290, %291, %cst_123 {dimension_numbers = #tpu.dot_dimension_numbers<[1], [0], [0], [1], [0, 0, 1, 1], [], []>} : vector<8x1024xbf16>, vector<1024x512xbf16>, vector<8x512xf32> -> vector<8x512xf32>
    %c2_124 = arith.constant 2 : index
    %c3072 = arith.constant 3072 : index
    %293 = vector.load %arg2[%c2_124, %c3072] : memref<3x5504xf32, #tpu.memory_space<vmem>>, vector<1x512xf32>
    %294 = vector.broadcast %293 : vector<1x512xf32> to vector<8x512xf32>
    %295 = arith.addf %292, %294 : vector<8x512xf32>
    %cst_125 = arith.constant dense<0.000000e+00> : vector<512xf32>
    %296 = vector.multi_reduction <add>, %295, %cst_125 [0] : vector<8x512xf32> to vector<512xf32>
    %297 = vector.shape_cast %296 : vector<512xf32> to vector<1x512xf32>
    %cst_126 = arith.constant 8.000000e+00 : f32
    %298 = vector.broadcast %cst_126 : f32 to vector<1x512xf32>
    %299 = arith.divf %297, %298 : vector<1x512xf32>
    %300 = arith.mulf %295, %295 : vector<8x512xf32>
    %cst_127 = arith.constant dense<0.000000e+00> : vector<512xf32>
    %301 = vector.multi_reduction <add>, %300, %cst_127 [0] : vector<8x512xf32> to vector<512xf32>
    %302 = vector.shape_cast %301 : vector<512xf32> to vector<1x512xf32>
    %cst_128 = arith.constant 8.000000e+00 : f32
    %303 = vector.broadcast %cst_128 : f32 to vector<1x512xf32>
    %304 = arith.divf %302, %303 : vector<1x512xf32>
    %305 = arith.mulf %299, %299 : vector<1x512xf32>
    %306 = arith.subf %304, %305 : vector<1x512xf32>
    %cst_129 = arith.constant 0.000000e+00 : f32
    %307 = vector.broadcast %cst_129 : f32 to vector<1x512xf32>
    %308 = arith.maximumf %306, %307 : vector<1x512xf32>
    %c2_130 = arith.constant 2 : index
    %c3584 = arith.constant 3584 : index
    %309 = vector.load %arg2[%c2_130, %c3584] : memref<3x5504xf32, #tpu.memory_space<vmem>>, vector<1x512xf32>
    %cst_131 = arith.constant 9.99999974E-6 : f32
    %310 = vector.broadcast %cst_131 : f32 to vector<1x512xf32>
    %311 = arith.addf %308, %310 : vector<1x512xf32>
    %312 = math.rsqrt %311 : vector<1x512xf32>
    %313 = arith.mulf %309, %312 : vector<1x512xf32>
    %c2_132 = arith.constant 2 : index
    %c4096 = arith.constant 4096 : index
    %314 = vector.load %arg2[%c2_132, %c4096] : memref<3x5504xf32, #tpu.memory_space<vmem>>, vector<1x512xf32>
    %315 = arith.mulf %299, %313 : vector<1x512xf32>
    %316 = arith.subf %314, %315 : vector<1x512xf32>
    %317 = vector.broadcast %313 : vector<1x512xf32> to vector<8x512xf32>
    %318 = arith.mulf %295, %317 : vector<8x512xf32>
    %319 = vector.broadcast %316 : vector<1x512xf32> to vector<8x512xf32>
    %320 = arith.addf %318, %319 : vector<8x512xf32>
    %cst_133 = arith.constant 0.000000e+00 : f32
    %321 = vector.broadcast %cst_133 : f32 to vector<8x512xf32>
    %322 = arith.maximumf %320, %321 : vector<8x512xf32>
    %c10_i32_134 = arith.constant 10 : i32
    %323 = tpu.memref_slice %arg28[%c10_i32_134] : memref<12x!tpu.dma_semaphore, #tpu.memory_space<semaphore_mem>> -> memref<1x!tpu.dma_semaphore, #tpu.memory_space<semaphore_mem>>
    %324 = tpu.memref_squeeze %323 : memref<1x!tpu.dma_semaphore, #tpu.memory_space<semaphore_mem>> -> memref<!tpu.dma_semaphore, #tpu.memory_space<semaphore_mem>>
    tpu.wait_dma2 semaphore(%324 : memref<!tpu.dma_semaphore, #tpu.memory_space<semaphore_mem>>) src(%arg13 : memref<512x256xbf16, #tpu.memory_space<any>>) dst(%arg26 : memref<512x256xbf16, #tpu.memory_space<vmem>>)
    %325 = arith.truncf %322 : vector<8x512xf32> to vector<8x512xbf16>
    %c0_135 = arith.constant 0 : index
    %c0_136 = arith.constant 0 : index
    %326 = vector.load %arg26[%c0_135, %c0_136] : memref<512x256xbf16, #tpu.memory_space<vmem>>, vector<512x256xbf16>
    %cst_137 = arith.constant dense<0.000000e+00> : vector<8x256xf32>
    %327 = tpu.matmul %325, %326, %cst_137 {dimension_numbers = #tpu.dot_dimension_numbers<[1], [0], [0], [1], [0, 0, 1, 1], [], []>} : vector<8x512xbf16>, vector<512x256xbf16>, vector<8x256xf32> -> vector<8x256xf32>
    %c2_138 = arith.constant 2 : index
    %c4608 = arith.constant 4608 : index
    %328 = vector.load %arg2[%c2_138, %c4608] : memref<3x5504xf32, #tpu.memory_space<vmem>>, vector<1x256xf32>
    %329 = vector.broadcast %328 : vector<1x256xf32> to vector<8x256xf32>
    %330 = arith.addf %327, %329 : vector<8x256xf32>
    %cst_139 = arith.constant dense<0.000000e+00> : vector<256xf32>
    %331 = vector.multi_reduction <add>, %330, %cst_139 [0] : vector<8x256xf32> to vector<256xf32>
    %332 = vector.shape_cast %331 : vector<256xf32> to vector<1x256xf32>
    %cst_140 = arith.constant 8.000000e+00 : f32
    %333 = vector.broadcast %cst_140 : f32 to vector<1x256xf32>
    %334 = arith.divf %332, %333 : vector<1x256xf32>
    %335 = arith.mulf %330, %330 : vector<8x256xf32>
    %cst_141 = arith.constant dense<0.000000e+00> : vector<256xf32>
    %336 = vector.multi_reduction <add>, %335, %cst_141 [0] : vector<8x256xf32> to vector<256xf32>
    %337 = vector.shape_cast %336 : vector<256xf32> to vector<1x256xf32>
    %cst_142 = arith.constant 8.000000e+00 : f32
    %338 = vector.broadcast %cst_142 : f32 to vector<1x256xf32>
    %339 = arith.divf %337, %338 : vector<1x256xf32>
    %340 = arith.mulf %334, %334 : vector<1x256xf32>
    %341 = arith.subf %339, %340 : vector<1x256xf32>
    %cst_143 = arith.constant 0.000000e+00 : f32
    %342 = vector.broadcast %cst_143 : f32 to vector<1x256xf32>
    %343 = arith.maximumf %341, %342 : vector<1x256xf32>
    %c2_144 = arith.constant 2 : index
    %c4864 = arith.constant 4864 : index
    %344 = vector.load %arg2[%c2_144, %c4864] : memref<3x5504xf32, #tpu.memory_space<vmem>>, vector<1x256xf32>
    %cst_145 = arith.constant 9.99999974E-6 : f32
    %345 = vector.broadcast %cst_145 : f32 to vector<1x256xf32>
    %346 = arith.addf %343, %345 : vector<1x256xf32>
    %347 = math.rsqrt %346 : vector<1x256xf32>
    %348 = arith.mulf %344, %347 : vector<1x256xf32>
    %c2_146 = arith.constant 2 : index
    %c5120 = arith.constant 5120 : index
    %349 = vector.load %arg2[%c2_146, %c5120] : memref<3x5504xf32, #tpu.memory_space<vmem>>, vector<1x256xf32>
    %350 = arith.mulf %334, %348 : vector<1x256xf32>
    %351 = arith.subf %349, %350 : vector<1x256xf32>
    %352 = vector.broadcast %348 : vector<1x256xf32> to vector<8x256xf32>
    %353 = arith.mulf %330, %352 : vector<8x256xf32>
    %354 = vector.broadcast %351 : vector<1x256xf32> to vector<8x256xf32>
    %355 = arith.addf %353, %354 : vector<8x256xf32>
    %cst_147 = arith.constant 0.000000e+00 : f32
    %356 = vector.broadcast %cst_147 : f32 to vector<8x256xf32>
    %357 = arith.maximumf %355, %356 : vector<8x256xf32>
    %c11_i32_148 = arith.constant 11 : i32
    %358 = tpu.memref_slice %arg28[%c11_i32_148] : memref<12x!tpu.dma_semaphore, #tpu.memory_space<semaphore_mem>> -> memref<1x!tpu.dma_semaphore, #tpu.memory_space<semaphore_mem>>
    %359 = tpu.memref_squeeze %358 : memref<1x!tpu.dma_semaphore, #tpu.memory_space<semaphore_mem>> -> memref<!tpu.dma_semaphore, #tpu.memory_space<semaphore_mem>>
    tpu.wait_dma2 semaphore(%359 : memref<!tpu.dma_semaphore, #tpu.memory_space<semaphore_mem>>) src(%arg14 : memref<256x20xbf16, #tpu.memory_space<any>>) dst(%arg27 : memref<256x20xbf16, #tpu.memory_space<vmem>>)
    %360 = arith.truncf %357 : vector<8x256xf32> to vector<8x256xbf16>
    %c0_149 = arith.constant 0 : index
    %c0_150 = arith.constant 0 : index
    %361 = vector.load %arg27[%c0_149, %c0_150] : memref<256x20xbf16, #tpu.memory_space<vmem>>, vector<256x20xbf16>
    %cst_151 = arith.constant dense<0.000000e+00> : vector<8x20xf32>
    %362 = tpu.matmul %360, %361, %cst_151 {dimension_numbers = #tpu.dot_dimension_numbers<[1], [0], [0], [1], [0, 0, 1, 1], [], []>} : vector<8x256xbf16>, vector<256x20xbf16>, vector<8x20xf32> -> vector<8x20xf32>
    %c2_152 = arith.constant 2 : index
    %c5376_153 = arith.constant 5376 : index
    %363 = vector.load %arg2[%c2_152, %c5376_153] : memref<3x5504xf32, #tpu.memory_space<vmem>>, vector<1x20xf32>
    %364 = vector.broadcast %363 : vector<1x20xf32> to vector<8x20xf32>
    %365 = arith.addf %362, %364 : vector<8x20xf32>
    %c0_154 = arith.constant 0 : index
    %c0_155 = arith.constant 0 : index
    %366 = vector.load %arg15[%c0_154, %c0_155] : memref<8x20xf32, #tpu.memory_space<vmem>>, vector<8x20xf32>
    tpu.vector_store %arg15[%c0_154, %c0_155], %365 {strides = array<i32>} : memref<8x20xf32, #tpu.memory_space<vmem>>, vector<8x20xf32>,
    return
  }
}

</mosaic_0001>

<bundles_post_ra>
// kernel: tpu_custom_call.1
= control target key start
LH: loop header
LB: loop body
LE: loop exit
PB: predicated region body
PF: predicated region fallthrough
CT: control target
= control target key end

     0   :  { %20 = vsyncpa [#allocation16], 0  ;;  %s18046_s0 = inlined_call_operand.vmem [shape: f32[8,20], index: 0, kind: input, shape index: {}]   ;;  %s18047_s1 = inlined_call_operand.vmem [shape: f32[8,20], index: 1, kind: input, shape index: {}]   ;;  %s18048_s2 = inlined_call_operand.hbm [shape: f32[3,5504], index: 2, kind: input, shape index: {}]   ;;  %s18049_s3 = inlined_call_operand.vmem [shape: bf16[20,256], index: 3, kind: input, shape index: {}]   ;;  %s18050_s4 = inlined_call_operand.vmem [shape: bf16[256,512], index: 4, kind: input, shape index: {}]   ;;  %s18051_s5 = inlined_call_operand.hbm [shape: bf16[512,1024], index: 5, kind: input, shape index: {}]   ;;  %s18052_s6 = inlined_call_operand.vmem [shape: bf16[1024,64], index: 6, kind: input, shape index: {}]   ;;  %s18053_s7 = inlined_call_operand.vmem [shape: bf16[20,256], index: 7, kind: input, shape index: {}]   ;;  %s18054_s8 = inlined_call_operand.vmem [shape: bf16[256,512], index: 8, kind: input, shape index: {}]   ;;  %s18055_s9 = inlined_call_operand.hbm [shape: bf16[512,1024], index: 9, kind: input, shape index: {}]   ;;  %s18056_s10 = inlined_call_operand.vmem [shape: bf16[1024,64], index: 10, kind: input, shape index: {}]   ;;  %s18057_s11 = inlined_call_operand.vmem [shape: bf16[128,1024], index: 11, kind: input, shape index: {}]   ;;  %s18058_s12 = inlined_call_operand.hbm [shape: bf16[1024,512], index: 12, kind: input, shape index: {}]   ;;  %s18059_s13 = inlined_call_operand.hbm [shape: bf16[512,256], index: 13, kind: input, shape index: {}]   ;;  %s18060_s14 = inlined_call_operand.vmem [shape: bf16[256,20], index: 14, kind: input, shape index: {}]   ;;  %s18061_s15 = inlined_call_operand.hbm [shape: f32[8,20], index: 15, kind: output, shape index: {}]  }
   0x1   :  { %21 = vsyncpa [#allocation17], 0  ;;  %s15198_s18 = smov [#allocation15]  }
   0x2   :  { %s32_s19 = sshll.u32 %s15198_s18, 4  ;;  %s33_s19 = int_to_ptr.vmem [resolvable:$true] %s32_s19 }
   0x3   :  { %s15058_s20 = scalar_lea.vmem %s33_s19, 2752  ;;  %p15063_p1 = scmp.lt.s32.totalorder %s33_s19, %s33_s19 }
   0x4   :  { %p15059_p0 = scmp.ne.s32.totalorder %s33_s19, %s15058_s20  ;;  %p15064_p2 = scmp.lt.s32.totalorder %s15058_s20, %s15058_s20 }
   0x6   :  { %p15065_p3 = por %p15064_p2, %p15063_p1 }
   0x8   :  { %p15066_p4 = pnand %p15065_p3, %p15059_p0 }
   0xa   :  { %15069 = shalt.err (!%p15066_p4)
}
   0xb   :  { %35 = dma.hbm_to_vmem [thread:$0]  %s18048_s2, 2752, %s33_s19, [#allocation16]  }
   0xc   :  { %15170 = dma.done.wait [#allocation16], 2752  }
   0xd   :  { %15171 = vsyncadd [#allocation16], 4294964544  ;;  %v73_v0 = vld [vmem:[%s18049_s3] sm:$0xff]  ;;  %v75_v1 = vld [vmem:[%s18049_s3 + $0x8] sm:$0xff] }
   0xe   :  { %v77_v2 = vld [vmem:[%s18049_s3 + $0x10] sm:$0xff]  ;;  %74 = vst [vmem:[#allocation2 + $0x10] sm:$0xff] %v73_v0  ;;  %76 = vst [vmem:[#allocation2] sm:$0xff] %v75_v1 }
   0xf   :  { %78 = vst [vmem:[#allocation2 + $0x8] sm:$0xff] %v77_v2 }
  0x10   :  { %86 = vsyncadd [#allocation14], 384  ;;  %v15302_v3 = vld [vmem:[%s18050_s4] sm:$0xff]  ;;  %v15307_v4 = vld [vmem:[%s18050_s4 + $0x8] sm:$0xff] }
  0x11   :  { %v15312_v5 = vld [vmem:[%s18050_s4 + $0x10] sm:$0xff]  ;;  %v15317_v6 = vld [vmem:[%s18050_s4 + $0x18] sm:$0xff]  ;;  %v15322_v7 = vld [vmem:[%s18050_s4 + $0x20] sm:$0xff] }
  0x12   :  { %v15327_v8 = vld [vmem:[%s18050_s4 + $0x28] sm:$0xff]  ;;  %v15332_v9 = vld [vmem:[%s18050_s4 + $0x30] sm:$0xff]  ;;  %v15337_v10 = vld [vmem:[%s18050_s4 + $0x38] sm:$0xff] }
  0x13   :  { %v15342_v11 = vld [vmem:[%s18050_s4 + $0x40] sm:$0xff]  ;;  %v15347_v12 = vld [vmem:[%s18050_s4 + $0x48] sm:$0xff]  ;;  %v15352_v13 = vld [vmem:[%s18050_s4 + $0x50] sm:$0xff] }
  0x14   :  { %v15357_v14 = vld [vmem:[%s18050_s4 + $0x58] sm:$0xff]  ;;  %v15362_v15 = vld [vmem:[%s18050_s4 + $0x60] sm:$0xff]  ;;  %v15367_v16 = vld [vmem:[%s18050_s4 + $0x68] sm:$0xff] }
  0x15   :  { %v15372_v17 = vld [vmem:[%s18050_s4 + $0x70] sm:$0xff]  ;;  %v15377_v18 = vld [vmem:[%s18050_s4 + $0x78] sm:$0xff]  ;;  %v15382_v19 = vld [vmem:[%s18050_s4 + $0x80] sm:$0xff] }
  0x16   :  { %v15387_v20 = vld [vmem:[%s18050_s4 + $0x88] sm:$0xff]  ;;  %v15392_v21 = vld [vmem:[%s18050_s4 + $0x90] sm:$0xff]  ;;  %v15397_v22 = vld [vmem:[%s18050_s4 + $0x98] sm:$0xff] }
  0x17   :  { %v15402_v23 = vld [vmem:[%s18050_s4 + $0xa0] sm:$0xff]  ;;  %v15407_v24 = vld [vmem:[%s18050_s4 + $0xa8] sm:$0xff]  ;;  %v15412_v25 = vld [vmem:[%s18050_s4 + $0xb0] sm:$0xff] }
  0x18   :  { %v15417_v26 = vld [vmem:[%s18050_s4 + $0xb8] sm:$0xff]  ;;  %v15422_v27 = vld [vmem:[%s18050_s4 + $0xc0] sm:$0xff]  ;;  %v15427_v28 = vld [vmem:[%s18050_s4 + $0xc8] sm:$0xff] }
  0x19   :  { %v15432_v29 = vld [vmem:[%s18050_s4 + $0xd0] sm:$0xff]  ;;  %v15437_v30 = vld [vmem:[%s18050_s4 + $0xd8] sm:$0xff]  ;;  %v15442_v31 = vld [vmem:[%s18050_s4 + $0xe0] sm:$0xff] }
  0x1a   :  { %v15447_v32 = vld [vmem:[%s18050_s4 + $0xe8] sm:$0xff]  ;;  %v15452_v33 = vld [vmem:[%s18050_s4 + $0xf0] sm:$0xff]  ;;  %v15457_v34 = vld [vmem:[%s18050_s4 + $0xf8] sm:$0xff] }
  0x1b   :  { %v15462_v35 = vld [vmem:[%s18050_s4 + $0x100] sm:$0xff]  ;;  %v15467_v36 = vld [vmem:[%s18050_s4 + $0x108] sm:$0xff]  ;;  %v15472_v37 = vld [vmem:[%s18050_s4 + $0x110] sm:$0xff] }
  0x1c   :  { %18224 = vst [vmem:[#allocation51_spill] sm:$0xff] %v15462_v35  ;;  %18225 = vst [vmem:[#allocation52_spill] sm:$0xff] %v15467_v36  ;;  %v15477_v38 = vld [vmem:[%s18050_s4 + $0x118] sm:$0xff]  ;;  %v15482_v39 = vld [vmem:[%s18050_s4 + $0x120] sm:$0xff] }
  0x1d   :  { %18226 = vst [vmem:[#allocation53_spill] sm:$0xff] %v15472_v37  ;;  %18227 = vst [vmem:[#allocation54_spill] sm:$0xff] %v15477_v38  ;;  %v15487_v40 = vld [vmem:[%s18050_s4 + $0x128] sm:$0xff]  ;;  %v15492_v41 = vld [vmem:[%s18050_s4 + $0x130] sm:$0xff] }
  0x1e   :  { %18228 = vst [vmem:[#allocation55_spill] sm:$0xff] %v15482_v39  ;;  %18229 = vst [vmem:[#allocation56_spill] sm:$0xff] %v15487_v40  ;;  %v15497_v42 = vld [vmem:[%s18050_s4 + $0x138] sm:$0xff]  ;;  %v15502_v43 = vld [vmem:[%s18050_s4 + $0x140] sm:$0xff] }
  0x1f   :  { %18230 = vst [vmem:[#allocation57_spill] sm:$0xff] %v15492_v41  ;;  %18231 = vst [vmem:[#allocation58_spill] sm:$0xff] %v15497_v42  ;;  %v15507_v44 = vld [vmem:[%s18050_s4 + $0x148] sm:$0xff]  ;;  %v15512_v45 = vld [vmem:[%s18050_s4 + $0x150] sm:$0xff] }
  0x20   :  { %18232 = vst [vmem:[#allocation59_spill] sm:$0xff] %v15502_v43  ;;  %18233 = vst [vmem:[#allocation60_spill] sm:$0xff] %v15507_v44  ;;  %v15517_v46 = vld [vmem:[%s18050_s4 + $0x158] sm:$0xff]  ;;  %v15522_v47 = vld [vmem:[%s18050_s4 + $0x160] sm:$0xff] }
  0x21   :  { %18234 = vst [vmem:[#allocation61_spill] sm:$0xff] %v15512_v45  ;;  %18235 = vst [vmem:[#allocation62_spill] sm:$0xff] %v15517_v46  ;;  %v15527_v48 = vld [vmem:[%s18050_s4 + $0x168] sm:$0xff]  ;;  %v15532_v49 = vld [vmem:[%s18050_s4 + $0x170] sm:$0xff] }
  0x22   :  { %18236 = vst [vmem:[#allocation63_spill] sm:$0xff] %v15522_v47  ;;  %18237 = vst [vmem:[#allocation64_spill] sm:$0xff] %v15527_v48  ;;  %v15537_v50 = vld [vmem:[%s18050_s4 + $0x178] sm:$0xff]  ;;  %v15542_v51 = vld [vmem:[%s18050_s4 + $0x180] sm:$0xff] }
  0x23   :  { %18238 = vst [vmem:[#allocation65_spill] sm:$0xff] %v15532_v49  ;;  %18239 = vst [vmem:[#allocation66_spill] sm:$0xff] %v15537_v50  ;;  %v15547_v52 = vld [vmem:[%s18050_s4 + $0x188] sm:$0xff]  ;;  %v15552_v53 = vld [vmem:[%s18050_s4 + $0x190] sm:$0xff] }
  0x24   :  { %18240 = vst [vmem:[#allocation67_spill] sm:$0xff] %v15542_v51  ;;  %18241 = vst [vmem:[#allocation68_spill] sm:$0xff] %v15547_v52  ;;  %v15557_v54 = vld [vmem:[%s18050_s4 + $0x198] sm:$0xff]  ;;  %v15562_v55 = vld [vmem:[%s18050_s4 + $0x1a0] sm:$0xff] }
  0x25   :  { %18242 = vst [vmem:[#allocation69_spill] sm:$0xff] %v15552_v53  ;;  %18243 = vst [vmem:[#allocation70_spill] sm:$0xff] %v15557_v54  ;;  %v15567_v56 = vld [vmem:[%s18050_s4 + $0x1a8] sm:$0xff]  ;;  %v15572_v57 = vld [vmem:[%s18050_s4 + $0x1b0] sm:$0xff] }
  0x26   :  { %18244 = vst [vmem:[#allocation71_spill] sm:$0xff] %v15562_v55  ;;  %18245 = vst [vmem:[#allocation72_spill] sm:$0xff] %v15567_v56  ;;  %v15577_v58 = vld [vmem:[%s18050_s4 + $0x1b8] sm:$0xff]  ;;  %v15582_v59 = vld [vmem:[%s18050_s4 + $0x1c0] sm:$0xff] }
  0x27   :  { %18246 = vst [vmem:[#allocation73_spill] sm:$0xff] %v15572_v57  ;;  %18247 = vst [vmem:[#allocation74_spill] sm:$0xff] %v15577_v58  ;;  %v15587_v60 = vld [vmem:[%s18050_s4 + $0x1c8] sm:$0xff]  ;;  %v15592_v61 = vld [vmem:[%s18050_s4 + $0x1d0] sm:$0xff] }
  0x28   :  { %18248 = vst [vmem:[#allocation75_spill] sm:$0xff] %v15582_v59  ;;  %18249 = vst [vmem:[#allocation76_spill] sm:$0xff] %v15587_v60  ;;  %v15597_v62 = vld [vmem:[%s18050_s4 + $0x1d8] sm:$0xff]  ;;  %v15602_v63 = vld [vmem:[%s18050_s4 + $0x1e0] sm:$0xff] }
  0x29   :  { %18250 = vst [vmem:[#allocation77_spill] sm:$0xff] %v15592_v61  ;;  %18251 = vst [vmem:[#allocation78_spill] sm:$0xff] %v15597_v62  ;;  %v15607_v0 = vld [vmem:[%s18050_s4 + $0x1e8] sm:$0xff]  ;;  %v15612_v1 = vld [vmem:[%s18050_s4 + $0x1f0] sm:$0xff] }
  0x2a   :  { %18252 = vst [vmem:[#allocation79_spill] sm:$0xff] %v15602_v63  ;;  %18253 = vst [vmem:[#allocation80_spill] sm:$0xff] %v15607_v0  ;;  %v15617_v2 = vld [vmem:[%s18050_s4 + $0x1f8] sm:$0xff] }
  0x2b   :  { %18254 = vst [vmem:[#allocation81_spill] sm:$0xff] %v15612_v1  ;;  %18255 = vst [vmem:[#allocation82_spill] sm:$0xff] %v15617_v2 }
  0x2c   :  { %256 = vsyncadd [#allocation14 + $0x1], 8192  ;;  %v303_v36 = vld [vmem:[%s18052_s6] sm:$0xff]  ;;  %v305_v38 = vld [vmem:[%s18052_s6 + $0x8] sm:$0xff]  ;;  %s15199_s25 = smov [#allocation4]  }
  0x2d   :  { %s265_s26 = sshll.u32 %s15199_s25, 4  ;;  %304 = vst [vmem:[#allocation5] sm:$0xff] %v303_v36  ;;  %306 = vst [vmem:[#allocation5 + $0x8] sm:$0xff] %v305_v38  ;;  %v307_v35 = vld [vmem:[%s18052_s6 + $0x10] sm:$0xff]  ;;  %v309_v37 = vld [vmem:[%s18052_s6 + $0x18] sm:$0xff]  ;;  %s266_s26 = int_to_ptr.vmem [resolvable:$true] %s265_s26 }
  0x2e   :  { %v311_v40 = vld [vmem:[%s18052_s6 + $0x20] sm:$0xff]  ;;  %308 = vst [vmem:[#allocation5 + $0x10] sm:$0xff] %v307_v35  ;;  %310 = vst [vmem:[#allocation5 + $0x18] sm:$0xff] %v309_v37  ;;  %v313_v36 = vld [vmem:[%s18052_s6 + $0x28] sm:$0xff]  ;;  %s15078_s21 = scalar_lea.vmem %s266_s26, 32768  ;;  %p15083_p6 = scmp.lt.s32.totalorder %s266_s26, %s266_s26 }
  0x2f   :  { %312 = vst [vmem:[#allocation5 + $0x20] sm:$0xff] %v311_v40  ;;  %v315_v38 = vld [vmem:[%s18052_s6 + $0x30] sm:$0xff]  ;;  %v317_v42 = vld [vmem:[%s18052_s6 + $0x38] sm:$0xff]  ;;  %p15079_p5 = scmp.ne.s32.totalorder %s266_s26, %s15078_s21  ;;  %p15084_p7 = scmp.lt.s32.totalorder %s15078_s21, %s15078_s21 }
  0x31   :  { %p15085_p8 = por %p15084_p7, %p15083_p6 }
  0x33   :  { %p15086_p9 = pnand %p15085_p8, %p15079_p5 }
  0x35   :  { %15089 = shalt.err (!%p15086_p9)  }
  0x36   :  { %268 = dma.hbm_to_vmem [thread:$0]  %s18051_s5, 32768, %s266_s26, [#allocation14 + $0x2]  ;;  %314 = vst [vmem:[#allocation5 + $0x28] sm:$0xff] %v313_v36  ;;  %316 = vst [vmem:[#allocation5 + $0x30] sm:$0xff] %v315_v38  ;;  %v319_v35 = vld [vmem:[%s18052_s6 + $0x40] sm:$0xff]  ;;  %v321_v37 = vld [vmem:[%s18052_s6 + $0x48] sm:$0xff] }
  0x37   :  { %318 = vst [vmem:[#allocation5 + $0x38] sm:$0xff] %v317_v42  ;;  %v323_v40 = vld [vmem:[%s18052_s6 + $0x50] sm:$0xff]  ;;  %320 = vst [vmem:[#allocation5 + $0x40] sm:$0xff] %v319_v35  ;;  %v325_v36 = vld [vmem:[%s18052_s6 + $0x58] sm:$0xff] }
  0x38   :  { %322 = vst [vmem:[#allocation5 + $0x48] sm:$0xff] %v321_v37  ;;  %324 = vst [vmem:[#allocation5 + $0x50] sm:$0xff] %v323_v40  ;;  %v327_v42 = vld [vmem:[%s18052_s6 + $0x60] sm:$0xff]  ;;  %v329_v38 = vld [vmem:[%s18052_s6 + $0x68] sm:$0xff] }
  0x39   :  { %326 = vst [vmem:[#allocation5 + $0x58] sm:$0xff] %v325_v36  ;;  %328 = vst [vmem:[#allocation5 + $0x60] sm:$0xff] %v327_v42  ;;  %v331_v35 = vld [vmem:[%s18052_s6 + $0x70] sm:$0xff]  ;;  %v333_v37 = vld [vmem:[%s18052_s6 + $0x78] sm:$0xff] }
  0x3a   :  { %330 = vst [vmem:[#allocation5 + $0x68] sm:$0xff] %v329_v38  ;;  %v335_v40 = vld [vmem:[%s18052_s6 + $0x80] sm:$0xff]  ;;  %332 = vst [vmem:[#allocation5 + $0x70] sm:$0xff] %v331_v35  ;;  %v337_v36 = vld [vmem:[%s18052_s6 + $0x88] sm:$0xff] }
  0x3b   :  { %334 = vst [vmem:[#allocation5 + $0x78] sm:$0xff] %v333_v37  ;;  %336 = vst [vmem:[#allocation5 + $0x80] sm:$0xff] %v335_v40  ;;  %v339_v42 = vld [vmem:[%s18052_s6 + $0x90] sm:$0xff]  ;;  %v341_v38 = vld [vmem:[%s18052_s6 + $0x98] sm:$0xff] }
  0x3c   :  { %338 = vst [vmem:[#allocation5 + $0x88] sm:$0xff] %v337_v36  ;;  %340 = vst [vmem:[#allocation5 + $0x90] sm:$0xff] %v339_v42  ;;  %v343_v35 = vld [vmem:[%s18052_s6 + $0xa0] sm:$0xff]  ;;  %v345_v37 = vld [vmem:[%s18052_s6 + $0xa8] sm:$0xff] }
  0x3d   :  { %342 = vst [vmem:[#allocation5 + $0x98] sm:$0xff] %v341_v38  ;;  %v347_v40 = vld [vmem:[%s18052_s6 + $0xb0] sm:$0xff]  ;;  %344 = vst [vmem:[#allocation5 + $0xa0] sm:$0xff] %v343_v35  ;;  %v349_v36 = vld [vmem:[%s18052_s6 + $0xb8] sm:$0xff] }
  0x3e   :  { %346 = vst [vmem:[#allocation5 + $0xa8] sm:$0xff] %v345_v37  ;;  %348 = vst [vmem:[#allocation5 + $0xb0] sm:$0xff] %v347_v40  ;;  %v351_v42 = vld [vmem:[%s18052_s6 + $0xc0] sm:$0xff]  ;;  %v353_v38 = vld [vmem:[%s18052_s6 + $0xc8] sm:$0xff] }
  0x3f   :  { %350 = vst [vmem:[#allocation5 + $0xb8] sm:$0xff] %v349_v36  ;;  %352 = vst [vmem:[#allocation5 + $0xc0] sm:$0xff] %v351_v42  ;;  %v355_v35 = vld [vmem:[%s18052_s6 + $0xd0] sm:$0xff]  ;;  %v357_v37 = vld [vmem:[%s18052_s6 + $0xd8] sm:$0xff] }
  0x40   :  { %354 = vst [vmem:[#allocation5 + $0xc8] sm:$0xff] %v353_v38  ;;  %v359_v40 = vld [vmem:[%s18052_s6 + $0xe0] sm:$0xff]  ;;  %356 = vst [vmem:[#allocation5 + $0xd0] sm:$0xff] %v355_v35  ;;  %v361_v36 = vld [vmem:[%s18052_s6 + $0xe8] sm:$0xff] }
  0x41   :  { %358 = vst [vmem:[#allocation5 + $0xd8] sm:$0xff] %v357_v37  ;;  %360 = vst [vmem:[#allocation5 + $0xe0] sm:$0xff] %v359_v40  ;;  %v363_v42 = vld [vmem:[%s18052_s6 + $0xf0] sm:$0xff]  ;;  %v365_v38 = vld [vmem:[%s18052_s6 + $0xf8] sm:$0xff] }
  0x42   :  { %362 = vst [vmem:[#allocation5 + $0xe8] sm:$0xff] %v361_v36  ;;  %364 = vst [vmem:[#allocation5 + $0xf0] sm:$0xff] %v363_v42  ;;  %v367_v35 = vld [vmem:[%s18052_s6 + $0x100] sm:$0xff]  ;;  %v369_v37 = vld [vmem:[%s18052_s6 + $0x108] sm:$0xff] }
  0x43   :  { %366 = vst [vmem:[#allocation5 + $0xf8] sm:$0xff] %v365_v38  ;;  %v371_v40 = vld [vmem:[%s18052_s6 + $0x110] sm:$0xff]  ;;  %368 = vst [vmem:[#allocation5 + $0x100] sm:$0xff] %v367_v35  ;;  %v373_v36 = vld [vmem:[%s18052_s6 + $0x118] sm:$0xff] }
  0x44   :  { %370 = vst [vmem:[#allocation5 + $0x108] sm:$0xff] %v369_v37  ;;  %372 = vst [vmem:[#allocation5 + $0x110] sm:$0xff] %v371_v40  ;;  %v375_v42 = vld [vmem:[%s18052_s6 + $0x120] sm:$0xff]  ;;  %v377_v38 = vld [vmem:[%s18052_s6 + $0x128] sm:$0xff] }
  0x45   :  { %374 = vst [vmem:[#allocation5 + $0x118] sm:$0xff] %v373_v36  ;;  %376 = vst [vmem:[#allocation5 + $0x120] sm:$0xff] %v375_v42  ;;  %v379_v35 = vld [vmem:[%s18052_s6 + $0x130] sm:$0xff]  ;;  %v381_v37 = vld [vmem:[%s18052_s6 + $0x138] sm:$0xff] }
  0x46   :  { %378 = vst [vmem:[#allocation5 + $0x128] sm:$0xff] %v377_v38  ;;  %v383_v40 = vld [vmem:[%s18052_s6 + $0x140] sm:$0xff]  ;;  %380 = vst [vmem:[#allocation5 + $0x130] sm:$0xff] %v379_v35  ;;  %v385_v36 = vld [vmem:[%s18052_s6 + $0x148] sm:$0xff] }
  0x47   :  { %382 = vst [vmem:[#allocation5 + $0x138] sm:$0xff] %v381_v37  ;;  %384 = vst [vmem:[#allocation5 + $0x140] sm:$0xff] %v383_v40  ;;  %v387_v42 = vld [vmem:[%s18052_s6 + $0x150] sm:$0xff]  ;;  %v389_v38 = vld [vmem:[%s18052_s6 + $0x158] sm:$0xff] }
  0x48   :  { %386 = vst [vmem:[#allocation5 + $0x148] sm:$0xff] %v385_v36  ;;  %388 = vst [vmem:[#allocation5 + $0x150] sm:$0xff] %v387_v42  ;;  %v391_v35 = vld [vmem:[%s18052_s6 + $0x160] sm:$0xff]  ;;  %v393_v37 = vld [vmem:[%s18052_s6 + $0x168] sm:$0xff] }
  0x49   :  { %390 = vst [vmem:[#allocation5 + $0x158] sm:$0xff] %v389_v38  ;;  %v395_v40 = vld [vmem:[%s18052_s6 + $0x170] sm:$0xff]  ;;  %392 = vst [vmem:[#allocation5 + $0x160] sm:$0xff] %v391_v35  ;;  %v397_v36 = vld [vmem:[%s18052_s6 + $0x178] sm:$0xff] }
  0x4a   :  { %394 = vst [vmem:[#allocation5 + $0x168] sm:$0xff] %v393_v37  ;;  %396 = vst [vmem:[#allocation5 + $0x170] sm:$0xff] %v395_v40  ;;  %v399_v42 = vld [vmem:[%s18052_s6 + $0x180] sm:$0xff]  ;;  %v401_v38 = vld [vmem:[%s18052_s6 + $0x188] sm:$0xff] }
  0x4b   :  { %398 = vst [vmem:[#allocation5 + $0x178] sm:$0xff] %v397_v36  ;;  %400 = vst [vmem:[#allocation5 + $0x180] sm:$0xff] %v399_v42  ;;  %v403_v35 = vld [vmem:[%s18052_s6 + $0x190] sm:$0xff]  ;;  %v405_v37 = vld [vmem:[%s18052_s6 + $0x198] sm:$0xff] }
  0x4c   :  { %402 = vst [vmem:[#allocation5 + $0x188] sm:$0xff] %v401_v38  ;;  %v407_v40 = vld [vmem:[%s18052_s6 + $0x1a0] sm:$0xff]  ;;  %404 = vst [vmem:[#allocation5 + $0x190] sm:$0xff] %v403_v35  ;;  %v409_v36 = vld [vmem:[%s18052_s6 + $0x1a8] sm:$0xff] }
  0x4d   :  { %406 = vst [vmem:[#allocation5 + $0x198] sm:$0xff] %v405_v37  ;;  %408 = vst [vmem:[#allocation5 + $0x1a0] sm:$0xff] %v407_v40  ;;  %v411_v42 = vld [vmem:[%s18052_s6 + $0x1b0] sm:$0xff]  ;;  %v413_v38 = vld [vmem:[%s18052_s6 + $0x1b8] sm:$0xff] }
  0x4e   :  { %410 = vst [vmem:[#allocation5 + $0x1a8] sm:$0xff] %v409_v36  ;;  %412 = vst [vmem:[#allocation5 + $0x1b0] sm:$0xff] %v411_v42  ;;  %v415_v35 = vld [vmem:[%s18052_s6 + $0x1c0] sm:$0xff]  ;;  %v417_v37 = vld [vmem:[%s18052_s6 + $0x1c8] sm:$0xff] }
  0x4f   :  { %414 = vst [vmem:[#allocation5 + $0x1b8] sm:$0xff] %v413_v38  ;;  %v419_v40 = vld [vmem:[%s18052_s6 + $0x1d0] sm:$0xff]  ;;  %416 = vst [vmem:[#allocation5 + $0x1c0] sm:$0xff] %v415_v35  ;;  %v421_v36 = vld [vmem:[%s18052_s6 + $0x1d8] sm:$0xff] }
  0x50   :  { %418 = vst [vmem:[#allocation5 + $0x1c8] sm:$0xff] %v417_v37  ;;  %420 = vst [vmem:[#allocation5 + $0x1d0] sm:$0xff] %v419_v40  ;;  %v423_v42 = vld [vmem:[%s18052_s6 + $0x1e0] sm:$0xff]  ;;  %v425_v38 = vld [vmem:[%s18052_s6 + $0x1e8] sm:$0xff] }
  0x51   :  { %422 = vst [vmem:[#allocation5 + $0x1d8] sm:$0xff] %v421_v36  ;;  %424 = vst [vmem:[#allocation5 + $0x1e0] sm:$0xff] %v423_v42  ;;  %v427_v35 = vld [vmem:[%s18052_s6 + $0x1f0] sm:$0xff]  ;;  %v429_v37 = vld [vmem:[%s18052_s6 + $0x1f8] sm:$0xff] }
  0x52   :  { %426 = vst [vmem:[#allocation5 + $0x1e8] sm:$0xff] %v425_v38  ;;  %428 = vst [vmem:[#allocation5 + $0x1f0] sm:$0xff] %v427_v35 }
  0x53   :  { %430 = vst [vmem:[#allocation5 + $0x1f8] sm:$0xff] %v429_v37 }
  0x54   :  { %438 = vsyncadd [#allocation14 + $0x3], 8192  ;;  %v473_v40 = vld [vmem:[%s18053_s7] sm:$0xff]  ;;  %v475_v36 = vld [vmem:[%s18053_s7 + $0x8] sm:$0xff] }
  0x55   :  { %474 = vst [vmem:[#allocation6 + $0x8] sm:$0xff] %v473_v40  ;;  %476 = vst [vmem:[#allocation6] sm:$0xff] %v475_v36  ;;  %v477_v42 = vld [vmem:[%s18053_s7 + $0x10] sm:$0xff] }
  0x56   :  { %478 = vst [vmem:[#allocation6 + $0x10] sm:$0xff] %v477_v42 }
  0x57   :  { %486 = vsyncadd [#allocation14 + $0x4], 384  ;;  %v15826_v38 = vld [vmem:[%s18054_s8] sm:$0xff]  ;;  %v15831_v35 = vld [vmem:[%s18054_s8 + $0x8] sm:$0xff] }
  0x58   :  { %18256 = vst [vmem:[#allocation83_spill] sm:$0xff] %v15826_v38  ;;  %18257 = vst [vmem:[#allocation84_spill] sm:$0xff] %v15831_v35  ;;  %v15836_v37 = vld [vmem:[%s18054_s8 + $0x10] sm:$0xff]  ;;  %v15841_v40 = vld [vmem:[%s18054_s8 + $0x18] sm:$0xff] }
  0x59   :  { %18258 = vst [vmem:[#allocation85_spill] sm:$0xff] %v15836_v37  ;;  %18259 = vst [vmem:[#allocation86_spill] sm:$0xff] %v15841_v40  ;;  %v15846_v36 = vld [vmem:[%s18054_s8 + $0x20] sm:$0xff]  ;;  %v15851_v42 = vld [vmem:[%s18054_s8 + $0x28] sm:$0xff] }
  0x5a   :  { %18260 = vst [vmem:[#allocation87_spill] sm:$0xff] %v15846_v36  ;;  %18261 = vst [vmem:[#allocation88_spill] sm:$0xff] %v15851_v42  ;;  %v15856_v35 = vld [vmem:[%s18054_s8 + $0x30] sm:$0xff]  ;;  %v15861_v38 = vld [vmem:[%s18054_s8 + $0x38] sm:$0xff] }
  0x5b   :  { %18262 = vst [vmem:[#allocation89_spill] sm:$0xff] %v15856_v35  ;;  %18263 = vst [vmem:[#allocation90_spill] sm:$0xff] %v15861_v38  ;;  %v15866_v40 = vld [vmem:[%s18054_s8 + $0x40] sm:$0xff]  ;;  %v15871_v37 = vld [vmem:[%s18054_s8 + $0x48] sm:$0xff] }
  0x5c   :  { %18264 = vst [vmem:[#allocation91_spill] sm:$0xff] %v15866_v40  ;;  %18265 = vst [vmem:[#allocation92_spill] sm:$0xff] %v15871_v37  ;;  %v15876_v42 = vld [vmem:[%s18054_s8 + $0x50] sm:$0xff]  ;;  %v15881_v36 = vld [vmem:[%s18054_s8 + $0x58] sm:$0xff] }
  0x5d   :  { %18266 = vst [vmem:[#allocation93_spill] sm:$0xff] %v15876_v42  ;;  %18267 = vst [vmem:[#allocation94_spill] sm:$0xff] %v15881_v36  ;;  %v15886_v38 = vld [vmem:[%s18054_s8 + $0x60] sm:$0xff]  ;;  %v15891_v35 = vld [vmem:[%s18054_s8 + $0x68] sm:$0xff] }
  0x5e   :  { %18268 = vst [vmem:[#allocation95_spill] sm:$0xff] %v15886_v38  ;;  %18269 = vst [vmem:[#allocation96_spill] sm:$0xff] %v15891_v35  ;;  %v15896_v37 = vld [vmem:[%s18054_s8 + $0x70] sm:$0xff]  ;;  %v15901_v40 = vld [vmem:[%s18054_s8 + $0x78] sm:$0xff] }
  0x5f   :  { %18270 = vst [vmem:[#allocation97_spill] sm:$0xff] %v15896_v37  ;;  %18271 = vst [vmem:[#allocation98_spill] sm:$0xff] %v15901_v40  ;;  %v15906_v36 = vld [vmem:[%s18054_s8 + $0x80] sm:$0xff]  ;;  %v15911_v42 = vld [vmem:[%s18054_s8 + $0x88] sm:$0xff] }
  0x60   :  { %18272 = vst [vmem:[#allocation99_spill] sm:$0xff] %v15906_v36  ;;  %18273 = vst [vmem:[#allocation100_spill] sm:$0xff] %v15911_v42  ;;  %v15916_v35 = vld [vmem:[%s18054_s8 + $0x90] sm:$0xff]  ;;  %v15921_v38 = vld [vmem:[%s18054_s8 + $0x98] sm:$0xff] }
  0x61   :  { %18274 = vst [vmem:[#allocation101_spill] sm:$0xff] %v15916_v35  ;;  %18275 = vst [vmem:[#allocation102_spill] sm:$0xff] %v15921_v38  ;;  %v15926_v40 = vld [vmem:[%s18054_s8 + $0xa0] sm:$0xff]  ;;  %v15931_v37 = vld [vmem:[%s18054_s8 + $0xa8] sm:$0xff] }
  0x62   :  { %18276 = vst [vmem:[#allocation103_spill] sm:$0xff] %v15926_v40  ;;  %18277 = vst [vmem:[#allocation104_spill] sm:$0xff] %v15931_v37  ;;  %v15936_v42 = vld [vmem:[%s18054_s8 + $0xb0] sm:$0xff]  ;;  %v15941_v36 = vld [vmem:[%s18054_s8 + $0xb8] sm:$0xff] }
  0x63   :  { %18278 = vst [vmem:[#allocation105_spill] sm:$0xff] %v15936_v42  ;;  %18279 = vst [vmem:[#allocation106_spill] sm:$0xff] %v15941_v36  ;;  %v15946_v38 = vld [vmem:[%s18054_s8 + $0xc0] sm:$0xff]  ;;  %v15951_v35 = vld [vmem:[%s18054_s8 + $0xc8] sm:$0xff] }
  0x64   :  { %18280 = vst [vmem:[#allocation107_spill] sm:$0xff] %v15946_v38  ;;  %18281 = vst [vmem:[#allocation108_spill] sm:$0xff] %v15951_v35  ;;  %v15956_v37 = vld [vmem:[%s18054_s8 + $0xd0] sm:$0xff]  ;;  %v15961_v40 = vld [vmem:[%s18054_s8 + $0xd8] sm:$0xff] }
  0x65   :  { %18282 = vst [vmem:[#allocation109_spill] sm:$0xff] %v15956_v37  ;;  %18283 = vst [vmem:[#allocation110_spill] sm:$0xff] %v15961_v40  ;;  %v15966_v36 = vld [vmem:[%s18054_s8 + $0xe0] sm:$0xff]  ;;  %v15971_v42 = vld [vmem:[%s18054_s8 + $0xe8] sm:$0xff] }
  0x66   :  { %18284 = vst [vmem:[#allocation111_spill] sm:$0xff] %v15966_v36  ;;  %18285 = vst [vmem:[#allocation112_spill] sm:$0xff] %v15971_v42  ;;  %v15976_v35 = vld [vmem:[%s18054_s8 + $0xf0] sm:$0xff]  ;;  %v15981_v38 = vld [vmem:[%s18054_s8 + $0xf8] sm:$0xff] }
  0x67   :  { %18286 = vst [vmem:[#allocation113_spill] sm:$0xff] %v15976_v35  ;;  %18287 = vst [vmem:[#allocation114_spill] sm:$0xff] %v15981_v38  ;;  %v15986_v40 = vld [vmem:[%s18054_s8 + $0x100] sm:$0xff]  ;;  %v15991_v37 = vld [vmem:[%s18054_s8 + $0x108] sm:$0xff] }
  0x68   :  { %18288 = vst [vmem:[#allocation115_spill] sm:$0xff] %v15986_v40  ;;  %18289 = vst [vmem:[#allocation116_spill] sm:$0xff] %v15991_v37  ;;  %v15996_v42 = vld [vmem:[%s18054_s8 + $0x110] sm:$0xff]  ;;  %v16001_v36 = vld [vmem:[%s18054_s8 + $0x118] sm:$0xff] }
  0x69   :  { %18290 = vst [vmem:[#allocation117_spill] sm:$0xff] %v15996_v42  ;;  %18291 = vst [vmem:[#allocation118_spill] sm:$0xff] %v16001_v36  ;;  %v16006_v38 = vld [vmem:[%s18054_s8 + $0x120] sm:$0xff]  ;;  %v16011_v40 = vld [vmem:[%s18054_s8 + $0x128] sm:$0xff] }
  0x6a   :  { %18292 = vst [vmem:[#allocation119_spill] sm:$0xff] %v16006_v38  ;;  %18293 = vst [vmem:[#allocation120_spill] sm:$0xff] %v16011_v40  ;;  %v16016_v37 = vld [vmem:[%s18054_s8 + $0x130] sm:$0xff]  ;;  %v16021_v42 = vld [vmem:[%s18054_s8 + $0x138] sm:$0xff] }
  0x6b   :  { %18294 = vst [vmem:[#allocation121_spill] sm:$0xff] %v16016_v37  ;;  %18295 = vst [vmem:[#allocation122_spill] sm:$0xff] %v16021_v42  ;;  %v16026_v36 = vld [vmem:[%s18054_s8 + $0x140] sm:$0xff]  ;;  %v16031_v38 = vld [vmem:[%s18054_s8 + $0x148] sm:$0xff] }
  0x6c   :  { %18296 = vst [vmem:[#allocation123_spill] sm:$0xff] %v16026_v36  ;;  %18297 = vst [vmem:[#allocation124_spill] sm:$0xff] %v16031_v38  ;;  %v16036_v40 = vld [vmem:[%s18054_s8 + $0x150] sm:$0xff]  ;;  %v16041_v37 = vld [vmem:[%s18054_s8 + $0x158] sm:$0xff] }
  0x6d   :  { %18298 = vst [vmem:[#allocation125_spill] sm:$0xff] %v16036_v40  ;;  %18299 = vst [vmem:[#allocation126_spill] sm:$0xff] %v16041_v37  ;;  %v16046_v42 = vld [vmem:[%s18054_s8 + $0x160] sm:$0xff]  ;;  %v16051_v36 = vld [vmem:[%s18054_s8 + $0x168] sm:$0xff] }
  0x6e   :  { %18300 = vst [vmem:[#allocation127_spill] sm:$0xff] %v16046_v42  ;;  %18301 = vst [vmem:[#allocation128_spill] sm:$0xff] %v16051_v36  ;;  %v16056_v38 = vld [vmem:[%s18054_s8 + $0x170] sm:$0xff]  ;;  %v16061_v40 = vld [vmem:[%s18054_s8 + $0x178] sm:$0xff] }
  0x6f   :  { %18302 = vst [vmem:[#allocation129_spill] sm:$0xff] %v16056_v38  ;;  %18303 = vst [vmem:[#allocation130_spill] sm:$0xff] %v16061_v40  ;;  %v16066_v37 = vld [vmem:[%s18054_s8 + $0x180] sm:$0xff]  ;;  %v16071_v42 = vld [vmem:[%s18054_s8 + $0x188] sm:$0xff] }
  0x70   :  { %18304 = vst [vmem:[#allocation131_spill] sm:$0xff] %v16066_v37  ;;  %18305 = vst [vmem:[#allocation132_spill] sm:$0xff] %v16071_v42  ;;  %v16076_v36 = vld [vmem:[%s18054_s8 + $0x190] sm:$0xff]  ;;  %v16081_v38 = vld [vmem:[%s18054_s8 + $0x198] sm:$0xff] }
  0x71   :  { %18306 = vst [vmem:[#allocation133_spill] sm:$0xff] %v16076_v36  ;;  %18307 = vst [vmem:[#allocation134_spill] sm:$0xff] %v16081_v38  ;;  %v16086_v40 = vld [vmem:[%s18054_s8 + $0x1a0] sm:$0xff]  ;;  %v16091_v37 = vld [vmem:[%s18054_s8 + $0x1a8] sm:$0xff] }
  0x72   :  { %18308 = vst [vmem:[#allocation135_spill] sm:$0xff] %v16086_v40  ;;  %18309 = vst [vmem:[#allocation136_spill] sm:$0xff] %v16091_v37  ;;  %v16096_v42 = vld [vmem:[%s18054_s8 + $0x1b0] sm:$0xff]  ;;  %v16101_v36 = vld [vmem:[%s18054_s8 + $0x1b8] sm:$0xff] }
  0x73   :  { %18310 = vst [vmem:[#allocation137_spill] sm:$0xff] %v16096_v42  ;;  %18311 = vst [vmem:[#allocation138_spill] sm:$0xff] %v16101_v36  ;;  %v16106_v38 = vld [vmem:[%s18054_s8 + $0x1c0] sm:$0xff]  ;;  %v16111_v40 = vld [vmem:[%s18054_s8 + $0x1c8] sm:$0xff] }
  0x74   :  { %18312 = vst [vmem:[#allocation139_spill] sm:$0xff] %v16106_v38  ;;  %18313 = vst [vmem:[#allocation140_spill] sm:$0xff] %v16111_v40  ;;  %v16116_v37 = vld [vmem:[%s18054_s8 + $0x1d0] sm:$0xff]  ;;  %v16121_v42 = vld [vmem:[%s18054_s8 + $0x1d8] sm:$0xff] }
  0x75   :  { %18314 = vst [vmem:[#allocation141_spill] sm:$0xff] %v16116_v37  ;;  %18315 = vst [vmem:[#allocation142_spill] sm:$0xff] %v16121_v42  ;;  %v16126_v36 = vld [vmem:[%s18054_s8 + $0x1e0] sm:$0xff]  ;;  %v16131_v38 = vld [vmem:[%s18054_s8 + $0x1e8] sm:$0xff] }
  0x76   :  { %18316 = vst [vmem:[#allocation143_spill] sm:$0xff] %v16126_v36  ;;  %18317 = vst [vmem:[#allocation144_spill] sm:$0xff] %v16131_v38  ;;  %v16136_v40 = vld [vmem:[%s18054_s8 + $0x1f0] sm:$0xff]  ;;  %v16141_v37 = vld [vmem:[%s18054_s8 + $0x1f8] sm:$0xff] }
  0x77   :  { %18318 = vst [vmem:[#allocation145_spill] sm:$0xff] %v16136_v40  ;;  %18319 = vst [vmem:[#allocation146_spill] sm:$0xff] %v16141_v37 }
  0x78   :  { %656 = vsyncadd [#allocation14 + $0x5], 8192  ;;  %v703_v42 = vld [vmem:[%s18056_s10] sm:$0xff]  ;;  %v705_v36 = vld [vmem:[%s18056_s10 + $0x8] sm:$0xff]  ;;  %s15200_s30 = smov [#allocation8]  }
  0x79   :  { %s665_s16 = sshll.u32 %s15200_s30, 4  ;;  %704 = vst [vmem:[#allocation9] sm:$0xff] %v703_v42  ;;  %706 = vst [vmem:[#allocation9 + $0x8] sm:$0xff] %v705_v36  ;;  %v707_v38 = vld [vmem:[%s18056_s10 + $0x10] sm:$0xff]  ;;  %v709_v37 = vld [vmem:[%s18056_s10 + $0x18] sm:$0xff]  ;;  %s666_s16 = int_to_ptr.vmem [resolvable:$true] %s665_s16 }
  0x7a   :  { %v711_v40 = vld [vmem:[%s18056_s10 + $0x20] sm:$0xff]  ;;  %708 = vst [vmem:[#allocation9 + $0x10] sm:$0xff] %v707_v38  ;;  %710 = vst [vmem:[#allocation9 + $0x18] sm:$0xff] %v709_v37  ;;  %v713_v36 = vld [vmem:[%s18056_s10 + $0x28] sm:$0xff]  ;;  %s15098_s27 = scalar_lea.vmem %s666_s16, 32768  ;;  %p15103_p11 = scmp.lt.s32.totalorder %s666_s16, %s666_s16 }
  0x7b   :  { %712 = vst [vmem:[#allocation9 + $0x20] sm:$0xff] %v711_v40  ;;  %v715_v42 = vld [vmem:[%s18056_s10 + $0x30] sm:$0xff]  ;;  %v717_v35 = vld [vmem:[%s18056_s10 + $0x38] sm:$0xff]  ;;  %p15099_p10 = scmp.ne.s32.totalorder %s666_s16, %s15098_s27  ;;  %p15104_p12 = scmp.lt.s32.totalorder %s15098_s27, %s15098_s27 }
  0x7d   :  { %p15105_p13 = por %p15104_p12, %p15103_p11 }
  0x7f   :  { %p15106_p0 = pnand %p15105_p13, %p15099_p10 }
  0x81   :  { %15109 = shalt.err (!%p15106_p0)  }
  0x82   :  { %668 = dma.hbm_to_vmem [thread:$0]  %s18055_s9, 32768, %s666_s16, [#allocation14 + $0x6]  ;;  %714 = vst [vmem:[#allocation9 + $0x28] sm:$0xff] %v713_v36  ;;  %716 = vst [vmem:[#allocation9 + $0x30] sm:$0xff] %v715_v42  ;;  %v719_v38 = vld [vmem:[%s18056_s10 + $0x40] sm:$0xff]  ;;  %v721_v37 = vld [vmem:[%s18056_s10 + $0x48] sm:$0xff] }
  0x83   :  { %718 = vst [vmem:[#allocation9 + $0x38] sm:$0xff] %v717_v35  ;;  %v723_v40 = vld [vmem:[%s18056_s10 + $0x50] sm:$0xff]  ;;  %720 = vst [vmem:[#allocation9 + $0x40] sm:$0xff] %v719_v38  ;;  %v725_v36 = vld [vmem:[%s18056_s10 + $0x58] sm:$0xff] }
  0x84   :  { %722 = vst [vmem:[#allocation9 + $0x48] sm:$0xff] %v721_v37  ;;  %724 = vst [vmem:[#allocation9 + $0x50] sm:$0xff] %v723_v40  ;;  %v727_v35 = vld [vmem:[%s18056_s10 + $0x60] sm:$0xff]  ;;  %v729_v42 = vld [vmem:[%s18056_s10 + $0x68] sm:$0xff] }
  0x85   :  { %726 = vst [vmem:[#allocation9 + $0x58] sm:$0xff] %v725_v36  ;;  %728 = vst [vmem:[#allocation9 + $0x60] sm:$0xff] %v727_v35  ;;  %v731_v38 = vld [vmem:[%s18056_s10 + $0x70] sm:$0xff]  ;;  %v733_v37 = vld [vmem:[%s18056_s10 + $0x78] sm:$0xff] }
  0x86   :  { %730 = vst [vmem:[#allocation9 + $0x68] sm:$0xff] %v729_v42  ;;  %v735_v40 = vld [vmem:[%s18056_s10 + $0x80] sm:$0xff]  ;;  %732 = vst [vmem:[#allocation9 + $0x70] sm:$0xff] %v731_v38  ;;  %v737_v36 = vld [vmem:[%s18056_s10 + $0x88] sm:$0xff] }
  0x87   :  { %734 = vst [vmem:[#allocation9 + $0x78] sm:$0xff] %v733_v37  ;;  %736 = vst [vmem:[#allocation9 + $0x80] sm:$0xff] %v735_v40  ;;  %v739_v35 = vld [vmem:[%s18056_s10 + $0x90] sm:$0xff]  ;;  %v741_v42 = vld [vmem:[%s18056_s10 + $0x98] sm:$0xff] }
  0x88   :  { %738 = vst [vmem:[#allocation9 + $0x88] sm:$0xff] %v737_v36  ;;  %740 = vst [vmem:[#allocation9 + $0x90] sm:$0xff] %v739_v35  ;;  %v743_v38 = vld [vmem:[%s18056_s10 + $0xa0] sm:$0xff]  ;;  %v745_v37 = vld [vmem:[%s18056_s10 + $0xa8] sm:$0xff] }
  0x89   :  { %742 = vst [vmem:[#allocation9 + $0x98] sm:$0xff] %v741_v42  ;;  %v747_v40 = vld [vmem:[%s18056_s10 + $0xb0] sm:$0xff]  ;;  %744 = vst [vmem:[#allocation9 + $0xa0] sm:$0xff] %v743_v38  ;;  %v749_v36 = vld [vmem:[%s18056_s10 + $0xb8] sm:$0xff] }
  0x8a   :  { %746 = vst [vmem:[#allocation9 + $0xa8] sm:$0xff] %v745_v37  ;;  %748 = vst [vmem:[#allocation9 + $0xb0] sm:$0xff] %v747_v40  ;;  %v751_v35 = vld [vmem:[%s18056_s10 + $0xc0] sm:$0xff]  ;;  %v753_v42 = vld [vmem:[%s18056_s10 + $0xc8] sm:$0xff] }
  0x8b   :  { %750 = vst [vmem:[#allocation9 + $0xb8] sm:$0xff] %v749_v36  ;;  %752 = vst [vmem:[#allocation9 + $0xc0] sm:$0xff] %v751_v35  ;;  %v755_v38 = vld [vmem:[%s18056_s10 + $0xd0] sm:$0xff]  ;;  %v757_v37 = vld [vmem:[%s18056_s10 + $0xd8] sm:$0xff] }
  0x8c   :  { %754 = vst [vmem:[#allocation9 + $0xc8] sm:$0xff] %v753_v42  ;;  %v759_v40 = vld [vmem:[%s18056_s10 + $0xe0] sm:$0xff]  ;;  %756 = vst [vmem:[#allocation9 + $0xd0] sm:$0xff] %v755_v38  ;;  %v761_v36 = vld [vmem:[%s18056_s10 + $0xe8] sm:$0xff] }
  0x8d   :  { %758 = vst [vmem:[#allocation9 + $0xd8] sm:$0xff] %v757_v37  ;;  %760 = vst [vmem:[#allocation9 + $0xe0] sm:$0xff] %v759_v40  ;;  %v763_v35 = vld [vmem:[%s18056_s10 + $0xf0] sm:$0xff]  ;;  %v765_v42 = vld [vmem:[%s18056_s10 + $0xf8] sm:$0xff] }
  0x8e   :  { %762 = vst [vmem:[#allocation9 + $0xe8] sm:$0xff] %v761_v36  ;;  %764 = vst [vmem:[#allocation9 + $0xf0] sm:$0xff] %v763_v35  ;;  %v767_v38 = vld [vmem:[%s18056_s10 + $0x100] sm:$0xff]  ;;  %v769_v37 = vld [vmem:[%s18056_s10 + $0x108] sm:$0xff] }
  0x8f   :  { %766 = vst [vmem:[#allocation9 + $0xf8] sm:$0xff] %v765_v42  ;;  %v771_v40 = vld [vmem:[%s18056_s10 + $0x110] sm:$0xff]  ;;  %768 = vst [vmem:[#allocation9 + $0x100] sm:$0xff] %v767_v38  ;;  %v773_v36 = vld [vmem:[%s18056_s10 + $0x118] sm:$0xff] }
  0x90   :  { %770 = vst [vmem:[#allocation9 + $0x108] sm:$0xff] %v769_v37  ;;  %772 = vst [vmem:[#allocation9 + $0x110] sm:$0xff] %v771_v40  ;;  %v775_v35 = vld [vmem:[%s18056_s10 + $0x120] sm:$0xff]  ;;  %v777_v42 = vld [vmem:[%s18056_s10 + $0x128] sm:$0xff] }
  0x91   :  { %774 = vst [vmem:[#allocation9 + $0x118] sm:$0xff] %v773_v36  ;;  %776 = vst [vmem:[#allocation9 + $0x120] sm:$0xff] %v775_v35  ;;  %v779_v38 = vld [vmem:[%s18056_s10 + $0x130] sm:$0xff]  ;;  %v781_v37 = vld [vmem:[%s18056_s10 + $0x138] sm:$0xff] }
  0x92   :  { %778 = vst [vmem:[#allocation9 + $0x128] sm:$0xff] %v777_v42  ;;  %v783_v40 = vld [vmem:[%s18056_s10 + $0x140] sm:$0xff]  ;;  %780 = vst [vmem:[#allocation9 + $0x130] sm:$0xff] %v779_v38  ;;  %v785_v36 = vld [vmem:[%s18056_s10 + $0x148] sm:$0xff] }
  0x93   :  { %782 = vst [vmem:[#allocation9 + $0x138] sm:$0xff] %v781_v37  ;;  %784 = vst [vmem:[#allocation9 + $0x140] sm:$0xff] %v783_v40  ;;  %v787_v35 = vld [vmem:[%s18056_s10 + $0x150] sm:$0xff]  ;;  %v789_v42 = vld [vmem:[%s18056_s10 + $0x158] sm:$0xff] }
  0x94   :  { %786 = vst [vmem:[#allocation9 + $0x148] sm:$0xff] %v785_v36  ;;  %788 = vst [vmem:[#allocation9 + $0x150] sm:$0xff] %v787_v35  ;;  %v791_v38 = vld [vmem:[%s18056_s10 + $0x160] sm:$0xff]  ;;  %v793_v37 = vld [vmem:[%s18056_s10 + $0x168] sm:$0xff] }
  0x95   :  { %790 = vst [vmem:[#allocation9 + $0x158] sm:$0xff] %v789_v42  ;;  %v795_v40 = vld [vmem:[%s18056_s10 + $0x170] sm:$0xff]  ;;  %792 = vst [vmem:[#allocation9 + $0x160] sm:$0xff] %v791_v38  ;;  %v797_v36 = vld [vmem:[%s18056_s10 + $0x178] sm:$0xff] }
  0x96   :  { %794 = vst [vmem:[#allocation9 + $0x168] sm:$0xff] %v793_v37  ;;  %796 = vst [vmem:[#allocation9 + $0x170] sm:$0xff] %v795_v40  ;;  %v799_v35 = vld [vmem:[%s18056_s10 + $0x180] sm:$0xff]  ;;  %v801_v42 = vld [vmem:[%s18056_s10 + $0x188] sm:$0xff] }
  0x97   :  { %798 = vst [vmem:[#allocation9 + $0x178] sm:$0xff] %v797_v36  ;;  %800 = vst [vmem:[#allocation9 + $0x180] sm:$0xff] %v799_v35  ;;  %v803_v38 = vld [vmem:[%s18056_s10 + $0x190] sm:$0xff]  ;;  %v805_v37 = vld [vmem:[%s18056_s10 + $0x198] sm:$0xff] }
  0x98   :  { %802 = vst [vmem:[#allocation9 + $0x188] sm:$0xff] %v801_v42  ;;  %v807_v40 = vld [vmem:[%s18056_s10 + $0x1a0] sm:$0xff]  ;;  %804 = vst [vmem:[#allocation9 + $0x190] sm:$0xff] %v803_v38  ;;  %v809_v36 = vld [vmem:[%s18056_s10 + $0x1a8] sm:$0xff] }
  0x99   :  { %806 = vst [vmem:[#allocation9 + $0x198] sm:$0xff] %v805_v37  ;;  %808 = vst [vmem:[#allocation9 + $0x1a0] sm:$0xff] %v807_v40  ;;  %v811_v35 = vld [vmem:[%s18056_s10 + $0x1b0] sm:$0xff]  ;;  %v813_v42 = vld [vmem:[%s18056_s10 + $0x1b8] sm:$0xff] }
  0x9a   :  { %810 = vst [vmem:[#allocation9 + $0x1a8] sm:$0xff] %v809_v36  ;;  %812 = vst [vmem:[#allocation9 + $0x1b0] sm:$0xff] %v811_v35  ;;  %v815_v38 = vld [vmem:[%s18056_s10 + $0x1c0] sm:$0xff]  ;;  %v817_v37 = vld [vmem:[%s18056_s10 + $0x1c8] sm:$0xff] }
  0x9b   :  { %814 = vst [vmem:[#allocation9 + $0x1b8] sm:$0xff] %v813_v42  ;;  %v819_v40 = vld [vmem:[%s18056_s10 + $0x1d0] sm:$0xff]  ;;  %816 = vst [vmem:[#allocation9 + $0x1c0] sm:$0xff] %v815_v38  ;;  %v821_v36 = vld [vmem:[%s18056_s10 + $0x1d8] sm:$0xff] }
  0x9c   :  { %818 = vst [vmem:[#allocation9 + $0x1c8] sm:$0xff] %v817_v37  ;;  %820 = vst [vmem:[#allocation9 + $0x1d0] sm:$0xff] %v819_v40  ;;  %v823_v35 = vld [vmem:[%s18056_s10 + $0x1e0] sm:$0xff]  ;;  %v825_v42 = vld [vmem:[%s18056_s10 + $0x1e8] sm:$0xff] }
  0x9d   :  { %822 = vst [vmem:[#allocation9 + $0x1d8] sm:$0xff] %v821_v36  ;;  %824 = vst [vmem:[#allocation9 + $0x1e0] sm:$0xff] %v823_v35  ;;  %v827_v38 = vld [vmem:[%s18056_s10 + $0x1f0] sm:$0xff]  ;;  %v829_v37 = vld [vmem:[%s18056_s10 + $0x1f8] sm:$0xff] }
  0x9e   :  { %826 = vst [vmem:[#allocation9 + $0x1e8] sm:$0xff] %v825_v42  ;;  %828 = vst [vmem:[#allocation9 + $0x1f0] sm:$0xff] %v827_v38 }
  0x9f   :  { %830 = vst [vmem:[#allocation9 + $0x1f8] sm:$0xff] %v829_v37 }
  0xa0   :  { %838 = vsyncadd [#allocation14 + $0x7], 8192  ;;  %v16341_v40 = vld [vmem:[%s18057_s11] sm:$0xff]  ;;  %v16346_v36 = vld [vmem:[%s18057_s11 + $0x8] sm:$0xff] }
  0xa1   :  { %18320 = vst [vmem:[#allocation147_spill] sm:$0xff] %v16341_v40  ;;  %18321 = vst [vmem:[#allocation148_spill] sm:$0xff] %v16346_v36  ;;  %v16351_v35 = vld [vmem:[%s18057_s11 + $0x10] sm:$0xff]  ;;  %v16356_v42 = vld [vmem:[%s18057_s11 + $0x18] sm:$0xff] }
  0xa2   :  { %18322 = vst [vmem:[#allocation149_spill] sm:$0xff] %v16351_v35  ;;  %18323 = vst [vmem:[#allocation150_spill] sm:$0xff] %v16356_v42  ;;  %v16361_v38 = vld [vmem:[%s18057_s11 + $0x20] sm:$0xff]  ;;  %v16366_v37 = vld [vmem:[%s18057_s11 + $0x28] sm:$0xff] }
  0xa3   :  { %18324 = vst [vmem:[#allocation151_spill] sm:$0xff] %v16361_v38  ;;  %18325 = vst [vmem:[#allocation152_spill] sm:$0xff] %v16366_v37  ;;  %v16371_v36 = vld [vmem:[%s18057_s11 + $0x30] sm:$0xff]  ;;  %v16376_v35 = vld [vmem:[%s18057_s11 + $0x38] sm:$0xff] }
  0xa4   :  { %18326 = vst [vmem:[#allocation153_spill] sm:$0xff] %v16371_v36  ;;  %18327 = vst [vmem:[#allocation154_spill] sm:$0xff] %v16376_v35  ;;  %v16381_v42 = vld [vmem:[%s18057_s11 + $0x40] sm:$0xff]  ;;  %v16386_v40 = vld [vmem:[%s18057_s11 + $0x48] sm:$0xff] }
  0xa5   :  { %18328 = vst [vmem:[#allocation155_spill] sm:$0xff] %v16381_v42  ;;  %18329 = vst [vmem:[#allocation156_spill] sm:$0xff] %v16386_v40  ;;  %v16391_v37 = vld [vmem:[%s18057_s11 + $0x50] sm:$0xff]  ;;  %v16396_v36 = vld [vmem:[%s18057_s11 + $0x58] sm:$0xff] }
  0xa6   :  { %18330 = vst [vmem:[#allocation157_spill] sm:$0xff] %v16391_v37  ;;  %18331 = vst [vmem:[#allocation158_spill] sm:$0xff] %v16396_v36  ;;  %v16401_v35 = vld [vmem:[%s18057_s11 + $0x60] sm:$0xff]  ;;  %v16406_v38 = vld [vmem:[%s18057_s11 + $0x68] sm:$0xff] }
  0xa7   :  { %18332 = vst [vmem:[#allocation159_spill] sm:$0xff] %v16401_v35  ;;  %18333 = vst [vmem:[#allocation160_spill] sm:$0xff] %v16406_v38  ;;  %v16411_v40 = vld [vmem:[%s18057_s11 + $0x70] sm:$0xff]  ;;  %v16416_v37 = vld [vmem:[%s18057_s11 + $0x78] sm:$0xff] }
  0xa8   :  { %18334 = vst [vmem:[#allocation161_spill] sm:$0xff] %v16411_v40  ;;  %18335 = vst [vmem:[#allocation162_spill] sm:$0xff] %v16416_v37  ;;  %v16421_v36 = vld [vmem:[%s18057_s11 + $0x80] sm:$0xff]  ;;  %v16426_v42 = vld [vmem:[%s18057_s11 + $0x88] sm:$0xff] }
  0xa9   :  { %18336 = vst [vmem:[#allocation163_spill] sm:$0xff] %v16421_v36  ;;  %18337 = vst [vmem:[#allocation164_spill] sm:$0xff] %v16426_v42  ;;  %v16431_v38 = vld [vmem:[%s18057_s11 + $0x90] sm:$0xff]  ;;  %v16436_v40 = vld [vmem:[%s18057_s11 + $0x98] sm:$0xff] }
  0xaa   :  { %18338 = vst [vmem:[#allocation165_spill] sm:$0xff] %v16431_v38  ;;  %18339 = vst [vmem:[#allocation166_spill] sm:$0xff] %v16436_v40  ;;  %v16441_v37 = vld [vmem:[%s18057_s11 + $0xa0] sm:$0xff]  ;;  %v16446_v35 = vld [vmem:[%s18057_s11 + $0xa8] sm:$0xff] }
  0xab   :  { %18340 = vst [vmem:[#allocation167_spill] sm:$0xff] %v16441_v37  ;;  %18341 = vst [vmem:[#allocation168_spill] sm:$0xff] %v16446_v35  ;;  %v16451_v42 = vld [vmem:[%s18057_s11 + $0xb0] sm:$0xff]  ;;  %v16456_v38 = vld [vmem:[%s18057_s11 + $0xb8] sm:$0xff] }
  0xac   :  { %18342 = vst [vmem:[#allocation169_spill] sm:$0xff] %v16451_v42  ;;  %18343 = vst [vmem:[#allocation170_spill] sm:$0xff] %v16456_v38  ;;  %v16461_v40 = vld [vmem:[%s18057_s11 + $0xc0] sm:$0xff]  ;;  %v16466_v36 = vld [vmem:[%s18057_s11 + $0xc8] sm:$0xff] }
  0xad   :  { %18344 = vst [vmem:[#allocation171_spill] sm:$0xff] %v16461_v40  ;;  %18345 = vst [vmem:[#allocation172_spill] sm:$0xff] %v16466_v36  ;;  %v16471_v35 = vld [vmem:[%s18057_s11 + $0xd0] sm:$0xff]  ;;  %v16476_v42 = vld [vmem:[%s18057_s11 + $0xd8] sm:$0xff] }
  0xae   :  { %18346 = vst [vmem:[#allocation173_spill] sm:$0xff] %v16471_v35  ;;  %18347 = vst [vmem:[#allocation174_spill] sm:$0xff] %v16476_v42  ;;  %v16481_v38 = vld [vmem:[%s18057_s11 + $0xe0] sm:$0xff]  ;;  %v16486_v37 = vld [vmem:[%s18057_s11 + $0xe8] sm:$0xff] }
  0xaf   :  { %18348 = vst [vmem:[#allocation175_spill] sm:$0xff] %v16481_v38  ;;  %18349 = vst [vmem:[#allocation176_spill] sm:$0xff] %v16486_v37  ;;  %v16491_v36 = vld [vmem:[%s18057_s11 + $0xf0] sm:$0xff]  ;;  %v16496_v35 = vld [vmem:[%s18057_s11 + $0xf8] sm:$0xff] }
  0xb0   :  { %18350 = vst [vmem:[#allocation177_spill] sm:$0xff] %v16491_v36  ;;  %18351 = vst [vmem:[#allocation178_spill] sm:$0xff] %v16496_v35  ;;  %v16501_v42 = vld [vmem:[%s18057_s11 + $0x100] sm:$0xff]  ;;  %v16506_v40 = vld [vmem:[%s18057_s11 + $0x108] sm:$0xff] }
  0xb1   :  { %18352 = vst [vmem:[#allocation179_spill] sm:$0xff] %v16501_v42  ;;  %18353 = vst [vmem:[#allocation180_spill] sm:$0xff] %v16506_v40  ;;  %v16511_v37 = vld [vmem:[%s18057_s11 + $0x110] sm:$0xff]  ;;  %v16516_v36 = vld [vmem:[%s18057_s11 + $0x118] sm:$0xff] }
  0xb2   :  { %18354 = vst [vmem:[#allocation181_spill] sm:$0xff] %v16511_v37  ;;  %18355 = vst [vmem:[#allocation182_spill] sm:$0xff] %v16516_v36  ;;  %v16521_v35 = vld [vmem:[%s18057_s11 + $0x120] sm:$0xff]  ;;  %v16526_v38 = vld [vmem:[%s18057_s11 + $0x128] sm:$0xff] }
  0xb3   :  { %18356 = vst [vmem:[#allocation183_spill] sm:$0xff] %v16521_v35  ;;  %18357 = vst [vmem:[#allocation184_spill] sm:$0xff] %v16526_v38  ;;  %v16531_v40 = vld [vmem:[%s18057_s11 + $0x130] sm:$0xff]  ;;  %v16536_v37 = vld [vmem:[%s18057_s11 + $0x138] sm:$0xff] }
  0xb4   :  { %18358 = vst [vmem:[#allocation185_spill] sm:$0xff] %v16531_v40  ;;  %18359 = vst [vmem:[#allocation186_spill] sm:$0xff] %v16536_v37  ;;  %v16541_v36 = vld [vmem:[%s18057_s11 + $0x140] sm:$0xff]  ;;  %v16546_v42 = vld [vmem:[%s18057_s11 + $0x148] sm:$0xff] }
  0xb5   :  { %18360 = vst [vmem:[#allocation187_spill] sm:$0xff] %v16541_v36  ;;  %18361 = vst [vmem:[#allocation188_spill] sm:$0xff] %v16546_v42  ;;  %v16551_v38 = vld [vmem:[%s18057_s11 + $0x150] sm:$0xff]  ;;  %v16556_v40 = vld [vmem:[%s18057_s11 + $0x158] sm:$0xff] }
  0xb6   :  { %18362 = vst [vmem:[#allocation189_spill] sm:$0xff] %v16551_v38  ;;  %18363 = vst [vmem:[#allocation190_spill] sm:$0xff] %v16556_v40  ;;  %v16561_v37 = vld [vmem:[%s18057_s11 + $0x160] sm:$0xff]  ;;  %v16566_v35 = vld [vmem:[%s18057_s11 + $0x168] sm:$0xff] }
  0xb7   :  { %18364 = vst [vmem:[#allocation191_spill] sm:$0xff] %v16561_v37  ;;  %18365 = vst [vmem:[#allocation192_spill] sm:$0xff] %v16566_v35  ;;  %v16571_v42 = vld [vmem:[%s18057_s11 + $0x170] sm:$0xff]  ;;  %v16576_v38 = vld [vmem:[%s18057_s11 + $0x178] sm:$0xff] }
  0xb8   :  { %18366 = vst [vmem:[#allocation193_spill] sm:$0xff] %v16571_v42  ;;  %18367 = vst [vmem:[#allocation194_spill] sm:$0xff] %v16576_v38  ;;  %v16581_v40 = vld [vmem:[%s18057_s11 + $0x180] sm:$0xff]  ;;  %v16586_v36 = vld [vmem:[%s18057_s11 + $0x188] sm:$0xff] }
  0xb9   :  { %18368 = vst [vmem:[#allocation195_spill] sm:$0xff] %v16581_v40  ;;  %18369 = vst [vmem:[#allocation196_spill] sm:$0xff] %v16586_v36  ;;  %v16591_v35 = vld [vmem:[%s18057_s11 + $0x190] sm:$0xff]  ;;  %v16596_v42 = vld [vmem:[%s18057_s11 + $0x198] sm:$0xff] }
  0xba   :  { %18370 = vst [vmem:[#allocation197_spill] sm:$0xff] %v16591_v35  ;;  %18371 = vst [vmem:[#allocation198_spill] sm:$0xff] %v16596_v42  ;;  %v16601_v38 = vld [vmem:[%s18057_s11 + $0x1a0] sm:$0xff]  ;;  %v16606_v37 = vld [vmem:[%s18057_s11 + $0x1a8] sm:$0xff] }
  0xbb   :  { %18372 = vst [vmem:[#allocation199_spill] sm:$0xff] %v16601_v38  ;;  %18373 = vst [vmem:[#allocation200_spill] sm:$0xff] %v16606_v37  ;;  %v16611_v36 = vld [vmem:[%s18057_s11 + $0x1b0] sm:$0xff]  ;;  %v16616_v35 = vld [vmem:[%s18057_s11 + $0x1b8] sm:$0xff] }
  0xbc   :  { %18374 = vst [vmem:[#allocation201_spill] sm:$0xff] %v16611_v36  ;;  %18375 = vst [vmem:[#allocation202_spill] sm:$0xff] %v16616_v35  ;;  %v16621_v42 = vld [vmem:[%s18057_s11 + $0x1c0] sm:$0xff]  ;;  %v16626_v40 = vld [vmem:[%s18057_s11 + $0x1c8] sm:$0xff] }
  0xbd   :  { %18376 = vst [vmem:[#allocation203_spill] sm:$0xff] %v16621_v42  ;;  %18377 = vst [vmem:[#allocation204_spill] sm:$0xff] %v16626_v40  ;;  %v16631_v37 = vld [vmem:[%s18057_s11 + $0x1d0] sm:$0xff]  ;;  %v16636_v36 = vld [vmem:[%s18057_s11 + $0x1d8] sm:$0xff] }
  0xbe   :  { %18378 = vst [vmem:[#allocation205_spill] sm:$0xff] %v16631_v37  ;;  %18379 = vst [vmem:[#allocation206_spill] sm:$0xff] %v16636_v36  ;;  %v16641_v35 = vld [vmem:[%s18057_s11 + $0x1e0] sm:$0xff]  ;;  %v16646_v38 = vld [vmem:[%s18057_s11 + $0x1e8] sm:$0xff] }
  0xbf   :  { %18380 = vst [vmem:[#allocation207_spill] sm:$0xff] %v16641_v35  ;;  %18381 = vst [vmem:[#allocation208_spill] sm:$0xff] %v16646_v38  ;;  %v16651_v40 = vld [vmem:[%s18057_s11 + $0x1f0] sm:$0xff]  ;;  %v16656_v37 = vld [vmem:[%s18057_s11 + $0x1f8] sm:$0xff] }
  0xc0   :  { %18382 = vst [vmem:[#allocation209_spill] sm:$0xff] %v16651_v40  ;;  %18383 = vst [vmem:[#allocation210_spill] sm:$0xff] %v16656_v37 }
  0xc1   :  { %1008 = vsyncadd [#allocation14 + $0x8], 8192  ;;  %v1067_v36 = vld [vmem:[%s18060_s14] sm:$0xff]  ;;  %v1069_v42 = vld [vmem:[%s18060_s14 + $0x8] sm:$0xff]  ;;  %s15201_s16 = smov [#allocation11]   ;;  %s15202_s18 = smov [#allocation12]  }
  0xc2   :  { %s1017_s17 = sshll.u32 %s15201_s16, 4  ;;  %s1029_s8 = sshll.u32 %s15202_s18, 4  ;;  %1068 = vst [vmem:[#allocation13] sm:$0xff] %v1067_v36  ;;  %1070 = vst [vmem:[#allocation13 + $0x8] sm:$0xff] %v1069_v42  ;;  %v1071_v40 = vld [vmem:[%s18060_s14 + $0x10] sm:$0xff]  ;;  %v1073_v37 = vld [vmem:[%s18060_s14 + $0x18] sm:$0xff]  ;;  %s1018_s17 = int_to_ptr.vmem [resolvable:$true] %s1017_s17  ;;  %s1030_s8 = int_to_ptr.vmem [resolvable:$true] %s1029_s8 }
  0xc3   :  { %v1075_v38 = vld [vmem:[%s18060_s14 + $0x20] sm:$0xff]  ;;  %1072 = vst [vmem:[#allocation13 + $0x10] sm:$0xff] %v1071_v40  ;;  %1074 = vst [vmem:[#allocation13 + $0x18] sm:$0xff] %v1073_v37  ;;  %v1077_v36 = vld [vmem:[%s18060_s14 + $0x28] sm:$0xff]  ;;  %s15118_s29 = scalar_lea.vmem %s1018_s17, 32768  ;;  %p15123_p2 = scmp.lt.s32.totalorder %s1018_s17, %s1018_s17 }
  0xc4   :  { %1076 = vst [vmem:[#allocation13 + $0x20] sm:$0xff] %v1075_v38  ;;  %v1079_v42 = vld [vmem:[%s18060_s14 + $0x30] sm:$0xff]  ;;  %v1081_v35 = vld [vmem:[%s18060_s14 + $0x38] sm:$0xff]  ;;  %p15119_p1 = scmp.ne.s32.totalorder %s1018_s17, %s15118_s29  ;;  %p15124_p3 = scmp.lt.s32.totalorder %s15118_s29, %s15118_s29 }
  0xc6   :  { %p15125_p4 = por %p15124_p3, %p15123_p2 }
  0xc8   :  { %p15126_p5 = pnand %p15125_p4, %p15119_p1 }
  0xca   :  { %15129 = shalt.err (!%p15126_p5)  }
  0xcb   :  { %1020 = dma.hbm_to_vmem [thread:$0]  %s18058_s12, 32768, %s1018_s17, [#allocation14 + $0x9]  ;;  %1078 = vst [vmem:[#allocation13 + $0x28] sm:$0xff] %v1077_v36  ;;  %1080 = vst [vmem:[#allocation13 + $0x30] sm:$0xff] %v1079_v42  ;;  %v1083_v40 = vld [vmem:[%s18060_s14 + $0x40] sm:$0xff]  ;;  %v1085_v38 = vld [vmem:[%s18060_s14 + $0x48] sm:$0xff] }
  0xcc   :  { %1082 = vst [vmem:[#allocation13 + $0x38] sm:$0xff] %v1081_v35  ;;  %v1087_v37 = vld [vmem:[%s18060_s14 + $0x50] sm:$0xff]  ;;  %s15138_s16 = scalar_lea.vmem %s1030_s8, 8192  ;;  %p15143_p7 = scmp.lt.s32.totalorder %s1030_s8, %s1030_s8 }
  0xcd   :  { %p15139_p6 = scmp.ne.s32.totalorder %s1030_s8, %s15138_s16  ;;  %p15144_p8 = scmp.lt.s32.totalorder %s15138_s16, %s15138_s16 }
  0xcf   :  { %p15145_p9 = por %p15144_p8, %p15143_p7 }
  0xd1   :  { %p15146_p10 = pnand %p15145_p9, %p15139_p6 }
  0xd3   :  { %15149 = shalt.err (!%p15146_p10)  }
  0xd4   :  { %1032 = dma.hbm_to_vmem [thread:$0]  %s18059_s13, 8192, %s1030_s8, [#allocation14 + $0xa]  ;;  %1084 = vst [vmem:[#allocation13 + $0x40] sm:$0xff] %v1083_v40  ;;  %1086 = vst [vmem:[#allocation13 + $0x48] sm:$0xff] %v1085_v38  ;;  %v1089_v35 = vld [vmem:[%s18060_s14 + $0x58] sm:$0xff]  ;;  %v1091_v36 = vld [vmem:[%s18060_s14 + $0x60] sm:$0xff] }
  0xd5   :  { %1088 = vst [vmem:[#allocation13 + $0x50] sm:$0xff] %v1087_v37  ;;  %v1093_v42 = vld [vmem:[%s18060_s14 + $0x68] sm:$0xff]  ;;  %1090 = vst [vmem:[#allocation13 + $0x58] sm:$0xff] %v1089_v35  ;;  %v1095_v40 = vld [vmem:[%s18060_s14 + $0x70] sm:$0xff] }
  0xd6   :  { %1092 = vst [vmem:[#allocation13 + $0x60] sm:$0xff] %v1091_v36  ;;  %1094 = vst [vmem:[#allocation13 + $0x68] sm:$0xff] %v1093_v42  ;;  %v1097_v38 = vld [vmem:[%s18060_s14 + $0x78] sm:$0xff] }
  0xd7   :  { %1096 = vst [vmem:[#allocation13 + $0x70] sm:$0xff] %v1095_v40  ;;  %1098 = vst [vmem:[#allocation13 + $0x78] sm:$0xff] %v1097_v38 }
  0xd8   :  { %1106 = vsyncadd [#allocation14 + $0xb], 2048  ;;  %v1107_v37 = vld [vmem:[%s18047_s1] sm:$0xff] }
  0xd9   :  { %15172 = dma.done.wait [#allocation14], 384 }
  0xda   :  { %15173 = vsyncadd [#allocation14], 4294966912  ;;  %v18201_v35 = vmov 0   ;;  %v1115_v36 = vld [vmem:[#allocation2 + $0x8] sm:$0x33]  ;;  %vm1147_vm0 = vcmask 1041408   ;;  %v1112_v44 = vpack.c.bf16 %v1107_v37, %v1107_v37  ;;  %v1118_v46 = vlaneseq }
  0xdb   :  { %1186 = vmatprep.mubr.bf16.mxu1 %v18201_v35  ;;  %v12933_v42 = vcombine.high %v1115_v36, %v1115_v36  ;;  %v12932_v39 = vcombine.low %v1115_v36, %v1115_v36  ;;  %v14334_v41 = vld [vmem:[#allocation2 + $0x14] ss:$-16 sps:$4 sm:$0xff]   ;;  %v14336_v38 = vld [vmem:[#allocation2 + $0x10] ss:$-16 sps:$4 sm:$0xff]   ;;  %vm1143_vm1 = vcmask 162816  }
  0xdc   :  { %v16719_v43 = vshrl.u32 %v1118_v46, 7  ;;  %v1116_v36 = vld [vmem:[#allocation15] ss:$4 sm:$0x3] }
  0xdd   :  { %12934 = vmatprep.subr.msk.bf16.mxu1 %vm1147_vm0, %v12933_v42  ;;  %v1149_v40 = vsel %vm1147_vm0, %v12932_v39, 0 }
  0xde   :  { %1167 = vmatpush1.bf16.msra.mxu1 %v1149_v40  ;;  %v16722_v35 = vsub.s32 0, %v16719_v43  ;;  %v16725_v45 = vsub.s32 1, %v16719_v43 }
  0xdf   :  { %1168 = vmatprep.subr.bf16.mxu1 %v14334_v41 }
  0xe0   :  { %v1121_v39 = vrot.slane %v1116_v36, %v16722_v35  ;;  %v1125_v42 = vrot.slane %v1116_v36, %v16725_v45 }
  0xe2   :  { %1169 = vmatpush1.bf16.msra.mxu1 %v14336_v38 }
  0xe5   :  { %12935 = vmatmul.mubr.msk.bf16.vlgmr.msra.gmra.mxu1 %vm1143_vm1, %v1112_v44 }
 0x1a5   :  { %v1188_v41 = vpop.f32.mrf.mxu1 }
 0x1a6   :  { %v16729_v37 = vadd.f32 %v1188_v41, %v1121_v39 }
 0x1a7   :  { %v1190_v40 = vpop.f32.mrf.mxu1 }
 0x1a8   :  { %v1195_v44 = vrot.slane %v16729_v37, 4  ;;  %v1210_v46 = vmul.f32 %v16729_v37, %v16729_v37  ;;  %v1191_v38 = vadd.f32 %v1190_v40, %v1125_v42 }
 0x1a9   :  { %v1192_v48 = vpop.f32.mrf.mxu1 }
 0x1aa   :  { %v1196_v50 = vadd.f32 %v1195_v44, %v16729_v37  ;;  %v1212_v47 = vrot.slane %v1210_v46, 4  ;;  %v1201_v49 = vrot.slane %v1191_v38, 4  ;;  %v1211_v52 = vmul.f32 %v1191_v38, %v1191_v38 }
 0x1ab   :  { %v1193_v54 = vpop.f32.mrf.mxu1 }
 0x1ac   :  { %v1197_v51 = vrot.slane %v1196_v50, 2  ;;  %v1213_v53 = vadd.f32 %v1212_v47, %v1210_v46  ;;  %v1202_v36 = vadd.f32 %v1201_v49, %v1191_v38  ;;  %v1218_v56 = vrot.slane %v1211_v52, 4 }
 0x1ae   :  { %v1198_v39 = vadd.f32 %v1197_v51, %v1196_v50  ;;  %v1214_v41 = vrot.slane %v1213_v53, 2  ;;  %v1203_v58 = vrot.slane %v1202_v36, 2  ;;  %v1219_v55 = vadd.f32 %v1218_v56, %v1211_v52 }
 0x1b0   :  { %v1199_v57 = vrot.slane %v1198_v39, 1  ;;  %v1215_v60 = vadd.f32 %v1214_v41, %v1213_v53  ;;  %v1204_v62 = vadd.f32 %v1203_v58, %v1202_v36  ;;  %v1220_v59 = vrot.slane %v1219_v55, 2 }
 0x1b2   :  { %v1200_v42 = vadd.f32 %v1199_v57, %v1198_v39  ;;  %v1216_v48 = vrot.slane %v1215_v60, 1  ;;  %v1205_v40 = vrot.slane %v1204_v62, 1  ;;  %v1221_v44 = vadd.f32 %v1220_v59, %v1219_v55  ;;  %v1233_v39 = vld [vmem:[#allocation15 + $0x8] ss:$4 sm:$0x3] }
 0x1b3   :  { %v15204_v57 = vmov 1966171168  }
 0x1b4   :  { %v1208_v61 = vmul.f32 0.125, %v1200_v42  ;;  %v1217_v0 = vadd.f32 %v1216_v48, %v1215_v60  ;;  %v1206_v2 = vadd.f32 %v1205_v40, %v1204_v62  ;;  %v1222_v54 = vrot.slane %v1221_v44, 1 }
 0x1b5   :  { %v1242_v55 = vunpack.c.l.s4 %v15204_v57 }
 0x1b6   :  { %v1224_v63 = vmul.f32 0.125, %v1217_v0  ;;  %v1226_v47 = vmul.f32 %v1208_v61, %v1208_v61  ;;  %v1209_v49 = vmul.f32 0.125, %v1206_v2  ;;  %v1223_v46 = vadd.f32 %v1222_v54, %v1221_v44 }
 0x1b7   :  { %v1243_v59 = vunpack.c.0.s8 %v1242_v55  ;;  %v12965_v55 = vcombine.high %v15442_v31, %v15452_v33 }
 0x1b8   :  { %v1228_v50 = vsub.f32 %v1224_v63, %v1226_v47  ;;  %v1225_v51 = vmul.f32 0.125, %v1223_v46  ;;  %v1227_v1 = vmul.f32 %v1209_v49, %v1209_v49  ;;  %v1258_v46 = vld [vmem:[#allocation15 + $0x10] ss:$4 sm:$0x3] }
 0x1b9   :  { %v16736_v62 = vsub.s32 %v1243_v59, %v16719_v43  ;;  %v12967_v59 = vcombine.high %v15447_v32, %v15457_v34 }
 0x1ba   :  { %v1230_v52 = vmax.f32 %v1228_v50, 0.0  ;;  %v1229_v56 = vsub.f32 %v1225_v51, %v1227_v1 }
 0x1bc   :  { %v1234_v53 = vadd.f32 1e-05, %v1230_v52  ;;  %v1231_v58 = vmax.f32 %v1229_v56, 0.0 }
 0x1be   :  { %v1235_v36 = vadd.f32 1e-05, %v1231_v58  ;;  %14337 = vrsqrt.f32 %v1234_v53 }
 0x1c0   :  { %14339 = vrsqrt.f32 %v1235_v36 }
 0x1cb   :  { %v14338_v60 = vpop.eup %14337 }
 0x1cd   :  { %v14340_v0 = vpop.eup %14339 }
 0x1ce   :  { %v1240_v2 = vcombine.low %v14338_v60, %v14340_v0 }
 0x1d0   :  { %v1247_v63 = vrot.slane %v1240_v2, %v16736_v62 }
 0x1d2   :  { %v1254_v41 = vrot.slane %v1247_v63, %v16736_v62 }
 0x1d4   :  { %v1256_v1 = vmul.f32 %v1254_v41, %v1233_v39 }
 0x1d6   :  { %v1263_v42 = vrot.slane %v1256_v1, %v16722_v35  ;;  %v1267_v48 = vrot.slane %v1256_v1, %v16725_v45 }
 0x1d8   :  { %v1270_v40 = vmul.f32 %v1263_v42, %v1208_v61  ;;  %v1271_v44 = vmul.f32 %v1267_v48, %v1209_v49  ;;  %v1291_v52 = vmul.f32 %v1263_v42, %v16729_v37  ;;  %v1292_v56 = vmul.f32 %v1267_v48, %v1191_v38 }
 0x1d9   :  { %v12964_v37 = vcombine.low %v15442_v31, %v15452_v33  ;;  %v12966_v38 = vcombine.low %v15447_v32, %v15457_v34 }
 0x1da   :  { %v1274_v54 = vcombine.low %v1270_v40, %v1271_v44 }
 0x1dc   :  { %v1281_v47 = vrot.slane %v1274_v54, %v16736_v62 }
 0x1de   :  { %v1288_v50 = vrot.slane %v1281_v47, %v16736_v62 }
 0x1e0   :  { %v1290_v51 = vsub.f32 %v1258_v46, %v1288_v50 }
 0x1e2   :  { %v1297_v53 = vrot.slane %v1290_v51, %v16722_v35  ;;  %v1301_v58 = vrot.slane %v1290_v51, %v16725_v45 }
 0x1e4   :  { %v16747_v36 = vadd.f32 %v1297_v53, %v1291_v52  ;;  %v1305_v57 = vadd.f32 %v1301_v58, %v1292_v56 }
 0x1e6   :  { %v1306_v61 = vmax.f32 %v16747_v36, 0.0  ;;  %v1307_v49 = vmax.f32 %v1305_v57, 0.0 }
 0x1e7   :  { %15174 = dma.done.wait [#allocation14 + $0x1], 8192 }
 0x1e8   :  { %15175 = vsyncadd [#allocation14 + $0x1], 4294959104  ;;  %v12961_v60 = vcombine.high %v15422_v27, %v15432_v29  ;;  %v12963_v0 = vcombine.high %v15427_v28, %v15437_v30  ;;  %1721 = vmatprep.subr.bf16.mxu1 %v12965_v55  ;;  %1762 = vmatprep.subr.bf16.mxu0 %v12967_v59  ;;  %v12960_v2 = vcombine.low %v15422_v27, %v15432_v29  ;;  %v18387_v41 = vld [vmem:[#allocation80_spill] sm:$0xff]  ;;  %v18392_v46 = vld [vmem:[#allocation73_spill] sm:$0xff] }
 0x1e9   :  { %1722 = vmatpush1.bf16.msra.mxu1 %v12964_v37  ;;  %1763 = vmatpush1.bf16.msra.mxu0 %v12966_v38  ;;  %v12962_v31 = vcombine.low %v15427_v28, %v15437_v30  ;;  %v12957_v32 = vcombine.high %v15402_v23, %v15412_v25  ;;  %v12959_v33 = vcombine.high %v15407_v24, %v15417_v26  ;;  %v18391_v40 = vld [vmem:[#allocation76_spill] sm:$0xff]  ;;  %v18393_v50 = vld [vmem:[#allocation71_spill] sm:$0xff]  ;;  %v18394_v52 = vld [vmem:[#allocation74_spill] sm:$0xff] }
 0x1ea   :  { %1723 = vmatprep.subr.bf16.mxu1 %v12961_v60  ;;  %1764 = vmatprep.subr.bf16.mxu0 %v12963_v0  ;;  %v12956_v34 = vcombine.low %v15402_v23, %v15412_v25  ;;  %v12958_v63 = vcombine.low %v15407_v24, %v15417_v26  ;;  %v12953_v27 = vcombine.high %v15382_v19, %v15392_v21  ;;  %v18395_v56 = vld [vmem:[#allocation72_spill] sm:$0xff]  ;;  %v18397_v55 = vld [vmem:[#allocation67_spill] sm:$0xff]  ;;  %v18398_v37 = vld [vmem:[#allocation70_spill] sm:$0xff] }
 0x1eb   :  { %v12955_v28 = vcombine.high %v15387_v20, %v15397_v22  ;;  %v12952_v29 = vcombine.low %v15382_v19, %v15392_v21  ;;  %v12954_v30 = vcombine.low %v15387_v20, %v15397_v22  ;;  %v12949_v23 = vcombine.high %v15362_v15, %v15372_v17  ;;  %v18399_v38 = vld [vmem:[#allocation68_spill] sm:$0xff] }
 0x1ec   :  { %v12951_v24 = vcombine.high %v15367_v16, %v15377_v18  ;;  %v12948_v25 = vcombine.low %v15362_v15, %v15372_v17  ;;  %v12950_v26 = vcombine.low %v15367_v16, %v15377_v18  ;;  %v12945_v19 = vcombine.high %v15342_v11, %v15352_v13 }
 0x1ed   :  { %1724 = vmatpush1.bf16.msra.mxu1 %v12960_v2  ;;  %1765 = vmatpush1.bf16.msra.mxu0 %v12962_v31  ;;  %v12947_v20 = vcombine.high %v15347_v12, %v15357_v14  ;;  %v1313_v21 = vpack.c.bf16 %v1307_v49, %v1307_v49  ;;  %v12944_v22 = vcombine.low %v15342_v11, %v15352_v13  ;;  %v18396_v49 = vld [vmem:[#allocation69_spill] sm:$0xff] }
 0x1ee   :  { %1725 = vmatprep.subr.bf16.mxu1 %v12957_v32  ;;  %1766 = vmatprep.subr.bf16.mxu0 %v12959_v33  ;;  %v12946_v15 = vcombine.low %v15347_v12, %v15357_v14  ;;  %v12941_v16 = vcombine.high %v15322_v7, %v15332_v9  ;;  %v12943_v17 = vcombine.high %v15327_v8, %v15337_v10  ;;  %v18400_v31 = vld [vmem:[#allocation65_spill] sm:$0xff]  ;;  %v18401_v32 = vld [vmem:[#allocation63_spill] sm:$0xff] }
 0x1ef   :  { %1753 = vmatprep.mubr.bf16.mxu1 %v1313_v21  ;;  %1794 = vmatprep.mubr.bf16.mxu0 %v1313_v21  ;;  %v12940_v18 = vcombine.low %v15322_v7, %v15332_v9  ;;  %v12942_v11 = vcombine.low %v15327_v8, %v15337_v10  ;;  %v12937_v12 = vcombine.high %v15302_v3, %v15312_v5  ;;  %v18384_v7 = vld [vmem:[#allocation81_spill] sm:$0xff]  ;;  %v18385_v8 = vld [vmem:[#allocation79_spill] sm:$0xff]  ;;  %v18386_v10 = vld [vmem:[#allocation82_spill] sm:$0xff] }
 0x1f0   :  { %v12939_v13 = vcombine.high %v15307_v4, %v15317_v6  ;;  %v12936_v14 = vcombine.low %v15302_v3, %v15312_v5  ;;  %v12938_v39 = vcombine.low %v15307_v4, %v15317_v6  ;;  %v12997_v9 = vcombine.high %v18385_v8, %v18384_v7  ;;  %v18388_v3 = vld [vmem:[#allocation77_spill] sm:$0xff]  ;;  %v18389_v4 = vld [vmem:[#allocation75_spill] sm:$0xff]  ;;  %v18390_v6 = vld [vmem:[#allocation78_spill] sm:$0xff] }
 0x1f1   :  { %1726 = vmatpush1.bf16.msra.mxu1 %v12956_v34  ;;  %1767 = vmatpush1.bf16.msra.mxu0 %v12958_v63  ;;  %v12999_v1 = vcombine.high %v18387_v41, %v18386_v10  ;;  %v12996_v42 = vcombine.low %v18385_v8, %v18384_v7  ;;  %v12998_v48 = vcombine.low %v18387_v41, %v18386_v10  ;;  %v18402_v34 = vld [vmem:[#allocation66_spill] sm:$0xff]  ;;  %v18403_v63 = vld [vmem:[#allocation64_spill] sm:$0xff] }
 0x1f2   :  { %1727 = vmatprep.subr.bf16.mxu1 %v12953_v27  ;;  %1768 = vmatprep.subr.bf16.mxu0 %v12955_v28  ;;  %v12993_v5 = vcombine.high %v18389_v4, %v18388_v3  ;;  %v12995_v44 = vcombine.high %v18391_v40, %v18390_v6  ;;  %v12992_v54 = vcombine.low %v18389_v4, %v18388_v3  ;;  %v18414_v8 = vld [vmem:[#allocation54_spill] sm:$0xff]  ;;  %v1379_v3 = vld [vmem:[#allocation15 + $0x18] ss:$4 sm:$0xf]  ;;  %v16885_v4 = vsub.s32 3, %v16719_v43 }
 0x1f3   :  { %v12994_v47 = vcombine.low %v18391_v40, %v18390_v6  ;;  %v12989_v51 = vcombine.high %v18393_v50, %v18392_v46  ;;  %v12991_v53 = vcombine.high %v18395_v56, %v18394_v52  ;;  %v12988_v58 = vcombine.low %v18393_v50, %v18392_v46 }
 0x1f4   :  { %v12990_v57 = vcombine.low %v18395_v56, %v18394_v52  ;;  %v12985_v59 = vcombine.high %v18397_v55, %v18396_v49  ;;  %v12987_v60 = vcombine.high %v18399_v38, %v18398_v37  ;;  %v12984_v0 = vcombine.low %v18397_v55, %v18396_v49 }
 0x1f5   :  { %1728 = vmatpush1.bf16.msra.mxu1 %v12952_v29  ;;  %1769 = vmatpush1.bf16.msra.mxu0 %v12954_v30  ;;  %v12986_v2 = vcombine.low %v18399_v38, %v18398_v37  ;;  %v12981_v33 = vcombine.high %v18401_v32, %v18400_v31  ;;  %v12983_v27 = vcombine.high %v18403_v63, %v18402_v34  ;;  %v18404_v30 = vld [vmem:[#allocation61_spill] sm:$0xff] }
 0x1f6   :  { %1729 = vmatprep.subr.bf16.mxu1 %v12949_v23  ;;  %1770 = vmatprep.subr.bf16.mxu0 %v12951_v24  ;;  %v12980_v28 = vcombine.low %v18401_v32, %v18400_v31  ;;  %v12982_v29 = vcombine.low %v18403_v63, %v18402_v34  ;;  %v18405_v23 = vld [vmem:[#allocation59_spill] sm:$0xff]  ;;  %v1388_v36 = vrot.slane %v1379_v3, %v16725_v45 }
 0x1f7   :  { %v12977_v24 = vcombine.high %v18405_v23, %v18404_v30 }
 0x1f9   :  { %1730 = vmatpush1.bf16.msra.mxu1 %v12948_v25  ;;  %1771 = vmatpush1.bf16.msra.mxu0 %v12950_v26  ;;  %v18406_v25 = vld [vmem:[#allocation62_spill] sm:$0xff]  ;;  %v18407_v26 = vld [vmem:[#allocation60_spill] sm:$0xff] }
 0x1fa   :  { %1731 = vmatprep.subr.bf16.mxu1 %v12945_v19  ;;  %1772 = vmatprep.subr.bf16.mxu0 %v12947_v20  ;;  %v12979_v19 = vcombine.high %v18407_v26, %v18406_v25  ;;  %v12976_v20 = vcombine.low %v18405_v23, %v18404_v30  ;;  %v12978_v21 = vcombine.low %v18407_v26, %v18406_v25 }
 0x1fd   :  { %1732 = vmatpush1.bf16.msra.mxu1 %v12944_v22  ;;  %1773 = vmatpush1.bf16.msra.mxu0 %v12946_v15  ;;  %v18408_v22 = vld [vmem:[#allocation57_spill] sm:$0xff]  ;;  %v18409_v15 = vld [vmem:[#allocation55_spill] sm:$0xff] }
 0x1fe   :  { %1733 = vmatprep.subr.bf16.mxu1 %v12941_v16  ;;  %1774 = vmatprep.subr.bf16.mxu0 %v12943_v17  ;;  %v12973_v16 = vcombine.high %v18409_v15, %v18408_v22  ;;  %v18410_v17 = vld [vmem:[#allocation58_spill] sm:$0xff] }
 0x201   :  { %1734 = vmatpush1.bf16.msra.mxu1 %v12940_v18  ;;  %1775 = vmatpush1.bf16.msra.mxu0 %v12942_v11  ;;  %v18411_v18 = vld [vmem:[#allocation56_spill] sm:$0xff] }
 0x202   :  { %1735 = vmatprep.subr.bf16.mxu1 %v12937_v12  ;;  %1776 = vmatprep.subr.bf16.mxu0 %v12939_v13  ;;  %v12975_v11 = vcombine.high %v18411_v18, %v18410_v17  ;;  %v12972_v12 = vcombine.low %v18409_v15, %v18408_v22  ;;  %v12974_v13 = vcombine.low %v18411_v18, %v18410_v17 }
 0x205   :  { %1736 = vmatpush1.bf16.msra.mxu1 %v12936_v14  ;;  %1777 = vmatpush1.bf16.msra.mxu0 %v12938_v39  ;;  %v18412_v14 = vld [vmem:[#allocation53_spill] sm:$0xff]  ;;  %v18413_v39 = vld [vmem:[#allocation51_spill] sm:$0xff] }
 0x206   :  { %1737 = vmatprep.subr.bf16.mxu1 %v12997_v9  ;;  %1778 = vmatprep.subr.bf16.mxu0 %v12999_v1  ;;  %v12969_v7 = vcombine.high %v18413_v39, %v18412_v14  ;;  %v18415_v9 = vld [vmem:[#allocation52_spill] sm:$0xff]  ;;  %v12968_v41 = vcombine.low %v18413_v39, %v18412_v14 }
 0x207   :  { %v12971_v10 = vcombine.high %v18415_v9, %v18414_v8  ;;  %v12970_v1 = vcombine.low %v18415_v9, %v18414_v8 }
 0x209   :  { %1738 = vmatpush2.bf16.msra.mxu1 %v12996_v42  ;;  %1779 = vmatpush2.bf16.msra.mxu0 %v12998_v48  ;;  %v1312_v42 = vpack.c.bf16 %v1306_v61, %v1306_v61  ;;  %v16882_v48 = vsub.s32 2, %v16719_v43  ;;  %v1396_v61 = vrot.slane %v1379_v3, %v16885_v4 }
 0x20a   :  { %1739 = vmatprep.subr.bf16.mxu1 %v12993_v5  ;;  %1780 = vmatprep.subr.bf16.mxu0 %v12995_v44  ;;  %v1384_v5 = vrot.slane %v1379_v3, %v16722_v35 }
 0x20b   :  { %v1392_v6 = vrot.slane %v1379_v3, %v16882_v48 }
 0x20d   :  { %1740 = vmatpush2.bf16.msra.mxu1 %v12992_v54  ;;  %1781 = vmatpush2.bf16.msra.mxu0 %v12994_v47 }
 0x20e   :  { %1741 = vmatprep.subr.bf16.mxu1 %v12989_v51  ;;  %1782 = vmatprep.subr.bf16.mxu0 %v12991_v53 }
 0x211   :  { %1742 = vmatpush2.bf16.msra.mxu1 %v12988_v58  ;;  %1783 = vmatpush2.bf16.msra.mxu0 %v12990_v57 }
 0x212   :  { %1743 = vmatprep.subr.bf16.mxu1 %v12985_v59  ;;  %1784 = vmatprep.subr.bf16.mxu0 %v12987_v60 }
 0x215   :  { %1744 = vmatpush2.bf16.msra.mxu1 %v12984_v0  ;;  %1785 = vmatpush2.bf16.msra.mxu0 %v12986_v2 }
 0x216   :  { %1745 = vmatprep.subr.bf16.mxu1 %v12981_v33  ;;  %1786 = vmatprep.subr.bf16.mxu0 %v12983_v27 }
 0x219   :  { %1746 = vmatpush2.bf16.msra.mxu1 %v12980_v28  ;;  %1787 = vmatpush2.bf16.msra.mxu0 %v12982_v29 }
 0x21a   :  { %1747 = vmatprep.subr.bf16.mxu1 %v12977_v24  ;;  %1788 = vmatprep.subr.bf16.mxu0 %v12979_v19 }
 0x21d   :  { %1748 = vmatpush2.bf16.msra.mxu1 %v12976_v20  ;;  %1789 = vmatpush2.bf16.msra.mxu0 %v12978_v21 }
 0x21e   :  { %1749 = vmatprep.subr.bf16.mxu1 %v12973_v16  ;;  %1790 = vmatprep.subr.bf16.mxu0 %v12975_v11 }
 0x221   :  { %1750 = vmatpush2.bf16.msra.mxu1 %v12972_v12  ;;  %1791 = vmatpush2.bf16.msra.mxu0 %v12974_v13 }
 0x222   :  { %1751 = vmatprep.subr.bf16.mxu1 %v12969_v7  ;;  %1792 = vmatprep.subr.bf16.mxu0 %v12971_v10 }
 0x225   :  { %1752 = vmatpush2.bf16.msra.mxu1 %v12968_v41  ;;  %1793 = vmatpush2.bf16.msra.mxu0 %v12970_v1 }
 0x228   :  { %1754 = vmatmul.mubr.bf16.vlgmr.msra.gmra.mxu1 %v1312_v42  ;;  %1795 = vmatmul.mubr.bf16.vlgmr.msra.gmra.mxu0 %v1312_v42 }
 0x2e8   :  { %v1755_v40 = vpop.f32.mrf.mxu1  ;;  %v1796_v44 = vpop.f32.mrf.mxu0 }
 0x2e9   :  { %v16891_v54 = vadd.f32 %v1755_v40, %v1384_v5  ;;  %v16893_v47 = vadd.f32 %v1796_v44, %v1392_v6 }
 0x2ea   :  { %v1757_v46 = vpop.f32.mrf.mxu1  ;;  %v1798_v50 = vpop.f32.mrf.mxu0 }
 0x2eb   :  { %v1803_v51 = vrot.slane %v16891_v54, 4  ;;  %v1831_v52 = vmul.f32 %v16891_v54, %v16891_v54  ;;  %v1815_v56 = vrot.slane %v16893_v47, 4  ;;  %v1833_v53 = vmul.f32 %v16893_v47, %v16893_v47 }
 0x2ec   :  { %v16901_v58 = vadd.f32 %v1757_v46, %v1388_v36  ;;  %v16903_v57 = vadd.f32 %v1798_v50, %v1396_v61  ;;  %v1759_v49 = vpop.f32.mrf.mxu1  ;;  %v1800_v55 = vpop.f32.mrf.mxu0 }
 0x2ed   :  { %v1804_v59 = vadd.f32 %v1803_v51, %v16891_v54  ;;  %v1835_v37 = vrot.slane %v1831_v52, 4  ;;  %v1816_v38 = vadd.f32 %v1815_v56, %v16893_v47  ;;  %v1847_v60 = vrot.slane %v1833_v53, 4 }
 0x2ee   :  { %v1809_v0 = vrot.slane %v16901_v58, 4  ;;  %v1832_v2 = vmul.f32 %v16901_v58, %v16901_v58  ;;  %v1821_v31 = vrot.slane %v16903_v57, 4  ;;  %v1834_v32 = vmul.f32 %v16903_v57, %v16903_v57  ;;  %v1760_v33 = vpop.f32.mrf.mxu1  ;;  %v1801_v34 = vpop.f32.mrf.mxu0 }
 0x2ef   :  { %v1805_v63 = vrot.slane %v1804_v59, 2  ;;  %v1836_v27 = vadd.f32 %v1835_v37, %v1831_v52  ;;  %v1817_v28 = vrot.slane %v1816_v38, 2  ;;  %v1848_v29 = vadd.f32 %v1847_v60, %v1833_v53 }
 0x2f0   :  { %v1810_v30 = vadd.f32 %v1809_v0, %v16901_v58  ;;  %v1841_v23 = vrot.slane %v1832_v2, 4  ;;  %v1822_v24 = vadd.f32 %v1821_v31, %v16903_v57  ;;  %v1853_v25 = vrot.slane %v1834_v32, 4 }
 0x2f1   :  { %v1806_v26 = vadd.f32 %v1805_v63, %v1804_v59  ;;  %v1837_v19 = vrot.slane %v1836_v27, 2  ;;  %v1818_v20 = vadd.f32 %v1817_v28, %v1816_v38  ;;  %v1849_v21 = vrot.slane %v1848_v29, 2 }
 0x2f2   :  { %v1811_v22 = vrot.slane %v1810_v30, 2  ;;  %v1842_v15 = vadd.f32 %v1841_v23, %v1832_v2  ;;  %v1823_v16 = vrot.slane %v1822_v24, 2  ;;  %v1854_v17 = vadd.f32 %v1853_v25, %v1834_v32 }
 0x2f3   :  { %v1807_v18 = vrot.slane %v1806_v26, 1  ;;  %v1838_v11 = vadd.f32 %v1837_v19, %v1836_v27  ;;  %v1819_v12 = vrot.slane %v1818_v20, 1  ;;  %v1850_v13 = vadd.f32 %v1849_v21, %v1848_v29 }
 0x2f4   :  { %v1812_v14 = vadd.f32 %v1811_v22, %v1810_v30  ;;  %v1843_v39 = vrot.slane %v1842_v15, 2  ;;  %v1824_v7 = vadd.f32 %v1823_v16, %v1822_v24  ;;  %v1855_v8 = vrot.slane %v1854_v17, 2 }
 0x2f5   :  { %v1808_v9 = vadd.f32 %v1807_v18, %v1806_v26  ;;  %v1839_v10 = vrot.slane %v1838_v11, 1  ;;  %v1820_v41 = vadd.f32 %v1819_v12, %v1818_v20  ;;  %v1851_v1 = vrot.slane %v1850_v13, 1 }
 0x2f6   :  { %v1813_v42 = vrot.slane %v1812_v14, 1  ;;  %v1844_v3 = vadd.f32 %v1843_v39, %v1842_v15  ;;  %v1825_v5 = vrot.slane %v1824_v7, 1  ;;  %v1856_v6 = vadd.f32 %v1855_v8, %v1854_v17 }
 0x2f7   :  { %v1827_v40 = vmul.f32 0.125, %v1808_v9  ;;  %v1840_v44 = vadd.f32 %v1839_v10, %v1838_v11  ;;  %v1829_v36 = vmul.f32 0.125, %v1820_v41  ;;  %v1852_v61 = vadd.f32 %v1851_v1, %v1850_v13  ;;  %v1876_v13 = vld [vmem:[#allocation15 + $0x28] ss:$4 sm:$0xf] }
 0x2f8   :  { %v1814_v46 = vadd.f32 %v1813_v42, %v1812_v14  ;;  %v1845_v50 = vrot.slane %v1844_v3, 1  ;;  %v1826_v51 = vadd.f32 %v1825_v5, %v1824_v7  ;;  %v1857_v52 = vrot.slane %v1856_v6, 1 }
 0x2f9   :  { %v1859_v56 = vmul.f32 0.125, %v1840_v44  ;;  %v1863_v53 = vmul.f32 %v1827_v40, %v1827_v40  ;;  %v1861_v49 = vmul.f32 0.125, %v1852_v61  ;;  %v1865_v55 = vmul.f32 %v1829_v36, %v1829_v36 }
 0x2fa   :  { %v1828_v59 = vmul.f32 0.125, %v1814_v46  ;;  %v1846_v37 = vadd.f32 %v1845_v50, %v1844_v3  ;;  %v1830_v38 = vmul.f32 0.125, %v1826_v51  ;;  %v1858_v60 = vadd.f32 %v1857_v52, %v1856_v6  ;;  %v1916_v50 = vld [vmem:[#allocation15 + $0x38] ss:$4 sm:$0xf] }
 0x2fb   :  { %v1867_v0 = vsub.f32 %v1859_v56, %v1863_v53  ;;  %v1869_v2 = vsub.f32 %v1861_v49, %v1865_v55 }
 0x2fc   :  { %v1860_v31 = vmul.f32 0.125, %v1846_v37  ;;  %v1864_v32 = vmul.f32 %v1828_v59, %v1828_v59  ;;  %v1862_v33 = vmul.f32 0.125, %v1858_v60  ;;  %v1866_v34 = vmul.f32 %v1830_v38, %v1830_v38 }
 0x2fd   :  { %v1871_v63 = vmax.f32 %v1867_v0, 0.0  ;;  %v1873_v27 = vmax.f32 %v1869_v2, 0.0 }
 0x2fe   :  { %v1868_v28 = vsub.f32 %v1860_v31, %v1864_v32  ;;  %v1870_v29 = vsub.f32 %v1862_v33, %v1866_v34 }
 0x2ff   :  { %v1877_v30 = vadd.f32 1e-05, %v1871_v63  ;;  %v1879_v23 = vadd.f32 1e-05, %v1873_v27 }
 0x300   :  { %v1872_v24 = vmax.f32 %v1868_v28, 0.0  ;;  %v1874_v25 = vmax.f32 %v1870_v29, 0.0 }
 0x301   :  { %14341 = vrsqrt.f32 %v1877_v30 }
 0x302   :  { %v1878_v26 = vadd.f32 1e-05, %v1872_v24  ;;  %v1880_v19 = vadd.f32 1e-05, %v1874_v25  ;;  %14343 = vrsqrt.f32 %v1879_v23 }
 0x304   :  { %14345 = vrsqrt.f32 %v1878_v26 }
 0x305   :  { %14347 = vrsqrt.f32 %v1880_v19 }
 0x30e   :  { %v14342_v20 = vpop.eup %14341 }
 0x30f   :  { %v14344_v21 = vpop.eup %14343 }
 0x311   :  { %v14346_v22 = vpop.eup %14345 }
 0x312   :  { %v14348_v15 = vpop.eup %14347  ;;  %v1889_v16 = vcombine.low %v14342_v20, %v14346_v22 }
 0x313   :  { %v1890_v17 = vcombine.low %v14344_v21, %v14348_v15 }
 0x314   :  { %v1897_v18 = vrot.slane %v1889_v16, %v16736_v62 }
 0x315   :  { %v1904_v11 = vrot.slane %v1890_v17, %v16736_v62 }
 0x317   :  { %v1905_v12 = vcombine.low %v1897_v18, %v1904_v11 }
 0x319   :  { %v1912_v14 = vrot.slane %v1905_v12, %v16736_v62 }
 0x31b   :  { %v1914_v39 = vmul.f32 %v1912_v14, %v1876_v13 }
 0x31d   :  { %v1921_v7 = vrot.slane %v1914_v39, %v16722_v35  ;;  %v1925_v8 = vrot.slane %v1914_v39, %v16725_v45  ;;  %v1929_v9 = vrot.slane %v1914_v39, %v16882_v48  ;;  %v1933_v10 = vrot.slane %v1914_v39, %v16885_v4 }
 0x31f   :  { %v1938_v41 = vmul.f32 %v1921_v7, %v1827_v40  ;;  %v1939_v1 = vmul.f32 %v1925_v8, %v1828_v59  ;;  %v1940_v42 = vmul.f32 %v1929_v9, %v1829_v36  ;;  %v1941_v3 = vmul.f32 %v1933_v10, %v1830_v38 }
 0x320   :  { %v1972_v56 = vmul.f32 %v1921_v7, %v16891_v54  ;;  %v1973_v53 = vmul.f32 %v1925_v8, %v16901_v58  ;;  %v1974_v40 = vmul.f32 %v1929_v9, %v16893_v47  ;;  %v1975_v36 = vmul.f32 %v1933_v10, %v16903_v57 }
 0x321   :  { %v1946_v5 = vcombine.low %v1938_v41, %v1939_v1  ;;  %v1947_v6 = vcombine.low %v1940_v42, %v1941_v3 }
 0x323   :  { %v1954_v44 = vrot.slane %v1946_v5, %v16736_v62  ;;  %v1961_v61 = vrot.slane %v1947_v6, %v16736_v62 }
 0x325   :  { %v1962_v46 = vcombine.low %v1954_v44, %v1961_v61 }
 0x327   :  { %v1969_v51 = vrot.slane %v1962_v46, %v16736_v62 }
 0x329   :  { %v1971_v52 = vsub.f32 %v1916_v50, %v1969_v51 }
 0x32b   :  { %v1980_v49 = vrot.slane %v1971_v52, %v16722_v35  ;;  %v1984_v55 = vrot.slane %v1971_v52, %v16725_v45  ;;  %v1988_v59 = vrot.slane %v1971_v52, %v16882_v48  ;;  %v1992_v37 = vrot.slane %v1971_v52, %v16885_v4 }
 0x32d   :  { %v16933_v38 = vadd.f32 %v1980_v49, %v1972_v56  ;;  %v1998_v60 = vadd.f32 %v1984_v55, %v1973_v53  ;;  %v16935_v0 = vadd.f32 %v1988_v59, %v1974_v40  ;;  %v2000_v54 = vadd.f32 %v1992_v37, %v1975_v36 }
 0x32f   :  { %v2001_v58 = vmax.f32 %v16933_v38, 0.0  ;;  %v2002_v2 = vmax.f32 %v1998_v60, 0.0  ;;  %v2003_v47 = vmax.f32 %v16935_v0, 0.0  ;;  %v2004_v57 = vmax.f32 %v2000_v54, 0.0 }
 0x330   :  { %15176 = dma.done.wait [#allocation14 + $0x2], 32768 }
 0x331   :  { %15177 = vsyncadd [#allocation14 + $0x2], 4294934528  ;;  %v16939_v31 = vpack.c.bf16 %v2002_v2, %v2002_v2  ;;  %v16941_v32 = vpack.c.bf16 %v2004_v57, %v2004_v57  ;;  %v2069_v33 = vld [vmem:[#allocation4 + $0x1c0] sm:$0xff]  ;;  %v2058_v38 = vld [vmem:[#allocation4 + $0x168] sm:$0xff] }
 0x332   :  { %v2073_v34 = vld [vmem:[#allocation4 + $0x1e0] sm:$0xff] }
 0x333   :  { %3624 = vmatprep.mubr.bf16.mxu1 %v16939_v31  ;;  %3665 = vmatprep.mubr.bf16.mxu0 %v16941_v32  ;;  %v2197_v63 = vld [vmem:[#allocation4 + $0x5c0] sm:$0xff]  ;;  %v13057_v27 = vcombine.high %v2069_v33, %v2073_v34  ;;  %v13056_v29 = vcombine.low %v2069_v33, %v2073_v34 }
 0x334   :  { %v2201_v28 = vld [vmem:[#allocation4 + $0x5e0] sm:$0xff] }
 0x335   :  { %v2061_v30 = vld [vmem:[#allocation4 + $0x180] sm:$0xff]  ;;  %v13185_v24 = vcombine.high %v2197_v63, %v2201_v28  ;;  %v13184_v25 = vcombine.low %v2197_v63, %v2201_v28  ;;  %3592 = vmatprep.subr.bf16.mxu1 %v13057_v27 }
 0x336   :  { %v2065_v23 = vld [vmem:[#allocation4 + $0x1a0] sm:$0xff]  ;;  %3593 = vmatpush1.bf16.msra.mxu1 %v13056_v29 }
 0x337   :  { %v13049_v26 = vcombine.high %v2061_v30, %v2065_v23  ;;  %v2189_v19 = vld [vmem:[#allocation4 + $0x580] sm:$0xff]  ;;  %3633 = vmatprep.subr.bf16.mxu0 %v13185_v24  ;;  %v13048_v18 = vcombine.low %v2061_v30, %v2065_v23 }
 0x338   :  { %v2193_v20 = vld [vmem:[#allocation4 + $0x5a0] sm:$0xff]  ;;  %3634 = vmatpush1.bf16.msra.mxu0 %v13184_v25 }
 0x339   :  { %v2053_v21 = vld [vmem:[#allocation4 + $0x140] sm:$0xff]  ;;  %v13177_v22 = vcombine.high %v2189_v19, %v2193_v20  ;;  %3594 = vmatprep.subr.bf16.mxu1 %v13049_v26  ;;  %v13176_v11 = vcombine.low %v2189_v19, %v2193_v20 }
 0x33a   :  { %v2057_v15 = vld [vmem:[#allocation4 + $0x160] sm:$0xff]  ;;  %3595 = vmatpush1.bf16.msra.mxu1 %v13048_v18 }
 0x33b   :  { %v2181_v16 = vld [vmem:[#allocation4 + $0x540] sm:$0xff]  ;;  %v13041_v12 = vcombine.high %v2053_v21, %v2057_v15  ;;  %3635 = vmatprep.subr.bf16.mxu0 %v13177_v22  ;;  %v13040_v9 = vcombine.low %v2053_v21, %v2057_v15 }
 0x33c   :  { %v2185_v17 = vld [vmem:[#allocation4 + $0x560] sm:$0xff]  ;;  %3636 = vmatpush1.bf16.msra.mxu0 %v13176_v11 }
 0x33d   :  { %v13169_v13 = vcombine.high %v2181_v16, %v2185_v17  ;;  %v2045_v14 = vld [vmem:[#allocation4 + $0x100] sm:$0xff]  ;;  %3596 = vmatprep.subr.bf16.mxu1 %v13041_v12  ;;  %v13168_v10 = vcombine.low %v2181_v16, %v2185_v17 }
 0x33e   :  { %v2049_v39 = vld [vmem:[#allocation4 + $0x120] sm:$0xff]  ;;  %3597 = vmatpush1.bf16.msra.mxu1 %v13040_v9 }
 0x33f   :  { %v2173_v7 = vld [vmem:[#allocation4 + $0x500] sm:$0xff]  ;;  %v13033_v41 = vcombine.high %v2045_v14, %v2049_v39  ;;  %3637 = vmatprep.subr.bf16.mxu0 %v13169_v13  ;;  %v13032_v44 = vcombine.low %v2045_v14, %v2049_v39 }
 0x340   :  { %v2177_v8 = vld [vmem:[#allocation4 + $0x520] sm:$0xff]  ;;  %3638 = vmatpush1.bf16.msra.mxu0 %v13168_v10 }
 0x341   :  { %v13161_v1 = vcombine.high %v2173_v7, %v2177_v8  ;;  %v2037_v42 = vld [vmem:[#allocation4 + $0xc0] sm:$0xff]  ;;  %3598 = vmatprep.subr.bf16.mxu1 %v13033_v41  ;;  %v13160_v61 = vcombine.low %v2173_v7, %v2177_v8 }
 0x342   :  { %v2041_v3 = vld [vmem:[#allocation4 + $0xe0] sm:$0xff]  ;;  %3599 = vmatpush1.bf16.msra.mxu1 %v13032_v44 }
 0x343   :  { %v2165_v5 = vld [vmem:[#allocation4 + $0x4c0] sm:$0xff]  ;;  %v13025_v46 = vcombine.high %v2037_v42, %v2041_v3  ;;  %3639 = vmatprep.subr.bf16.mxu0 %v13161_v1  ;;  %v13024_v40 = vcombine.low %v2037_v42, %v2041_v3 }
 0x344   :  { %v2169_v6 = vld [vmem:[#allocation4 + $0x4e0] sm:$0xff]  ;;  %3640 = vmatpush1.bf16.msra.mxu0 %v13160_v61 }
 0x345   :  { %v13153_v50 = vcombine.high %v2165_v5, %v2169_v6  ;;  %v2029_v51 = vld [vmem:[#allocation4 + $0x80] sm:$0xff]  ;;  %3600 = vmatprep.subr.bf16.mxu1 %v13025_v46  ;;  %v13152_v36 = vcombine.low %v2165_v5, %v2169_v6 }
 0x346   :  { %v2033_v52 = vld [vmem:[#allocation4 + $0xa0] sm:$0xff]  ;;  %3601 = vmatpush1.bf16.msra.mxu1 %v13024_v40 }
 0x347   :  { %v2157_v56 = vld [vmem:[#allocation4 + $0x480] sm:$0xff]  ;;  %v13017_v49 = vcombine.high %v2029_v51, %v2033_v52  ;;  %3641 = vmatprep.subr.bf16.mxu0 %v13153_v50  ;;  %v13016_v2 = vcombine.low %v2029_v51, %v2033_v52 }
 0x348   :  { %v2161_v53 = vld [vmem:[#allocation4 + $0x4a0] sm:$0xff]  ;;  %3642 = vmatpush1.bf16.msra.mxu0 %v13152_v36 }
 0x349   :  { %v13145_v55 = vcombine.high %v2157_v56, %v2161_v53  ;;  %v2021_v59 = vld [vmem:[#allocation4 + $0x40] sm:$0xff]  ;;  %3602 = vmatprep.subr.bf16.mxu1 %v13017_v49  ;;  %v13144_v57 = vcombine.low %v2157_v56, %v2161_v53 }
 0x34a   :  { %v2025_v37 = vld [vmem:[#allocation4 + $0x60] sm:$0xff]  ;;  %3603 = vmatpush1.bf16.msra.mxu1 %v13016_v2 }
 0x34b   :  { %v2149_v60 = vld [vmem:[#allocation4 + $0x440] sm:$0xff]  ;;  %v13009_v33 = vcombine.high %v2021_v59, %v2025_v37  ;;  %3643 = vmatprep.subr.bf16.mxu0 %v13145_v55  ;;  %v13008_v30 = vcombine.low %v2021_v59, %v2025_v37 }
 0x34c   :  { %v2153_v54 = vld [vmem:[#allocation4 + $0x460] sm:$0xff]  ;;  %3644 = vmatpush1.bf16.msra.mxu0 %v13144_v57 }
 0x34d   :  { %v13137_v34 = vcombine.high %v2149_v60, %v2153_v54  ;;  %v2013_v63 = vld [vmem:[#allocation4] sm:$0xff]  ;;  %3604 = vmatprep.subr.bf16.mxu1 %v13009_v33  ;;  %v13136_v23 = vcombine.low %v2149_v60, %v2153_v54 }
 0x34e   :  { %v2017_v27 = vld [vmem:[#allocation4 + $0x20] sm:$0xff]  ;;  %3605 = vmatpush1.bf16.msra.mxu1 %v13008_v30 }
 0x34f   :  { %v2141_v28 = vld [vmem:[#allocation4 + $0x400] sm:$0xff]  ;;  %v13001_v24 = vcombine.high %v2013_v63, %v2017_v27  ;;  %3645 = vmatprep.subr.bf16.mxu0 %v13137_v34  ;;  %v13000_v22 = vcombine.low %v2013_v63, %v2017_v27 }
 0x350   :  { %v2145_v29 = vld [vmem:[#allocation4 + $0x420] sm:$0xff]  ;;  %3646 = vmatpush1.bf16.msra.mxu0 %v13136_v23 }
 0x351   :  { %v13129_v25 = vcombine.high %v2141_v28, %v2145_v29  ;;  %v2133_v26 = vld [vmem:[#allocation4 + $0x3c0] sm:$0xff]  ;;  %3606 = vmatprep.subr.bf16.mxu1 %v13001_v24  ;;  %v13128_v15 = vcombine.low %v2141_v28, %v2145_v29 }
 0x352   :  { %v2137_v19 = vld [vmem:[#allocation4 + $0x3e0] sm:$0xff]  ;;  %3607 = vmatpush1.bf16.msra.mxu1 %v13000_v22 }
 0x353   :  { %v2261_v20 = vld [vmem:[#allocation4 + $0x7c0] sm:$0xff]  ;;  %v13121_v16 = vcombine.high %v2133_v26, %v2137_v19  ;;  %3647 = vmatprep.subr.bf16.mxu0 %v13129_v25  ;;  %v13120_v14 = vcombine.low %v2133_v26, %v2137_v19 }
 0x354   :  { %v2265_v21 = vld [vmem:[#allocation4 + $0x7e0] sm:$0xff]  ;;  %3648 = vmatpush1.bf16.msra.mxu0 %v13128_v15 }
 0x355   :  { %v13249_v17 = vcombine.high %v2261_v20, %v2265_v21  ;;  %v2125_v18 = vld [vmem:[#allocation4 + $0x380] sm:$0xff]  ;;  %3608 = vmatprep.subr.bf16.mxu1 %v13121_v16  ;;  %v13248_v39 = vcombine.low %v2261_v20, %v2265_v21 }
 0x356   :  { %v2129_v11 = vld [vmem:[#allocation4 + $0x3a0] sm:$0xff]  ;;  %3609 = vmatpush2.bf16.msra.mxu1 %v13120_v14  ;;  %v2070_v14 = vld [vmem:[#allocation4 + $0x1c8] sm:$0xff] }
 0x357   :  { %v2253_v12 = vld [vmem:[#allocation4 + $0x780] sm:$0xff]  ;;  %v13113_v7 = vcombine.high %v2125_v18, %v2129_v11  ;;  %3649 = vmatprep.subr.bf16.mxu0 %v13249_v17  ;;  %v13112_v42 = vcombine.low %v2125_v18, %v2129_v11 }
 0x358   :  { %v2257_v13 = vld [vmem:[#allocation4 + $0x7a0] sm:$0xff]  ;;  %3650 = vmatpush2.bf16.msra.mxu0 %v13248_v39  ;;  %v2074_v39 = vld [vmem:[#allocation4 + $0x1e8] sm:$0xff] }
 0x359   :  { %v13241_v8 = vcombine.high %v2253_v12, %v2257_v13  ;;  %v2117_v9 = vld [vmem:[#allocation4 + $0x340] sm:$0xff]  ;;  %3610 = vmatprep.subr.bf16.mxu1 %v13113_v7  ;;  %v13240_v3 = vcombine.low %v2253_v12, %v2257_v13  ;;  %v2198_v7 = vld [vmem:[#allocation4 + $0x5c8] sm:$0xff] }
 0x35a   :  { %v2121_v10 = vld [vmem:[#allocation4 + $0x360] sm:$0xff]  ;;  %3611 = vmatpush2.bf16.msra.mxu1 %v13112_v42  ;;  %v2062_v42 = vld [vmem:[#allocation4 + $0x188] sm:$0xff] }
 0x35b   :  { %v2245_v41 = vld [vmem:[#allocation4 + $0x740] sm:$0xff]  ;;  %v13105_v5 = vcombine.high %v2117_v9, %v2121_v10  ;;  %3651 = vmatprep.subr.bf16.mxu0 %v13241_v8  ;;  %v13104_v51 = vcombine.low %v2117_v9, %v2121_v10  ;;  %v2202_v8 = vld [vmem:[#allocation4 + $0x5e8] sm:$0xff] }
 0x35c   :  { %v2249_v1 = vld [vmem:[#allocation4 + $0x760] sm:$0xff]  ;;  %3652 = vmatpush2.bf16.msra.mxu0 %v13240_v3  ;;  %v2066_v3 = vld [vmem:[#allocation4 + $0x1a8] sm:$0xff] }
 0x35d   :  { %v13233_v6 = vcombine.high %v2245_v41, %v2249_v1  ;;  %v2109_v44 = vld [vmem:[#allocation4 + $0x300] sm:$0xff]  ;;  %3612 = vmatprep.subr.bf16.mxu1 %v13105_v5  ;;  %v13232_v52 = vcombine.low %v2245_v41, %v2249_v1  ;;  %v13059_v41 = vcombine.high %v2070_v14, %v2074_v39  ;;  %v13187_v1 = vcombine.high %v2198_v7, %v2202_v8 }
 0x35e   :  { %v2113_v61 = vld [vmem:[#allocation4 + $0x320] sm:$0xff]  ;;  %3613 = vmatpush2.bf16.msra.mxu1 %v13104_v51  ;;  %v16948_v5 = vpack.c.bf16 %v2001_v58, %v2001_v58  ;;  %v13051_v51 = vcombine.high %v2062_v42, %v2066_v3  ;;  %v2182_v58 = vld [vmem:[#allocation4 + $0x548] sm:$0xff]  ;;  %v13050_v0 = vcombine.low %v2062_v42, %v2066_v3 }
 0x35f   :  { %v2237_v46 = vld [vmem:[#allocation4 + $0x700] sm:$0xff]  ;;  %v13097_v56 = vcombine.high %v2109_v44, %v2113_v61  ;;  %3653 = vmatprep.subr.bf16.mxu0 %v13233_v6  ;;  %v13096_v59 = vcombine.low %v2109_v44, %v2113_v61  ;;  %v2190_v6 = vld [vmem:[#allocation4 + $0x588] sm:$0xff]  ;;  %v16953_v61 = vpack.c.bf16 %v2003_v47, %v2003_v47 }
 0x360   :  { %v2241_v50 = vld [vmem:[#allocation4 + $0x720] sm:$0xff]  ;;  %3654 = vmatpush2.bf16.msra.mxu0 %v13232_v52  ;;  %v2194_v44 = vld [vmem:[#allocation4 + $0x5a8] sm:$0xff] }
 0x361   :  { %v13225_v53 = vcombine.high %v2237_v46, %v2241_v50  ;;  %v2101_v40 = vld [vmem:[#allocation4 + $0x2c0] sm:$0xff]  ;;  %3614 = vmatprep.subr.bf16.mxu1 %v13097_v56  ;;  %v13224_v37 = vcombine.low %v2237_v46, %v2241_v50  ;;  %v13058_v46 = vcombine.low %v2070_v14, %v2074_v39  ;;  %v13186_v50 = vcombine.low %v2198_v7, %v2202_v8  ;;  %v2054_v56 = vld [vmem:[#allocation4 + $0x148] sm:$0xff] }
 0x362   :  { %v2105_v36 = vld [vmem:[#allocation4 + $0x2e0] sm:$0xff]  ;;  %3615 = vmatpush2.bf16.msra.mxu1 %v13096_v59  ;;  %v13179_v52 = vcombine.high %v2190_v6, %v2194_v44  ;;  %v13178_v47 = vcombine.low %v2190_v6, %v2194_v44  ;;  %v2174_v59 = vld [vmem:[#allocation4 + $0x508] sm:$0xff] }
 0x363   :  { %v2229_v49 = vld [vmem:[#allocation4 + $0x6c0] sm:$0xff]  ;;  %v13089_v60 = vcombine.high %v2101_v40, %v2105_v36  ;;  %3655 = vmatprep.subr.bf16.mxu0 %v13225_v53  ;;  %v13088_v63 = vcombine.low %v2101_v40, %v2105_v36  ;;  %v2186_v53 = vld [vmem:[#allocation4 + $0x568] sm:$0xff]  ;;  %v13043_v40 = vcombine.high %v2054_v56, %v2058_v38 }
 0x364   :  { %v2233_v55 = vld [vmem:[#allocation4 + $0x6e0] sm:$0xff]  ;;  %3656 = vmatpush2.bf16.msra.mxu0 %v13224_v37  ;;  %v13171_v36 = vcombine.high %v2182_v58, %v2186_v53  ;;  %v2178_v37 = vld [vmem:[#allocation4 + $0x528] sm:$0xff] }
 0x365   :  { %v13217_v54 = vcombine.high %v2229_v49, %v2233_v55  ;;  %v2093_v2 = vld [vmem:[#allocation4 + $0x280] sm:$0xff]  ;;  %3616 = vmatprep.subr.bf16.mxu1 %v13089_v60  ;;  %v13216_v27 = vcombine.low %v2229_v49, %v2233_v55  ;;  %v2046_v49 = vld [vmem:[#allocation4 + $0x108] sm:$0xff]  ;;  %v13042_v60 = vcombine.low %v2054_v56, %v2058_v38 }
 0x366   :  { %v2097_v57 = vld [vmem:[#allocation4 + $0x2a0] sm:$0xff]  ;;  %3617 = vmatpush2.bf16.msra.mxu1 %v13088_v63  ;;  %v2050_v55 = vld [vmem:[#allocation4 + $0x128] sm:$0xff] }
 0x367   :  { %v2221_v33 = vld [vmem:[#allocation4 + $0x680] sm:$0xff]  ;;  %v13081_v28 = vcombine.high %v2093_v2, %v2097_v57  ;;  %3657 = vmatprep.subr.bf16.mxu0 %v13217_v54  ;;  %v13080_v26 = vcombine.low %v2093_v2, %v2097_v57  ;;  %v13170_v54 = vcombine.low %v2182_v58, %v2186_v53  ;;  %v13035_v2 = vcombine.high %v2046_v49, %v2050_v55  ;;  %v2166_v63 = vld [vmem:[#allocation4 + $0x4c8] sm:$0xff] }
 0x368   :  { %v2225_v34 = vld [vmem:[#allocation4 + $0x6a0] sm:$0xff]  ;;  %3658 = vmatpush2.bf16.msra.mxu0 %v13216_v27  ;;  %v13163_v57 = vcombine.high %v2174_v59, %v2178_v37  ;;  %v2170_v27 = vld [vmem:[#allocation4 + $0x4e8] sm:$0xff] }
 0x369   :  { %v13209_v29 = vcombine.high %v2221_v33, %v2225_v34  ;;  %v2085_v30 = vld [vmem:[#allocation4 + $0x240] sm:$0xff]  ;;  %3618 = vmatprep.subr.bf16.mxu1 %v13081_v28  ;;  %v13208_v19 = vcombine.low %v2221_v33, %v2225_v34  ;;  %v2038_v33 = vld [vmem:[#allocation4 + $0xc8] sm:$0xff]  ;;  %v13034_v28 = vcombine.low %v2046_v49, %v2050_v55 }
 0x36a   :  { %v2089_v23 = vld [vmem:[#allocation4 + $0x260] sm:$0xff]  ;;  %3619 = vmatpush2.bf16.msra.mxu1 %v13080_v26  ;;  %v2042_v34 = vld [vmem:[#allocation4 + $0xe8] sm:$0xff] }
 0x36b   :  { %v2213_v24 = vld [vmem:[#allocation4 + $0x640] sm:$0xff]  ;;  %v13073_v20 = vcombine.high %v2085_v30, %v2089_v23  ;;  %3659 = vmatprep.subr.bf16.mxu0 %v13209_v29  ;;  %v13072_v18 = vcombine.low %v2085_v30, %v2089_v23  ;;  %v13162_v29 = vcombine.low %v2174_v59, %v2178_v37  ;;  %v13027_v30 = vcombine.high %v2038_v33, %v2042_v34  ;;  %v2158_v26 = vld [vmem:[#allocation4 + $0x488] sm:$0xff] }
 0x36c   :  { %v2217_v25 = vld [vmem:[#allocation4 + $0x660] sm:$0xff]  ;;  %3660 = vmatpush2.bf16.msra.mxu0 %v13208_v19  ;;  %v13155_v23 = vcombine.high %v2166_v63, %v2170_v27  ;;  %v2162_v19 = vld [vmem:[#allocation4 + $0x4a8] sm:$0xff] }
 0x36d   :  { %v13201_v21 = vcombine.high %v2213_v24, %v2217_v25  ;;  %v2077_v22 = vld [vmem:[#allocation4 + $0x200] sm:$0xff]  ;;  %3620 = vmatprep.subr.bf16.mxu1 %v13073_v20  ;;  %v13200_v11 = vcombine.low %v2213_v24, %v2217_v25  ;;  %v2030_v24 = vld [vmem:[#allocation4 + $0x88] sm:$0xff]  ;;  %v13026_v20 = vcombine.low %v2038_v33, %v2042_v34 }
 0x36e   :  { %v2081_v15 = vld [vmem:[#allocation4 + $0x220] sm:$0xff]  ;;  %3621 = vmatpush2.bf16.msra.mxu1 %v13072_v18  ;;  %v2034_v25 = vld [vmem:[#allocation4 + $0xa8] sm:$0xff] }
 0x36f   :  { %v2205_v16 = vld [vmem:[#allocation4 + $0x600] sm:$0xff]  ;;  %v13065_v12 = vcombine.high %v2077_v22, %v2081_v15  ;;  %3661 = vmatprep.subr.bf16.mxu0 %v13201_v21  ;;  %v13064_v9 = vcombine.low %v2077_v22, %v2081_v15  ;;  %v13154_v21 = vcombine.low %v2166_v63, %v2170_v27  ;;  %v13019_v22 = vcombine.high %v2030_v24, %v2034_v25  ;;  %v2150_v18 = vld [vmem:[#allocation4 + $0x448] sm:$0xff] }
 0x370   :  { %v2209_v17 = vld [vmem:[#allocation4 + $0x620] sm:$0xff]  ;;  %3662 = vmatpush2.bf16.msra.mxu0 %v13200_v11  ;;  %v13147_v15 = vcombine.high %v2158_v26, %v2162_v19  ;;  %v2154_v11 = vld [vmem:[#allocation4 + $0x468] sm:$0xff] }
 0x371   :  { %v13193_v13 = vcombine.high %v2205_v16, %v2209_v17  ;;  %3622 = vmatprep.subr.bf16.mxu1 %v13065_v12  ;;  %v13192_v10 = vcombine.low %v2205_v16, %v2209_v17  ;;  %v2022_v16 = vld [vmem:[#allocation4 + $0x48] sm:$0xff]  ;;  %v13018_v12 = vcombine.low %v2030_v24, %v2034_v25  ;;  %v13139_v39 = vcombine.high %v2150_v18, %v2154_v11 }
 0x372   :  { %3623 = vmatpush2.bf16.msra.mxu1 %v13064_v9  ;;  %v2026_v17 = vld [vmem:[#allocation4 + $0x68] sm:$0xff] }
 0x373   :  { %3663 = vmatprep.subr.bf16.mxu0 %v13193_v13  ;;  %3674 = vmatprep.subr.bf16.mxu1 %v13059_v41  ;;  %v13146_v13 = vcombine.low %v2158_v26, %v2162_v19  ;;  %v13011_v14 = vcombine.high %v2022_v16, %v2026_v17  ;;  %v2014_v7 = vld [vmem:[#allocation4 + $0x8] sm:$0xff]  ;;  %v13010_v41 = vcombine.low %v2022_v16, %v2026_v17 }
 0x374   :  { %3664 = vmatpush2.bf16.msra.mxu0 %v13192_v10  ;;  %v2018_v8 = vld [vmem:[#allocation4 + $0x28] sm:$0xff] }
 0x375   :  { %3715 = vmatprep.subr.bf16.mxu0 %v13187_v1  ;;  %3625 = vmatmul.mubr.bf16.vlgmr.msra.gmra.mxu1 %v16948_v5  ;;  %v2142_v9 = vld [vmem:[#allocation4 + $0x408] sm:$0xff]  ;;  %v13138_v1 = vcombine.low %v2150_v18, %v2154_v11  ;;  %v13003_v42 = vcombine.high %v2014_v7, %v2018_v8 }
 0x376   :  { %3675 = vmatpush1.bf16.msra.mxu1 %v13058_v46  ;;  %3706 = vmatprep.mubr.bf16.mxu1 %v16939_v31  ;;  %v2146_v10 = vld [vmem:[#allocation4 + $0x428] sm:$0xff] }
 0x377   :  { %3666 = vmatmul.mubr.bf16.vlgmr.msra.gmra.mxu0 %v16953_v61  ;;  %3676 = vmatprep.subr.bf16.mxu1 %v13051_v51  ;;  %v13131_v3 = vcombine.high %v2142_v9, %v2146_v10  ;;  %v2134_v6 = vld [vmem:[#allocation4 + $0x3c8] sm:$0xff]  ;;  %v13002_v51 = vcombine.low %v2014_v7, %v2018_v8 }
 0x378   :  { %3716 = vmatpush1.bf16.msra.mxu0 %v13186_v50  ;;  %3747 = vmatprep.mubr.bf16.mxu0 %v16941_v32  ;;  %v2138_v44 = vld [vmem:[#allocation4 + $0x3e8] sm:$0xff] }
 0x379   :  { %3717 = vmatprep.subr.bf16.mxu0 %v13179_v52  ;;  %v2262_v46 = vld [vmem:[#allocation4 + $0x7c8] sm:$0xff]  ;;  %v13130_v52 = vcombine.low %v2142_v9, %v2146_v10  ;;  %v13123_v56 = vcombine.high %v2134_v6, %v2138_v44 }
 0x37a   :  { %3677 = vmatpush1.bf16.msra.mxu1 %v13050_v0  ;;  %v2266_v50 = vld [vmem:[#allocation4 + $0x7e8] sm:$0xff] }
 0x37b   :  { %3678 = vmatprep.subr.bf16.mxu1 %v13043_v40  ;;  %v13251_v38 = vcombine.high %v2262_v46, %v2266_v50  ;;  %v2126_v58 = vld [vmem:[#allocation4 + $0x388] sm:$0xff]  ;;  %v13122_v40 = vcombine.low %v2134_v6, %v2138_v44 }
 0x37c   :  { %3718 = vmatpush1.bf16.msra.mxu0 %v13178_v47  ;;  %v2130_v53 = vld [vmem:[#allocation4 + $0x3a8] sm:$0xff] }
 0x37d   :  { %3719 = vmatprep.subr.bf16.mxu0 %v13171_v36  ;;  %v2254_v0 = vld [vmem:[#allocation4 + $0x788] sm:$0xff]  ;;  %v13250_v36 = vcombine.low %v2262_v46, %v2266_v50  ;;  %v13115_v49 = vcombine.high %v2126_v58, %v2130_v53 }
 0x37e   :  { %3679 = vmatpush1.bf16.msra.mxu1 %v13042_v60  ;;  %v2258_v47 = vld [vmem:[#allocation4 + $0x7a8] sm:$0xff] }
 0x37f   :  { %3680 = vmatprep.subr.bf16.mxu1 %v13035_v2  ;;  %v13243_v55 = vcombine.high %v2254_v0, %v2258_v47  ;;  %v2118_v59 = vld [vmem:[#allocation4 + $0x348] sm:$0xff]  ;;  %v13114_v2 = vcombine.low %v2126_v58, %v2130_v53 }
 0x380   :  { %3720 = vmatpush1.bf16.msra.mxu0 %v13170_v54  ;;  %v2122_v37 = vld [vmem:[#allocation4 + $0x368] sm:$0xff] }
 0x381   :  { %3721 = vmatprep.subr.bf16.mxu0 %v13163_v57  ;;  %v2246_v60 = vld [vmem:[#allocation4 + $0x748] sm:$0xff]  ;;  %v13242_v57 = vcombine.low %v2254_v0, %v2258_v47  ;;  %v13107_v33 = vcombine.high %v2118_v59, %v2122_v37  ;;  %v2071_v0 = vld [vmem:[#allocation4 + $0x1d0] sm:$0xff] }
 0x382   :  { %3681 = vmatpush1.bf16.msra.mxu1 %v13034_v28  ;;  %v2250_v54 = vld [vmem:[#allocation4 + $0x768] sm:$0xff]  ;;  %v2075_v47 = vld [vmem:[#allocation4 + $0x1f0] sm:$0xff] }
 0x383   :  { %3682 = vmatprep.subr.bf16.mxu1 %v13027_v30  ;;  %v13235_v34 = vcombine.high %v2246_v60, %v2250_v54  ;;  %v2110_v63 = vld [vmem:[#allocation4 + $0x308] sm:$0xff]  ;;  %v13106_v30 = vcombine.low %v2118_v59, %v2122_v37  ;;  %v13061_v59 = vcombine.high %v2071_v0, %v2075_v47 }
 0x384   :  { %3722 = vmatpush1.bf16.msra.mxu0 %v13162_v29  ;;  %v2114_v27 = vld [vmem:[#allocation4 + $0x328] sm:$0xff] }
 0x385   :  { %3723 = vmatprep.subr.bf16.mxu0 %v13155_v23  ;;  %v2238_v28 = vld [vmem:[#allocation4 + $0x708] sm:$0xff]  ;;  %v13234_v23 = vcombine.low %v2246_v60, %v2250_v54  ;;  %v13099_v24 = vcombine.high %v2110_v63, %v2114_v27  ;;  %v2063_v60 = vld [vmem:[#allocation4 + $0x190] sm:$0xff] }
 0x386   :  { %3683 = vmatpush1.bf16.msra.mxu1 %v13026_v20  ;;  %v2242_v29 = vld [vmem:[#allocation4 + $0x728] sm:$0xff]  ;;  %v2067_v54 = vld [vmem:[#allocation4 + $0x1b0] sm:$0xff] }
 0x387   :  { %3684 = vmatprep.subr.bf16.mxu1 %v13019_v22  ;;  %v13227_v25 = vcombine.high %v2238_v28, %v2242_v29  ;;  %v2102_v26 = vld [vmem:[#allocation4 + $0x2c8] sm:$0xff]  ;;  %v13098_v22 = vcombine.low %v2110_v63, %v2114_v27  ;;  %v13053_v63 = vcombine.high %v2063_v60, %v2067_v54 }
 0x388   :  { %3724 = vmatpush1.bf16.msra.mxu0 %v13154_v21  ;;  %v2106_v19 = vld [vmem:[#allocation4 + $0x2e8] sm:$0xff] }
 0x389   :  { %3725 = vmatprep.subr.bf16.mxu0 %v13147_v15  ;;  %v2230_v20 = vld [vmem:[#allocation4 + $0x6c8] sm:$0xff]  ;;  %v13226_v15 = vcombine.low %v2238_v28, %v2242_v29  ;;  %v13091_v16 = vcombine.high %v2102_v26, %v2106_v19  ;;  %v2055_v28 = vld [vmem:[#allocation4 + $0x150] sm:$0xff] }
 0x38a   :  { %3685 = vmatpush1.bf16.msra.mxu1 %v13018_v12  ;;  %v2234_v21 = vld [vmem:[#allocation4 + $0x6e8] sm:$0xff]  ;;  %v2059_v29 = vld [vmem:[#allocation4 + $0x170] sm:$0xff] }
 0x38b   :  { %3686 = vmatprep.subr.bf16.mxu1 %v13011_v14  ;;  %v13219_v17 = vcombine.high %v2230_v20, %v2234_v21  ;;  %v2094_v18 = vld [vmem:[#allocation4 + $0x288] sm:$0xff]  ;;  %v13090_v14 = vcombine.low %v2102_v26, %v2106_v19  ;;  %v13045_v26 = vcombine.high %v2055_v28, %v2059_v29 }
 0x38c   :  { %3726 = vmatpush1.bf16.msra.mxu0 %v13146_v13  ;;  %v2098_v11 = vld [vmem:[#allocation4 + $0x2a8] sm:$0xff] }
 0x38d   :  { %3727 = vmatprep.subr.bf16.mxu0 %v13139_v39  ;;  %v2222_v12 = vld [vmem:[#allocation4 + $0x688] sm:$0xff]  ;;  %v13218_v39 = vcombine.low %v2230_v20, %v2234_v21  ;;  %v13083_v7 = vcombine.high %v2094_v18, %v2098_v11  ;;  %v2047_v20 = vld [vmem:[#allocation4 + $0x110] sm:$0xff] }
 0x38e   :  { %3687 = vmatpush1.bf16.msra.mxu1 %v13010_v41  ;;  %v2226_v13 = vld [vmem:[#allocation4 + $0x6a8] sm:$0xff]  ;;  %v2051_v21 = vld [vmem:[#allocation4 + $0x130] sm:$0xff] }
 0x38f   :  { %3688 = vmatprep.subr.bf16.mxu1 %v13003_v42  ;;  %v13211_v8 = vcombine.high %v2222_v12, %v2226_v13  ;;  %v2086_v9 = vld [vmem:[#allocation4 + $0x248] sm:$0xff]  ;;  %v13082_v42 = vcombine.low %v2094_v18, %v2098_v11  ;;  %v13037_v18 = vcombine.high %v2047_v20, %v2051_v21 }
 0x390   :  { %3728 = vmatpush1.bf16.msra.mxu0 %v13138_v1  ;;  %v2090_v10 = vld [vmem:[#allocation4 + $0x268] sm:$0xff] }
 0x391   :  { %3729 = vmatprep.subr.bf16.mxu0 %v13131_v3  ;;  %v2214_v41 = vld [vmem:[#allocation4 + $0x648] sm:$0xff]  ;;  %v13210_v3 = vcombine.low %v2222_v12, %v2226_v13  ;;  %v13075_v6 = vcombine.high %v2086_v9, %v2090_v10  ;;  %v2039_v12 = vld [vmem:[#allocation4 + $0xd0] sm:$0xff] }
 0x392   :  { %3689 = vmatpush1.bf16.msra.mxu1 %v13002_v51  ;;  %v2218_v1 = vld [vmem:[#allocation4 + $0x668] sm:$0xff]  ;;  %v2043_v13 = vld [vmem:[#allocation4 + $0xf0] sm:$0xff] }
 0x393   :  { %3690 = vmatprep.subr.bf16.mxu1 %v13123_v56  ;;  %v13203_v44 = vcombine.high %v2214_v41, %v2218_v1  ;;  %v2078_v46 = vld [vmem:[#allocation4 + $0x208] sm:$0xff]  ;;  %v13074_v56 = vcombine.low %v2086_v9, %v2090_v10  ;;  %v13029_v9 = vcombine.high %v2039_v12, %v2043_v13 }
 0x394   :  { %3730 = vmatpush1.bf16.msra.mxu0 %v13130_v52  ;;  %v2082_v50 = vld [vmem:[#allocation4 + $0x228] sm:$0xff] }
 0x395   :  { %3731 = vmatprep.subr.bf16.mxu0 %v13251_v38  ;;  %v2206_v51 = vld [vmem:[#allocation4 + $0x608] sm:$0xff]  ;;  %v13202_v38 = vcombine.low %v2214_v41, %v2218_v1  ;;  %v13067_v58 = vcombine.high %v2078_v46, %v2082_v50  ;;  %v2031_v41 = vld [vmem:[#allocation4 + $0x90] sm:$0xff] }
 0x396   :  { %3691 = vmatpush2.bf16.msra.mxu1 %v13122_v40  ;;  %v2210_v52 = vld [vmem:[#allocation4 + $0x628] sm:$0xff]  ;;  %v2199_v40 = vld [vmem:[#allocation4 + $0x5d0] sm:$0xff] }
 0x397   :  { %3692 = vmatprep.subr.bf16.mxu1 %v13115_v49  ;;  %v13195_v53 = vcombine.high %v2206_v51, %v2210_v52  ;;  %v13066_v49 = vcombine.low %v2078_v46, %v2082_v50  ;;  %v2035_v1 = vld [vmem:[#allocation4 + $0xb0] sm:$0xff] }
 0x398   :  { %3732 = vmatpush2.bf16.msra.mxu0 %v13250_v36  ;;  %v2203_v36 = vld [vmem:[#allocation4 + $0x5f0] sm:$0xff]  ;;  %v13021_v46 = vcombine.high %v2031_v41, %v2035_v1 }
 0x399   :  { %3733 = vmatprep.subr.bf16.mxu0 %v13243_v55  ;;  %v13194_v55 = vcombine.low %v2206_v51, %v2210_v52  ;;  %v13189_v37 = vcombine.high %v2199_v40, %v2203_v36  ;;  %v2023_v51 = vld [vmem:[#allocation4 + $0x50] sm:$0xff] }
 0x39a   :  { %3693 = vmatpush2.bf16.msra.mxu1 %v13114_v2  ;;  %v2191_v2 = vld [vmem:[#allocation4 + $0x590] sm:$0xff] }
 0x39b   :  { %3694 = vmatprep.subr.bf16.mxu1 %v13107_v33  ;;  %v13060_v33 = vcombine.low %v2071_v0, %v2075_v47  ;;  %v2027_v52 = vld [vmem:[#allocation4 + $0x70] sm:$0xff] }
 0x39c   :  { %3734 = vmatpush2.bf16.msra.mxu0 %v13242_v57  ;;  %v2195_v57 = vld [vmem:[#allocation4 + $0x5b0] sm:$0xff]  ;;  %v13013_v0 = vcombine.high %v2023_v51, %v2027_v52 }
 0x39d   :  { %3735 = vmatprep.subr.bf16.mxu0 %v13235_v34  ;;  %v13188_v34 = vcombine.low %v2199_v40, %v2203_v36  ;;  %v13181_v27 = vcombine.high %v2191_v2, %v2195_v57  ;;  %v2015_v40 = vld [vmem:[#allocation4 + $0x10] sm:$0xff] }
 0x39e   :  { %3695 = vmatpush2.bf16.msra.mxu1 %v13106_v30  ;;  %v2183_v30 = vld [vmem:[#allocation4 + $0x550] sm:$0xff] }
 0x39f   :  { %3696 = vmatprep.subr.bf16.mxu1 %v13099_v24  ;;  %v13052_v24 = vcombine.low %v2063_v60, %v2067_v54  ;;  %v2019_v36 = vld [vmem:[#allocation4 + $0x30] sm:$0xff] }
 0x3a0   :  { %3736 = vmatpush2.bf16.msra.mxu0 %v13234_v23  ;;  %v2187_v23 = vld [vmem:[#allocation4 + $0x570] sm:$0xff]  ;;  %v13005_v60 = vcombine.high %v2015_v40, %v2019_v36 }
 0x3a1   :  { %3737 = vmatprep.subr.bf16.mxu0 %v13227_v25  ;;  %v13180_v25 = vcombine.low %v2191_v2, %v2195_v57  ;;  %v13173_v19 = vcombine.high %v2183_v30, %v2187_v23  ;;  %v2135_v2 = vld [vmem:[#allocation4 + $0x3d0] sm:$0xff] }
 0x3a2   :  { %3697 = vmatpush2.bf16.msra.mxu1 %v13098_v22  ;;  %v2175_v22 = vld [vmem:[#allocation4 + $0x510] sm:$0xff] }
 0x3a3   :  { %3698 = vmatprep.subr.bf16.mxu1 %v13091_v16  ;;  %v13044_v16 = vcombine.low %v2055_v28, %v2059_v29  ;;  %v2139_v57 = vld [vmem:[#allocation4 + $0x3f0] sm:$0xff] }
 0x3a4   :  { %3738 = vmatpush2.bf16.msra.mxu0 %v13226_v15  ;;  %v2179_v15 = vld [vmem:[#allocation4 + $0x530] sm:$0xff]  ;;  %v13125_v28 = vcombine.high %v2135_v2, %v2139_v57 }
 0x3a5   :  { %3739 = vmatprep.subr.bf16.mxu0 %v13219_v17  ;;  %v13172_v17 = vcombine.low %v2183_v30, %v2187_v23  ;;  %v13165_v11 = vcombine.high %v2175_v22, %v2179_v15  ;;  %v2127_v30 = vld [vmem:[#allocation4 + $0x390] sm:$0xff] }
 0x3a6   :  { %3699 = vmatpush2.bf16.msra.mxu1 %v13090_v14  ;;  %v2167_v14 = vld [vmem:[#allocation4 + $0x4d0] sm:$0xff] }
 0x3a7   :  { %3700 = vmatprep.subr.bf16.mxu1 %v13083_v7  ;;  %v13036_v7 = vcombine.low %v2047_v20, %v2051_v21  ;;  %v2131_v23 = vld [vmem:[#allocation4 + $0x3b0] sm:$0xff] }
 0x3a8   :  { %3740 = vmatpush2.bf16.msra.mxu0 %v13218_v39  ;;  %v2171_v39 = vld [vmem:[#allocation4 + $0x4f0] sm:$0xff]  ;;  %v13117_v20 = vcombine.high %v2127_v30, %v2131_v23 }
 0x3a9   :  { %3741 = vmatprep.subr.bf16.mxu0 %v13211_v8  ;;  %v13164_v8 = vcombine.low %v2175_v22, %v2179_v15  ;;  %v13157_v10 = vcombine.high %v2167_v14, %v2171_v39  ;;  %v2119_v22 = vld [vmem:[#allocation4 + $0x350] sm:$0xff] }
 0x3aa   :  { %3701 = vmatpush2.bf16.msra.mxu1 %v13082_v42  ;;  %v2159_v42 = vld [vmem:[#allocation4 + $0x490] sm:$0xff] }
 0x3ab   :  { %3702 = vmatprep.subr.bf16.mxu1 %v13075_v6  ;;  %v13028_v6 = vcombine.low %v2039_v12, %v2043_v13  ;;  %v2123_v15 = vld [vmem:[#allocation4 + $0x370] sm:$0xff] }
 0x3ac   :  { %3742 = vmatpush2.bf16.msra.mxu0 %v13210_v3  ;;  %v2163_v3 = vld [vmem:[#allocation4 + $0x4b0] sm:$0xff]  ;;  %v13109_v12 = vcombine.high %v2119_v22, %v2123_v15 }
 0x3ad   :  { %3743 = vmatprep.subr.bf16.mxu0 %v13203_v44  ;;  %v13156_v44 = vcombine.low %v2167_v14, %v2171_v39  ;;  %v13149_v50 = vcombine.high %v2159_v42, %v2163_v3  ;;  %v2111_v14 = vld [vmem:[#allocation4 + $0x310] sm:$0xff] }
 0x3ae   :  { %3703 = vmatpush2.bf16.msra.mxu1 %v13074_v56  ;;  %v2151_v56 = vld [vmem:[#allocation4 + $0x450] sm:$0xff] }
 0x3af   :  { %3704 = vmatprep.subr.bf16.mxu1 %v13067_v58  ;;  %v13020_v58 = vcombine.low %v2031_v41, %v2035_v1  ;;  %v2115_v39 = vld [vmem:[#allocation4 + $0x330] sm:$0xff] }
 0x3b0   :  { %3744 = vmatpush2.bf16.msra.mxu0 %v13202_v38  ;;  %v2155_v38 = vld [vmem:[#allocation4 + $0x470] sm:$0xff]  ;;  %v13101_v41 = vcombine.high %v2111_v14, %v2115_v39 }
 0x3b1   :  { %3745 = vmatprep.subr.bf16.mxu0 %v13195_v53  ;;  %v13148_v53 = vcombine.low %v2159_v42, %v2163_v3  ;;  %v13141_v47 = vcombine.high %v2151_v56, %v2155_v38  ;;  %v2103_v42 = vld [vmem:[#allocation4 + $0x2d0] sm:$0xff] }
 0x3b2   :  { %3705 = vmatpush2.bf16.msra.mxu1 %v13066_v49  ;;  %v2143_v49 = vld [vmem:[#allocation4 + $0x410] sm:$0xff] }
 0x3b3   :  { %3756 = vmatprep.subr.bf16.mxu1 %v13061_v59  ;;  %v13012_v59 = vcombine.low %v2023_v51, %v2027_v52  ;;  %v2107_v3 = vld [vmem:[#allocation4 + $0x2f0] sm:$0xff] }
 0x3b4   :  { %3746 = vmatpush2.bf16.msra.mxu0 %v13194_v55  ;;  %v2147_v55 = vld [vmem:[#allocation4 + $0x430] sm:$0xff]  ;;  %v13093_v51 = vcombine.high %v2103_v42, %v2107_v3 }
 0x3b5   :  { %3797 = vmatprep.subr.bf16.mxu0 %v13189_v37  ;;  %3707 = vmatmul.mubr.bf16.vlgmr.msra.gmra.mxu1 %v16948_v5  ;;  %v13140_v37 = vcombine.low %v2151_v56, %v2155_v38  ;;  %v13133_v54 = vcombine.high %v2143_v49, %v2147_v55  ;;  %v2095_v56 = vld [vmem:[#allocation4 + $0x290] sm:$0xff] }
 0x3b6   :  { %3757 = vmatpush1.bf16.msra.mxu1 %v13060_v33  ;;  %3788 = vmatprep.mubr.bf16.mxu1 %v16939_v31  ;;  %v2263_v33 = vld [vmem:[#allocation4 + $0x7d0] sm:$0xff] }
 0x3b7   :  { %3748 = vmatmul.mubr.bf16.vlgmr.msra.gmra.mxu0 %v16953_v61  ;;  %3758 = vmatprep.subr.bf16.mxu1 %v13053_v63  ;;  %v13004_v63 = vcombine.low %v2015_v40, %v2019_v36  ;;  %v2099_v38 = vld [vmem:[#allocation4 + $0x2b0] sm:$0xff] }
 0x3b8   :  { %3798 = vmatpush1.bf16.msra.mxu0 %v13188_v34  ;;  %3829 = vmatprep.mubr.bf16.mxu0 %v16941_v32  ;;  %v2267_v34 = vld [vmem:[#allocation4 + $0x7f0] sm:$0xff]  ;;  %v13085_v40 = vcombine.high %v2095_v56, %v2099_v38 }
 0x3b9   :  { %3799 = vmatprep.subr.bf16.mxu0 %v13181_v27  ;;  %v13132_v27 = vcombine.low %v2143_v49, %v2147_v55  ;;  %v13253_v29 = vcombine.high %v2263_v33, %v2267_v34  ;;  %v2087_v49 = vld [vmem:[#allocation4 + $0x250] sm:$0xff] }
 0x3ba   :  { %3759 = vmatpush1.bf16.msra.mxu1 %v13052_v24  ;;  %v2255_v24 = vld [vmem:[#allocation4 + $0x790] sm:$0xff] }
 0x3bb   :  { %3760 = vmatprep.subr.bf16.mxu1 %v13045_v26  ;;  %v13124_v26 = vcombine.low %v2135_v2, %v2139_v57  ;;  %v2091_v55 = vld [vmem:[#allocation4 + $0x270] sm:$0xff] }
 0x3bc   :  { %3800 = vmatpush1.bf16.msra.mxu0 %v13180_v25  ;;  %v2259_v25 = vld [vmem:[#allocation4 + $0x7b0] sm:$0xff]  ;;  %v13077_v2 = vcombine.high %v2087_v49, %v2091_v55 }
 0x3bd   :  { %3801 = vmatprep.subr.bf16.mxu0 %v13173_v19  ;;  %v13252_v19 = vcombine.low %v2263_v33, %v2267_v34  ;;  %v13245_v21 = vcombine.high %v2255_v24, %v2259_v25  ;;  %v2079_v33 = vld [vmem:[#allocation4 + $0x210] sm:$0xff] }
 0x3be   :  { %3761 = vmatpush1.bf16.msra.mxu1 %v13044_v16  ;;  %v2247_v16 = vld [vmem:[#allocation4 + $0x750] sm:$0xff] }
 0x3bf   :  { %3762 = vmatprep.subr.bf16.mxu1 %v13037_v18  ;;  %v13116_v18 = vcombine.low %v2127_v30, %v2131_v23  ;;  %v2083_v34 = vld [vmem:[#allocation4 + $0x230] sm:$0xff] }
 0x3c0   :  { %3802 = vmatpush1.bf16.msra.mxu0 %v13172_v17  ;;  %v2251_v17 = vld [vmem:[#allocation4 + $0x770] sm:$0xff]  ;;  %v13069_v30 = vcombine.high %v2079_v33, %v2083_v34 }
 0x3c1   :  { %3803 = vmatprep.subr.bf16.mxu0 %v13165_v11  ;;  %v13244_v11 = vcombine.low %v2255_v24, %v2259_v25  ;;  %v13237_v13 = vcombine.high %v2247_v16, %v2251_v17  ;;  %v2072_v24 = vld [vmem:[#allocation4 + $0x1d8] sm:$0xff] }
 0x3c2   :  { %3763 = vmatpush1.bf16.msra.mxu1 %v13036_v7  ;;  %v2239_v7 = vld [vmem:[#allocation4 + $0x710] sm:$0xff]  ;;  %v2076_v25 = vld [vmem:[#allocation4 + $0x1f8] sm:$0xff] }
 0x3c3   :  { %3764 = vmatprep.subr.bf16.mxu1 %v13029_v9  ;;  %v13108_v9 = vcombine.low %v2119_v22, %v2123_v15  ;;  %v13063_v22 = vcombine.high %v2072_v24, %v2076_v25 }
 0x3c4   :  { %3804 = vmatpush1.bf16.msra.mxu0 %v13164_v8  ;;  %v2243_v8 = vld [vmem:[#allocation4 + $0x730] sm:$0xff] }
 0x3c5   :  { %3805 = vmatprep.subr.bf16.mxu0 %v13157_v10  ;;  %v13236_v10 = vcombine.low %v2247_v16, %v2251_v17  ;;  %v13229_v1 = vcombine.high %v2239_v7, %v2243_v8  ;;  %v2064_v16 = vld [vmem:[#allocation4 + $0x198] sm:$0xff] }
 0x3c6   :  { %3765 = vmatpush1.bf16.msra.mxu1 %v13028_v6  ;;  %v2231_v6 = vld [vmem:[#allocation4 + $0x6d0] sm:$0xff]  ;;  %v2068_v17 = vld [vmem:[#allocation4 + $0x1b8] sm:$0xff] }
 0x3c7   :  { %3766 = vmatprep.subr.bf16.mxu1 %v13021_v46  ;;  %v13100_v46 = vcombine.low %v2111_v14, %v2115_v39  ;;  %v13055_v14 = vcombine.high %v2064_v16, %v2068_v17 }
 0x3c8   :  { %3806 = vmatpush1.bf16.msra.mxu0 %v13156_v44  ;;  %v2235_v44 = vld [vmem:[#allocation4 + $0x6f0] sm:$0xff] }
 0x3c9   :  { %3807 = vmatprep.subr.bf16.mxu0 %v13149_v50  ;;  %v13228_v50 = vcombine.low %v2239_v7, %v2243_v8  ;;  %v13221_v52 = vcombine.high %v2231_v6, %v2235_v44  ;;  %v2056_v7 = vld [vmem:[#allocation4 + $0x158] sm:$0xff] }
 0x3ca   :  { %3767 = vmatpush1.bf16.msra.mxu1 %v13020_v58  ;;  %v2223_v58 = vld [vmem:[#allocation4 + $0x690] sm:$0xff]  ;;  %v2060_v8 = vld [vmem:[#allocation4 + $0x178] sm:$0xff] }
 0x3cb   :  { %3768 = vmatprep.subr.bf16.mxu1 %v13013_v0  ;;  %v13092_v0 = vcombine.low %v2103_v42, %v2107_v3  ;;  %v13047_v42 = vcombine.high %v2056_v7, %v2060_v8 }
 0x3cc   :  { %3808 = vmatpush1.bf16.msra.mxu0 %v13148_v53  ;;  %v2227_v53 = vld [vmem:[#allocation4 + $0x6b0] sm:$0xff] }
 0x3cd   :  { %3809 = vmatprep.subr.bf16.mxu0 %v13141_v47  ;;  %v13220_v47 = vcombine.low %v2231_v6, %v2235_v44  ;;  %v13213_v36 = vcombine.high %v2223_v58, %v2227_v53  ;;  %v2048_v6 = vld [vmem:[#allocation4 + $0x118] sm:$0xff] }
 0x3ce   :  { %3769 = vmatpush1.bf16.msra.mxu1 %v13012_v59  ;;  %v2215_v59 = vld [vmem:[#allocation4 + $0x650] sm:$0xff]  ;;  %v2052_v44 = vld [vmem:[#allocation4 + $0x138] sm:$0xff] }
 0x3cf   :  { %3770 = vmatprep.subr.bf16.mxu1 %v13005_v60  ;;  %v13084_v60 = vcombine.low %v2095_v56, %v2099_v38  ;;  %v13039_v56 = vcombine.high %v2048_v6, %v2052_v44 }
 0x3d0   :  { %3810 = vmatpush1.bf16.msra.mxu0 %v13140_v37  ;;  %v2219_v37 = vld [vmem:[#allocation4 + $0x670] sm:$0xff] }
 0x3d1   :  { %3811 = vmatprep.subr.bf16.mxu0 %v13133_v54  ;;  %v13212_v54 = vcombine.low %v2223_v58, %v2227_v53  ;;  %v13205_v57 = vcombine.high %v2215_v59, %v2219_v37  ;;  %v2040_v58 = vld [vmem:[#allocation4 + $0xd8] sm:$0xff] }
 0x3d2   :  { %3771 = vmatpush1.bf16.msra.mxu1 %v13004_v63  ;;  %v2207_v63 = vld [vmem:[#allocation4 + $0x610] sm:$0xff]  ;;  %v2044_v53 = vld [vmem:[#allocation4 + $0xf8] sm:$0xff] }
 0x3d3   :  { %3772 = vmatprep.subr.bf16.mxu1 %v13125_v28  ;;  %v13076_v28 = vcombine.low %v2087_v49, %v2091_v55  ;;  %v2032_v49 = vld [vmem:[#allocation4 + $0x98] sm:$0xff] }
 0x3d4   :  { %3812 = vmatpush1.bf16.msra.mxu0 %v13132_v27  ;;  %v2211_v27 = vld [vmem:[#allocation4 + $0x630] sm:$0xff]  ;;  %v2036_v55 = vld [vmem:[#allocation4 + $0xb8] sm:$0xff] }
 0x3d5   :  { %3813 = vmatprep.subr.bf16.mxu0 %v13253_v29  ;;  %v13204_v29 = vcombine.low %v2215_v59, %v2219_v37  ;;  %v13197_v23 = vcombine.high %v2207_v63, %v2211_v27  ;;  %v2160_v59 = vld [vmem:[#allocation4 + $0x498] sm:$0xff] }
 0x3d6   :  { %3773 = vmatpush2.bf16.msra.mxu1 %v13124_v26  ;;  %v2200_v26 = vld [vmem:[#allocation4 + $0x5d8] sm:$0xff] }
 0x3d7   :  { %3774 = vmatprep.subr.bf16.mxu1 %v13117_v20  ;;  %v13068_v20 = vcombine.low %v2079_v33, %v2083_v34  ;;  %v2164_v37 = vld [vmem:[#allocation4 + $0x4b8] sm:$0xff] }
 0x3d8   :  { %3814 = vmatpush2.bf16.msra.mxu0 %v13252_v19  ;;  %v2204_v19 = vld [vmem:[#allocation4 + $0x5f8] sm:$0xff] }
 0x3d9   :  { %3815 = vmatprep.subr.bf16.mxu0 %v13245_v21  ;;  %v13196_v21 = vcombine.low %v2207_v63, %v2211_v27  ;;  %v13191_v15 = vcombine.high %v2200_v26, %v2204_v19  ;;  %v2024_v33 = vld [vmem:[#allocation4 + $0x58] sm:$0xff] }
 0x3da   :  { %3775 = vmatpush2.bf16.msra.mxu1 %v13116_v18  ;;  %v2192_v18 = vld [vmem:[#allocation4 + $0x598] sm:$0xff] }
 0x3db   :  { %3776 = vmatprep.subr.bf16.mxu1 %v13109_v12  ;;  %v13062_v12 = vcombine.low %v2072_v24, %v2076_v25  ;;  %v2028_v34 = vld [vmem:[#allocation4 + $0x78] sm:$0xff] }
 0x3dc   :  { %3816 = vmatpush2.bf16.msra.mxu0 %v13244_v11  ;;  %v2196_v11 = vld [vmem:[#allocation4 + $0x5b8] sm:$0xff] }
 0x3dd   :  { %3817 = vmatprep.subr.bf16.mxu0 %v13237_v13  ;;  %v13190_v13 = vcombine.low %v2200_v26, %v2204_v19  ;;  %v13183_v39 = vcombine.high %v2192_v18, %v2196_v11  ;;  %v2152_v63 = vld [vmem:[#allocation4 + $0x458] sm:$0xff] }
 0x3de   :  { %3777 = vmatpush2.bf16.msra.mxu1 %v13108_v9  ;;  %v2184_v9 = vld [vmem:[#allocation4 + $0x558] sm:$0xff] }
 0x3df   :  { %3778 = vmatprep.subr.bf16.mxu1 %v13101_v41  ;;  %v13054_v41 = vcombine.low %v2064_v16, %v2068_v17  ;;  %v2156_v27 = vld [vmem:[#allocation4 + $0x478] sm:$0xff] }
 0x3e0   :  { %3818 = vmatpush2.bf16.msra.mxu0 %v13236_v10  ;;  %v2188_v10 = vld [vmem:[#allocation4 + $0x578] sm:$0xff] }
 0x3e1   :  { %3819 = vmatprep.subr.bf16.mxu0 %v13229_v1  ;;  %v13182_v1 = vcombine.low %v2192_v18, %v2196_v11  ;;  %v13175_v3 = vcombine.high %v2184_v9, %v2188_v10  ;;  %v2016_v24 = vld [vmem:[#allocation4 + $0x18] sm:$0xff] }
 0x3e2   :  { %3779 = vmatpush2.bf16.msra.mxu1 %v13100_v46  ;;  %v2176_v46 = vld [vmem:[#allocation4 + $0x518] sm:$0xff] }
 0x3e3   :  { %3780 = vmatprep.subr.bf16.mxu1 %v13093_v51  ;;  %v13046_v51 = vcombine.low %v2056_v7, %v2060_v8  ;;  %v2020_v25 = vld [vmem:[#allocation4 + $0x38] sm:$0xff] }
 0x3e4   :  { %3820 = vmatpush2.bf16.msra.mxu0 %v13228_v50  ;;  %v2180_v50 = vld [vmem:[#allocation4 + $0x538] sm:$0xff] }
 0x3e5   :  { %3821 = vmatprep.subr.bf16.mxu0 %v13221_v52  ;;  %v13174_v52 = vcombine.low %v2184_v9, %v2188_v10  ;;  %v13167_v38 = vcombine.high %v2176_v46, %v2180_v50  ;;  %v2144_v26 = vld [vmem:[#allocation4 + $0x418] sm:$0xff] }
 0x3e6   :  { %3781 = vmatpush2.bf16.msra.mxu1 %v13092_v0  ;;  %v2168_v0 = vld [vmem:[#allocation4 + $0x4d8] sm:$0xff] }
 0x3e7   :  { %3782 = vmatprep.subr.bf16.mxu1 %v13085_v40  ;;  %v13038_v40 = vcombine.low %v2048_v6, %v2052_v44  ;;  %v2148_v19 = vld [vmem:[#allocation4 + $0x438] sm:$0xff] }
 0x3e8   :  { %3822 = vmatpush2.bf16.msra.mxu0 %v13220_v47  ;;  %v2172_v47 = vld [vmem:[#allocation4 + $0x4f8] sm:$0xff] }
 0x3e9   :  { %3823 = vmatprep.subr.bf16.mxu0 %v13213_v36  ;;  %v13031_v36 = vcombine.high %v2040_v58, %v2044_v53  ;;  %v2136_v16 = vld [vmem:[#allocation4 + $0x3d8] sm:$0xff] }
 0x3ea   :  { %3783 = vmatpush2.bf16.msra.mxu1 %v13084_v60  ;;  %v13030_v60 = vcombine.low %v2040_v58, %v2044_v53  ;;  %v2140_v17 = vld [vmem:[#allocation4 + $0x3f8] sm:$0xff] }
 0x3eb   :  { %3784 = vmatprep.subr.bf16.mxu1 %v13077_v2  ;;  %v13023_v2 = vcombine.high %v2032_v49, %v2036_v55  ;;  %v2264_v18 = vld [vmem:[#allocation4 + $0x7d8] sm:$0xff] }
 0x3ec   :  { %3824 = vmatpush2.bf16.msra.mxu0 %v13212_v54  ;;  %v13158_v54 = vcombine.low %v2168_v0, %v2172_v47  ;;  %v2268_v11 = vld [vmem:[#allocation4 + $0x7f8] sm:$0xff] }
 0x3ed   :  { %3825 = vmatprep.subr.bf16.mxu0 %v13205_v57  ;;  %v13151_v57 = vcombine.high %v2160_v59, %v2164_v37  ;;  %v2128_v7 = vld [vmem:[#allocation4 + $0x398] sm:$0xff] }
 0x3ee   :  { %3785 = vmatpush2.bf16.msra.mxu1 %v13076_v28  ;;  %v13022_v28 = vcombine.low %v2032_v49, %v2036_v55  ;;  %v2132_v8 = vld [vmem:[#allocation4 + $0x3b8] sm:$0xff] }
 0x3ef   :  { %3786 = vmatprep.subr.bf16.mxu1 %v13069_v30  ;;  %v13015_v30 = vcombine.high %v2024_v33, %v2028_v34  ;;  %v2256_v9 = vld [vmem:[#allocation4 + $0x798] sm:$0xff] }
 0x3f0   :  { %3826 = vmatpush2.bf16.msra.mxu0 %v13204_v29  ;;  %v13150_v29 = vcombine.low %v2160_v59, %v2164_v37  ;;  %v2260_v10 = vld [vmem:[#allocation4 + $0x7b8] sm:$0xff] }
 0x3f1   :  { %3827 = vmatprep.subr.bf16.mxu0 %v13197_v23  ;;  %v13143_v23 = vcombine.high %v2152_v63, %v2156_v27  ;;  %v2120_v6 = vld [vmem:[#allocation4 + $0x358] sm:$0xff] }
 0x3f2   :  { %3787 = vmatpush2.bf16.msra.mxu1 %v13068_v20  ;;  %v13014_v20 = vcombine.low %v2024_v33, %v2028_v34  ;;  %v2124_v44 = vld [vmem:[#allocation4 + $0x378] sm:$0xff] }
 0x3f3   :  { %3838 = vmatprep.subr.bf16.mxu1 %v13063_v22  ;;  %v13007_v22 = vcombine.high %v2016_v24, %v2020_v25  ;;  %v2112_v58 = vld [vmem:[#allocation4 + $0x318] sm:$0xff] }
 0x3f4   :  { %3828 = vmatpush2.bf16.msra.mxu0 %v13196_v21  ;;  %v13142_v21 = vcombine.low %v2152_v63, %v2156_v27  ;;  %v2116_v53 = vld [vmem:[#allocation4 + $0x338] sm:$0xff] }
 0x3f5   :  { %3879 = vmatprep.subr.bf16.mxu0 %v13191_v15  ;;  %3789 = vmatmul.mubr.bf16.vlgmr.msra.gmra.mxu1 %v16948_v5  ;;  %v13135_v15 = vcombine.high %v2144_v26, %v2148_v19  ;;  %v2104_v49 = vld [vmem:[#allocation4 + $0x2d8] sm:$0xff] }
 0x3f6   :  { %3839 = vmatpush1.bf16.msra.mxu1 %v13062_v12  ;;  %3870 = vmatprep.mubr.bf16.mxu1 %v16939_v31  ;;  %v13166_v31 = vcombine.low %v2176_v46, %v2180_v50  ;;  %v13006_v12 = vcombine.low %v2016_v24, %v2020_v25  ;;  %v2248_v46 = vld [vmem:[#allocation4 + $0x758] sm:$0xff] }
 0x3f7   :  { %3830 = vmatmul.mubr.bf16.vlgmr.msra.gmra.mxu0 %v16953_v61  ;;  %3840 = vmatprep.subr.bf16.mxu1 %v13055_v14  ;;  %v13127_v14 = vcombine.high %v2136_v16, %v2140_v17  ;;  %v2252_v50 = vld [vmem:[#allocation4 + $0x778] sm:$0xff] }
 0x3f8   :  { %3880 = vmatpush1.bf16.msra.mxu0 %v13190_v13  ;;  %3911 = vmatprep.mubr.bf16.mxu0 %v16941_v32  ;;  %v13159_v32 = vcombine.high %v2168_v0, %v2172_v47  ;;  %v13134_v13 = vcombine.low %v2144_v26, %v2148_v19  ;;  %v2240_v0 = vld [vmem:[#allocation4 + $0x718] sm:$0xff] }
 0x3f9   :  { %3881 = vmatprep.subr.bf16.mxu0 %v13183_v39  ;;  %v13255_v39 = vcombine.high %v2264_v18, %v2268_v11  ;;  %v2244_v47 = vld [vmem:[#allocation4 + $0x738] sm:$0xff] }
 0x3fa   :  { %3841 = vmatpush1.bf16.msra.mxu1 %v13054_v41  ;;  %v13126_v41 = vcombine.low %v2136_v16, %v2140_v17  ;;  %v2108_v55 = vld [vmem:[#allocation4 + $0x2f8] sm:$0xff] }
 0x3fb   :  { %3842 = vmatprep.subr.bf16.mxu1 %v13047_v42  ;;  %v13119_v42 = vcombine.high %v2128_v7, %v2132_v8  ;;  %v2232_v59 = vld [vmem:[#allocation4 + $0x6d8] sm:$0xff] }
 0x3fc   :  { %3882 = vmatpush1.bf16.msra.mxu0 %v13182_v1  ;;  %v13254_v1 = vcombine.low %v2264_v18, %v2268_v11  ;;  %v2236_v37 = vld [vmem:[#allocation4 + $0x6f8] sm:$0xff] }
 0x3fd   :  { %3883 = vmatprep.subr.bf16.mxu0 %v13175_v3  ;;  %v13247_v3 = vcombine.high %v2256_v9, %v2260_v10  ;;  %v2096_v33 = vld [vmem:[#allocation4 + $0x298] sm:$0xff] }
 0x3fe   :  { %3843 = vmatpush1.bf16.msra.mxu1 %v13046_v51  ;;  %v13118_v51 = vcombine.low %v2128_v7, %v2132_v8  ;;  %v2100_v34 = vld [vmem:[#allocation4 + $0x2b8] sm:$0xff] }
 0x3ff   :  { %3844 = vmatprep.subr.bf16.mxu1 %v13039_v56  ;;  %v13111_v56 = vcombine.high %v2120_v6, %v2124_v44  ;;  %v2224_v63 = vld [vmem:[#allocation4 + $0x698] sm:$0xff] }
 0x400   :  { %3884 = vmatpush1.bf16.msra.mxu0 %v13174_v52  ;;  %v13246_v52 = vcombine.low %v2256_v9, %v2260_v10  ;;  %v2228_v27 = vld [vmem:[#allocation4 + $0x6b8] sm:$0xff] }
 0x401   :  { %3885 = vmatprep.subr.bf16.mxu0 %v13167_v38  ;;  %v13239_v38 = vcombine.high %v2248_v46, %v2252_v50  ;;  %v2088_v24 = vld [vmem:[#allocation4 + $0x258] sm:$0xff] }
 0x402   :  { %3845 = vmatpush1.bf16.msra.mxu1 %v13038_v40  ;;  %v13110_v40 = vcombine.low %v2120_v6, %v2124_v44  ;;  %v2092_v25 = vld [vmem:[#allocation4 + $0x278] sm:$0xff] }
 0x403   :  { %3846 = vmatprep.subr.bf16.mxu1 %v13031_v36  ;;  %v13103_v36 = vcombine.high %v2112_v58, %v2116_v53  ;;  %v2216_v26 = vld [vmem:[#allocation4 + $0x658] sm:$0xff] }
 0x404   :  { %3886 = vmatpush1.bf16.msra.mxu0 %v13166_v31  ;;  %v13238_v31 = vcombine.low %v2248_v46, %v2252_v50  ;;  %v2220_v19 = vld [vmem:[#allocation4 + $0x678] sm:$0xff] }
 0x405   :  { %3887 = vmatprep.subr.bf16.mxu0 %v13159_v32  ;;  %v13231_v32 = vcombine.high %v2240_v0, %v2244_v47  ;;  %v2080_v16 = vld [vmem:[#allocation4 + $0x218] sm:$0xff] }
 0x406   :  { %3847 = vmatpush1.bf16.msra.mxu1 %v13030_v60  ;;  %v13102_v60 = vcombine.low %v2112_v58, %v2116_v53  ;;  %v2084_v17 = vld [vmem:[#allocation4 + $0x238] sm:$0xff] }
 0x407   :  { %3848 = vmatprep.subr.bf16.mxu1 %v13023_v2  ;;  %v13095_v2 = vcombine.high %v2104_v49, %v2108_v55  ;;  %v2208_v18 = vld [vmem:[#allocation4 + $0x618] sm:$0xff]  ;;  %v13070_v7 = vcombine.low %v2080_v16, %v2084_v17 }
 0x408   :  { %3888 = vmatpush1.bf16.msra.mxu0 %v13158_v54  ;;  %v13230_v54 = vcombine.low %v2240_v0, %v2244_v47  ;;  %v2212_v11 = vld [vmem:[#allocation4 + $0x638] sm:$0xff] }
 0x409   :  { %3889 = vmatprep.subr.bf16.mxu0 %v13151_v57  ;;  %v13223_v57 = vcombine.high %v2232_v59, %v2236_v37  ;;  %v13198_v8 = vcombine.low %v2208_v18, %v2212_v11  ;;  %v16967_v9 = vld [vmem:[#allocation15 + $0x48] ss:$4 sm:$0xff] }
 0x40a   :  { %3849 = vmatpush1.bf16.msra.mxu1 %v13022_v28  ;;  %v13094_v28 = vcombine.low %v2104_v49, %v2108_v55  ;;  %v2275_v10 = vrot.slane %v16967_v9, %v16722_v35 }
 0x40b   :  { %3850 = vmatprep.subr.bf16.mxu1 %v13015_v30  ;;  %v13087_v30 = vcombine.high %v2096_v33, %v2100_v34 }
 0x40c   :  { %3890 = vmatpush1.bf16.msra.mxu0 %v13150_v29  ;;  %v13222_v29 = vcombine.low %v2232_v59, %v2236_v37 }
 0x40d   :  { %3891 = vmatprep.subr.bf16.mxu0 %v13143_v23  ;;  %v13215_v23 = vcombine.high %v2224_v63, %v2228_v27 }
 0x40e   :  { %3851 = vmatpush1.bf16.msra.mxu1 %v13014_v20  ;;  %v13086_v20 = vcombine.low %v2096_v33, %v2100_v34 }
 0x40f   :  { %3852 = vmatprep.subr.bf16.mxu1 %v13007_v22  ;;  %v13079_v22 = vcombine.high %v2088_v24, %v2092_v25 }
 0x410   :  { %3892 = vmatpush1.bf16.msra.mxu0 %v13142_v21  ;;  %v13214_v21 = vcombine.low %v2224_v63, %v2228_v27 }
 0x411   :  { %3893 = vmatprep.subr.bf16.mxu0 %v13135_v15  ;;  %v13207_v15 = vcombine.high %v2216_v26, %v2220_v19 }
 0x412   :  { %3853 = vmatpush1.bf16.msra.mxu1 %v13006_v12  ;;  %v13078_v12 = vcombine.low %v2088_v24, %v2092_v25 }
 0x413   :  { %3854 = vmatprep.subr.bf16.mxu1 %v13127_v14  ;;  %v13071_v14 = vcombine.high %v2080_v16, %v2084_v17 }
 0x414   :  { %3894 = vmatpush1.bf16.msra.mxu0 %v13134_v13  ;;  %v13206_v13 = vcombine.low %v2216_v26, %v2220_v19 }
 0x415   :  { %3895 = vmatprep.subr.bf16.mxu0 %v13255_v39  ;;  %v13199_v39 = vcombine.high %v2208_v18, %v2212_v11 }
 0x416   :  { %3855 = vmatpush2.bf16.msra.mxu1 %v13126_v41  ;;  %v2279_v41 = vrot.slane %v16967_v9, %v16725_v45 }
 0x417   :  { %3856 = vmatprep.subr.bf16.mxu1 %v13119_v42 }
 0x418   :  { %3896 = vmatpush2.bf16.msra.mxu0 %v13254_v1 }
 0x419   :  { %3897 = vmatprep.subr.bf16.mxu0 %v13247_v3 }
 0x41a   :  { %3857 = vmatpush2.bf16.msra.mxu1 %v13118_v51 }
 0x41b   :  { %3858 = vmatprep.subr.bf16.mxu1 %v13111_v56 }
 0x41c   :  { %3898 = vmatpush2.bf16.msra.mxu0 %v13246_v52 }
 0x41d   :  { %3899 = vmatprep.subr.bf16.mxu0 %v13239_v38 }
 0x41e   :  { %3859 = vmatpush2.bf16.msra.mxu1 %v13110_v40 }
 0x41f   :  { %3860 = vmatprep.subr.bf16.mxu1 %v13103_v36 }
 0x420   :  { %3900 = vmatpush2.bf16.msra.mxu0 %v13238_v31 }
 0x421   :  { %3901 = vmatprep.subr.bf16.mxu0 %v13231_v32 }
 0x422   :  { %3861 = vmatpush2.bf16.msra.mxu1 %v13102_v60 }
 0x423   :  { %3862 = vmatprep.subr.bf16.mxu1 %v13095_v2 }
 0x424   :  { %3902 = vmatpush2.bf16.msra.mxu0 %v13230_v54 }
 0x425   :  { %3903 = vmatprep.subr.bf16.mxu0 %v13223_v57 }
 0x426   :  { %3863 = vmatpush2.bf16.msra.mxu1 %v13094_v28 }
 0x427   :  { %3864 = vmatprep.subr.bf16.mxu1 %v13087_v30 }
 0x428   :  { %3904 = vmatpush2.bf16.msra.mxu0 %v13222_v29 }
 0x429   :  { %3905 = vmatprep.subr.bf16.mxu0 %v13215_v23 }
 0x42a   :  { %3865 = vmatpush2.bf16.msra.mxu1 %v13086_v20 }
 0x42b   :  { %3866 = vmatprep.subr.bf16.mxu1 %v13079_v22 }
 0x42c   :  { %3906 = vmatpush2.bf16.msra.mxu0 %v13214_v21 }
 0x42d   :  { %3907 = vmatprep.subr.bf16.mxu0 %v13207_v15 }
 0x42e   :  { %3867 = vmatpush2.bf16.msra.mxu1 %v13078_v12 }
 0x42f   :  { %3868 = vmatprep.subr.bf16.mxu1 %v13071_v14 }
 0x430   :  { %3908 = vmatpush2.bf16.msra.mxu0 %v13206_v13 }
 0x431   :  { %3909 = vmatprep.subr.bf16.mxu0 %v13199_v39 }
 0x432   :  { %3869 = vmatpush2.bf16.msra.mxu1 %v13070_v7  ;;  %v2283_v7 = vrot.slane %v16967_v9, %v16882_v48 }
 0x434   :  { %3910 = vmatpush2.bf16.msra.mxu0 %v13198_v8  ;;  %v2287_v8 = vrot.slane %v16967_v9, %v16885_v4 }
 0x435   :  { %v3626_v1 = vpop.f32.mrf.mxu1  ;;  %3871 = vmatmul.mubr.bf16.vlgmr.msra.gmra.mxu1 %v16948_v5 }
 0x436   :  { %v3627_v42 = vadd.f32 %v3626_v1, %v2275_v10 }
 0x437   :  { %v3667_v3 = vpop.f32.mrf.mxu0  ;;  %3912 = vmatmul.mubr.bf16.vlgmr.msra.gmra.mxu0 %v16953_v61  ;;  %v3628_v6 = vpop.f32.mrf.mxu1 }
 0x438   :  { %v16975_v44 = vadd.f32 %v3667_v3, %v3627_v42  ;;  %v3629_v46 = vadd.f32 %v3628_v6, %v2279_v41 }
 0x439   :  { %v3669_v50 = vpop.f32.mrf.mxu0  ;;  %v3630_v51 = vpop.f32.mrf.mxu1 }
 0x43a   :  { %v3920_v52 = vrot.slane %v16975_v44, 4  ;;  %v3976_v56 = vmul.f32 %v16975_v44, %v16975_v44  ;;  %v16980_v38 = vadd.f32 %v3669_v50, %v3629_v46 }
 0x43b   :  { %v3671_v58 = vpop.f32.mrf.mxu0  ;;  %v3631_v53 = vpop.f32.mrf.mxu1 }
 0x43c   :  { %v3921_v5 = vadd.f32 %v3920_v52, %v16975_v44  ;;  %v3984_v0 = vrot.slane %v3976_v56, 4  ;;  %v3926_v61 = vrot.slane %v16980_v38, 4  ;;  %v3977_v47 = vmul.f32 %v16980_v38, %v16980_v38 }
 0x43d   :  { %v3672_v40 = vpop.f32.mrf.mxu0 }
 0x43e   :  { %v3922_v31 = vrot.slane %v3921_v5, 2  ;;  %v3985_v36 = vadd.f32 %v3984_v0, %v3976_v56  ;;  %v3927_v32 = vadd.f32 %v3926_v61, %v16980_v38  ;;  %v3990_v49 = vrot.slane %v3977_v47, 4 }
 0x440   :  { %v3923_v55 = vadd.f32 %v3922_v31, %v3921_v5  ;;  %v3986_v59 = vrot.slane %v3985_v36, 2  ;;  %v3928_v37 = vrot.slane %v3927_v32, 2  ;;  %v3991_v60 = vadd.f32 %v3990_v49, %v3977_v47 }
 0x442   :  { %v3924_v54 = vrot.slane %v3923_v55, 1  ;;  %v3987_v2 = vadd.f32 %v3986_v59, %v3985_v36  ;;  %v3929_v57 = vadd.f32 %v3928_v37, %v3927_v32  ;;  %v3992_v33 = vrot.slane %v3991_v60, 2 }
 0x444   :  { %v3925_v34 = vadd.f32 %v3924_v54, %v3923_v55  ;;  %v3988_v63 = vrot.slane %v3987_v2, 1  ;;  %v3930_v27 = vrot.slane %v3929_v57, 1  ;;  %v3993_v28 = vadd.f32 %v3992_v33, %v3991_v60 }
 0x446   :  { %v16987_v29 = vmul.f32 0.125, %v3925_v34  ;;  %v3989_v30 = vadd.f32 %v3988_v63, %v3987_v2  ;;  %v3931_v23 = vadd.f32 %v3930_v27, %v3929_v57  ;;  %v3994_v24 = vrot.slane %v3993_v28, 1 }
 0x448   :  { %v4032_v25 = vmul.f32 0.125, %v3989_v30  ;;  %v4040_v26 = vmul.f32 %v16987_v29, %v16987_v29  ;;  %v16991_v19 = vmul.f32 0.125, %v3931_v23  ;;  %v3995_v20 = vadd.f32 %v3994_v24, %v3993_v28 }
 0x44a   :  { %v4048_v21 = vsub.f32 %v4032_v25, %v4040_v26  ;;  %v4033_v22 = vmul.f32 0.125, %v3995_v20  ;;  %v4041_v15 = vmul.f32 %v16991_v19, %v16991_v19 }
 0x44c   :  { %v4056_v16 = vmax.f32 %v4048_v21, 0.0  ;;  %v4049_v17 = vsub.f32 %v4033_v22, %v4041_v15 }
 0x44e   :  { %v4066_v18 = vadd.f32 1e-05, %v4056_v16  ;;  %v4057_v11 = vmax.f32 %v4049_v17, 0.0 }
 0x450   :  { %v4067_v12 = vadd.f32 1e-05, %v4057_v11  ;;  %14349 = vrsqrt.f32 %v4066_v18 }
 0x452   :  { %14351 = vrsqrt.f32 %v4067_v12 }
 0x45d   :  { %v14350_v13 = vpop.eup %14349 }
 0x45f   :  { %v14352_v14 = vpop.eup %14351 }
 0x460   :  { %v4090_v39 = vcombine.low %v14350_v13, %v14352_v14 }
 0x475   :  { %v3708_v10 = vpop.f32.mrf.mxu1 }
 0x476   :  { %v3709_v41 = vadd.f32 %v3708_v10, %v2283_v7 }
 0x477   :  { %v3749_v1 = vpop.f32.mrf.mxu0  ;;  %v3710_v42 = vpop.f32.mrf.mxu1 }
 0x478   :  { %v16999_v3 = vadd.f32 %v3749_v1, %v3709_v41  ;;  %v3711_v6 = vadd.f32 %v3710_v42, %v2287_v8  ;;  %v17020_v41 = vrot.slane %v4090_v39, %v16736_v62 }
 0x479   :  { %v3751_v46 = vpop.f32.mrf.mxu0  ;;  %v3712_v50 = vpop.f32.mrf.mxu1 }
 0x47a   :  { %v3932_v51 = vrot.slane %v16999_v3, 4  ;;  %v3978_v52 = vmul.f32 %v16999_v3, %v16999_v3  ;;  %v17004_v56 = vadd.f32 %v3751_v46, %v3711_v6  ;;  %v17028_v6 = vsub.s32 4, %v16719_v43 }
 0x47b   :  { %v3753_v58 = vpop.f32.mrf.mxu0  ;;  %v3713_v53 = vpop.f32.mrf.mxu1  ;;  %v17031_v46 = vsub.s32 5, %v16719_v43 }
 0x47c   :  { %v3933_v5 = vadd.f32 %v3932_v51, %v16999_v3  ;;  %v3996_v0 = vrot.slane %v3978_v52, 4  ;;  %v3938_v61 = vrot.slane %v17004_v56, 4  ;;  %v3979_v47 = vmul.f32 %v17004_v56, %v17004_v56 }
 0x47d   :  { %v3754_v40 = vpop.f32.mrf.mxu0  ;;  %v2291_v50 = vrot.slane %v16967_v9, %v17028_v6  ;;  %v2295_v51 = vrot.slane %v16967_v9, %v17031_v46 }
 0x47e   :  { %v3934_v31 = vrot.slane %v3933_v5, 2  ;;  %v3997_v36 = vadd.f32 %v3996_v0, %v3978_v52  ;;  %v3939_v32 = vadd.f32 %v3938_v61, %v17004_v56  ;;  %v4002_v49 = vrot.slane %v3979_v47, 4 }
 0x480   :  { %v3935_v55 = vadd.f32 %v3934_v31, %v3933_v5  ;;  %v3998_v59 = vrot.slane %v3997_v36, 2  ;;  %v3940_v37 = vrot.slane %v3939_v32, 2  ;;  %v4003_v60 = vadd.f32 %v4002_v49, %v3979_v47 }
 0x482   :  { %v3936_v54 = vrot.slane %v3935_v55, 1  ;;  %v3999_v2 = vadd.f32 %v3998_v59, %v3997_v36  ;;  %v3941_v57 = vadd.f32 %v3940_v37, %v3939_v32  ;;  %v4004_v33 = vrot.slane %v4003_v60, 2 }
 0x484   :  { %v3937_v34 = vadd.f32 %v3936_v54, %v3935_v55  ;;  %v4000_v63 = vrot.slane %v3999_v2, 1  ;;  %v3942_v27 = vrot.slane %v3941_v57, 1  ;;  %v4005_v28 = vadd.f32 %v4004_v33, %v4003_v60 }
 0x486   :  { %v17011_v30 = vmul.f32 0.125, %v3937_v34  ;;  %v4001_v23 = vadd.f32 %v4000_v63, %v3999_v2  ;;  %v3943_v24 = vadd.f32 %v3942_v27, %v3941_v57  ;;  %v4006_v25 = vrot.slane %v4005_v28, 1 }
 0x488   :  { %v4034_v26 = vmul.f32 0.125, %v4001_v23  ;;  %v4042_v20 = vmul.f32 %v17011_v30, %v17011_v30  ;;  %v17015_v21 = vmul.f32 0.125, %v3943_v24  ;;  %v4007_v22 = vadd.f32 %v4006_v25, %v4005_v28 }
 0x48a   :  { %v4050_v15 = vsub.f32 %v4034_v26, %v4042_v20  ;;  %v4035_v16 = vmul.f32 0.125, %v4007_v22  ;;  %v4043_v17 = vmul.f32 %v17015_v21, %v17015_v21 }
 0x48c   :  { %v4058_v18 = vmax.f32 %v4050_v15, 0.0  ;;  %v4051_v11 = vsub.f32 %v4035_v16, %v4043_v17 }
 0x48e   :  { %v4068_v12 = vadd.f32 1e-05, %v4058_v18  ;;  %v4059_v13 = vmax.f32 %v4051_v11, 0.0 }
 0x490   :  { %v4069_v14 = vadd.f32 1e-05, %v4059_v13  ;;  %14353 = vrsqrt.f32 %v4068_v12 }
 0x492   :  { %14355 = vrsqrt.f32 %v4069_v14 }
 0x49d   :  { %v14354_v7 = vpop.eup %14353 }
 0x49f   :  { %v14356_v8 = vpop.eup %14355 }
 0x4a0   :  { %v4091_v10 = vcombine.low %v14354_v7, %v14356_v8 }
 0x4a2   :  { %v17023_v1 = vrot.slane %v4091_v10, %v16736_v62 }
 0x4a4   :  { %v4122_v42 = vcombine.low %v17020_v41, %v17023_v1 }
 0x4b5   :  { %v3790_v39 = vpop.f32.mrf.mxu1 }
 0x4b6   :  { %v3791_v52 = vadd.f32 %v3790_v39, %v2291_v50 }
 0x4b7   :  { %v3831_v58 = vpop.f32.mrf.mxu0  ;;  %v3792_v53 = vpop.f32.mrf.mxu1 }
 0x4b8   :  { %v17037_v5 = vadd.f32 %v3831_v58, %v3791_v52  ;;  %v3793_v0 = vadd.f32 %v3792_v53, %v2295_v51 }
 0x4b9   :  { %v3833_v61 = vpop.f32.mrf.mxu0  ;;  %v3794_v47 = vpop.f32.mrf.mxu1 }
 0x4ba   :  { %v3944_v40 = vrot.slane %v17037_v5, 4  ;;  %v3980_v31 = vmul.f32 %v17037_v5, %v17037_v5  ;;  %v17042_v36 = vadd.f32 %v3833_v61, %v3793_v0 }
 0x4bb   :  { %v3835_v32 = vpop.f32.mrf.mxu0  ;;  %v3795_v49 = vpop.f32.mrf.mxu1 }
 0x4bc   :  { %v3945_v55 = vadd.f32 %v3944_v40, %v17037_v5  ;;  %v4008_v59 = vrot.slane %v3980_v31, 4  ;;  %v3950_v37 = vrot.slane %v17042_v36, 4  ;;  %v3981_v60 = vmul.f32 %v17042_v36, %v17042_v36 }
 0x4bd   :  { %v3836_v54 = vpop.f32.mrf.mxu0  ;;  %v17061_v32 = vsub.s32 6, %v16719_v43  ;;  %v17064_v49 = vsub.s32 7, %v16719_v43 }
 0x4be   :  { %v3946_v2 = vrot.slane %v3945_v55, 2  ;;  %v4009_v57 = vadd.f32 %v4008_v59, %v3980_v31  ;;  %v3951_v33 = vadd.f32 %v3950_v37, %v17042_v36  ;;  %v4014_v34 = vrot.slane %v3981_v60, 4 }
 0x4bf   :  { %v2303_v59 = vrot.slane %v16967_v9, %v17064_v49 }
 0x4c0   :  { %v3947_v63 = vadd.f32 %v3946_v2, %v3945_v55  ;;  %v4010_v27 = vrot.slane %v4009_v57, 2  ;;  %v3952_v28 = vrot.slane %v3951_v33, 2  ;;  %v4015_v23 = vadd.f32 %v4014_v34, %v3981_v60 }
 0x4c1   :  { %v2299_v55 = vrot.slane %v16967_v9, %v17061_v32 }
 0x4c2   :  { %v3948_v24 = vrot.slane %v3947_v63, 1  ;;  %v4011_v25 = vadd.f32 %v4010_v27, %v4009_v57  ;;  %v3953_v26 = vadd.f32 %v3952_v28, %v3951_v33  ;;  %v4016_v20 = vrot.slane %v4015_v23, 2 }
 0x4c4   :  { %v3949_v22 = vadd.f32 %v3948_v24, %v3947_v63  ;;  %v4012_v15 = vrot.slane %v4011_v25, 1  ;;  %v3954_v16 = vrot.slane %v3953_v26, 1  ;;  %v4017_v17 = vadd.f32 %v4016_v20, %v4015_v23 }
 0x4c6   :  { %v17049_v18 = vmul.f32 0.125, %v3949_v22  ;;  %v4013_v11 = vadd.f32 %v4012_v15, %v4011_v25  ;;  %v3955_v12 = vadd.f32 %v3954_v16, %v3953_v26  ;;  %v4018_v13 = vrot.slane %v4017_v17, 1 }
 0x4c8   :  { %v4036_v14 = vmul.f32 0.125, %v4013_v11  ;;  %v4044_v7 = vmul.f32 %v17049_v18, %v17049_v18  ;;  %v17053_v8 = vmul.f32 0.125, %v3955_v12  ;;  %v4019_v10 = vadd.f32 %v4018_v13, %v4017_v17 }
 0x4ca   :  { %v4052_v50 = vsub.f32 %v4036_v14, %v4044_v7  ;;  %v4037_v51 = vmul.f32 0.125, %v4019_v10  ;;  %v4045_v39 = vmul.f32 %v17053_v8, %v17053_v8 }
 0x4cc   :  { %v4060_v52 = vmax.f32 %v4052_v50, 0.0  ;;  %v4053_v58 = vsub.f32 %v4037_v51, %v4045_v39 }
 0x4ce   :  { %v4070_v53 = vadd.f32 1e-05, %v4060_v52  ;;  %v4061_v0 = vmax.f32 %v4053_v58, 0.0 }
 0x4d0   :  { %v4071_v61 = vadd.f32 1e-05, %v4061_v0  ;;  %14357 = vrsqrt.f32 %v4070_v53 }
 0x4d2   :  { %14359 = vrsqrt.f32 %v4071_v61 }
 0x4dd   :  { %v17057_v47 = vpop.eup %14357 }
 0x4df   :  { %v14360_v40 = vpop.eup %14359 }
 0x4e0   :  { %v4092_v31 = vcombine.low %v17057_v47, %v14360_v40 }
 0x4f5   :  { %v3872_v37 = vpop.f32.mrf.mxu1 }
 0x4f6   :  { %v3873_v60 = vadd.f32 %v3872_v37, %v2299_v55 }
 0x4f7   :  { %v3913_v54 = vpop.f32.mrf.mxu0  ;;  %v3874_v2 = vpop.f32.mrf.mxu1 }
 0x4f8   :  { %v17070_v57 = vadd.f32 %v3913_v54, %v3873_v60  ;;  %v3875_v33 = vadd.f32 %v3874_v2, %v2303_v59 }
 0x4f9   :  { %v3915_v34 = vpop.f32.mrf.mxu0  ;;  %v3876_v63 = vpop.f32.mrf.mxu1 }
 0x4fa   :  { %v3956_v27 = vrot.slane %v17070_v57, 4  ;;  %v3982_v43 = vmul.f32 %v17070_v57, %v17070_v57  ;;  %v17075_v28 = vadd.f32 %v3915_v34, %v3875_v33 }
 0x4fb   :  { %v3917_v23 = vpop.f32.mrf.mxu0  ;;  %v3877_v24 = vpop.f32.mrf.mxu1 }
 0x4fc   :  { %v3957_v9 = vadd.f32 %v3956_v27, %v17070_v57  ;;  %v4020_v25 = vrot.slane %v3982_v43, 4  ;;  %v3962_v26 = vrot.slane %v17075_v28, 4  ;;  %v3983_v20 = vmul.f32 %v17075_v28, %v17075_v28 }
 0x4fd   :  { %v3918_v22 = vpop.f32.mrf.mxu0 }
 0x4fe   :  { %v3958_v15 = vrot.slane %v3957_v9, 2  ;;  %v4021_v16 = vadd.f32 %v4020_v25, %v3982_v43  ;;  %v3963_v17 = vadd.f32 %v3962_v26, %v17075_v28  ;;  %v4026_v11 = vrot.slane %v3983_v20, 4 }
 0x500   :  { %v3959_v12 = vadd.f32 %v3958_v15, %v3957_v9  ;;  %v4022_v13 = vrot.slane %v4021_v16, 2  ;;  %v3964_v14 = vrot.slane %v3963_v17, 2  ;;  %v4027_v7 = vadd.f32 %v4026_v11, %v3983_v20  ;;  %v4065_v11 = vld [vmem:[#allocation15 + $0x68] ss:$4 sm:$0xff] }
 0x501   :  { %v4114_v20 = vrot.slane %v4092_v31, %v16736_v62 }
 0x502   :  { %v3960_v10 = vrot.slane %v3959_v12, 1  ;;  %v4023_v50 = vadd.f32 %v4022_v13, %v4021_v16  ;;  %v3965_v51 = vadd.f32 %v3964_v14, %v3963_v17  ;;  %v4028_v39 = vrot.slane %v4027_v7, 2 }
 0x503   :  { %v4130_v16 = vrot.slane %v4122_v42, %v16736_v62 }
 0x504   :  { %v3961_v52 = vadd.f32 %v3960_v10, %v3959_v12  ;;  %v4024_v58 = vrot.slane %v4023_v50, 1  ;;  %v3966_v53 = vrot.slane %v3965_v51, 1  ;;  %v4029_v0 = vadd.f32 %v4028_v39, %v4027_v7 }
 0x506   :  { %v3974_v61 = vmul.f32 0.125, %v3961_v52  ;;  %v4025_v47 = vadd.f32 %v4024_v58, %v4023_v50  ;;  %v3967_v40 = vadd.f32 %v3966_v53, %v3965_v51  ;;  %v4030_v55 = vrot.slane %v4029_v0, 1 }
 0x508   :  { %v4038_v59 = vmul.f32 0.125, %v4025_v47  ;;  %v4046_v37 = vmul.f32 %v3974_v61, %v3974_v61  ;;  %v3975_v60 = vmul.f32 0.125, %v3967_v40  ;;  %v4031_v54 = vadd.f32 %v4030_v55, %v4029_v0 }
 0x50a   :  { %v4054_v2 = vsub.f32 %v4038_v59, %v4046_v37  ;;  %v4039_v33 = vmul.f32 0.125, %v4031_v54  ;;  %v4047_v34 = vmul.f32 %v3975_v60, %v3975_v60 }
 0x50c   :  { %v4062_v63 = vmax.f32 %v4054_v2, 0.0  ;;  %v4055_v27 = vsub.f32 %v4039_v33, %v4047_v34 }
 0x50e   :  { %v4072_v43 = vadd.f32 1e-05, %v4062_v63  ;;  %v4063_v23 = vmax.f32 %v4055_v27, 0.0  ;;  %v4142_v27 = vld [vmem:[#allocation15 + $0x88] ss:$4 sm:$0xff] }
 0x510   :  { %v4073_v24 = vadd.f32 1e-05, %v4063_v23  ;;  %14361 = vrsqrt.f32 %v4072_v43 }
 0x512   :  { %14363 = vrsqrt.f32 %v4073_v24 }
 0x51d   :  { %v14362_v9 = vpop.eup %14361 }
 0x51f   :  { %v14364_v25 = vpop.eup %14363 }
 0x520   :  { %v4093_v26 = vcombine.low %v14362_v9, %v14364_v25 }
 0x522   :  { %v4121_v22 = vrot.slane %v4093_v26, %v16736_v62 }
 0x524   :  { %v4123_v15 = vcombine.low %v4114_v20, %v4121_v22 }
 0x526   :  { %v4137_v17 = vrot.slane %v4123_v15, %v16736_v62 }
 0x528   :  { %v4138_v12 = vcombine.low %v4130_v16, %v4137_v17 }
 0x52a   :  { %v4140_v13 = vmul.f32 %v4138_v12, %v4065_v11 }
 0x52c   :  { %v4147_v14 = vrot.slane %v4140_v13, %v16722_v35  ;;  %v4151_v7 = vrot.slane %v4140_v13, %v16725_v45  ;;  %v4155_v10 = vrot.slane %v4140_v13, %v16882_v48  ;;  %v4159_v31 = vrot.slane %v4140_v13, %v16885_v4 }
 0x52d   :  { %v4163_v50 = vrot.slane %v4140_v13, %v17028_v6  ;;  %v4167_v51 = vrot.slane %v4140_v13, %v17031_v46  ;;  %v4171_v41 = vrot.slane %v4140_v13, %v17061_v32  ;;  %v4175_v1 = vrot.slane %v4140_v13, %v17064_v49 }
 0x52e   :  { %v4184_v42 = vmul.f32 %v4147_v14, %v16987_v29  ;;  %v4185_v39 = vmul.f32 %v4151_v7, %v16991_v19  ;;  %v4186_v52 = vmul.f32 %v4155_v10, %v17011_v30  ;;  %v4187_v58 = vmul.f32 %v4159_v31, %v17015_v21 }
 0x52f   :  { %v4188_v53 = vmul.f32 %v4163_v50, %v17049_v18  ;;  %v4189_v0 = vmul.f32 %v4167_v51, %v17053_v8  ;;  %v4190_v47 = vmul.f32 %v4171_v41, %v3974_v61  ;;  %v4191_v40 = vmul.f32 %v4175_v1, %v3975_v60 }
 0x530   :  { %v4200_v55 = vcombine.low %v4184_v42, %v4185_v39  ;;  %v4201_v59 = vcombine.low %v4186_v52, %v4187_v58  ;;  %v4251_v37 = vmul.f32 %v4147_v14, %v16975_v44  ;;  %v4252_v54 = vmul.f32 %v4151_v7, %v16980_v38 }
 0x531   :  { %v4202_v2 = vcombine.low %v4188_v53, %v4189_v0  ;;  %v4203_v29 = vcombine.low %v4190_v47, %v4191_v40  ;;  %v4253_v19 = vmul.f32 %v4155_v10, %v16999_v3  ;;  %v4254_v30 = vmul.f32 %v4159_v31, %v17004_v56 }
 0x532   :  { %v4210_v21 = vrot.slane %v4200_v55, %v16736_v62  ;;  %v4217_v18 = vrot.slane %v4201_v59, %v16736_v62  ;;  %v4255_v8 = vmul.f32 %v4163_v50, %v17037_v5  ;;  %v4256_v61 = vmul.f32 %v4167_v51, %v17042_v36 }
 0x533   :  { %v4224_v60 = vrot.slane %v4202_v2, %v16736_v62  ;;  %v4231_v44 = vrot.slane %v4203_v29, %v16736_v62  ;;  %v4257_v38 = vmul.f32 %v4171_v41, %v17070_v57  ;;  %v4258_v33 = vmul.f32 %v4175_v1, %v17075_v28 }
 0x534   :  { %v4232_v34 = vcombine.low %v4210_v21, %v4217_v18 }
 0x535   :  { %v4233_v3 = vcombine.low %v4224_v60, %v4231_v44 }
 0x536   :  { %v4240_v56 = vrot.slane %v4232_v34, %v16736_v62 }
 0x537   :  { %v4247_v63 = vrot.slane %v4233_v3, %v16736_v62 }
 0x539   :  { %v4248_v43 = vcombine.low %v4240_v56, %v4247_v63 }
 0x53b   :  { %v4250_v23 = vsub.f32 %v4142_v27, %v4248_v43 }
 0x53d   :  { %v4263_v5 = vrot.slane %v4250_v23, %v16722_v35  ;;  %v4267_v36 = vrot.slane %v4250_v23, %v16725_v45  ;;  %v4271_v24 = vrot.slane %v4250_v23, %v16882_v48  ;;  %v4275_v9 = vrot.slane %v4250_v23, %v16885_v4 }
 0x53e   :  { %v4279_v57 = vrot.slane %v4250_v23, %v17028_v6  ;;  %v4283_v28 = vrot.slane %v4250_v23, %v17031_v46  ;;  %v4287_v25 = vrot.slane %v4250_v23, %v17061_v32  ;;  %v4291_v26 = vrot.slane %v4250_v23, %v17064_v49 }
 0x53f   :  { %v17125_v20 = vadd.f32 %v4263_v5, %v4251_v37  ;;  %v4301_v22 = vadd.f32 %v4267_v36, %v4252_v54  ;;  %v17127_v15 = vadd.f32 %v4271_v24, %v4253_v19  ;;  %v4303_v16 = vadd.f32 %v4275_v9, %v4254_v30 }
 0x540   :  { %v17129_v17 = vadd.f32 %v4279_v57, %v4255_v8  ;;  %v17131_v11 = vadd.f32 %v4283_v28, %v4256_v61  ;;  %v17133_v12 = vadd.f32 %v4287_v25, %v4257_v38  ;;  %v17135_v13 = vadd.f32 %v4291_v26, %v4258_v33 }
 0x541   :  { %v4308_v14 = vmax.f32 %v17125_v20, 0.0  ;;  %v4309_v7 = vmax.f32 %v4301_v22, 0.0  ;;  %v4310_v10 = vmax.f32 %v17127_v15, 0.0  ;;  %v4311_v31 = vmax.f32 %v4303_v16, 0.0 }
 0x542   :  { %v4312_v50 = vmax.f32 %v17129_v17, 0.0  ;;  %v4313_v51 = vmax.f32 %v17131_v11, 0.0  ;;  %v4314_v41 = vmax.f32 %v17133_v12, 0.0  ;;  %v4315_v1 = vmax.f32 %v17135_v13, 0.0 }
 0x543   :  { %15178 = dma.done.wait [#allocation14 + $0x3], 8192 }
 0x544   :  { %15179 = vsyncadd [#allocation14 + $0x3], 4294959104  ;;  %v4321_v42 = vpack.c.bf16 %v4309_v7, %v4309_v7  ;;  %v4323_v39 = vpack.c.bf16 %v4311_v31, %v4311_v31  ;;  %v17146_v52 = vld [vmem:[%s18046_s0] sm:$0xff]  ;;  %v14365_v58 = vld [vmem:[#allocation5 + $0x78] sm:$0xff]   ;;  %v4320_v57 = vpack.c.bf16 %v4308_v14, %v4308_v14  ;;  %v4322_v28 = vpack.c.bf16 %v4310_v10, %v4310_v10 }
 0x545   :  { %v14366_v53 = vld [vmem:[#allocation5 + $0xf8] sm:$0xff]   ;;  %14125 = vmatprep.subr.bf16.mxu1 %v14365_v58  ;;  %v14369_v40 = vld [vmem:[#allocation5 + $0x70] sm:$0xff]   ;;  %v14373_v54 = vld [vmem:[#allocation5 + $0x68] sm:$0xff]   ;;  %v4325_v22 = vpack.c.bf16 %v4313_v51, %v4313_v51  ;;  %v4327_v20 = vpack.c.bf16 %v4315_v1, %v4315_v1 }
 0x546   :  { %4877 = vmatprep.mubr.bf16.mxu1 %v4321_v42  ;;  %4917 = vmatprep.mubr.bf16.mxu0 %v4323_v39  ;;  %v14367_v0 = vld [vmem:[#allocation5 + $0x38] sm:$0xff]   ;;  %v14370_v55 = vld [vmem:[#allocation5 + $0xf0] sm:$0xff]   ;;  %v14374_v2 = vld [vmem:[#allocation5 + $0xe8] sm:$0xff]  }
 0x547   :  { %14147 = vmatprep.subr.bf16.mxu0 %v14366_v53  ;;  %v14368_v47 = vld [vmem:[#allocation5 + $0xb8] sm:$0xff]   ;;  %14126 = vmatpush3.bf16.msra.mxu1 %v14367_v0  ;;  %v14371_v59 = vld [vmem:[#allocation5 + $0x30] sm:$0xff]   ;;  %v14375_v29 = vld [vmem:[#allocation5 + $0x28] sm:$0xff]  }
 0x548   :  { %14148 = vmatpush3.bf16.msra.mxu0 %v14368_v47  ;;  %14127 = vmatprep.subr.bf16.mxu1 %v14369_v40  ;;  %v14372_v37 = vld [vmem:[#allocation5 + $0xb0] sm:$0xff]   ;;  %v14376_v19 = vld [vmem:[#allocation5 + $0xa8] sm:$0xff]   ;;  %v14377_v30 = vld [vmem:[#allocation5 + $0x60] sm:$0xff]  }
 0x549   :  { %14149 = vmatprep.subr.bf16.mxu0 %v14370_v55  ;;  %v14378_v21 = vld [vmem:[#allocation5 + $0xe0] sm:$0xff]   ;;  %v14381_v61 = vld [vmem:[#allocation5 + $0x58] sm:$0xff]   ;;  %v14385_v33 = vld [vmem:[#allocation5 + $0x50] sm:$0xff]  }
 0x54a   :  { %v14379_v18 = vld [vmem:[#allocation5 + $0x20] sm:$0xff]   ;;  %v14382_v60 = vld [vmem:[#allocation5 + $0xd8] sm:$0xff]   ;;  %v14386_v34 = vld [vmem:[#allocation5 + $0xd0] sm:$0xff]  }
 0x54b   :  { %14128 = vmatpush3.bf16.msra.mxu1 %v14371_v59  ;;  %v14380_v8 = vld [vmem:[#allocation5 + $0xa0] sm:$0xff]   ;;  %v14383_v44 = vld [vmem:[#allocation5 + $0x18] sm:$0xff]   ;;  %v14387_v3 = vld [vmem:[#allocation5 + $0x10] sm:$0xff]  }
 0x54c   :  { %14150 = vmatpush3.bf16.msra.mxu0 %v14372_v37  ;;  %14129 = vmatprep.subr.bf16.mxu1 %v14373_v54  ;;  %v14384_v38 = vld [vmem:[#allocation5 + $0x98] sm:$0xff]   ;;  %v14388_v56 = vld [vmem:[#allocation5 + $0x90] sm:$0xff]   ;;  %v14389_v63 = vld [vmem:[#allocation5 + $0x48] sm:$0xff]  }
 0x54d   :  { %14151 = vmatprep.subr.bf16.mxu0 %v14374_v2  ;;  %v14390_v27 = vld [vmem:[#allocation5 + $0xc8] sm:$0xff]   ;;  %v14393_v5 = vld [vmem:[#allocation5 + $0x40] sm:$0xff]   ;;  %v14397_v25 = vld [vmem:[#allocation5 + $0x178] sm:$0xff]  }
 0x54e   :  { %v14391_v43 = vld [vmem:[#allocation5 + $0x8] sm:$0xff]   ;;  %v14394_v36 = vld [vmem:[#allocation5 + $0xc0] sm:$0xff]   ;;  %v14398_v26 = vld [vmem:[#allocation5 + $0x1f8] sm:$0xff]  }
 0x54f   :  { %14130 = vmatpush3.bf16.msra.mxu1 %v14375_v29  ;;  %v14392_v23 = vld [vmem:[#allocation5 + $0x88] sm:$0xff]   ;;  %v14395_v24 = vld [vmem:[#allocation5] sm:$0xff]   ;;  %v14399_v16 = vld [vmem:[#allocation5 + $0x138] sm:$0xff]  }
 0x550   :  { %14152 = vmatpush3.bf16.msra.mxu0 %v14376_v19  ;;  %14131 = vmatprep.subr.bf16.mxu1 %v14377_v30  ;;  %v14396_v9 = vld [vmem:[#allocation5 + $0x80] sm:$0xff]   ;;  %v14400_v14 = vld [vmem:[#allocation5 + $0x1b8] sm:$0xff]   ;;  %v14401_v15 = vld [vmem:[#allocation5 + $0x170] sm:$0xff]  }
 0x551   :  { %14153 = vmatprep.subr.bf16.mxu0 %v14378_v21  ;;  %v14402_v7 = vld [vmem:[#allocation5 + $0x1f0] sm:$0xff]   ;;  %v14405_v31 = vld [vmem:[#allocation5 + $0x168] sm:$0xff]   ;;  %v14409_v42 = vld [vmem:[#allocation5 + $0x160] sm:$0xff]  }
 0x552   :  { %v14403_v10 = vld [vmem:[#allocation5 + $0x130] sm:$0xff]   ;;  %v14406_v13 = vld [vmem:[#allocation5 + $0x1e8] sm:$0xff]   ;;  %v14410_v39 = vld [vmem:[#allocation5 + $0x1e0] sm:$0xff]  }
 0x553   :  { %14132 = vmatpush3.bf16.msra.mxu1 %v14379_v18  ;;  %v14404_v11 = vld [vmem:[#allocation5 + $0x1b0] sm:$0xff]   ;;  %v14407_v51 = vld [vmem:[#allocation5 + $0x128] sm:$0xff]   ;;  %v14411_v58 = vld [vmem:[#allocation5 + $0x120] sm:$0xff]  }
 0x554   :  { %14154 = vmatpush3.bf16.msra.mxu0 %v14380_v8  ;;  %14133 = vmatprep.subr.bf16.mxu1 %v14381_v61  ;;  %v14408_v1 = vld [vmem:[#allocation5 + $0x1a8] sm:$0xff]   ;;  %v14412_v53 = vld [vmem:[#allocation5 + $0x1a0] sm:$0xff]   ;;  %v14413_v0 = vld [vmem:[#allocation5 + $0x158] sm:$0xff]  }
 0x555   :  { %14155 = vmatprep.subr.bf16.mxu0 %v14382_v60  ;;  %v14414_v47 = vld [vmem:[#allocation5 + $0x1d8] sm:$0xff]   ;;  %v14417_v59 = vld [vmem:[#allocation5 + $0x150] sm:$0xff]   ;;  %v14421_v29 = vld [vmem:[#allocation5 + $0x148] sm:$0xff]  }
 0x556   :  { %v14415_v40 = vld [vmem:[#allocation5 + $0x118] sm:$0xff]   ;;  %v14418_v37 = vld [vmem:[#allocation5 + $0x1d0] sm:$0xff]   ;;  %v14422_v19 = vld [vmem:[#allocation5 + $0x1c8] sm:$0xff]  }
 0x557   :  { %14134 = vmatpush3.bf16.msra.mxu1 %v14383_v44  ;;  %v14416_v55 = vld [vmem:[#allocation5 + $0x198] sm:$0xff]   ;;  %v14419_v54 = vld [vmem:[#allocation5 + $0x110] sm:$0xff]   ;;  %v14423_v30 = vld [vmem:[#allocation5 + $0x108] sm:$0xff]   ;;  %v4324_v44 = vpack.c.bf16 %v4312_v50, %v4312_v50 }
 0x558   :  { %14156 = vmatpush3.bf16.msra.mxu0 %v14384_v38  ;;  %14135 = vmatprep.subr.bf16.mxu1 %v14385_v33  ;;  %v14420_v2 = vld [vmem:[#allocation5 + $0x190] sm:$0xff]   ;;  %v14424_v21 = vld [vmem:[#allocation5 + $0x188] sm:$0xff]   ;;  %v14425_v18 = vld [vmem:[#allocation5 + $0x140] sm:$0xff]   ;;  %v4326_v38 = vpack.c.bf16 %v4314_v41, %v4314_v41 }
 0x559   :  { %14157 = vmatprep.subr.bf16.mxu0 %v14386_v34  ;;  %v14426_v8 = vld [vmem:[#allocation5 + $0x1c0] sm:$0xff]  }
 0x55a   :  { %v14427_v61 = vld [vmem:[#allocation5 + $0x100] sm:$0xff]  }
 0x55b   :  { %14136 = vmatpush3.bf16.msra.mxu1 %v14387_v3  ;;  %v14428_v60 = vld [vmem:[#allocation5 + $0x180] sm:$0xff]  }
 0x55c   :  { %14158 = vmatpush3.bf16.msra.mxu0 %v14388_v56  ;;  %14137 = vmatprep.subr.bf16.mxu1 %v14389_v63  ;;  %v13256_v17 = vld [vmem:[#allocation15 + $0xa8] ss:$0 sm:$0xff] }
 0x55d   :  { %14159 = vmatprep.subr.bf16.mxu0 %v14390_v27 }
 0x55f   :  { %14138 = vmatpush3.bf16.msra.mxu1 %v14391_v43 }
 0x560   :  { %14160 = vmatpush3.bf16.msra.mxu0 %v14392_v23  ;;  %14139 = vmatprep.subr.bf16.mxu1 %v14393_v5 }
 0x561   :  { %14161 = vmatprep.subr.bf16.mxu0 %v14394_v36 }
 0x563   :  { %14140 = vmatpush3.bf16.msra.mxu1 %v14395_v24 }
 0x564   :  { %14162 = vmatpush3.bf16.msra.mxu0 %v14396_v9  ;;  %14169 = vmatprep.subr.bf16.mxu1 %v14397_v25 }
 0x565   :  { %14191 = vmatprep.subr.bf16.mxu0 %v14398_v26 }
 0x566   :  { %4878 = vmatmul.mubr.bf16.vlgmr.msra.gmra.mxu1 %v4320_v57 }
 0x567   :  { %4918 = vmatmul.mubr.bf16.vlgmr.msra.gmra.mxu0 %v4322_v28  ;;  %14170 = vmatpush3.bf16.msra.mxu1 %v14399_v16 }
 0x568   :  { %14192 = vmatpush3.bf16.msra.mxu0 %v14400_v14  ;;  %4957 = vmatprep.mubr.bf16.mxu1 %v4325_v22 }
 0x569   :  { %14171 = vmatprep.subr.bf16.mxu1 %v14401_v15  ;;  %4997 = vmatprep.mubr.bf16.mxu0 %v4327_v20 }
 0x56a   :  { %14193 = vmatprep.subr.bf16.mxu0 %v14402_v7 }
 0x56b   :  { %14172 = vmatpush3.bf16.msra.mxu1 %v14403_v10 }
 0x56c   :  { %14194 = vmatpush3.bf16.msra.mxu0 %v14404_v11  ;;  %14173 = vmatprep.subr.bf16.mxu1 %v14405_v31 }
 0x56d   :  { %14195 = vmatprep.subr.bf16.mxu0 %v14406_v13 }
 0x56f   :  { %14174 = vmatpush3.bf16.msra.mxu1 %v14407_v51 }
 0x570   :  { %14196 = vmatpush3.bf16.msra.mxu0 %v14408_v1  ;;  %14175 = vmatprep.subr.bf16.mxu1 %v14409_v42 }
 0x571   :  { %14197 = vmatprep.subr.bf16.mxu0 %v14410_v39 }
 0x573   :  { %14176 = vmatpush3.bf16.msra.mxu1 %v14411_v58 }
 0x574   :  { %14198 = vmatpush3.bf16.msra.mxu0 %v14412_v53  ;;  %14177 = vmatprep.subr.bf16.mxu1 %v14413_v0 }
 0x575   :  { %14199 = vmatprep.subr.bf16.mxu0 %v14414_v47 }
 0x577   :  { %14178 = vmatpush3.bf16.msra.mxu1 %v14415_v40 }
 0x578   :  { %14200 = vmatpush3.bf16.msra.mxu0 %v14416_v55  ;;  %14179 = vmatprep.subr.bf16.mxu1 %v14417_v59 }
 0x579   :  { %14201 = vmatprep.subr.bf16.mxu0 %v14418_v37 }
 0x57b   :  { %14180 = vmatpush3.bf16.msra.mxu1 %v14419_v54 }
 0x57c   :  { %14202 = vmatpush3.bf16.msra.mxu0 %v14420_v2  ;;  %14181 = vmatprep.subr.bf16.mxu1 %v14421_v29 }
 0x57d   :  { %14203 = vmatprep.subr.bf16.mxu0 %v14422_v19 }
 0x57f   :  { %14182 = vmatpush3.bf16.msra.mxu1 %v14423_v30 }
 0x580   :  { %14204 = vmatpush3.bf16.msra.mxu0 %v14424_v21  ;;  %14183 = vmatprep.subr.bf16.mxu1 %v14425_v18 }
 0x581   :  { %14205 = vmatprep.subr.bf16.mxu0 %v14426_v8 }
 0x583   :  { %14184 = vmatpush3.bf16.msra.mxu1 %v14427_v61 }
 0x584   :  { %14206 = vmatpush3.bf16.msra.mxu0 %v14428_v60 }
 0x586   :  { %4958 = vmatmul.mubr.bf16.vlgmr.msra.gmra.mxu1 %v4324_v44 }
 0x587   :  { %4998 = vmatmul.mubr.bf16.vlgmr.msra.gmra.mxu0 %v4326_v38 }
 0x626   :  { %v14141_v33 = vpop.f32.mrf.mxu1 }
 0x627   :  { %v14163_v34 = vpop.f32.mrf.mxu0 }
 0x628   :  { %v14142_v3 = vpop.f32.mrf.mxu1 }
 0x629   :  { %v14164_v56 = vpop.f32.mrf.mxu0  ;;  %v14143_v5 = vadd.f32 %v14142_v3, %v14141_v33 }
 0x62a   :  { %v14144_v63 = vpop.f32.mrf.mxu1  ;;  %v14165_v24 = vadd.f32 %v14164_v56, %v14163_v34 }
 0x62b   :  { %v14166_v27 = vpop.f32.mrf.mxu0  ;;  %v4880_v36 = vadd.f32 %v14143_v5, %v13256_v17 }
 0x62c   :  { %v14145_v43 = vpop.f32.mrf.mxu1 }
 0x62d   :  { %v14167_v23 = vpop.f32.mrf.mxu0  ;;  %v4920_v57 = vadd.f32 %v14165_v24, %v4880_v36 }
 0x646   :  { %v14185_v50 = vpop.f32.mrf.mxu1 }
 0x647   :  { %v14207_v9 = vpop.f32.mrf.mxu0 }
 0x648   :  { %v14186_v12 = vpop.f32.mrf.mxu1 }
 0x649   :  { %v14187_v41 = vadd.f32 %v14186_v12, %v14185_v50  ;;  %v14208_v28 = vpop.f32.mrf.mxu0 }
 0x64a   :  { %v14188_v25 = vpop.f32.mrf.mxu1  ;;  %v14209_v22 = vadd.f32 %v14208_v28, %v14207_v9 }
 0x64b   :  { %v4960_v26 = vadd.f32 %v14187_v41, %v4920_v57  ;;  %v14210_v16 = vpop.f32.mrf.mxu0 }
 0x64c   :  { %v14189_v20 = vpop.f32.mrf.mxu1 }
 0x64d   :  { %v17166_v14 = vadd.f32 %v14209_v22, %v4960_v26  ;;  %v14211_v15 = vpop.f32.mrf.mxu0 }
 0x64e   :  { %15180 = dma.done.wait [#allocation14 + $0x4], 384 }
 0x64f   :  { %15181 = vsyncadd [#allocation14 + $0x4], 4294966912  ;;  %v18416_v7 = vmov 0   ;;  %v5011_v10 = vld [vmem:[#allocation6 + $0x10] sm:$0x33]  ;;  %v5008_v42 = vpack.c.bf16 %v17146_v52, %v17146_v52 }
 0x650   :  { %5081 = vmatprep.mubr.bf16.mxu1 %v18416_v7  ;;  %v13324_v11 = vcombine.high %v5011_v10, %v5011_v10  ;;  %v13323_v31 = vcombine.low %v5011_v10, %v5011_v10  ;;  %v14431_v13 = vld [vmem:[#allocation6 + $0xc] ss:$-8 sps:$4 sm:$0xff]   ;;  %v14433_v1 = vld [vmem:[#allocation6 + $0x8] ss:$-8 sps:$4 sm:$0xff]  }
 0x651   :  { %v5013_v39 = vld [vmem:[#allocation15 + $0x1] ss:$4 sm:$0x3] }
 0x652   :  { %13325 = vmatprep.subr.msk.bf16.mxu1 %vm1147_vm0, %v13324_v11  ;;  %v5044_v51 = vsel %vm1147_vm0, %v13323_v31, 0  ;;  %v5018_v58 = vrot.slane %v5013_v39, %v16722_v35  ;;  %v5022_v53 = vrot.slane %v5013_v39, %v16725_v45 }
 0x653   :  { %5062 = vmatpush1.bf16.msra.mxu1 %v5044_v51 }
 0x654   :  { %5063 = vmatprep.subr.bf16.mxu1 %v14431_v13 }
 0x657   :  { %5064 = vmatpush1.bf16.msra.mxu1 %v14433_v1  ;;  %v5127_v1 = vld [vmem:[#allocation15 + $0x9] ss:$4 sm:$0x3] }
 0x65a   :  { %13326 = vmatmul.mubr.msk.bf16.vlgmr.msra.gmra.mxu1 %vm1143_vm1, %v5008_v42 }
 0x71a   :  { %v5083_v0 = vpop.f32.mrf.mxu1 }
 0x71b   :  { %v5084_v47 = vadd.f32 %v5083_v0, %v5018_v58 }
 0x71c   :  { %v5085_v40 = vpop.f32.mrf.mxu1 }
 0x71d   :  { %v5090_v55 = vrot.slane %v5084_v47, 4  ;;  %v5104_v59 = vmul.f32 %v5084_v47, %v5084_v47  ;;  %v5086_v37 = vadd.f32 %v5085_v40, %v5022_v53 }
 0x71e   :  { %v5087_v54 = vpop.f32.mrf.mxu1 }
 0x71f   :  { %v5091_v2 = vadd.f32 %v5090_v55, %v5084_v47  ;;  %v5106_v29 = vrot.slane %v5104_v59, 4  ;;  %v5096_v19 = vrot.slane %v5086_v37, 4  ;;  %v5105_v30 = vmul.f32 %v5086_v37, %v5086_v37  ;;  %v5152_v54 = vld [vmem:[#allocation15 + $0x11] ss:$4 sm:$0x3] }
 0x720   :  { %v5088_v52 = vpop.f32.mrf.mxu1 }
 0x721   :  { %v5092_v21 = vrot.slane %v5091_v2, 2  ;;  %v5107_v18 = vadd.f32 %v5106_v29, %v5104_v59  ;;  %v5097_v8 = vadd.f32 %v5096_v19, %v5086_v37  ;;  %v5112_v61 = vrot.slane %v5105_v30, 4 }
 0x723   :  { %v5093_v60 = vadd.f32 %v5092_v21, %v5091_v2  ;;  %v5108_v44 = vrot.slane %v5107_v18, 2  ;;  %v5098_v38 = vrot.slane %v5097_v8, 2  ;;  %v5113_v33 = vadd.f32 %v5112_v61, %v5105_v30 }
 0x725   :  { %v5094_v34 = vrot.slane %v5093_v60, 1  ;;  %v5109_v3 = vadd.f32 %v5108_v44, %v5107_v18  ;;  %v5099_v56 = vadd.f32 %v5098_v38, %v5097_v8  ;;  %v5114_v63 = vrot.slane %v5113_v33, 2  ;;  %v18417_v44 = vld [vmem:[#allocation113_spill] sm:$0xff]  ;;  %v18418_v38 = vld [vmem:[#allocation111_spill] sm:$0xff] }
 0x727   :  { %v5095_v27 = vadd.f32 %v5094_v34, %v5093_v60  ;;  %v5110_v43 = vrot.slane %v5109_v3, 1  ;;  %v5100_v23 = vrot.slane %v5099_v56, 1  ;;  %v5115_v5 = vadd.f32 %v5114_v63, %v5113_v33  ;;  %v18419_v34 = vld [vmem:[#allocation114_spill] sm:$0xff] }
 0x728   :  { %v13356_v33 = vcombine.high %v18418_v38, %v18417_v44 }
 0x729   :  { %v5102_v17 = vmul.f32 0.125, %v5095_v27  ;;  %v5111_v36 = vadd.f32 %v5110_v43, %v5109_v3  ;;  %v5101_v50 = vadd.f32 %v5100_v23, %v5099_v56  ;;  %v5116_v24 = vrot.slane %v5115_v5, 1  ;;  %v18420_v3 = vld [vmem:[#allocation112_spill] sm:$0xff] }
 0x72a   :  { %v13358_v56 = vcombine.high %v18420_v3, %v18419_v34 }
 0x72b   :  { %v5118_v9 = vmul.f32 0.125, %v5111_v36  ;;  %v5120_v12 = vmul.f32 %v5102_v17, %v5102_v17  ;;  %v5103_v57 = vmul.f32 0.125, %v5101_v50  ;;  %v5117_v41 = vadd.f32 %v5116_v24, %v5115_v5 }
 0x72d   :  { %v5122_v28 = vsub.f32 %v5118_v9, %v5120_v12  ;;  %v5119_v25 = vmul.f32 0.125, %v5117_v41  ;;  %v5121_v26 = vmul.f32 %v5103_v57, %v5103_v57 }
 0x72f   :  { %v5124_v22 = vmax.f32 %v5122_v28, 0.0  ;;  %v5123_v16 = vsub.f32 %v5119_v25, %v5121_v26 }
 0x731   :  { %v5128_v20 = vadd.f32 1e-05, %v5124_v22  ;;  %v5125_v15 = vmax.f32 %v5123_v16, 0.0 }
 0x733   :  { %v5129_v10 = vadd.f32 1e-05, %v5125_v15  ;;  %14434 = vrsqrt.f32 %v5128_v20 }
 0x735   :  { %14436 = vrsqrt.f32 %v5129_v10 }
 0x740   :  { %v14435_v11 = vpop.eup %14434 }
 0x742   :  { %v14437_v31 = vpop.eup %14436 }
 0x743   :  { %v5134_v13 = vcombine.low %v14435_v11, %v14437_v31 }
 0x745   :  { %v5141_v51 = vrot.slane %v5134_v13, %v16736_v62 }
 0x747   :  { %v5148_v42 = vrot.slane %v5141_v51, %v16736_v62 }
 0x749   :  { %v5150_v39 = vmul.f32 %v5148_v42, %v5127_v1 }
 0x74b   :  { %v5157_v58 = vrot.slane %v5150_v39, %v16722_v35  ;;  %v5161_v53 = vrot.slane %v5150_v39, %v16725_v45 }
 0x74d   :  { %v5164_v0 = vmul.f32 %v5157_v58, %v5102_v17  ;;  %v5165_v40 = vmul.f32 %v5161_v53, %v5103_v57  ;;  %v5185_v19 = vmul.f32 %v5157_v58, %v5084_v47  ;;  %v5186_v30 = vmul.f32 %v5161_v53, %v5086_v37 }
 0x74e   :  { %v13355_v47 = vcombine.low %v18418_v38, %v18417_v44  ;;  %v13357_v37 = vcombine.low %v18420_v3, %v18419_v34 }
 0x74f   :  { %v5168_v55 = vcombine.low %v5164_v0, %v5165_v40 }
 0x751   :  { %v5175_v59 = vrot.slane %v5168_v55, %v16736_v62 }
 0x753   :  { %v5182_v2 = vrot.slane %v5175_v59, %v16736_v62 }
 0x755   :  { %v5184_v29 = vsub.f32 %v5152_v54, %v5182_v2 }
 0x757   :  { %v5191_v52 = vrot.slane %v5184_v29, %v16722_v35  ;;  %v5195_v21 = vrot.slane %v5184_v29, %v16725_v45 }
 0x759   :  { %v17184_v18 = vadd.f32 %v5191_v52, %v5185_v19  ;;  %v5199_v8 = vadd.f32 %v5195_v21, %v5186_v30 }
 0x75b   :  { %v5200_v61 = vmax.f32 %v17184_v18, 0.0  ;;  %v5201_v60 = vmax.f32 %v5199_v8, 0.0 }
 0x75c   :  { %15182 = dma.done.wait [#allocation14 + $0x5], 8192 }
 0x75d   :  { %15183 = vsyncadd [#allocation14 + $0x5], 4294959104  ;;  %v18421_v63 = vld [vmem:[#allocation109_spill] sm:$0xff]  ;;  %v18422_v27 = vld [vmem:[#allocation107_spill] sm:$0xff]  ;;  %5613 = vmatprep.subr.bf16.mxu0 %v13356_v33  ;;  %5654 = vmatprep.subr.bf16.mxu1 %v13358_v56  ;;  %v5205_v30 = vpack.c.bf16 %v5201_v60, %v5201_v60 }
 0x75e   :  { %v13352_v43 = vcombine.high %v18422_v27, %v18421_v63  ;;  %v18423_v23 = vld [vmem:[#allocation110_spill] sm:$0xff]  ;;  %v18424_v5 = vld [vmem:[#allocation108_spill] sm:$0xff]  ;;  %5614 = vmatpush1.bf16.msra.mxu0 %v13355_v47  ;;  %5655 = vmatpush1.bf16.msra.mxu1 %v13357_v37  ;;  %v13351_v36 = vcombine.low %v18422_v27, %v18421_v63  ;;  %v18425_v24 = vld [vmem:[#allocation105_spill] sm:$0xff] }
 0x75f   :  { %v13354_v17 = vcombine.high %v18424_v5, %v18423_v23  ;;  %v13353_v50 = vcombine.low %v18424_v5, %v18423_v23  ;;  %v18426_v9 = vld [vmem:[#allocation103_spill] sm:$0xff]  ;;  %v18427_v57 = vld [vmem:[#allocation106_spill] sm:$0xff]  ;;  %v18428_v41 = vld [vmem:[#allocation104_spill] sm:$0xff]  ;;  %5645 = vmatprep.mubr.bf16.mxu0 %v5205_v30  ;;  %5686 = vmatprep.mubr.bf16.mxu1 %v5205_v30 }
 0x760   :  { %5615 = vmatprep.subr.bf16.mxu0 %v13352_v43  ;;  %v13348_v12 = vcombine.high %v18426_v9, %v18425_v24  ;;  %v13350_v28 = vcombine.high %v18428_v41, %v18427_v57  ;;  %v13347_v25 = vcombine.low %v18426_v9, %v18425_v24  ;;  %v13349_v26 = vcombine.low %v18428_v41, %v18427_v57  ;;  %v18429_v22 = vld [vmem:[#allocation101_spill] sm:$0xff]  ;;  %v18430_v16 = vld [vmem:[#allocation99_spill] sm:$0xff]  ;;  %v18431_v15 = vld [vmem:[#allocation102_spill] sm:$0xff] }
 0x761   :  { %5656 = vmatprep.subr.bf16.mxu1 %v13354_v17  ;;  %v13344_v20 = vcombine.high %v18430_v16, %v18429_v22  ;;  %v18432_v10 = vld [vmem:[#allocation100_spill] sm:$0xff]  ;;  %v13343_v31 = vcombine.low %v18430_v16, %v18429_v22  ;;  %v18433_v51 = vld [vmem:[#allocation97_spill] sm:$0xff]  ;;  %v18434_v1 = vld [vmem:[#allocation95_spill] sm:$0xff] }
 0x762   :  { %5616 = vmatpush1.bf16.msra.mxu0 %v13351_v36  ;;  %5657 = vmatpush1.bf16.msra.mxu1 %v13353_v50  ;;  %v13346_v11 = vcombine.high %v18432_v10, %v18431_v15  ;;  %v13345_v13 = vcombine.low %v18432_v10, %v18431_v15  ;;  %v13340_v42 = vcombine.high %v18434_v1, %v18433_v51  ;;  %v18435_v39 = vld [vmem:[#allocation98_spill] sm:$0xff]  ;;  %v18436_v58 = vld [vmem:[#allocation96_spill] sm:$0xff]  ;;  %v18437_v55 = vld [vmem:[#allocation93_spill] sm:$0xff] }
 0x763   :  { %5617 = vmatprep.subr.bf16.mxu0 %v13348_v12  ;;  %5658 = vmatprep.subr.bf16.mxu1 %v13350_v28  ;;  %v13342_v53 = vcombine.high %v18436_v58, %v18435_v39  ;;  %v13339_v0 = vcombine.low %v18434_v1, %v18433_v51  ;;  %v13341_v40 = vcombine.low %v18436_v58, %v18435_v39  ;;  %v18438_v59 = vld [vmem:[#allocation91_spill] sm:$0xff]  ;;  %v18439_v2 = vld [vmem:[#allocation94_spill] sm:$0xff]  ;;  %v18440_v29 = vld [vmem:[#allocation92_spill] sm:$0xff] }
 0x764   :  { %v13336_v54 = vcombine.high %v18438_v59, %v18437_v55  ;;  %v13338_v19 = vcombine.high %v18440_v29, %v18439_v2  ;;  %v13335_v52 = vcombine.low %v18438_v59, %v18437_v55  ;;  %v13337_v21 = vcombine.low %v18440_v29, %v18439_v2  ;;  %v18441_v8 = vld [vmem:[#allocation89_spill] sm:$0xff]  ;;  %v18442_v44 = vld [vmem:[#allocation87_spill] sm:$0xff]  ;;  %v18443_v33 = vld [vmem:[#allocation90_spill] sm:$0xff] }
 0x765   :  { %v13332_v38 = vcombine.high %v18442_v44, %v18441_v8  ;;  %v18444_v34 = vld [vmem:[#allocation88_spill] sm:$0xff]  ;;  %v13331_v60 = vcombine.low %v18442_v44, %v18441_v8  ;;  %v18445_v47 = vld [vmem:[#allocation85_spill] sm:$0xff]  ;;  %v18446_v37 = vld [vmem:[#allocation83_spill] sm:$0xff] }
 0x766   :  { %5618 = vmatpush1.bf16.msra.mxu0 %v13347_v25  ;;  %5659 = vmatpush1.bf16.msra.mxu1 %v13349_v26  ;;  %v13334_v3 = vcombine.high %v18444_v34, %v18443_v33  ;;  %v13333_v56 = vcombine.low %v18444_v34, %v18443_v33  ;;  %v13328_v63 = vcombine.high %v18446_v37, %v18445_v47  ;;  %v18447_v27 = vld [vmem:[#allocation86_spill] sm:$0xff]  ;;  %v18448_v43 = vld [vmem:[#allocation84_spill] sm:$0xff]  ;;  %v18449_v36 = vld [vmem:[#allocation145_spill] sm:$0xff] }
 0x767   :  { %5619 = vmatprep.subr.bf16.mxu0 %v13344_v20  ;;  %5660 = vmatprep.subr.bf16.mxu1 %v13346_v11  ;;  %v13330_v23 = vcombine.high %v18448_v43, %v18447_v27  ;;  %v13327_v5 = vcombine.low %v18446_v37, %v18445_v47  ;;  %v13329_v17 = vcombine.low %v18448_v43, %v18447_v27  ;;  %v18450_v50 = vld [vmem:[#allocation143_spill] sm:$0xff]  ;;  %v18451_v9 = vld [vmem:[#allocation146_spill] sm:$0xff]  ;;  %v18452_v12 = vld [vmem:[#allocation144_spill] sm:$0xff] }
 0x768   :  { %v13388_v24 = vcombine.high %v18450_v50, %v18449_v36  ;;  %v13390_v57 = vcombine.high %v18452_v12, %v18451_v9  ;;  %v13387_v41 = vcombine.low %v18450_v50, %v18449_v36  ;;  %v13389_v28 = vcombine.low %v18452_v12, %v18451_v9  ;;  %v18453_v25 = vld [vmem:[#allocation141_spill] sm:$0xff]  ;;  %v18454_v26 = vld [vmem:[#allocation139_spill] sm:$0xff]  ;;  %v18455_v16 = vld [vmem:[#allocation142_spill] sm:$0xff] }
 0x769   :  { %v13384_v22 = vcombine.high %v18454_v26, %v18453_v25  ;;  %v18456_v20 = vld [vmem:[#allocation140_spill] sm:$0xff]  ;;  %v13383_v10 = vcombine.low %v18454_v26, %v18453_v25  ;;  %v18459_v1 = vld [vmem:[#allocation138_spill] sm:$0xff]  ;;  %v18465_v30 = vld [vmem:[#allocation129_spill] sm:$0xff] }
 0x76a   :  { %5620 = vmatpush1.bf16.msra.mxu0 %v13343_v31  ;;  %5661 = vmatpush1.bf16.msra.mxu1 %v13345_v13  ;;  %v13386_v15 = vcombine.high %v18456_v20, %v18455_v16  ;;  %v13385_v11 = vcombine.low %v18456_v20, %v18455_v16  ;;  %v18457_v31 = vld [vmem:[#allocation137_spill] sm:$0xff]  ;;  %v18458_v13 = vld [vmem:[#allocation135_spill] sm:$0xff]  ;;  %v18463_v59 = vld [vmem:[#allocation134_spill] sm:$0xff] }
 0x76b   :  { %5621 = vmatprep.subr.bf16.mxu0 %v13340_v42  ;;  %5662 = vmatprep.subr.bf16.mxu1 %v13342_v53  ;;  %v13380_v51 = vcombine.high %v18458_v13, %v18457_v31  ;;  %v18460_v42 = vld [vmem:[#allocation136_spill] sm:$0xff]  ;;  %v13379_v58 = vcombine.low %v18458_v13, %v18457_v31  ;;  %v18467_v8 = vld [vmem:[#allocation130_spill] sm:$0xff] }
 0x76c   :  { %v13382_v39 = vcombine.high %v18460_v42, %v18459_v1  ;;  %v13381_v53 = vcombine.low %v18460_v42, %v18459_v1  ;;  %v18468_v44 = vld [vmem:[#allocation128_spill] sm:$0xff]  ;;  %v18471_v47 = vld [vmem:[#allocation126_spill] sm:$0xff] }
 0x76d   :  { %v13373_v34 = vcombine.low %v18468_v44, %v18467_v8  ;;  %v18472_v37 = vld [vmem:[#allocation124_spill] sm:$0xff]  ;;  %v18475_v36 = vld [vmem:[#allocation122_spill] sm:$0xff] }
 0x76e   :  { %5622 = vmatpush1.bf16.msra.mxu0 %v13339_v0  ;;  %5663 = vmatpush1.bf16.msra.mxu1 %v13341_v40  ;;  %v18461_v0 = vld [vmem:[#allocation133_spill] sm:$0xff]  ;;  %v18462_v40 = vld [vmem:[#allocation131_spill] sm:$0xff]  ;;  %v13369_v43 = vcombine.low %v18472_v37, %v18471_v47  ;;  %v18476_v50 = vld [vmem:[#allocation120_spill] sm:$0xff] }
 0x76f   :  { %5623 = vmatprep.subr.bf16.mxu0 %v13336_v54  ;;  %5664 = vmatprep.subr.bf16.mxu1 %v13338_v19  ;;  %v13376_v55 = vcombine.high %v18462_v40, %v18461_v0  ;;  %v18464_v54 = vld [vmem:[#allocation132_spill] sm:$0xff]  ;;  %v13375_v29 = vcombine.low %v18462_v40, %v18461_v0  ;;  %v13365_v12 = vcombine.low %v18476_v50, %v18475_v36  ;;  %v18479_v25 = vld [vmem:[#allocation118_spill] sm:$0xff] }
 0x770   :  { %v13378_v2 = vcombine.high %v18464_v54, %v18463_v59  ;;  %v13377_v19 = vcombine.low %v18464_v54, %v18463_v59  ;;  %v18480_v26 = vld [vmem:[#allocation116_spill] sm:$0xff] }
 0x771   :  { %v13361_v20 = vcombine.low %v18480_v26, %v18479_v25 }
 0x772   :  { %5624 = vmatpush1.bf16.msra.mxu0 %v13335_v52  ;;  %5665 = vmatpush1.bf16.msra.mxu1 %v13337_v21  ;;  %v18466_v52 = vld [vmem:[#allocation127_spill] sm:$0xff] }
 0x773   :  { %5625 = vmatprep.subr.bf16.mxu0 %v13332_v38  ;;  %5666 = vmatprep.subr.bf16.mxu1 %v13334_v3  ;;  %v13372_v21 = vcombine.high %v18466_v52, %v18465_v30  ;;  %v13374_v38 = vcombine.high %v18468_v44, %v18467_v8  ;;  %v13371_v33 = vcombine.low %v18466_v52, %v18465_v30  ;;  %v18469_v3 = vld [vmem:[#allocation125_spill] sm:$0xff] }
 0x776   :  { %5626 = vmatpush1.bf16.msra.mxu0 %v13331_v60  ;;  %5667 = vmatpush1.bf16.msra.mxu1 %v13333_v56  ;;  %v18470_v60 = vld [vmem:[#allocation123_spill] sm:$0xff] }
 0x777   :  { %5627 = vmatprep.subr.bf16.mxu0 %v13328_v63  ;;  %5668 = vmatprep.subr.bf16.mxu1 %v13330_v23  ;;  %v13368_v56 = vcombine.high %v18470_v60, %v18469_v3  ;;  %v13370_v63 = vcombine.high %v18472_v37, %v18471_v47  ;;  %v13367_v27 = vcombine.low %v18470_v60, %v18469_v3  ;;  %v18473_v23 = vld [vmem:[#allocation121_spill] sm:$0xff] }
 0x77a   :  { %5628 = vmatpush1.bf16.msra.mxu0 %v13327_v5  ;;  %5669 = vmatpush1.bf16.msra.mxu1 %v13329_v17  ;;  %v18474_v5 = vld [vmem:[#allocation119_spill] sm:$0xff] }
 0x77b   :  { %5629 = vmatprep.subr.bf16.mxu0 %v13388_v24  ;;  %5670 = vmatprep.subr.bf16.mxu1 %v13390_v57  ;;  %v13364_v17 = vcombine.high %v18474_v5, %v18473_v23  ;;  %v13366_v24 = vcombine.high %v18476_v50, %v18475_v36  ;;  %v13363_v9 = vcombine.low %v18474_v5, %v18473_v23  ;;  %v18477_v57 = vld [vmem:[#allocation117_spill] sm:$0xff] }
 0x77e   :  { %5630 = vmatpush2.bf16.msra.mxu0 %v13387_v41  ;;  %5671 = vmatpush2.bf16.msra.mxu1 %v13389_v28  ;;  %v18478_v41 = vld [vmem:[#allocation115_spill] sm:$0xff] }
 0x77f   :  { %5631 = vmatprep.subr.bf16.mxu0 %v13384_v22  ;;  %5672 = vmatprep.subr.bf16.mxu1 %v13386_v15  ;;  %v13360_v28 = vcombine.high %v18478_v41, %v18477_v57  ;;  %v13362_v22 = vcombine.high %v18480_v26, %v18479_v25  ;;  %v13359_v16 = vcombine.low %v18478_v41, %v18477_v57 }
 0x780   :  { %v5204_v15 = vpack.c.bf16 %v5200_v61, %v5200_v61 }
 0x782   :  { %5632 = vmatpush2.bf16.msra.mxu0 %v13383_v10  ;;  %5673 = vmatpush2.bf16.msra.mxu1 %v13385_v11  ;;  %v5271_v10 = vld [vmem:[#allocation15 + $0x19] ss:$4 sm:$0xf] }
 0x783   :  { %5633 = vmatprep.subr.bf16.mxu0 %v13380_v51  ;;  %5674 = vmatprep.subr.bf16.mxu1 %v13382_v39  ;;  %v5276_v11 = vrot.slane %v5271_v10, %v16722_v35  ;;  %v5284_v31 = vrot.slane %v5271_v10, %v16882_v48  ;;  %v5280_v1 = vrot.slane %v5271_v10, %v16725_v45 }
 0x784   :  { %v5288_v42 = vrot.slane %v5271_v10, %v16885_v4 }
 0x786   :  { %5634 = vmatpush2.bf16.msra.mxu0 %v13379_v58  ;;  %5675 = vmatpush2.bf16.msra.mxu1 %v13381_v53 }
 0x787   :  { %5635 = vmatprep.subr.bf16.mxu0 %v13376_v55  ;;  %5676 = vmatprep.subr.bf16.mxu1 %v13378_v2 }
 0x78a   :  { %5636 = vmatpush2.bf16.msra.mxu0 %v13375_v29  ;;  %5677 = vmatpush2.bf16.msra.mxu1 %v13377_v19 }
 0x78b   :  { %5637 = vmatprep.subr.bf16.mxu0 %v13372_v21  ;;  %5678 = vmatprep.subr.bf16.mxu1 %v13374_v38 }
 0x78e   :  { %5638 = vmatpush2.bf16.msra.mxu0 %v13371_v33  ;;  %5679 = vmatpush2.bf16.msra.mxu1 %v13373_v34 }
 0x78f   :  { %5639 = vmatprep.subr.bf16.mxu0 %v13368_v56  ;;  %5680 = vmatprep.subr.bf16.mxu1 %v13370_v63 }
 0x792   :  { %5640 = vmatpush2.bf16.msra.mxu0 %v13367_v27  ;;  %5681 = vmatpush2.bf16.msra.mxu1 %v13369_v43 }
 0x793   :  { %5641 = vmatprep.subr.bf16.mxu0 %v13364_v17  ;;  %5682 = vmatprep.subr.bf16.mxu1 %v13366_v24 }
 0x796   :  { %5642 = vmatpush2.bf16.msra.mxu0 %v13363_v9  ;;  %5683 = vmatpush2.bf16.msra.mxu1 %v13365_v12 }
 0x797   :  { %5643 = vmatprep.subr.bf16.mxu0 %v13360_v28  ;;  %5684 = vmatprep.subr.bf16.mxu1 %v13362_v22 }
 0x79a   :  { %5644 = vmatpush2.bf16.msra.mxu0 %v13359_v16  ;;  %5685 = vmatpush2.bf16.msra.mxu1 %v13361_v20 }
 0x79d   :  { %5646 = vmatmul.mubr.bf16.vlgmr.msra.gmra.mxu0 %v5204_v15  ;;  %5687 = vmatmul.mubr.bf16.vlgmr.msra.gmra.mxu1 %v5204_v15 }
 0x85d   :  { %v5647_v13 = vpop.f32.mrf.mxu0  ;;  %v5688_v51 = vpop.f32.mrf.mxu1 }
 0x85e   :  { %v17322_v39 = vadd.f32 %v5647_v13, %v5276_v11  ;;  %v17324_v18 = vadd.f32 %v5688_v51, %v5284_v31 }
 0x85f   :  { %v5649_v61 = vpop.f32.mrf.mxu0  ;;  %v5690_v58 = vpop.f32.mrf.mxu1 }
 0x860   :  { %v5695_v53 = vrot.slane %v17322_v39, 4  ;;  %v5723_v0 = vmul.f32 %v17322_v39, %v17322_v39  ;;  %v5707_v40 = vrot.slane %v17324_v18, 4  ;;  %v5725_v55 = vmul.f32 %v17324_v18, %v17324_v18 }
 0x861   :  { %v17332_v59 = vadd.f32 %v5649_v61, %v5280_v1  ;;  %v17334_v54 = vadd.f32 %v5690_v58, %v5288_v42  ;;  %v5651_v2 = vpop.f32.mrf.mxu0  ;;  %v5692_v29 = vpop.f32.mrf.mxu1 }
 0x862   :  { %v5696_v19 = vadd.f32 %v5695_v53, %v17322_v39  ;;  %v5727_v30 = vrot.slane %v5723_v0, 4  ;;  %v5708_v52 = vadd.f32 %v5707_v40, %v17324_v18  ;;  %v5739_v21 = vrot.slane %v5725_v55, 4 }
 0x863   :  { %v5701_v8 = vrot.slane %v17332_v59, 4  ;;  %v5724_v44 = vmul.f32 %v17332_v59, %v17332_v59  ;;  %v5713_v38 = vrot.slane %v17334_v54, 4  ;;  %v5726_v33 = vmul.f32 %v17334_v54, %v17334_v54  ;;  %v5652_v34 = vpop.f32.mrf.mxu0  ;;  %v5693_v3 = vpop.f32.mrf.mxu1 }
 0x864   :  { %v5697_v60 = vrot.slane %v5696_v19, 2  ;;  %v5728_v56 = vadd.f32 %v5727_v30, %v5723_v0  ;;  %v5709_v47 = vrot.slane %v5708_v52, 2  ;;  %v5740_v37 = vadd.f32 %v5739_v21, %v5725_v55 }
 0x865   :  { %v5702_v63 = vadd.f32 %v5701_v8, %v17332_v59  ;;  %v5733_v27 = vrot.slane %v5724_v44, 4  ;;  %v5714_v43 = vadd.f32 %v5713_v38, %v17334_v54  ;;  %v5745_v23 = vrot.slane %v5726_v33, 4 }
 0x866   :  { %v5698_v5 = vadd.f32 %v5697_v60, %v5696_v19  ;;  %v5729_v17 = vrot.slane %v5728_v56, 2  ;;  %v5710_v36 = vadd.f32 %v5709_v47, %v5708_v52  ;;  %v5741_v50 = vrot.slane %v5740_v37, 2 }
 0x867   :  { %v5703_v24 = vrot.slane %v5702_v63, 2  ;;  %v5734_v9 = vadd.f32 %v5733_v27, %v5724_v44  ;;  %v5715_v12 = vrot.slane %v5714_v43, 2  ;;  %v5746_v57 = vadd.f32 %v5745_v23, %v5726_v33 }
 0x868   :  { %v5699_v41 = vrot.slane %v5698_v5, 1  ;;  %v5730_v28 = vadd.f32 %v5729_v17, %v5728_v56  ;;  %v5711_v25 = vrot.slane %v5710_v36, 1  ;;  %v5742_v26 = vadd.f32 %v5741_v50, %v5740_v37 }
 0x869   :  { %v5704_v22 = vadd.f32 %v5703_v24, %v5702_v63  ;;  %v5735_v16 = vrot.slane %v5734_v9, 2  ;;  %v5716_v20 = vadd.f32 %v5715_v12, %v5714_v43  ;;  %v5747_v15 = vrot.slane %v5746_v57, 2 }
 0x86a   :  { %v5700_v10 = vadd.f32 %v5699_v41, %v5698_v5  ;;  %v5731_v11 = vrot.slane %v5730_v28, 1  ;;  %v5712_v31 = vadd.f32 %v5711_v25, %v5710_v36  ;;  %v5743_v13 = vrot.slane %v5742_v26, 1 }
 0x86b   :  { %v5705_v51 = vrot.slane %v5704_v22, 1  ;;  %v5736_v1 = vadd.f32 %v5735_v16, %v5734_v9  ;;  %v5717_v42 = vrot.slane %v5716_v20, 1  ;;  %v5748_v61 = vadd.f32 %v5747_v15, %v5746_v57 }
 0x86c   :  { %v5719_v58 = vmul.f32 0.125, %v5700_v10  ;;  %v5732_v53 = vadd.f32 %v5731_v11, %v5730_v28  ;;  %v5721_v0 = vmul.f32 0.125, %v5712_v31  ;;  %v5744_v40 = vadd.f32 %v5743_v13, %v5742_v26  ;;  %v5768_v10 = vld [vmem:[#allocation15 + $0x29] ss:$4 sm:$0xf] }
 0x86d   :  { %v5706_v55 = vadd.f32 %v5705_v51, %v5704_v22  ;;  %v5737_v2 = vrot.slane %v5736_v1, 1  ;;  %v5718_v29 = vadd.f32 %v5717_v42, %v5716_v20  ;;  %v5749_v19 = vrot.slane %v5748_v61, 1 }
 0x86e   :  { %v5751_v30 = vmul.f32 0.125, %v5732_v53  ;;  %v5755_v52 = vmul.f32 %v5719_v58, %v5719_v58  ;;  %v5753_v21 = vmul.f32 0.125, %v5744_v40  ;;  %v5757_v8 = vmul.f32 %v5721_v0, %v5721_v0 }
 0x86f   :  { %v5720_v44 = vmul.f32 0.125, %v5706_v55  ;;  %v5738_v38 = vadd.f32 %v5737_v2, %v5736_v1  ;;  %v5722_v33 = vmul.f32 0.125, %v5718_v29  ;;  %v5750_v34 = vadd.f32 %v5749_v19, %v5748_v61 }
 0x870   :  { %v5759_v3 = vsub.f32 %v5751_v30, %v5755_v52  ;;  %v5761_v60 = vsub.f32 %v5753_v21, %v5757_v8  ;;  %v5808_v21 = vld [vmem:[#allocation15 + $0x39] ss:$4 sm:$0xf] }
 0x871   :  { %v5752_v56 = vmul.f32 0.125, %v5738_v38  ;;  %v5756_v47 = vmul.f32 %v5720_v44, %v5720_v44  ;;  %v5754_v37 = vmul.f32 0.125, %v5750_v34  ;;  %v5758_v63 = vmul.f32 %v5722_v33, %v5722_v33 }
 0x872   :  { %v5763_v27 = vmax.f32 %v5759_v3, 0.0  ;;  %v5765_v43 = vmax.f32 %v5761_v60, 0.0 }
 0x873   :  { %v5760_v23 = vsub.f32 %v5752_v56, %v5756_v47  ;;  %v5762_v5 = vsub.f32 %v5754_v37, %v5758_v63 }
 0x874   :  { %v5769_v17 = vadd.f32 1e-05, %v5763_v27  ;;  %v5771_v36 = vadd.f32 1e-05, %v5765_v43 }
 0x875   :  { %v5764_v50 = vmax.f32 %v5760_v23, 0.0  ;;  %v5766_v24 = vmax.f32 %v5762_v5, 0.0 }
 0x876   :  { %14438 = vrsqrt.f32 %v5769_v17 }
 0x877   :  { %v5770_v9 = vadd.f32 1e-05, %v5764_v50  ;;  %v5772_v12 = vadd.f32 1e-05, %v5766_v24  ;;  %14440 = vrsqrt.f32 %v5771_v36 }
 0x879   :  { %14442 = vrsqrt.f32 %v5770_v9 }
 0x87a   :  { %14444 = vrsqrt.f32 %v5772_v12 }
 0x883   :  { %v14439_v57 = vpop.eup %14438 }
 0x884   :  { %v14441_v41 = vpop.eup %14440 }
 0x886   :  { %v14443_v28 = vpop.eup %14442 }
 0x887   :  { %v14445_v25 = vpop.eup %14444  ;;  %v5781_v26 = vcombine.low %v14439_v57, %v14443_v28 }
 0x888   :  { %v5782_v22 = vcombine.low %v14441_v41, %v14445_v25 }
 0x889   :  { %v5789_v16 = vrot.slane %v5781_v26, %v16736_v62 }
 0x88a   :  { %v5796_v20 = vrot.slane %v5782_v22, %v16736_v62 }
 0x88c   :  { %v5797_v15 = vcombine.low %v5789_v16, %v5796_v20 }
 0x88e   :  { %v5804_v11 = vrot.slane %v5797_v15, %v16736_v62 }
 0x890   :  { %v5806_v31 = vmul.f32 %v5804_v11, %v5768_v10 }
 0x892   :  { %v5813_v13 = vrot.slane %v5806_v31, %v16722_v35  ;;  %v5817_v51 = vrot.slane %v5806_v31, %v16725_v45  ;;  %v5821_v1 = vrot.slane %v5806_v31, %v16882_v48  ;;  %v5825_v42 = vrot.slane %v5806_v31, %v16885_v4 }
 0x894   :  { %v5830_v61 = vmul.f32 %v5813_v13, %v5719_v58  ;;  %v5831_v53 = vmul.f32 %v5817_v51, %v5720_v44  ;;  %v5832_v40 = vmul.f32 %v5821_v1, %v5721_v0  ;;  %v5833_v55 = vmul.f32 %v5825_v42, %v5722_v33 }
 0x895   :  { %v5864_v34 = vmul.f32 %v5813_v13, %v17322_v39  ;;  %v5865_v3 = vmul.f32 %v5817_v51, %v17332_v59  ;;  %v5866_v58 = vmul.f32 %v5821_v1, %v17324_v18  ;;  %v5867_v0 = vmul.f32 %v5825_v42, %v17334_v54 }
 0x896   :  { %v5838_v2 = vcombine.low %v5830_v61, %v5831_v53  ;;  %v5839_v29 = vcombine.low %v5832_v40, %v5833_v55 }
 0x898   :  { %v5846_v19 = vrot.slane %v5838_v2, %v16736_v62  ;;  %v5853_v30 = vrot.slane %v5839_v29, %v16736_v62 }
 0x89a   :  { %v5854_v52 = vcombine.low %v5846_v19, %v5853_v30 }
 0x89c   :  { %v5861_v8 = vrot.slane %v5854_v52, %v16736_v62 }
 0x89e   :  { %v5863_v38 = vsub.f32 %v5808_v21, %v5861_v8 }
 0x8a0   :  { %v5872_v44 = vrot.slane %v5863_v38, %v16722_v35  ;;  %v5876_v33 = vrot.slane %v5863_v38, %v16725_v45  ;;  %v5880_v60 = vrot.slane %v5863_v38, %v16882_v48  ;;  %v5884_v56 = vrot.slane %v5863_v38, %v16885_v4 }
 0x8a2   :  { %v17364_v47 = vadd.f32 %v5872_v44, %v5864_v34  ;;  %v5890_v37 = vadd.f32 %v5876_v33, %v5865_v3  ;;  %v17366_v63 = vadd.f32 %v5880_v60, %v5866_v58  ;;  %v5892_v39 = vadd.f32 %v5884_v56, %v5867_v0 }
 0x8a4   :  { %v5893_v59 = vmax.f32 %v17364_v47, 0.0  ;;  %v5894_v27 = vmax.f32 %v5890_v37, 0.0  ;;  %v5895_v18 = vmax.f32 %v17366_v63, 0.0  ;;  %v5896_v54 = vmax.f32 %v5892_v39, 0.0 }
 0x8a5   :  { %15184 = dma.done.wait [#allocation14 + $0x6], 32768 }
 0x8a6   :  { %15185 = vsyncadd [#allocation14 + $0x6], 4294934528  ;;  %v17370_v43 = vpack.c.bf16 %v5894_v27, %v5894_v27  ;;  %v17372_v23 = vpack.c.bf16 %v5896_v54, %v5896_v54  ;;  %v5959_v5 = vld [vmem:[#allocation8 + $0x1c0] sm:$0xff]  ;;  %v5948_v47 = vld [vmem:[#allocation8 + $0x168] sm:$0xff] }
 0x8a7   :  { %v5963_v17 = vld [vmem:[#allocation8 + $0x1e0] sm:$0xff] }
 0x8a8   :  { %7514 = vmatprep.mubr.bf16.mxu0 %v17370_v43  ;;  %7555 = vmatprep.mubr.bf16.mxu1 %v17372_v23  ;;  %v6087_v36 = vld [vmem:[#allocation8 + $0x5c0] sm:$0xff]  ;;  %v13448_v50 = vcombine.high %v5959_v5, %v5963_v17  ;;  %v13447_v9 = vcombine.low %v5959_v5, %v5963_v17 }
 0x8a9   :  { %v6091_v24 = vld [vmem:[#allocation8 + $0x5e0] sm:$0xff] }
 0x8aa   :  { %v5951_v12 = vld [vmem:[#allocation8 + $0x180] sm:$0xff]  ;;  %v13576_v41 = vcombine.high %v6087_v36, %v6091_v24  ;;  %v13575_v28 = vcombine.low %v6087_v36, %v6091_v24  ;;  %7482 = vmatprep.subr.bf16.mxu0 %v13448_v50 }
 0x8ab   :  { %v5955_v57 = vld [vmem:[#allocation8 + $0x1a0] sm:$0xff]  ;;  %7483 = vmatpush1.bf16.msra.mxu0 %v13447_v9 }
 0x8ac   :  { %v13440_v25 = vcombine.high %v5951_v12, %v5955_v57  ;;  %v6079_v26 = vld [vmem:[#allocation8 + $0x580] sm:$0xff]  ;;  %7523 = vmatprep.subr.bf16.mxu1 %v13576_v41  ;;  %v13439_v31 = vcombine.low %v5951_v12, %v5955_v57 }
 0x8ad   :  { %v6083_v22 = vld [vmem:[#allocation8 + $0x5a0] sm:$0xff]  ;;  %7524 = vmatpush1.bf16.msra.mxu1 %v13575_v28 }
 0x8ae   :  { %v5943_v16 = vld [vmem:[#allocation8 + $0x140] sm:$0xff]  ;;  %v13568_v20 = vcombine.high %v6079_v26, %v6083_v22  ;;  %7484 = vmatprep.subr.bf16.mxu0 %v13440_v25  ;;  %v13567_v13 = vcombine.low %v6079_v26, %v6083_v22 }
 0x8af   :  { %v5947_v15 = vld [vmem:[#allocation8 + $0x160] sm:$0xff]  ;;  %7485 = vmatpush1.bf16.msra.mxu0 %v13439_v31 }
 0x8b0   :  { %v6071_v10 = vld [vmem:[#allocation8 + $0x540] sm:$0xff]  ;;  %v13432_v51 = vcombine.high %v5943_v16, %v5947_v15  ;;  %7525 = vmatprep.subr.bf16.mxu1 %v13568_v20  ;;  %v13431_v55 = vcombine.low %v5943_v16, %v5947_v15 }
 0x8b1   :  { %v6075_v11 = vld [vmem:[#allocation8 + $0x560] sm:$0xff]  ;;  %7526 = vmatpush1.bf16.msra.mxu1 %v13567_v13 }
 0x8b2   :  { %v13560_v1 = vcombine.high %v6071_v10, %v6075_v11  ;;  %v5935_v42 = vld [vmem:[#allocation8 + $0x100] sm:$0xff]  ;;  %7486 = vmatprep.subr.bf16.mxu0 %v13432_v51  ;;  %v13559_v2 = vcombine.low %v6071_v10, %v6075_v11 }
 0x8b3   :  { %v5939_v61 = vld [vmem:[#allocation8 + $0x120] sm:$0xff]  ;;  %7487 = vmatpush1.bf16.msra.mxu0 %v13431_v55 }
 0x8b4   :  { %v6063_v53 = vld [vmem:[#allocation8 + $0x500] sm:$0xff]  ;;  %v13424_v29 = vcombine.high %v5935_v42, %v5939_v61  ;;  %7527 = vmatprep.subr.bf16.mxu1 %v13560_v1  ;;  %v13423_v38 = vcombine.low %v5935_v42, %v5939_v61 }
 0x8b5   :  { %v6067_v40 = vld [vmem:[#allocation8 + $0x520] sm:$0xff]  ;;  %7528 = vmatpush1.bf16.msra.mxu1 %v13559_v2 }
 0x8b6   :  { %v13552_v19 = vcombine.high %v6063_v53, %v6067_v40  ;;  %v5927_v30 = vld [vmem:[#allocation8 + $0xc0] sm:$0xff]  ;;  %7488 = vmatprep.subr.bf16.mxu0 %v13424_v29  ;;  %v13551_v34 = vcombine.low %v6063_v53, %v6067_v40 }
 0x8b7   :  { %v5931_v52 = vld [vmem:[#allocation8 + $0xe0] sm:$0xff]  ;;  %7489 = vmatpush1.bf16.msra.mxu0 %v13423_v38 }
 0x8b8   :  { %v6055_v21 = vld [vmem:[#allocation8 + $0x4c0] sm:$0xff]  ;;  %v13416_v3 = vcombine.high %v5927_v30, %v5931_v52  ;;  %7529 = vmatprep.subr.bf16.mxu1 %v13552_v19  ;;  %v13415_v56 = vcombine.low %v5927_v30, %v5931_v52 }
 0x8b9   :  { %v6059_v8 = vld [vmem:[#allocation8 + $0x4e0] sm:$0xff]  ;;  %7530 = vmatpush1.bf16.msra.mxu1 %v13551_v34 }
 0x8ba   :  { %v13544_v58 = vcombine.high %v6055_v21, %v6059_v8  ;;  %v5919_v0 = vld [vmem:[#allocation8 + $0x80] sm:$0xff]  ;;  %7490 = vmatprep.subr.bf16.mxu0 %v13416_v3  ;;  %v13543_v37 = vcombine.low %v6055_v21, %v6059_v8 }
 0x8bb   :  { %v5923_v44 = vld [vmem:[#allocation8 + $0xa0] sm:$0xff]  ;;  %7491 = vmatpush1.bf16.msra.mxu0 %v13415_v56 }
 0x8bc   :  { %v6047_v33 = vld [vmem:[#allocation8 + $0x480] sm:$0xff]  ;;  %v13408_v39 = vcombine.high %v5919_v0, %v5923_v44  ;;  %7531 = vmatprep.subr.bf16.mxu1 %v13544_v58  ;;  %v13407_v50 = vcombine.low %v5919_v0, %v5923_v44 }
 0x8bd   :  { %v6051_v60 = vld [vmem:[#allocation8 + $0x4a0] sm:$0xff]  ;;  %7532 = vmatpush1.bf16.msra.mxu1 %v13543_v37 }
 0x8be   :  { %v13536_v27 = vcombine.high %v6047_v33, %v6051_v60  ;;  %v5911_v54 = vld [vmem:[#allocation8 + $0x40] sm:$0xff]  ;;  %7492 = vmatprep.subr.bf16.mxu0 %v13408_v39  ;;  %v13535_v24 = vcombine.low %v6047_v33, %v6051_v60 }
 0x8bf   :  { %v5915_v5 = vld [vmem:[#allocation8 + $0x60] sm:$0xff]  ;;  %7493 = vmatpush1.bf16.msra.mxu0 %v13407_v50 }
 0x8c0   :  { %v6039_v17 = vld [vmem:[#allocation8 + $0x440] sm:$0xff]  ;;  %v13400_v9 = vcombine.high %v5911_v54, %v5915_v5  ;;  %7533 = vmatprep.subr.bf16.mxu1 %v13536_v27  ;;  %v13399_v26 = vcombine.low %v5911_v54, %v5915_v5 }
 0x8c1   :  { %v6043_v36 = vld [vmem:[#allocation8 + $0x460] sm:$0xff]  ;;  %7534 = vmatpush1.bf16.msra.mxu1 %v13535_v24 }
 0x8c2   :  { %v13528_v12 = vcombine.high %v6039_v17, %v6043_v36  ;;  %v5903_v57 = vld [vmem:[#allocation8] sm:$0xff]  ;;  %7494 = vmatprep.subr.bf16.mxu0 %v13400_v9  ;;  %v13527_v22 = vcombine.low %v6039_v17, %v6043_v36 }
 0x8c3   :  { %v5907_v41 = vld [vmem:[#allocation8 + $0x20] sm:$0xff]  ;;  %7495 = vmatpush1.bf16.msra.mxu0 %v13399_v26 }
 0x8c4   :  { %v6031_v28 = vld [vmem:[#allocation8 + $0x400] sm:$0xff]  ;;  %v13392_v16 = vcombine.high %v5903_v57, %v5907_v41  ;;  %7535 = vmatprep.subr.bf16.mxu1 %v13528_v12  ;;  %v13391_v13 = vcombine.low %v5903_v57, %v5907_v41 }
 0x8c5   :  { %v6035_v25 = vld [vmem:[#allocation8 + $0x420] sm:$0xff]  ;;  %7536 = vmatpush1.bf16.msra.mxu1 %v13527_v22 }
 0x8c6   :  { %v13520_v20 = vcombine.high %v6031_v28, %v6035_v25  ;;  %v6023_v15 = vld [vmem:[#allocation8 + $0x3c0] sm:$0xff]  ;;  %7496 = vmatprep.subr.bf16.mxu0 %v13392_v16  ;;  %v13519_v51 = vcombine.low %v6031_v28, %v6035_v25 }
 0x8c7   :  { %v6027_v10 = vld [vmem:[#allocation8 + $0x3e0] sm:$0xff]  ;;  %7497 = vmatpush1.bf16.msra.mxu0 %v13391_v13 }
 0x8c8   :  { %v6151_v11 = vld [vmem:[#allocation8 + $0x7c0] sm:$0xff]  ;;  %v13512_v1 = vcombine.high %v6023_v15, %v6027_v10  ;;  %7537 = vmatprep.subr.bf16.mxu1 %v13520_v20  ;;  %v13511_v2 = vcombine.low %v6023_v15, %v6027_v10 }
 0x8c9   :  { %v6155_v31 = vld [vmem:[#allocation8 + $0x7e0] sm:$0xff]  ;;  %7538 = vmatpush1.bf16.msra.mxu1 %v13519_v51 }
 0x8ca   :  { %v13640_v42 = vcombine.high %v6151_v11, %v6155_v31  ;;  %v6015_v61 = vld [vmem:[#allocation8 + $0x380] sm:$0xff]  ;;  %7498 = vmatprep.subr.bf16.mxu0 %v13512_v1  ;;  %v13639_v29 = vcombine.low %v6151_v11, %v6155_v31 }
 0x8cb   :  { %v6019_v53 = vld [vmem:[#allocation8 + $0x3a0] sm:$0xff]  ;;  %7499 = vmatpush2.bf16.msra.mxu0 %v13511_v2 }
 0x8cc   :  { %v6143_v40 = vld [vmem:[#allocation8 + $0x780] sm:$0xff]  ;;  %v13504_v19 = vcombine.high %v6015_v61, %v6019_v53  ;;  %7539 = vmatprep.subr.bf16.mxu1 %v13640_v42  ;;  %v13503_v34 = vcombine.low %v6015_v61, %v6019_v53 }
 0x8cd   :  { %v6147_v55 = vld [vmem:[#allocation8 + $0x7a0] sm:$0xff]  ;;  %7540 = vmatpush2.bf16.msra.mxu1 %v13639_v29 }
 0x8ce   :  { %v13632_v30 = vcombine.high %v6143_v40, %v6147_v55  ;;  %v6007_v52 = vld [vmem:[#allocation8 + $0x340] sm:$0xff]  ;;  %7500 = vmatprep.subr.bf16.mxu0 %v13504_v19  ;;  %v13631_v3 = vcombine.low %v6143_v40, %v6147_v55 }
 0x8cf   :  { %v6011_v21 = vld [vmem:[#allocation8 + $0x360] sm:$0xff]  ;;  %7501 = vmatpush2.bf16.msra.mxu0 %v13503_v34  ;;  %v6092_v34 = vld [vmem:[#allocation8 + $0x5e8] sm:$0xff] }
 0x8d0   :  { %v6135_v8 = vld [vmem:[#allocation8 + $0x740] sm:$0xff]  ;;  %v13496_v58 = vcombine.high %v6007_v52, %v6011_v21  ;;  %7541 = vmatprep.subr.bf16.mxu1 %v13632_v30  ;;  %v13495_v37 = vcombine.low %v6007_v52, %v6011_v21  ;;  %v5960_v21 = vld [vmem:[#allocation8 + $0x1c8] sm:$0xff] }
 0x8d1   :  { %v6139_v38 = vld [vmem:[#allocation8 + $0x760] sm:$0xff]  ;;  %7542 = vmatpush2.bf16.msra.mxu1 %v13631_v3 }
 0x8d2   :  { %v13624_v0 = vcombine.high %v6135_v8, %v6139_v38  ;;  %v5999_v44 = vld [vmem:[#allocation8 + $0x300] sm:$0xff]  ;;  %7502 = vmatprep.subr.bf16.mxu0 %v13496_v58  ;;  %v13623_v39 = vcombine.low %v6135_v8, %v6139_v38  ;;  %v5964_v8 = vld [vmem:[#allocation8 + $0x1e8] sm:$0xff] }
 0x8d3   :  { %v6003_v33 = vld [vmem:[#allocation8 + $0x320] sm:$0xff]  ;;  %7503 = vmatpush2.bf16.msra.mxu0 %v13495_v37  ;;  %v6088_v38 = vld [vmem:[#allocation8 + $0x5c8] sm:$0xff] }
 0x8d4   :  { %v6127_v60 = vld [vmem:[#allocation8 + $0x700] sm:$0xff]  ;;  %v13488_v27 = vcombine.high %v5999_v44, %v6003_v33  ;;  %7543 = vmatprep.subr.bf16.mxu1 %v13624_v0  ;;  %v13487_v24 = vcombine.low %v5999_v44, %v6003_v33  ;;  %v13450_v0 = vcombine.high %v5960_v21, %v5964_v8  ;;  %v13578_v44 = vcombine.high %v6088_v38, %v6092_v34  ;;  %v5952_v33 = vld [vmem:[#allocation8 + $0x188] sm:$0xff] }
 0x8d5   :  { %v6131_v56 = vld [vmem:[#allocation8 + $0x720] sm:$0xff]  ;;  %7544 = vmatpush2.bf16.msra.mxu1 %v13623_v39  ;;  %v6080_v37 = vld [vmem:[#allocation8 + $0x588] sm:$0xff] }
 0x8d6   :  { %v13616_v54 = vcombine.high %v6127_v60, %v6131_v56  ;;  %v5991_v5 = vld [vmem:[#allocation8 + $0x2c0] sm:$0xff]  ;;  %7504 = vmatprep.subr.bf16.mxu0 %v13488_v27  ;;  %v13615_v9 = vcombine.low %v6127_v60, %v6131_v56  ;;  %v5956_v60 = vld [vmem:[#allocation8 + $0x1a8] sm:$0xff]  ;;  %v17379_v56 = vpack.c.bf16 %v5893_v59, %v5893_v59  ;;  %v17384_v27 = vpack.c.bf16 %v5895_v18, %v5895_v18 }
 0x8d7   :  { %v5995_v17 = vld [vmem:[#allocation8 + $0x2e0] sm:$0xff]  ;;  %7505 = vmatpush2.bf16.msra.mxu0 %v13487_v24  ;;  %v6084_v39 = vld [vmem:[#allocation8 + $0x5a8] sm:$0xff]  ;;  %v13441_v63 = vcombine.low %v5952_v33, %v5956_v60 }
 0x8d8   :  { %v6119_v36 = vld [vmem:[#allocation8 + $0x6c0] sm:$0xff]  ;;  %v13480_v12 = vcombine.high %v5991_v5, %v5995_v17  ;;  %7545 = vmatprep.subr.bf16.mxu1 %v13616_v54  ;;  %v13479_v22 = vcombine.low %v5991_v5, %v5995_v17  ;;  %v13449_v54 = vcombine.low %v5960_v21, %v5964_v8  ;;  %v13577_v5 = vcombine.low %v6088_v38, %v6092_v34  ;;  %v6072_v59 = vld [vmem:[#allocation8 + $0x548] sm:$0xff] }
 0x8d9   :  { %v6123_v50 = vld [vmem:[#allocation8 + $0x6e0] sm:$0xff]  ;;  %7546 = vmatpush2.bf16.msra.mxu1 %v13615_v9  ;;  %v13442_v17 = vcombine.high %v5952_v33, %v5956_v60  ;;  %v6076_v24 = vld [vmem:[#allocation8 + $0x568] sm:$0xff]  ;;  %v13569_v18 = vcombine.low %v6080_v37, %v6084_v39 }
 0x8da   :  { %v13608_v57 = vcombine.high %v6119_v36, %v6123_v50  ;;  %v5983_v41 = vld [vmem:[#allocation8 + $0x280] sm:$0xff]  ;;  %7506 = vmatprep.subr.bf16.mxu0 %v13480_v12  ;;  %v13607_v16 = vcombine.low %v6119_v36, %v6123_v50  ;;  %v13570_v36 = vcombine.high %v6080_v37, %v6084_v39  ;;  %v5944_v50 = vld [vmem:[#allocation8 + $0x148] sm:$0xff]  ;;  %v13562_v12 = vcombine.high %v6072_v59, %v6076_v24 }
 0x8db   :  { %v5987_v28 = vld [vmem:[#allocation8 + $0x2a0] sm:$0xff]  ;;  %7507 = vmatpush2.bf16.msra.mxu0 %v13479_v22  ;;  %v13434_v9 = vcombine.high %v5944_v50, %v5948_v47  ;;  %v13561_v22 = vcombine.low %v6072_v59, %v6076_v24  ;;  %v5916_v21 = vld [vmem:[#allocation8 + $0x68] sm:$0xff] }
 0x8dc   :  { %v6111_v25 = vld [vmem:[#allocation8 + $0x680] sm:$0xff]  ;;  %v13472_v20 = vcombine.high %v5983_v41, %v5987_v28  ;;  %7547 = vmatprep.subr.bf16.mxu1 %v13608_v57  ;;  %v13471_v51 = vcombine.low %v5983_v41, %v5987_v28  ;;  %v5936_v57 = vld [vmem:[#allocation8 + $0x108] sm:$0xff] }
 0x8dd   :  { %v6115_v26 = vld [vmem:[#allocation8 + $0x6a0] sm:$0xff]  ;;  %7548 = vmatpush2.bf16.msra.mxu1 %v13607_v16  ;;  %v5940_v41 = vld [vmem:[#allocation8 + $0x128] sm:$0xff] }
 0x8de   :  { %v13600_v15 = vcombine.high %v6111_v25, %v6115_v26  ;;  %v5975_v10 = vld [vmem:[#allocation8 + $0x240] sm:$0xff]  ;;  %7508 = vmatprep.subr.bf16.mxu0 %v13472_v20  ;;  %v13599_v1 = vcombine.low %v6111_v25, %v6115_v26  ;;  %v6064_v28 = vld [vmem:[#allocation8 + $0x508] sm:$0xff]  ;;  %v13433_v26 = vcombine.low %v5944_v50, %v5948_v47  ;;  %v13426_v16 = vcombine.high %v5936_v57, %v5940_v41 }
 0x8df   :  { %v5979_v11 = vld [vmem:[#allocation8 + $0x260] sm:$0xff]  ;;  %7509 = vmatpush2.bf16.msra.mxu0 %v13471_v51  ;;  %v6068_v25 = vld [vmem:[#allocation8 + $0x528] sm:$0xff] }
 0x8e0   :  { %v6103_v31 = vld [vmem:[#allocation8 + $0x640] sm:$0xff]  ;;  %v13464_v42 = vcombine.high %v5975_v10, %v5979_v11  ;;  %7549 = vmatprep.subr.bf16.mxu1 %v13600_v15  ;;  %v13463_v29 = vcombine.low %v5975_v10, %v5979_v11  ;;  %v13554_v20 = vcombine.high %v6064_v28, %v6068_v25  ;;  %v5928_v15 = vld [vmem:[#allocation8 + $0xc8] sm:$0xff]  ;;  %v13553_v51 = vcombine.low %v6064_v28, %v6068_v25 }
 0x8e1   :  { %v6107_v13 = vld [vmem:[#allocation8 + $0x660] sm:$0xff]  ;;  %7550 = vmatpush2.bf16.msra.mxu1 %v13599_v1  ;;  %v5932_v10 = vld [vmem:[#allocation8 + $0xe8] sm:$0xff] }
 0x8e2   :  { %v13592_v61 = vcombine.high %v6103_v31, %v6107_v13  ;;  %v5967_v53 = vld [vmem:[#allocation8 + $0x200] sm:$0xff]  ;;  %7510 = vmatprep.subr.bf16.mxu0 %v13464_v42  ;;  %v13591_v19 = vcombine.low %v6103_v31, %v6107_v13  ;;  %v6056_v11 = vld [vmem:[#allocation8 + $0x4c8] sm:$0xff]  ;;  %v13425_v13 = vcombine.low %v5936_v57, %v5940_v41  ;;  %v13418_v1 = vcombine.high %v5928_v15, %v5932_v10 }
 0x8e3   :  { %v5971_v40 = vld [vmem:[#allocation8 + $0x220] sm:$0xff]  ;;  %7511 = vmatpush2.bf16.msra.mxu0 %v13463_v29  ;;  %v6060_v31 = vld [vmem:[#allocation8 + $0x4e8] sm:$0xff] }
 0x8e4   :  { %v6095_v55 = vld [vmem:[#allocation8 + $0x600] sm:$0xff]  ;;  %v13456_v30 = vcombine.high %v5967_v53, %v5971_v40  ;;  %7551 = vmatprep.subr.bf16.mxu1 %v13592_v61  ;;  %v13455_v3 = vcombine.low %v5967_v53, %v5971_v40  ;;  %v13546_v42 = vcombine.high %v6056_v11, %v6060_v31  ;;  %v5920_v61 = vld [vmem:[#allocation8 + $0x88] sm:$0xff]  ;;  %v13545_v29 = vcombine.low %v6056_v11, %v6060_v31 }
 0x8e5   :  { %v6099_v2 = vld [vmem:[#allocation8 + $0x620] sm:$0xff]  ;;  %7552 = vmatpush2.bf16.msra.mxu1 %v13591_v19  ;;  %v5924_v53 = vld [vmem:[#allocation8 + $0xa8] sm:$0xff] }
 0x8e6   :  { %v13584_v52 = vcombine.high %v6095_v55, %v6099_v2  ;;  %7512 = vmatprep.subr.bf16.mxu0 %v13456_v30  ;;  %v13583_v58 = vcombine.low %v6095_v55, %v6099_v2  ;;  %v6048_v40 = vld [vmem:[#allocation8 + $0x488] sm:$0xff]  ;;  %v13417_v2 = vcombine.low %v5928_v15, %v5932_v10  ;;  %v13410_v19 = vcombine.high %v5920_v61, %v5924_v53 }
 0x8e7   :  { %7513 = vmatpush2.bf16.msra.mxu0 %v13455_v3  ;;  %v6052_v55 = vld [vmem:[#allocation8 + $0x4a8] sm:$0xff]  ;;  %v13409_v34 = vcombine.low %v5920_v61, %v5924_v53 }
 0x8e8   :  { %7553 = vmatprep.subr.bf16.mxu1 %v13584_v52  ;;  %7564 = vmatprep.subr.bf16.mxu0 %v13450_v0  ;;  %v13538_v30 = vcombine.high %v6048_v40, %v6052_v55  ;;  %v5912_v52 = vld [vmem:[#allocation8 + $0x48] sm:$0xff]  ;;  %v13537_v3 = vcombine.low %v6048_v40, %v6052_v55 }
 0x8e9   :  { %7554 = vmatpush2.bf16.msra.mxu1 %v13583_v58  ;;  %v6040_v8 = vld [vmem:[#allocation8 + $0x448] sm:$0xff]  ;;  %v13402_v58 = vcombine.high %v5912_v52, %v5916_v21  ;;  %v13401_v39 = vcombine.low %v5912_v52, %v5916_v21 }
 0x8ea   :  { %7605 = vmatprep.subr.bf16.mxu1 %v13578_v44  ;;  %7515 = vmatmul.mubr.bf16.vlgmr.msra.gmra.mxu0 %v17379_v56  ;;  %v6044_v38 = vld [vmem:[#allocation8 + $0x468] sm:$0xff] }
 0x8eb   :  { %7565 = vmatpush1.bf16.msra.mxu0 %v13449_v54  ;;  %7596 = vmatprep.mubr.bf16.mxu0 %v17370_v43  ;;  %v13530_v0 = vcombine.high %v6040_v8, %v6044_v38  ;;  %v5904_v44 = vld [vmem:[#allocation8 + $0x8] sm:$0xff]  ;;  %v13529_v54 = vcombine.low %v6040_v8, %v6044_v38 }
 0x8ec   :  { %7556 = vmatmul.mubr.bf16.vlgmr.msra.gmra.mxu1 %v17384_v27  ;;  %7566 = vmatprep.subr.bf16.mxu0 %v13442_v17  ;;  %v5908_v33 = vld [vmem:[#allocation8 + $0x28] sm:$0xff] }
 0x8ed   :  { %7606 = vmatpush1.bf16.msra.mxu1 %v13577_v5  ;;  %7637 = vmatprep.mubr.bf16.mxu1 %v17372_v23  ;;  %v6032_v60 = vld [vmem:[#allocation8 + $0x408] sm:$0xff]  ;;  %v13394_v5 = vcombine.high %v5904_v44, %v5908_v33  ;;  %v13393_v24 = vcombine.low %v5904_v44, %v5908_v33 }
 0x8ee   :  { %7607 = vmatprep.subr.bf16.mxu1 %v13570_v36  ;;  %v6036_v37 = vld [vmem:[#allocation8 + $0x428] sm:$0xff] }
 0x8ef   :  { %7567 = vmatpush1.bf16.msra.mxu0 %v13441_v63  ;;  %v13522_v17 = vcombine.high %v6032_v60, %v6036_v37  ;;  %v6024_v36 = vld [vmem:[#allocation8 + $0x3c8] sm:$0xff]  ;;  %v13521_v63 = vcombine.low %v6032_v60, %v6036_v37 }
 0x8f0   :  { %7568 = vmatprep.subr.bf16.mxu0 %v13434_v9  ;;  %v6028_v50 = vld [vmem:[#allocation8 + $0x3e8] sm:$0xff] }
 0x8f1   :  { %7608 = vmatpush1.bf16.msra.mxu1 %v13569_v18  ;;  %v6152_v47 = vld [vmem:[#allocation8 + $0x7c8] sm:$0xff]  ;;  %v13514_v18 = vcombine.high %v6024_v36, %v6028_v50  ;;  %v13513_v25 = vcombine.low %v6024_v36, %v6028_v50 }
 0x8f2   :  { %7609 = vmatprep.subr.bf16.mxu1 %v13562_v12  ;;  %v6156_v59 = vld [vmem:[#allocation8 + $0x7e8] sm:$0xff] }
 0x8f3   :  { %7569 = vmatpush1.bf16.msra.mxu0 %v13433_v26  ;;  %v13642_v9 = vcombine.high %v6152_v47, %v6156_v59  ;;  %v6016_v12 = vld [vmem:[#allocation8 + $0x388] sm:$0xff]  ;;  %v13641_v26 = vcombine.low %v6152_v47, %v6156_v59 }
 0x8f4   :  { %7570 = vmatprep.subr.bf16.mxu0 %v13426_v16  ;;  %v6020_v57 = vld [vmem:[#allocation8 + $0x3a8] sm:$0xff] }
 0x8f5   :  { %7610 = vmatpush1.bf16.msra.mxu1 %v13561_v22  ;;  %v6144_v41 = vld [vmem:[#allocation8 + $0x788] sm:$0xff]  ;;  %v13506_v22 = vcombine.high %v6016_v12, %v6020_v57  ;;  %v13505_v31 = vcombine.low %v6016_v12, %v6020_v57 }
 0x8f6   :  { %7611 = vmatprep.subr.bf16.mxu1 %v13554_v20  ;;  %v6148_v28 = vld [vmem:[#allocation8 + $0x7a8] sm:$0xff] }
 0x8f7   :  { %7571 = vmatpush1.bf16.msra.mxu0 %v13425_v13  ;;  %v13634_v16 = vcombine.high %v6144_v41, %v6148_v28  ;;  %v6008_v20 = vld [vmem:[#allocation8 + $0x348] sm:$0xff]  ;;  %v13633_v13 = vcombine.low %v6144_v41, %v6148_v28 }
 0x8f8   :  { %7572 = vmatprep.subr.bf16.mxu0 %v13418_v1  ;;  %v6012_v15 = vld [vmem:[#allocation8 + $0x368] sm:$0xff] }
 0x8f9   :  { %7612 = vmatpush1.bf16.msra.mxu1 %v13553_v51  ;;  %v6136_v10 = vld [vmem:[#allocation8 + $0x748] sm:$0xff]  ;;  %v13498_v51 = vcombine.high %v6008_v20, %v6012_v15  ;;  %v13497_v55 = vcombine.low %v6008_v20, %v6012_v15  ;;  %v5965_v20 = vld [vmem:[#allocation8 + $0x1f0] sm:$0xff] }
 0x8fa   :  { %7613 = vmatprep.subr.bf16.mxu1 %v13546_v42  ;;  %v6140_v11 = vld [vmem:[#allocation8 + $0x768] sm:$0xff]  ;;  %v6089_v15 = vld [vmem:[#allocation8 + $0x5d0] sm:$0xff] }
 0x8fb   :  { %7573 = vmatpush1.bf16.msra.mxu0 %v13417_v2  ;;  %v13626_v1 = vcombine.high %v6136_v10, %v6140_v11  ;;  %v6000_v42 = vld [vmem:[#allocation8 + $0x308] sm:$0xff]  ;;  %v13625_v2 = vcombine.low %v6136_v10, %v6140_v11  ;;  %v6093_v10 = vld [vmem:[#allocation8 + $0x5f0] sm:$0xff] }
 0x8fc   :  { %7574 = vmatprep.subr.bf16.mxu0 %v13410_v19  ;;  %v6004_v61 = vld [vmem:[#allocation8 + $0x328] sm:$0xff] }
 0x8fd   :  { %7614 = vmatpush1.bf16.msra.mxu1 %v13545_v29  ;;  %v6128_v53 = vld [vmem:[#allocation8 + $0x708] sm:$0xff]  ;;  %v13490_v29 = vcombine.high %v6000_v42, %v6004_v61  ;;  %v13489_v38 = vcombine.low %v6000_v42, %v6004_v61  ;;  %v5957_v42 = vld [vmem:[#allocation8 + $0x1b0] sm:$0xff] }
 0x8fe   :  { %7615 = vmatprep.subr.bf16.mxu1 %v13538_v30  ;;  %v6132_v40 = vld [vmem:[#allocation8 + $0x728] sm:$0xff]  ;;  %v6081_v61 = vld [vmem:[#allocation8 + $0x590] sm:$0xff] }
 0x8ff   :  { %7575 = vmatpush1.bf16.msra.mxu0 %v13409_v34  ;;  %v13618_v19 = vcombine.high %v6128_v53, %v6132_v40  ;;  %v5992_v30 = vld [vmem:[#allocation8 + $0x2c8] sm:$0xff]  ;;  %v13617_v34 = vcombine.low %v6128_v53, %v6132_v40  ;;  %v6085_v53 = vld [vmem:[#allocation8 + $0x5b0] sm:$0xff] }
 0x900   :  { %7576 = vmatprep.subr.bf16.mxu0 %v13402_v58  ;;  %v5996_v52 = vld [vmem:[#allocation8 + $0x2e8] sm:$0xff] }
 0x901   :  { %7616 = vmatpush1.bf16.msra.mxu1 %v13537_v3  ;;  %v6120_v21 = vld [vmem:[#allocation8 + $0x6c8] sm:$0xff]  ;;  %v13482_v3 = vcombine.high %v5992_v30, %v5996_v52  ;;  %v13481_v37 = vcombine.low %v5992_v30, %v5996_v52  ;;  %v5949_v30 = vld [vmem:[#allocation8 + $0x170] sm:$0xff] }
 0x902   :  { %7617 = vmatprep.subr.bf16.mxu1 %v13530_v0  ;;  %v6124_v8 = vld [vmem:[#allocation8 + $0x6e8] sm:$0xff]  ;;  %v6073_v52 = vld [vmem:[#allocation8 + $0x550] sm:$0xff] }
 0x903   :  { %7577 = vmatpush1.bf16.msra.mxu0 %v13401_v39  ;;  %v13610_v58 = vcombine.high %v6120_v21, %v6124_v8  ;;  %v5984_v0 = vld [vmem:[#allocation8 + $0x288] sm:$0xff]  ;;  %v13609_v39 = vcombine.low %v6120_v21, %v6124_v8  ;;  %v6077_v21 = vld [vmem:[#allocation8 + $0x570] sm:$0xff] }
 0x904   :  { %7578 = vmatprep.subr.bf16.mxu0 %v13394_v5  ;;  %v5988_v44 = vld [vmem:[#allocation8 + $0x2a8] sm:$0xff] }
 0x905   :  { %7618 = vmatpush1.bf16.msra.mxu1 %v13529_v54  ;;  %v6112_v33 = vld [vmem:[#allocation8 + $0x688] sm:$0xff]  ;;  %v13474_v54 = vcombine.high %v5984_v0, %v5988_v44  ;;  %v13473_v59 = vcombine.low %v5984_v0, %v5988_v44  ;;  %v5941_v0 = vld [vmem:[#allocation8 + $0x130] sm:$0xff] }
 0x906   :  { %7619 = vmatprep.subr.bf16.mxu1 %v13522_v17  ;;  %v6116_v60 = vld [vmem:[#allocation8 + $0x6a8] sm:$0xff]  ;;  %v6065_v44 = vld [vmem:[#allocation8 + $0x510] sm:$0xff] }
 0x907   :  { %7579 = vmatpush1.bf16.msra.mxu0 %v13393_v24  ;;  %v13602_v5 = vcombine.high %v6112_v33, %v6116_v60  ;;  %v5976_v17 = vld [vmem:[#allocation8 + $0x248] sm:$0xff]  ;;  %v13601_v24 = vcombine.low %v6112_v33, %v6116_v60  ;;  %v6069_v33 = vld [vmem:[#allocation8 + $0x530] sm:$0xff] }
 0x908   :  { %7580 = vmatprep.subr.bf16.mxu0 %v13514_v18  ;;  %v5980_v36 = vld [vmem:[#allocation8 + $0x268] sm:$0xff] }
 0x909   :  { %7620 = vmatpush1.bf16.msra.mxu1 %v13521_v63  ;;  %v6104_v50 = vld [vmem:[#allocation8 + $0x648] sm:$0xff]  ;;  %v13466_v63 = vcombine.high %v5976_v17, %v5980_v36  ;;  %v13465_v28 = vcombine.low %v5976_v17, %v5980_v36  ;;  %v5933_v17 = vld [vmem:[#allocation8 + $0xf0] sm:$0xff] }
 0x90a   :  { %7621 = vmatprep.subr.bf16.mxu1 %v13642_v9  ;;  %v6108_v47 = vld [vmem:[#allocation8 + $0x668] sm:$0xff]  ;;  %v6057_v36 = vld [vmem:[#allocation8 + $0x4d0] sm:$0xff] }
 0x90b   :  { %7581 = vmatpush2.bf16.msra.mxu0 %v13513_v25  ;;  %v13594_v18 = vcombine.high %v6104_v50, %v6108_v47  ;;  %v5968_v9 = vld [vmem:[#allocation8 + $0x208] sm:$0xff]  ;;  %v13593_v25 = vcombine.low %v6104_v50, %v6108_v47  ;;  %v6061_v50 = vld [vmem:[#allocation8 + $0x4f0] sm:$0xff] }
 0x90c   :  { %7582 = vmatprep.subr.bf16.mxu0 %v13506_v22  ;;  %v5972_v12 = vld [vmem:[#allocation8 + $0x228] sm:$0xff] }
 0x90d   :  { %7622 = vmatpush2.bf16.msra.mxu1 %v13641_v26  ;;  %v6096_v57 = vld [vmem:[#allocation8 + $0x608] sm:$0xff]  ;;  %v13458_v26 = vcombine.high %v5968_v9, %v5972_v12  ;;  %v13457_v11 = vcombine.low %v5968_v9, %v5972_v12  ;;  %v5925_v9 = vld [vmem:[#allocation8 + $0xb0] sm:$0xff] }
 0x90e   :  { %7623 = vmatprep.subr.bf16.mxu1 %v13634_v16  ;;  %v6100_v41 = vld [vmem:[#allocation8 + $0x628] sm:$0xff]  ;;  %v5961_v16 = vld [vmem:[#allocation8 + $0x1d0] sm:$0xff] }
 0x90f   :  { %7583 = vmatpush2.bf16.msra.mxu0 %v13505_v31  ;;  %v13586_v22 = vcombine.high %v6096_v57, %v6100_v41  ;;  %v13585_v31 = vcombine.low %v6096_v57, %v6100_v41  ;;  %v13451_v40 = vcombine.low %v5961_v16, %v5965_v20  ;;  %v6049_v12 = vld [vmem:[#allocation8 + $0x490] sm:$0xff] }
 0x910   :  { %7584 = vmatprep.subr.bf16.mxu0 %v13498_v51  ;;  %v13580_v51 = vcombine.high %v6089_v15, %v6093_v10  ;;  %v6053_v57 = vld [vmem:[#allocation8 + $0x4b0] sm:$0xff] }
 0x911   :  { %7624 = vmatpush2.bf16.msra.mxu1 %v13633_v13  ;;  %v13452_v13 = vcombine.high %v5961_v16, %v5965_v20  ;;  %v5917_v16 = vld [vmem:[#allocation8 + $0x70] sm:$0xff] }
 0x912   :  { %7625 = vmatprep.subr.bf16.mxu1 %v13626_v1  ;;  %v5953_v1 = vld [vmem:[#allocation8 + $0x190] sm:$0xff] }
 0x913   :  { %7585 = vmatpush2.bf16.msra.mxu0 %v13497_v55  ;;  %v13579_v55 = vcombine.low %v6089_v15, %v6093_v10  ;;  %v13443_v8 = vcombine.low %v5953_v1, %v5957_v42  ;;  %v6041_v20 = vld [vmem:[#allocation8 + $0x450] sm:$0xff] }
 0x914   :  { %7586 = vmatprep.subr.bf16.mxu0 %v13490_v29  ;;  %v13572_v29 = vcombine.high %v6081_v61, %v6085_v53  ;;  %v6045_v15 = vld [vmem:[#allocation8 + $0x470] sm:$0xff] }
 0x915   :  { %7626 = vmatpush2.bf16.msra.mxu1 %v13625_v2  ;;  %v13444_v2 = vcombine.high %v5953_v1, %v5957_v42  ;;  %v5909_v1 = vld [vmem:[#allocation8 + $0x30] sm:$0xff] }
 0x916   :  { %7627 = vmatprep.subr.bf16.mxu1 %v13618_v19  ;;  %v5945_v19 = vld [vmem:[#allocation8 + $0x150] sm:$0xff] }
 0x917   :  { %7587 = vmatpush2.bf16.msra.mxu0 %v13489_v38  ;;  %v13571_v38 = vcombine.low %v6081_v61, %v6085_v53  ;;  %v13435_v60 = vcombine.low %v5945_v19, %v5949_v30  ;;  %v6033_v42 = vld [vmem:[#allocation8 + $0x410] sm:$0xff] }
 0x918   :  { %7588 = vmatprep.subr.bf16.mxu0 %v13482_v3  ;;  %v13564_v3 = vcombine.high %v6073_v52, %v6077_v21  ;;  %v6037_v61 = vld [vmem:[#allocation8 + $0x430] sm:$0xff] }
 0x919   :  { %7628 = vmatpush2.bf16.msra.mxu1 %v13617_v34  ;;  %v13436_v34 = vcombine.high %v5945_v19, %v5949_v30  ;;  %v6029_v19 = vld [vmem:[#allocation8 + $0x3f0] sm:$0xff] }
 0x91a   :  { %7629 = vmatprep.subr.bf16.mxu1 %v13610_v58  ;;  %v5937_v58 = vld [vmem:[#allocation8 + $0x110] sm:$0xff] }
 0x91b   :  { %7589 = vmatpush2.bf16.msra.mxu0 %v13481_v37  ;;  %v13563_v37 = vcombine.low %v6073_v52, %v6077_v21  ;;  %v13427_v47 = vcombine.low %v5937_v58, %v5941_v0  ;;  %v6153_v30 = vld [vmem:[#allocation8 + $0x7d0] sm:$0xff] }
 0x91c   :  { %7590 = vmatprep.subr.bf16.mxu0 %v13474_v54  ;;  %v13556_v54 = vcombine.high %v6065_v44, %v6069_v33  ;;  %v6157_v52 = vld [vmem:[#allocation8 + $0x7f0] sm:$0xff] }
 0x91d   :  { %7630 = vmatpush2.bf16.msra.mxu1 %v13609_v39  ;;  %v13428_v39 = vcombine.high %v5937_v58, %v5941_v0  ;;  %v6021_v58 = vld [vmem:[#allocation8 + $0x3b0] sm:$0xff] }
 0x91e   :  { %7631 = vmatprep.subr.bf16.mxu1 %v13602_v5  ;;  %v5929_v5 = vld [vmem:[#allocation8 + $0xd0] sm:$0xff] }
 0x91f   :  { %7591 = vmatpush2.bf16.msra.mxu0 %v13473_v59  ;;  %v13555_v59 = vcombine.low %v6065_v44, %v6069_v33  ;;  %v13419_v41 = vcombine.low %v5929_v5, %v5933_v17  ;;  %v6145_v0 = vld [vmem:[#allocation8 + $0x790] sm:$0xff] }
 0x920   :  { %7592 = vmatprep.subr.bf16.mxu0 %v13466_v63  ;;  %v13548_v63 = vcombine.high %v6057_v36, %v6061_v50  ;;  %v6149_v44 = vld [vmem:[#allocation8 + $0x7b0] sm:$0xff] }
 0x921   :  { %7632 = vmatpush2.bf16.msra.mxu1 %v13601_v24  ;;  %v13420_v24 = vcombine.high %v5929_v5, %v5933_v17  ;;  %v6013_v5 = vld [vmem:[#allocation8 + $0x370] sm:$0xff] }
 0x922   :  { %7633 = vmatprep.subr.bf16.mxu1 %v13594_v18  ;;  %v5921_v18 = vld [vmem:[#allocation8 + $0x90] sm:$0xff] }
 0x923   :  { %7593 = vmatpush2.bf16.msra.mxu0 %v13465_v28  ;;  %v13547_v28 = vcombine.low %v6057_v36, %v6061_v50  ;;  %v13411_v10 = vcombine.low %v5921_v18, %v5925_v9  ;;  %v6137_v17 = vld [vmem:[#allocation8 + $0x750] sm:$0xff] }
 0x924   :  { %7594 = vmatprep.subr.bf16.mxu0 %v13458_v26  ;;  %v13540_v26 = vcombine.high %v6049_v12, %v6053_v57  ;;  %v6141_v36 = vld [vmem:[#allocation8 + $0x770] sm:$0xff] }
 0x925   :  { %7634 = vmatpush2.bf16.msra.mxu1 %v13593_v25  ;;  %v13412_v25 = vcombine.high %v5921_v18, %v5925_v9  ;;  %v6005_v18 = vld [vmem:[#allocation8 + $0x330] sm:$0xff] }
 0x926   :  { %7635 = vmatprep.subr.bf16.mxu1 %v13586_v22  ;;  %v5913_v22 = vld [vmem:[#allocation8 + $0x50] sm:$0xff] }
 0x927   :  { %7595 = vmatpush2.bf16.msra.mxu0 %v13457_v11  ;;  %v13539_v11 = vcombine.low %v6049_v12, %v6053_v57  ;;  %v13403_v53 = vcombine.low %v5913_v22, %v5917_v16  ;;  %v6129_v9 = vld [vmem:[#allocation8 + $0x710] sm:$0xff] }
 0x928   :  { %7646 = vmatprep.subr.bf16.mxu0 %v13452_v13  ;;  %v13532_v13 = vcombine.high %v6041_v20, %v6045_v15  ;;  %v6133_v12 = vld [vmem:[#allocation8 + $0x730] sm:$0xff] }
 0x929   :  { %7636 = vmatpush2.bf16.msra.mxu1 %v13585_v31  ;;  %v13404_v31 = vcombine.high %v5913_v22, %v5917_v16  ;;  %v5997_v22 = vld [vmem:[#allocation8 + $0x2f0] sm:$0xff] }
 0x92a   :  { %7687 = vmatprep.subr.bf16.mxu1 %v13580_v51  ;;  %7597 = vmatmul.mubr.bf16.vlgmr.msra.gmra.mxu0 %v17379_v56  ;;  %v5905_v51 = vld [vmem:[#allocation8 + $0x10] sm:$0xff] }
 0x92b   :  { %7647 = vmatpush1.bf16.msra.mxu0 %v13451_v40  ;;  %7678 = vmatprep.mubr.bf16.mxu0 %v17370_v43  ;;  %v13531_v40 = vcombine.low %v6041_v20, %v6045_v15  ;;  %v13395_v21 = vcombine.low %v5905_v51, %v5909_v1  ;;  %v6121_v16 = vld [vmem:[#allocation8 + $0x6d0] sm:$0xff] }
 0x92c   :  { %7638 = vmatmul.mubr.bf16.vlgmr.msra.gmra.mxu1 %v17384_v27  ;;  %7648 = vmatprep.subr.bf16.mxu0 %v13444_v2  ;;  %v13524_v2 = vcombine.high %v6033_v42, %v6037_v61  ;;  %v6125_v20 = vld [vmem:[#allocation8 + $0x6f0] sm:$0xff] }
 0x92d   :  { %7688 = vmatpush1.bf16.msra.mxu1 %v13579_v55  ;;  %7719 = vmatprep.mubr.bf16.mxu1 %v17372_v23  ;;  %v13396_v55 = vcombine.high %v5905_v51, %v5909_v1  ;;  %v5989_v51 = vld [vmem:[#allocation8 + $0x2b0] sm:$0xff] }
 0x92e   :  { %7689 = vmatprep.subr.bf16.mxu1 %v13572_v29  ;;  %v6025_v29 = vld [vmem:[#allocation8 + $0x3d0] sm:$0xff] }
 0x92f   :  { %7649 = vmatpush1.bf16.msra.mxu0 %v13443_v8  ;;  %v13523_v8 = vcombine.low %v6033_v42, %v6037_v61  ;;  %v13515_v33 = vcombine.low %v6025_v29, %v6029_v19  ;;  %v6113_v1 = vld [vmem:[#allocation8 + $0x690] sm:$0xff] }
 0x930   :  { %7650 = vmatprep.subr.bf16.mxu0 %v13436_v34  ;;  %v13644_v34 = vcombine.high %v6153_v30, %v6157_v52  ;;  %v6117_v42 = vld [vmem:[#allocation8 + $0x6b0] sm:$0xff] }
 0x931   :  { %7690 = vmatpush1.bf16.msra.mxu1 %v13571_v38  ;;  %v13516_v38 = vcombine.high %v6025_v29, %v6029_v19  ;;  %v5981_v29 = vld [vmem:[#allocation8 + $0x270] sm:$0xff] }
 0x932   :  { %7691 = vmatprep.subr.bf16.mxu1 %v13564_v3  ;;  %v6017_v3 = vld [vmem:[#allocation8 + $0x390] sm:$0xff] }
 0x933   :  { %7651 = vmatpush1.bf16.msra.mxu0 %v13435_v60  ;;  %v13643_v60 = vcombine.low %v6153_v30, %v6157_v52  ;;  %v13507_v50 = vcombine.low %v6017_v3, %v6021_v58  ;;  %v6105_v19 = vld [vmem:[#allocation8 + $0x650] sm:$0xff] }
 0x934   :  { %7652 = vmatprep.subr.bf16.mxu0 %v13428_v39  ;;  %v13636_v39 = vcombine.high %v6145_v0, %v6149_v44  ;;  %v6109_v30 = vld [vmem:[#allocation8 + $0x670] sm:$0xff] }
 0x935   :  { %7692 = vmatpush1.bf16.msra.mxu1 %v13563_v37  ;;  %v13508_v37 = vcombine.high %v6017_v3, %v6021_v58  ;;  %v5973_v3 = vld [vmem:[#allocation8 + $0x230] sm:$0xff] }
 0x936   :  { %7693 = vmatprep.subr.bf16.mxu1 %v13556_v54  ;;  %v6009_v54 = vld [vmem:[#allocation8 + $0x350] sm:$0xff] }
 0x937   :  { %7653 = vmatpush1.bf16.msra.mxu0 %v13427_v47  ;;  %v13635_v47 = vcombine.low %v6145_v0, %v6149_v44  ;;  %v13499_v57 = vcombine.low %v6009_v54, %v6013_v5  ;;  %v6097_v58 = vld [vmem:[#allocation8 + $0x610] sm:$0xff] }
 0x938   :  { %7654 = vmatprep.subr.bf16.mxu0 %v13420_v24  ;;  %v13628_v24 = vcombine.high %v6137_v17, %v6141_v36  ;;  %v6101_v0 = vld [vmem:[#allocation8 + $0x630] sm:$0xff] }
 0x939   :  { %7694 = vmatpush1.bf16.msra.mxu1 %v13555_v59  ;;  %v13500_v59 = vcombine.high %v6009_v54, %v6013_v5  ;;  %v5966_v54 = vld [vmem:[#allocation8 + $0x1f8] sm:$0xff] }
 0x93a   :  { %7695 = vmatprep.subr.bf16.mxu1 %v13548_v63  ;;  %v6001_v63 = vld [vmem:[#allocation8 + $0x310] sm:$0xff]  ;;  %v6090_v5 = vld [vmem:[#allocation8 + $0x5d8] sm:$0xff] }
 0x93b   :  { %7655 = vmatpush1.bf16.msra.mxu0 %v13419_v41  ;;  %v13627_v41 = vcombine.low %v6137_v17, %v6141_v36  ;;  %v13491_v15 = vcombine.low %v6001_v63, %v6005_v18  ;;  %v6094_v17 = vld [vmem:[#allocation8 + $0x5f8] sm:$0xff] }
 0x93c   :  { %7656 = vmatprep.subr.bf16.mxu0 %v13412_v25  ;;  %v13620_v25 = vcombine.high %v6129_v9, %v6133_v12 }
 0x93d   :  { %7696 = vmatpush1.bf16.msra.mxu1 %v13547_v28  ;;  %v13492_v28 = vcombine.high %v6001_v63, %v6005_v18  ;;  %v5958_v63 = vld [vmem:[#allocation8 + $0x1b8] sm:$0xff] }
 0x93e   :  { %7697 = vmatprep.subr.bf16.mxu1 %v13540_v26  ;;  %v5993_v26 = vld [vmem:[#allocation8 + $0x2d0] sm:$0xff]  ;;  %v6082_v18 = vld [vmem:[#allocation8 + $0x598] sm:$0xff] }
 0x93f   :  { %7657 = vmatpush1.bf16.msra.mxu0 %v13411_v10  ;;  %v13619_v10 = vcombine.low %v6129_v9, %v6133_v12  ;;  %v13483_v61 = vcombine.low %v5993_v26, %v5997_v22  ;;  %v6086_v9 = vld [vmem:[#allocation8 + $0x5b8] sm:$0xff] }
 0x940   :  { %7658 = vmatprep.subr.bf16.mxu0 %v13404_v31  ;;  %v13612_v31 = vcombine.high %v6121_v16, %v6125_v20 }
 0x941   :  { %7698 = vmatpush1.bf16.msra.mxu1 %v13539_v11  ;;  %v13484_v11 = vcombine.high %v5993_v26, %v5997_v22  ;;  %v5950_v26 = vld [vmem:[#allocation8 + $0x178] sm:$0xff] }
 0x942   :  { %7699 = vmatprep.subr.bf16.mxu1 %v13532_v13  ;;  %v5985_v13 = vld [vmem:[#allocation8 + $0x290] sm:$0xff]  ;;  %v6074_v22 = vld [vmem:[#allocation8 + $0x558] sm:$0xff] }
 0x943   :  { %7659 = vmatpush1.bf16.msra.mxu0 %v13403_v53  ;;  %v13611_v53 = vcombine.low %v6121_v16, %v6125_v20  ;;  %v13475_v52 = vcombine.low %v5985_v13, %v5989_v51  ;;  %v6078_v16 = vld [vmem:[#allocation8 + $0x578] sm:$0xff] }
 0x944   :  { %7660 = vmatprep.subr.bf16.mxu0 %v13396_v55  ;;  %v13604_v55 = vcombine.high %v6113_v1, %v6117_v42 }
 0x945   :  { %7700 = vmatpush1.bf16.msra.mxu1 %v13531_v40  ;;  %v13476_v40 = vcombine.high %v5985_v13, %v5989_v51  ;;  %v5942_v13 = vld [vmem:[#allocation8 + $0x138] sm:$0xff] }
 0x946   :  { %7701 = vmatprep.subr.bf16.mxu1 %v13524_v2  ;;  %v5977_v2 = vld [vmem:[#allocation8 + $0x250] sm:$0xff]  ;;  %v6066_v51 = vld [vmem:[#allocation8 + $0x518] sm:$0xff] }
 0x947   :  { %7661 = vmatpush1.bf16.msra.mxu0 %v13395_v21  ;;  %v13603_v21 = vcombine.low %v6113_v1, %v6117_v42  ;;  %v13467_v44 = vcombine.low %v5977_v2, %v5981_v29  ;;  %v6070_v1 = vld [vmem:[#allocation8 + $0x538] sm:$0xff] }
 0x948   :  { %7662 = vmatprep.subr.bf16.mxu0 %v13516_v38  ;;  %v13596_v38 = vcombine.high %v6105_v19, %v6109_v30 }
 0x949   :  { %7702 = vmatpush1.bf16.msra.mxu1 %v13523_v8  ;;  %v13468_v8 = vcombine.high %v5977_v2, %v5981_v29  ;;  %v5934_v2 = vld [vmem:[#allocation8 + $0xf8] sm:$0xff] }
 0x94a   :  { %7703 = vmatprep.subr.bf16.mxu1 %v13644_v34  ;;  %v5969_v34 = vld [vmem:[#allocation8 + $0x210] sm:$0xff]  ;;  %v6058_v29 = vld [vmem:[#allocation8 + $0x4d8] sm:$0xff] }
 0x94b   :  { %7663 = vmatpush2.bf16.msra.mxu0 %v13515_v33  ;;  %v13595_v33 = vcombine.low %v6105_v19, %v6109_v30  ;;  %v13459_v36 = vcombine.low %v5969_v34, %v5973_v3  ;;  %v6062_v19 = vld [vmem:[#allocation8 + $0x4f8] sm:$0xff] }
 0x94c   :  { %7664 = vmatprep.subr.bf16.mxu0 %v13508_v37  ;;  %v13588_v37 = vcombine.high %v6097_v58, %v6101_v0 }
 0x94d   :  { %7704 = vmatpush2.bf16.msra.mxu1 %v13643_v60  ;;  %v13460_v60 = vcombine.high %v5969_v34, %v5973_v3  ;;  %v6054_v34 = vld [vmem:[#allocation8 + $0x4b8] sm:$0xff] }
 0x94e   :  { %7705 = vmatprep.subr.bf16.mxu1 %v13636_v39  ;;  %v5962_v39 = vld [vmem:[#allocation8 + $0x1d8] sm:$0xff] }
 0x94f   :  { %7665 = vmatpush2.bf16.msra.mxu0 %v13507_v50  ;;  %v13587_v50 = vcombine.low %v6097_v58, %v6101_v0  ;;  %v13453_v12 = vcombine.low %v5962_v39, %v5966_v54  ;;  %v13549_v58 = vcombine.low %v6058_v29, %v6062_v19 }
 0x950   :  { %7666 = vmatprep.subr.bf16.mxu0 %v13500_v59  ;;  %v13582_v59 = vcombine.high %v6090_v5, %v6094_v17 }
 0x951   :  { %7706 = vmatpush2.bf16.msra.mxu1 %v13635_v47  ;;  %v13454_v47 = vcombine.high %v5962_v39, %v5966_v54  ;;  %v6046_v39 = vld [vmem:[#allocation8 + $0x478] sm:$0xff] }
 0x952   :  { %7707 = vmatprep.subr.bf16.mxu1 %v13628_v24  ;;  %v5954_v24 = vld [vmem:[#allocation8 + $0x198] sm:$0xff] }
 0x953   :  { %7667 = vmatpush2.bf16.msra.mxu0 %v13499_v57  ;;  %v13581_v57 = vcombine.low %v6090_v5, %v6094_v17  ;;  %v13445_v20 = vcombine.low %v5954_v24, %v5958_v63 }
 0x954   :  { %7668 = vmatprep.subr.bf16.mxu0 %v13492_v28  ;;  %v13574_v28 = vcombine.high %v6082_v18, %v6086_v9 }
 0x955   :  { %7708 = vmatpush2.bf16.msra.mxu1 %v13627_v41  ;;  %v13446_v41 = vcombine.high %v5954_v24, %v5958_v63  ;;  %v6038_v24 = vld [vmem:[#allocation8 + $0x438] sm:$0xff] }
 0x956   :  { %7709 = vmatprep.subr.bf16.mxu1 %v13620_v25  ;;  %v5946_v25 = vld [vmem:[#allocation8 + $0x158] sm:$0xff] }
 0x957   :  { %7669 = vmatpush2.bf16.msra.mxu0 %v13491_v15  ;;  %v13573_v15 = vcombine.low %v6082_v18, %v6086_v9  ;;  %v13437_v42 = vcombine.low %v5946_v25, %v5950_v26 }
 0x958   :  { %7670 = vmatprep.subr.bf16.mxu0 %v13484_v11  ;;  %v13566_v11 = vcombine.high %v6074_v22, %v6078_v16 }
 0x959   :  { %7710 = vmatpush2.bf16.msra.mxu1 %v13619_v10  ;;  %v13438_v10 = vcombine.high %v5946_v25, %v5950_v26  ;;  %v6158_v25 = vld [vmem:[#allocation8 + $0x7f8] sm:$0xff] }
 0x95a   :  { %7711 = vmatprep.subr.bf16.mxu1 %v13612_v31  ;;  %v5938_v31 = vld [vmem:[#allocation8 + $0x118] sm:$0xff] }
 0x95b   :  { %7671 = vmatpush2.bf16.msra.mxu0 %v13483_v61  ;;  %v13565_v61 = vcombine.low %v6074_v22, %v6078_v16  ;;  %v13429_v30 = vcombine.low %v5938_v31, %v5942_v13 }
 0x95c   :  { %7672 = vmatprep.subr.bf16.mxu0 %v13476_v40  ;;  %v13558_v40 = vcombine.high %v6066_v51, %v6070_v1 }
 0x95d   :  { %7712 = vmatpush2.bf16.msra.mxu1 %v13611_v53  ;;  %v13430_v53 = vcombine.high %v5938_v31, %v5942_v13  ;;  %v6150_v31 = vld [vmem:[#allocation8 + $0x7b8] sm:$0xff] }
 0x95e   :  { %7713 = vmatprep.subr.bf16.mxu1 %v13604_v55  ;;  %v5930_v55 = vld [vmem:[#allocation8 + $0xd8] sm:$0xff] }
 0x95f   :  { %7673 = vmatpush2.bf16.msra.mxu0 %v13475_v52  ;;  %v13422_v52 = vcombine.high %v5930_v55, %v5934_v2  ;;  %v13421_v3 = vcombine.low %v5930_v55, %v5934_v2  ;;  %v6142_v55 = vld [vmem:[#allocation8 + $0x778] sm:$0xff] }
 0x960   :  { %7674 = vmatprep.subr.bf16.mxu0 %v13468_v8  ;;  %v5926_v8 = vld [vmem:[#allocation8 + $0xb8] sm:$0xff] }
 0x961   :  { %7714 = vmatpush2.bf16.msra.mxu1 %v13603_v21  ;;  %v5922_v21 = vld [vmem:[#allocation8 + $0x98] sm:$0xff] }
 0x962   :  { %7715 = vmatprep.subr.bf16.mxu1 %v13596_v38  ;;  %v6050_v38 = vld [vmem:[#allocation8 + $0x498] sm:$0xff]  ;;  %v13414_v0 = vcombine.high %v5922_v21, %v5926_v8  ;;  %v13413_v54 = vcombine.low %v5922_v21, %v5926_v8 }
 0x963   :  { %7675 = vmatpush2.bf16.msra.mxu0 %v13467_v44  ;;  %v13542_v44 = vcombine.high %v6050_v38, %v6054_v34  ;;  %v13541_v5 = vcombine.low %v6050_v38, %v6054_v34  ;;  %v6134_v21 = vld [vmem:[#allocation8 + $0x738] sm:$0xff] }
 0x964   :  { %7676 = vmatprep.subr.bf16.mxu0 %v13460_v60  ;;  %v5918_v60 = vld [vmem:[#allocation8 + $0x78] sm:$0xff] }
 0x965   :  { %7716 = vmatpush2.bf16.msra.mxu1 %v13595_v33  ;;  %v5914_v33 = vld [vmem:[#allocation8 + $0x58] sm:$0xff] }
 0x966   :  { %7717 = vmatprep.subr.bf16.mxu1 %v13588_v37  ;;  %v6042_v37 = vld [vmem:[#allocation8 + $0x458] sm:$0xff]  ;;  %v13406_v17 = vcombine.high %v5914_v33, %v5918_v60  ;;  %v13405_v63 = vcombine.low %v5914_v33, %v5918_v60 }
 0x967   :  { %7677 = vmatpush2.bf16.msra.mxu0 %v13459_v36  ;;  %v13534_v36 = vcombine.high %v6042_v37, %v6046_v39  ;;  %v13533_v18 = vcombine.low %v6042_v37, %v6046_v39  ;;  %v6126_v33 = vld [vmem:[#allocation8 + $0x6f8] sm:$0xff] }
 0x968   :  { %7728 = vmatprep.subr.bf16.mxu0 %v13454_v47  ;;  %v5910_v47 = vld [vmem:[#allocation8 + $0x38] sm:$0xff] }
 0x969   :  { %7718 = vmatpush2.bf16.msra.mxu1 %v13587_v50  ;;  %v5906_v50 = vld [vmem:[#allocation8 + $0x18] sm:$0xff] }
 0x96a   :  { %7769 = vmatprep.subr.bf16.mxu1 %v13582_v59  ;;  %7679 = vmatmul.mubr.bf16.vlgmr.msra.gmra.mxu0 %v17379_v56  ;;  %v6034_v59 = vld [vmem:[#allocation8 + $0x418] sm:$0xff]  ;;  %v13398_v9 = vcombine.high %v5906_v50, %v5910_v47  ;;  %v13397_v26 = vcombine.low %v5906_v50, %v5910_v47 }
 0x96b   :  { %7729 = vmatpush1.bf16.msra.mxu0 %v13453_v12  ;;  %7760 = vmatprep.mubr.bf16.mxu0 %v17370_v43  ;;  %v13557_v43 = vcombine.low %v6066_v51, %v6070_v1  ;;  %v13526_v12 = vcombine.high %v6034_v59, %v6038_v24  ;;  %v13525_v22 = vcombine.low %v6034_v59, %v6038_v24  ;;  %v6118_v50 = vld [vmem:[#allocation8 + $0x6b8] sm:$0xff] }
 0x96c   :  { %7720 = vmatmul.mubr.bf16.vlgmr.msra.gmra.mxu1 %v17384_v27  ;;  %7730 = vmatprep.subr.bf16.mxu0 %v13446_v41  ;;  %v6030_v41 = vld [vmem:[#allocation8 + $0x3f8] sm:$0xff] }
 0x96d   :  { %7770 = vmatpush1.bf16.msra.mxu1 %v13581_v57  ;;  %7801 = vmatprep.mubr.bf16.mxu1 %v17372_v23  ;;  %v13550_v23 = vcombine.high %v6058_v29, %v6062_v19  ;;  %v6026_v57 = vld [vmem:[#allocation8 + $0x3d8] sm:$0xff] }
 0x96e   :  { %7771 = vmatprep.subr.bf16.mxu1 %v13574_v28  ;;  %v6154_v28 = vld [vmem:[#allocation8 + $0x7d8] sm:$0xff]  ;;  %v13518_v16 = vcombine.high %v6026_v57, %v6030_v41  ;;  %v13517_v13 = vcombine.low %v6026_v57, %v6030_v41 }
 0x96f   :  { %7731 = vmatpush1.bf16.msra.mxu0 %v13445_v20  ;;  %v13646_v20 = vcombine.high %v6154_v28, %v6158_v25  ;;  %v13645_v51 = vcombine.low %v6154_v28, %v6158_v25  ;;  %v6110_v57 = vld [vmem:[#allocation8 + $0x678] sm:$0xff] }
 0x970   :  { %7732 = vmatprep.subr.bf16.mxu0 %v13438_v10  ;;  %v6022_v10 = vld [vmem:[#allocation8 + $0x3b8] sm:$0xff] }
 0x971   :  { %7772 = vmatpush1.bf16.msra.mxu1 %v13573_v15  ;;  %v6018_v15 = vld [vmem:[#allocation8 + $0x398] sm:$0xff] }
 0x972   :  { %7773 = vmatprep.subr.bf16.mxu1 %v13566_v11  ;;  %v6146_v11 = vld [vmem:[#allocation8 + $0x798] sm:$0xff]  ;;  %v13510_v1 = vcombine.high %v6018_v15, %v6022_v10  ;;  %v13509_v2 = vcombine.low %v6018_v15, %v6022_v10 }
 0x973   :  { %7733 = vmatpush1.bf16.msra.mxu0 %v13437_v42  ;;  %v13638_v42 = vcombine.high %v6146_v11, %v6150_v31  ;;  %v13637_v29 = vcombine.low %v6146_v11, %v6150_v31  ;;  %v6102_v15 = vld [vmem:[#allocation8 + $0x638] sm:$0xff] }
 0x974   :  { %7734 = vmatprep.subr.bf16.mxu0 %v13430_v53  ;;  %v6014_v53 = vld [vmem:[#allocation8 + $0x378] sm:$0xff] }
 0x975   :  { %7774 = vmatpush1.bf16.msra.mxu1 %v13565_v61  ;;  %v6010_v61 = vld [vmem:[#allocation8 + $0x358] sm:$0xff] }
 0x976   :  { %7775 = vmatprep.subr.bf16.mxu1 %v13558_v40  ;;  %v6138_v40 = vld [vmem:[#allocation8 + $0x758] sm:$0xff]  ;;  %v13502_v19 = vcombine.high %v6010_v61, %v6014_v53  ;;  %v13501_v8 = vcombine.low %v6010_v61, %v6014_v53 }
 0x977   :  { %7735 = vmatpush1.bf16.msra.mxu0 %v13429_v30  ;;  %v13630_v30 = vcombine.high %v6138_v40, %v6142_v55  ;;  %v13629_v38 = vcombine.low %v6138_v40, %v6142_v55 }
 0x978   :  { %7736 = vmatprep.subr.bf16.mxu0 %v13422_v52  ;;  %v6006_v52 = vld [vmem:[#allocation8 + $0x338] sm:$0xff] }
 0x979   :  { %7776 = vmatpush1.bf16.msra.mxu1 %v13557_v43  ;;  %v6002_v43 = vld [vmem:[#allocation8 + $0x318] sm:$0xff] }
 0x97a   :  { %7777 = vmatprep.subr.bf16.mxu1 %v13550_v23  ;;  %v6130_v23 = vld [vmem:[#allocation8 + $0x718] sm:$0xff]  ;;  %v13494_v34 = vcombine.high %v6002_v43, %v6006_v52  ;;  %v13493_v60 = vcombine.low %v6002_v43, %v6006_v52 }
 0x97b   :  { %7737 = vmatpush1.bf16.msra.mxu0 %v13421_v3  ;;  %v13622_v3 = vcombine.high %v6130_v23, %v6134_v21  ;;  %v13621_v37 = vcombine.low %v6130_v23, %v6134_v21 }
 0x97c   :  { %7738 = vmatprep.subr.bf16.mxu0 %v13414_v0  ;;  %v5998_v0 = vld [vmem:[#allocation8 + $0x2f8] sm:$0xff] }
 0x97d   :  { %7778 = vmatpush1.bf16.msra.mxu1 %v13549_v58  ;;  %v5994_v58 = vld [vmem:[#allocation8 + $0x2d8] sm:$0xff] }
 0x97e   :  { %7779 = vmatprep.subr.bf16.mxu1 %v13542_v44  ;;  %v6122_v44 = vld [vmem:[#allocation8 + $0x6d8] sm:$0xff]  ;;  %v13486_v39 = vcombine.high %v5994_v58, %v5998_v0  ;;  %v13485_v47 = vcombine.low %v5994_v58, %v5998_v0 }
 0x97f   :  { %7739 = vmatpush1.bf16.msra.mxu0 %v13413_v54  ;;  %v13614_v54 = vcombine.high %v6122_v44, %v6126_v33  ;;  %v13613_v59 = vcombine.low %v6122_v44, %v6126_v33 }
 0x980   :  { %7740 = vmatprep.subr.bf16.mxu0 %v13406_v17  ;;  %v5990_v17 = vld [vmem:[#allocation8 + $0x2b8] sm:$0xff] }
 0x981   :  { %7780 = vmatpush1.bf16.msra.mxu1 %v13541_v5  ;;  %v5986_v5 = vld [vmem:[#allocation8 + $0x298] sm:$0xff] }
 0x982   :  { %7781 = vmatprep.subr.bf16.mxu1 %v13534_v36  ;;  %v6114_v36 = vld [vmem:[#allocation8 + $0x698] sm:$0xff]  ;;  %v13478_v24 = vcombine.high %v5986_v5, %v5990_v17  ;;  %v13477_v41 = vcombine.low %v5986_v5, %v5990_v17 }
 0x983   :  { %7741 = vmatpush1.bf16.msra.mxu0 %v13405_v63  ;;  %v13606_v63 = vcombine.high %v6114_v36, %v6118_v50  ;;  %v13605_v28 = vcombine.low %v6114_v36, %v6118_v50 }
 0x984   :  { %7742 = vmatprep.subr.bf16.mxu0 %v13398_v9  ;;  %v5982_v9 = vld [vmem:[#allocation8 + $0x278] sm:$0xff] }
 0x985   :  { %7782 = vmatpush1.bf16.msra.mxu1 %v13533_v18  ;;  %v5978_v18 = vld [vmem:[#allocation8 + $0x258] sm:$0xff] }
 0x986   :  { %7783 = vmatprep.subr.bf16.mxu1 %v13526_v12  ;;  %v6106_v12 = vld [vmem:[#allocation8 + $0x658] sm:$0xff]  ;;  %v13470_v25 = vcombine.high %v5978_v18, %v5982_v9  ;;  %v13469_v10 = vcombine.low %v5978_v18, %v5982_v9 }
 0x987   :  { %7743 = vmatpush1.bf16.msra.mxu0 %v13397_v26  ;;  %v13598_v26 = vcombine.high %v6106_v12, %v6110_v57  ;;  %v13597_v11 = vcombine.low %v6106_v12, %v6110_v57 }
 0x988   :  { %7744 = vmatprep.subr.bf16.mxu0 %v13518_v16  ;;  %v5974_v16 = vld [vmem:[#allocation8 + $0x238] sm:$0xff] }
 0x989   :  { %7784 = vmatpush1.bf16.msra.mxu1 %v13525_v22  ;;  %v5970_v22 = vld [vmem:[#allocation8 + $0x218] sm:$0xff] }
 0x98a   :  { %7785 = vmatprep.subr.bf16.mxu1 %v13646_v20  ;;  %v6098_v20 = vld [vmem:[#allocation8 + $0x618] sm:$0xff]  ;;  %v13462_v31 = vcombine.high %v5970_v22, %v5974_v16 }
 0x98b   :  { %7745 = vmatpush2.bf16.msra.mxu0 %v13517_v13  ;;  %v13590_v13 = vcombine.high %v6098_v20, %v6102_v15 }
 0x98c   :  { %7746 = vmatprep.subr.bf16.mxu0 %v13510_v1  ;;  %v13589_v1 = vcombine.low %v6098_v20, %v6102_v15 }
 0x98d   :  { %7786 = vmatpush2.bf16.msra.mxu1 %v13645_v51  ;;  %v13461_v51 = vcombine.low %v5970_v22, %v5974_v16 }
 0x98e   :  { %7787 = vmatprep.subr.bf16.mxu1 %v13638_v42  ;;  %v17398_v42 = vld [vmem:[#allocation15 + $0x49] ss:$4 sm:$0xff] }
 0x98f   :  { %7747 = vmatpush2.bf16.msra.mxu0 %v13509_v2  ;;  %v6165_v61 = vrot.slane %v17398_v42, %v16722_v35  ;;  %v6169_v53 = vrot.slane %v17398_v42, %v16725_v45 }
 0x990   :  { %7748 = vmatprep.subr.bf16.mxu0 %v13502_v19 }
 0x991   :  { %7788 = vmatpush2.bf16.msra.mxu1 %v13637_v29 }
 0x992   :  { %7789 = vmatprep.subr.bf16.mxu1 %v13630_v30 }
 0x993   :  { %7749 = vmatpush2.bf16.msra.mxu0 %v13501_v8 }
 0x994   :  { %7750 = vmatprep.subr.bf16.mxu0 %v13494_v34 }
 0x995   :  { %7790 = vmatpush2.bf16.msra.mxu1 %v13629_v38 }
 0x996   :  { %7791 = vmatprep.subr.bf16.mxu1 %v13622_v3 }
 0x997   :  { %7751 = vmatpush2.bf16.msra.mxu0 %v13493_v60 }
 0x998   :  { %7752 = vmatprep.subr.bf16.mxu0 %v13486_v39 }
 0x999   :  { %7792 = vmatpush2.bf16.msra.mxu1 %v13621_v37 }
 0x99a   :  { %7793 = vmatprep.subr.bf16.mxu1 %v13614_v54 }
 0x99b   :  { %7753 = vmatpush2.bf16.msra.mxu0 %v13485_v47 }
 0x99c   :  { %7754 = vmatprep.subr.bf16.mxu0 %v13478_v24 }
 0x99d   :  { %7794 = vmatpush2.bf16.msra.mxu1 %v13613_v59 }
 0x99e   :  { %7795 = vmatprep.subr.bf16.mxu1 %v13606_v63 }
 0x99f   :  { %7755 = vmatpush2.bf16.msra.mxu0 %v13477_v41 }
 0x9a0   :  { %7756 = vmatprep.subr.bf16.mxu0 %v13470_v25 }
 0x9a1   :  { %7796 = vmatpush2.bf16.msra.mxu1 %v13605_v28 }
 0x9a2   :  { %7797 = vmatprep.subr.bf16.mxu1 %v13598_v26 }
 0x9a3   :  { %7757 = vmatpush2.bf16.msra.mxu0 %v13469_v10 }
 0x9a4   :  { %7758 = vmatprep.subr.bf16.mxu0 %v13462_v31 }
 0x9a5   :  { %7798 = vmatpush2.bf16.msra.mxu1 %v13597_v11 }
 0x9a6   :  { %7799 = vmatprep.subr.bf16.mxu1 %v13590_v13 }
 0x9a7   :  { %7759 = vmatpush2.bf16.msra.mxu0 %v13461_v51 }
 0x9a9   :  { %7800 = vmatpush2.bf16.msra.mxu1 %v13589_v1 }
 0x9aa   :  { %v7516_v40 = vpop.f32.mrf.mxu0  ;;  %7761 = vmatmul.mubr.bf16.vlgmr.msra.gmra.mxu0 %v17379_v56 }
 0x9ab   :  { %v7517_v55 = vadd.f32 %v7516_v40, %v6165_v61 }
 0x9ac   :  { %v7557_v2 = vpop.f32.mrf.mxu1  ;;  %7802 = vmatmul.mubr.bf16.vlgmr.msra.gmra.mxu1 %v17384_v27  ;;  %v7518_v29 = vpop.f32.mrf.mxu0 }
 0x9ad   :  { %v17406_v19 = vadd.f32 %v7557_v2, %v7517_v55  ;;  %v7519_v30 = vadd.f32 %v7518_v29, %v6169_v53  ;;  %v6173_v55 = vrot.slane %v17398_v42, %v16882_v48  ;;  %v6177_v2 = vrot.slane %v17398_v42, %v16885_v4 }
 0x9ae   :  { %v7559_v43 = vpop.f32.mrf.mxu1  ;;  %v7520_v52 = vpop.f32.mrf.mxu0 }
 0x9af   :  { %v7810_v23 = vrot.slane %v17406_v19, 4  ;;  %v7866_v21 = vmul.f32 %v17406_v19, %v17406_v19  ;;  %v17411_v8 = vadd.f32 %v7559_v43, %v7519_v30 }
 0x9b0   :  { %v7561_v38 = vpop.f32.mrf.mxu1  ;;  %v7521_v34 = vpop.f32.mrf.mxu0 }
 0x9b1   :  { %v7811_v56 = vadd.f32 %v7810_v23, %v17406_v19  ;;  %v7874_v3 = vrot.slane %v7866_v21, 4  ;;  %v7816_v27 = vrot.slane %v17411_v8, 4  ;;  %v7867_v58 = vmul.f32 %v17411_v8, %v17411_v8 }
 0x9b2   :  { %v7562_v0 = vpop.f32.mrf.mxu1 }
 0x9b3   :  { %v7812_v44 = vrot.slane %v7811_v56, 2  ;;  %v7875_v33 = vadd.f32 %v7874_v3, %v7866_v21  ;;  %v7817_v60 = vadd.f32 %v7816_v27, %v17411_v8  ;;  %v7880_v37 = vrot.slane %v7867_v58, 4 }
 0x9b5   :  { %v7813_v39 = vadd.f32 %v7812_v44, %v7811_v56  ;;  %v7876_v54 = vrot.slane %v7875_v33, 2  ;;  %v7818_v5 = vrot.slane %v7817_v60, 2  ;;  %v7881_v17 = vadd.f32 %v7880_v37, %v7867_v58 }
 0x9b7   :  { %v7814_v36 = vrot.slane %v7813_v39, 1  ;;  %v7877_v50 = vadd.f32 %v7876_v54, %v7875_v33  ;;  %v7819_v47 = vadd.f32 %v7818_v5, %v7817_v60  ;;  %v7882_v59 = vrot.slane %v7881_v17, 2 }
 0x9b9   :  { %v7815_v24 = vadd.f32 %v7814_v36, %v7813_v39  ;;  %v7878_v63 = vrot.slane %v7877_v50, 1  ;;  %v7820_v18 = vrot.slane %v7819_v47, 1  ;;  %v7883_v9 = vadd.f32 %v7882_v59, %v7881_v17 }
 0x9bb   :  { %v17418_v12 = vmul.f32 0.125, %v7815_v24  ;;  %v7879_v57 = vadd.f32 %v7878_v63, %v7877_v50  ;;  %v7821_v41 = vadd.f32 %v7820_v18, %v7819_v47  ;;  %v7884_v28 = vrot.slane %v7883_v9, 1 }
 0x9bd   :  { %v7922_v25 = vmul.f32 0.125, %v7879_v57  ;;  %v7930_v26 = vmul.f32 %v17418_v12, %v17418_v12  ;;  %v17422_v22 = vmul.f32 0.125, %v7821_v41  ;;  %v7885_v16 = vadd.f32 %v7884_v28, %v7883_v9 }
 0x9bf   :  { %v7938_v20 = vsub.f32 %v7922_v25, %v7930_v26  ;;  %v7923_v15 = vmul.f32 0.125, %v7885_v16  ;;  %v7931_v10 = vmul.f32 %v17422_v22, %v17422_v22 }
 0x9c1   :  { %v7946_v11 = vmax.f32 %v7938_v20, 0.0  ;;  %v7939_v31 = vsub.f32 %v7923_v15, %v7931_v10 }
 0x9c3   :  { %v7956_v13 = vadd.f32 1e-05, %v7946_v11  ;;  %v7947_v51 = vmax.f32 %v7939_v31, 0.0 }
 0x9c5   :  { %v7957_v1 = vadd.f32 1e-05, %v7947_v51  ;;  %14446 = vrsqrt.f32 %v7956_v13 }
 0x9c7   :  { %14448 = vrsqrt.f32 %v7957_v1 }
 0x9d2   :  { %v14447_v61 = vpop.eup %14446 }
 0x9d4   :  { %v14449_v53 = vpop.eup %14448 }
 0x9d5   :  { %v7980_v40 = vcombine.low %v14447_v61, %v14449_v53 }
 0x9ea   :  { %v7598_v29 = vpop.f32.mrf.mxu0 }
 0x9eb   :  { %v7599_v30 = vadd.f32 %v7598_v29, %v6173_v55 }
 0x9ec   :  { %v7639_v43 = vpop.f32.mrf.mxu1  ;;  %v7600_v52 = vpop.f32.mrf.mxu0 }
 0x9ed   :  { %v17430_v23 = vadd.f32 %v7639_v43, %v7599_v30  ;;  %v7601_v21 = vadd.f32 %v7600_v52, %v6177_v2 }
 0x9ee   :  { %v7641_v38 = vpop.f32.mrf.mxu1  ;;  %v7602_v34 = vpop.f32.mrf.mxu0 }
 0x9ef   :  { %v7822_v56 = vrot.slane %v17430_v23, 4  ;;  %v7868_v3 = vmul.f32 %v17430_v23, %v17430_v23  ;;  %v17435_v27 = vadd.f32 %v7641_v38, %v7601_v21  ;;  %v17451_v34 = vrot.slane %v7980_v40, %v16736_v62 }
 0x9f0   :  { %v7643_v58 = vpop.f32.mrf.mxu1  ;;  %v7603_v0 = vpop.f32.mrf.mxu0 }
 0x9f1   :  { %v7823_v44 = vadd.f32 %v7822_v56, %v17430_v23  ;;  %v7886_v33 = vrot.slane %v7868_v3, 4  ;;  %v7828_v60 = vrot.slane %v17435_v27, 4  ;;  %v7869_v37 = vmul.f32 %v17435_v27, %v17435_v27 }
 0x9f2   :  { %v7644_v39 = vpop.f32.mrf.mxu1  ;;  %v6181_v58 = vrot.slane %v17398_v42, %v17028_v6  ;;  %v6185_v0 = vrot.slane %v17398_v42, %v17031_v46 }
 0x9f3   :  { %v7824_v54 = vrot.slane %v7823_v44, 2  ;;  %v7887_v5 = vadd.f32 %v7886_v33, %v7868_v3  ;;  %v7829_v17 = vadd.f32 %v7828_v60, %v17435_v27  ;;  %v7892_v36 = vrot.slane %v7869_v37, 4 }
 0x9f5   :  { %v7825_v50 = vadd.f32 %v7824_v54, %v7823_v44  ;;  %v7888_v47 = vrot.slane %v7887_v5, 2  ;;  %v7830_v59 = vrot.slane %v7829_v17, 2  ;;  %v7893_v24 = vadd.f32 %v7892_v36, %v7869_v37 }
 0x9f7   :  { %v7826_v63 = vrot.slane %v7825_v50, 1  ;;  %v7889_v18 = vadd.f32 %v7888_v47, %v7887_v5  ;;  %v7831_v9 = vadd.f32 %v7830_v59, %v7829_v17  ;;  %v7894_v57 = vrot.slane %v7893_v24, 2 }
 0x9f9   :  { %v7827_v41 = vadd.f32 %v7826_v63, %v7825_v50  ;;  %v7890_v28 = vrot.slane %v7889_v18, 1  ;;  %v7832_v25 = vrot.slane %v7831_v9, 1  ;;  %v7895_v26 = vadd.f32 %v7894_v57, %v7893_v24 }
 0x9fb   :  { %v17442_v16 = vmul.f32 0.125, %v7827_v41  ;;  %v7891_v20 = vadd.f32 %v7890_v28, %v7889_v18  ;;  %v7833_v15 = vadd.f32 %v7832_v25, %v7831_v9  ;;  %v7896_v10 = vrot.slane %v7895_v26, 1 }
 0x9fd   :  { %v7924_v11 = vmul.f32 0.125, %v7891_v20  ;;  %v7932_v31 = vmul.f32 %v17442_v16, %v17442_v16  ;;  %v17446_v13 = vmul.f32 0.125, %v7833_v15  ;;  %v7897_v51 = vadd.f32 %v7896_v10, %v7895_v26 }
 0x9ff   :  { %v7940_v1 = vsub.f32 %v7924_v11, %v7932_v31  ;;  %v7925_v61 = vmul.f32 0.125, %v7897_v51  ;;  %v7933_v53 = vmul.f32 %v17446_v13, %v17446_v13 }
 0xa01   :  { %v7948_v55 = vmax.f32 %v7940_v1, 0.0  ;;  %v7941_v2 = vsub.f32 %v7925_v61, %v7933_v53 }
 0xa03   :  { %v7958_v29 = vadd.f32 1e-05, %v7948_v55  ;;  %v7949_v30 = vmax.f32 %v7941_v2, 0.0 }
 0xa05   :  { %v7959_v43 = vadd.f32 1e-05, %v7949_v30  ;;  %14450 = vrsqrt.f32 %v7958_v29 }
 0xa07   :  { %14452 = vrsqrt.f32 %v7959_v43 }
 0xa12   :  { %v14451_v52 = vpop.eup %14450 }
 0xa14   :  { %v14453_v21 = vpop.eup %14452 }
 0xa15   :  { %v7981_v38 = vcombine.low %v14451_v52, %v14453_v21 }
 0xa17   :  { %v17454_v56 = vrot.slane %v7981_v38, %v16736_v62 }
 0xa19   :  { %v8012_v3 = vcombine.low %v17451_v34, %v17454_v56 }
 0xa2a   :  { %v7680_v44 = vpop.f32.mrf.mxu0 }
 0xa2b   :  { %v7681_v33 = vadd.f32 %v7680_v44, %v6181_v58 }
 0xa2c   :  { %v7721_v60 = vpop.f32.mrf.mxu1  ;;  %v7682_v37 = vpop.f32.mrf.mxu0 }
 0xa2d   :  { %v17462_v39 = vadd.f32 %v7721_v60, %v7681_v33  ;;  %v7683_v40 = vadd.f32 %v7682_v37, %v6185_v0 }
 0xa2e   :  { %v7723_v54 = vpop.f32.mrf.mxu1  ;;  %v7684_v5 = vpop.f32.mrf.mxu0 }
 0xa2f   :  { %v7834_v17 = vrot.slane %v17462_v39, 4  ;;  %v7870_v36 = vmul.f32 %v17462_v39, %v17462_v39  ;;  %v17467_v50 = vadd.f32 %v7723_v54, %v7683_v40 }
 0xa30   :  { %v7725_v47 = vpop.f32.mrf.mxu1  ;;  %v7685_v59 = vpop.f32.mrf.mxu0 }
 0xa31   :  { %v7835_v24 = vadd.f32 %v7834_v17, %v17462_v39  ;;  %v7898_v63 = vrot.slane %v7870_v36, 4  ;;  %v7840_v18 = vrot.slane %v17467_v50, 4  ;;  %v7871_v9 = vmul.f32 %v17467_v50, %v17467_v50 }
 0xa32   :  { %v7726_v57 = vpop.f32.mrf.mxu1 }
 0xa33   :  { %v7836_v41 = vrot.slane %v7835_v24, 2  ;;  %v7899_v28 = vadd.f32 %v7898_v63, %v7870_v36  ;;  %v7841_v25 = vadd.f32 %v7840_v18, %v17467_v50  ;;  %v7904_v26 = vrot.slane %v7871_v9, 4 }
 0xa34   :  { %v6189_v63 = vrot.slane %v17398_v42, %v17061_v32  ;;  %v6193_v18 = vrot.slane %v17398_v42, %v17064_v49 }
 0xa35   :  { %v7837_v20 = vadd.f32 %v7836_v41, %v7835_v24  ;;  %v7900_v15 = vrot.slane %v7899_v28, 2  ;;  %v7842_v10 = vrot.slane %v7841_v25, 2  ;;  %v7905_v11 = vadd.f32 %v7904_v26, %v7871_v9 }
 0xa37   :  { %v7838_v31 = vrot.slane %v7837_v20, 1  ;;  %v7901_v51 = vadd.f32 %v7900_v15, %v7899_v28  ;;  %v7843_v1 = vadd.f32 %v7842_v10, %v7841_v25  ;;  %v7906_v61 = vrot.slane %v7905_v11, 2 }
 0xa39   :  { %v7839_v53 = vadd.f32 %v7838_v31, %v7837_v20  ;;  %v7902_v55 = vrot.slane %v7901_v51, 1  ;;  %v7844_v2 = vrot.slane %v7843_v1, 1  ;;  %v7907_v29 = vadd.f32 %v7906_v61, %v7905_v11 }
 0xa3b   :  { %v17474_v30 = vmul.f32 0.125, %v7839_v53  ;;  %v7903_v43 = vadd.f32 %v7902_v55, %v7901_v51  ;;  %v7845_v52 = vadd.f32 %v7844_v2, %v7843_v1  ;;  %v7908_v21 = vrot.slane %v7907_v29, 1 }
 0xa3d   :  { %v7926_v38 = vmul.f32 0.125, %v7903_v43  ;;  %v7934_v58 = vmul.f32 %v17474_v30, %v17474_v30  ;;  %v17478_v0 = vmul.f32 0.125, %v7845_v52  ;;  %v7909_v44 = vadd.f32 %v7908_v21, %v7907_v29 }
 0xa3f   :  { %v7942_v33 = vsub.f32 %v7926_v38, %v7934_v58  ;;  %v7927_v60 = vmul.f32 0.125, %v7909_v44  ;;  %v7935_v37 = vmul.f32 %v17478_v0, %v17478_v0 }
 0xa41   :  { %v7950_v40 = vmax.f32 %v7942_v33, 0.0  ;;  %v7943_v54 = vsub.f32 %v7927_v60, %v7935_v37 }
 0xa43   :  { %v7960_v5 = vadd.f32 1e-05, %v7950_v40  ;;  %v7951_v17 = vmax.f32 %v7943_v54, 0.0 }
 0xa45   :  { %v7961_v36 = vadd.f32 1e-05, %v7951_v17  ;;  %14454 = vrsqrt.f32 %v7960_v5 }
 0xa47   :  { %14456 = vrsqrt.f32 %v7961_v36 }
 0xa52   :  { %v14455_v47 = vpop.eup %14454 }
 0xa54   :  { %v14457_v59 = vpop.eup %14456 }
 0xa55   :  { %v7982_v24 = vcombine.low %v14455_v47, %v14457_v59 }
 0xa6a   :  { %v7762_v9 = vpop.f32.mrf.mxu0 }
 0xa6b   :  { %v7763_v57 = vadd.f32 %v7762_v9, %v6189_v63 }
 0xa6c   :  { %v7803_v41 = vpop.f32.mrf.mxu1  ;;  %v7764_v28 = vpop.f32.mrf.mxu0 }
 0xa6d   :  { %v17486_v25 = vadd.f32 %v7803_v41, %v7763_v57  ;;  %v7765_v26 = vadd.f32 %v7764_v28, %v6193_v18 }
 0xa6e   :  { %v7805_v20 = vpop.f32.mrf.mxu1  ;;  %v7766_v15 = vpop.f32.mrf.mxu0 }
 0xa6f   :  { %v7846_v10 = vrot.slane %v17486_v25, 4  ;;  %v7872_v11 = vmul.f32 %v17486_v25, %v17486_v25  ;;  %v17491_v31 = vadd.f32 %v7805_v20, %v7765_v26 }
 0xa70   :  { %v7807_v51 = vpop.f32.mrf.mxu1  ;;  %v7767_v1 = vpop.f32.mrf.mxu0 }
 0xa71   :  { %v7847_v42 = vadd.f32 %v7846_v10, %v17486_v25  ;;  %v7910_v61 = vrot.slane %v7872_v11, 4  ;;  %v7852_v53 = vrot.slane %v17491_v31, 4  ;;  %v7873_v55 = vmul.f32 %v17491_v31, %v17491_v31 }
 0xa72   :  { %v7808_v2 = vpop.f32.mrf.mxu1 }
 0xa73   :  { %v7848_v29 = vrot.slane %v7847_v42, 2  ;;  %v7911_v43 = vadd.f32 %v7910_v61, %v7872_v11  ;;  %v7853_v52 = vadd.f32 %v7852_v53, %v17491_v31  ;;  %v7916_v21 = vrot.slane %v7873_v55, 4 }
 0xa75   :  { %v7849_v38 = vadd.f32 %v7848_v29, %v7847_v42  ;;  %v7912_v58 = vrot.slane %v7911_v43, 2  ;;  %v7854_v44 = vrot.slane %v7853_v52, 2  ;;  %v7917_v33 = vadd.f32 %v7916_v21, %v7873_v55 }
 0xa76   :  { %v8004_v29 = vrot.slane %v7982_v24, %v16736_v62  ;;  %v8020_v21 = vrot.slane %v8012_v3, %v16736_v62 }
 0xa77   :  { %v7850_v60 = vrot.slane %v7849_v38, 1  ;;  %v7913_v37 = vadd.f32 %v7912_v58, %v7911_v43  ;;  %v7855_v40 = vadd.f32 %v7854_v44, %v7853_v52  ;;  %v7918_v54 = vrot.slane %v7917_v33, 2  ;;  %v7955_v58 = vld [vmem:[#allocation15 + $0x69] ss:$4 sm:$0xff] }
 0xa79   :  { %v7851_v5 = vadd.f32 %v7850_v60, %v7849_v38  ;;  %v7914_v17 = vrot.slane %v7913_v37, 1  ;;  %v7856_v36 = vrot.slane %v7855_v40, 1  ;;  %v7919_v47 = vadd.f32 %v7918_v54, %v7917_v33 }
 0xa7b   :  { %v7864_v59 = vmul.f32 0.125, %v7851_v5  ;;  %v7915_v63 = vadd.f32 %v7914_v17, %v7913_v37  ;;  %v7857_v18 = vadd.f32 %v7856_v36, %v7855_v40  ;;  %v7920_v9 = vrot.slane %v7919_v47, 1 }
 0xa7d   :  { %v7928_v57 = vmul.f32 0.125, %v7915_v63  ;;  %v7936_v41 = vmul.f32 %v7864_v59, %v7864_v59  ;;  %v7865_v28 = vmul.f32 0.125, %v7857_v18  ;;  %v7921_v26 = vadd.f32 %v7920_v9, %v7919_v47 }
 0xa7f   :  { %v7944_v20 = vsub.f32 %v7928_v57, %v7936_v41  ;;  %v7929_v15 = vmul.f32 0.125, %v7921_v26  ;;  %v7937_v10 = vmul.f32 %v7865_v28, %v7865_v28 }
 0xa81   :  { %v7952_v11 = vmax.f32 %v7944_v20, 0.0  ;;  %v7945_v51 = vsub.f32 %v7929_v15, %v7937_v10 }
 0xa83   :  { %v7962_v1 = vadd.f32 1e-05, %v7952_v11  ;;  %v7953_v42 = vmax.f32 %v7945_v51, 0.0 }
 0xa85   :  { %v7963_v61 = vadd.f32 1e-05, %v7953_v42  ;;  %14458 = vrsqrt.f32 %v7962_v1  ;;  %v8032_v42 = vld [vmem:[#allocation15 + $0x89] ss:$4 sm:$0xff] }
 0xa87   :  { %14460 = vrsqrt.f32 %v7963_v61 }
 0xa92   :  { %v14459_v53 = vpop.eup %14458 }
 0xa94   :  { %v14461_v55 = vpop.eup %14460 }
 0xa95   :  { %v7983_v2 = vcombine.low %v14459_v53, %v14461_v55 }
 0xa97   :  { %v8011_v43 = vrot.slane %v7983_v2, %v16736_v62 }
 0xa99   :  { %v8013_v52 = vcombine.low %v8004_v29, %v8011_v43 }
 0xa9b   :  { %v8027_v38 = vrot.slane %v8013_v52, %v16736_v62 }
 0xa9d   :  { %v8028_v44 = vcombine.low %v8020_v21, %v8027_v38 }
 0xa9f   :  { %v8030_v33 = vmul.f32 %v8028_v44, %v7955_v58 }
 0xaa1   :  { %v8037_v60 = vrot.slane %v8030_v33, %v16722_v35  ;;  %v8041_v37 = vrot.slane %v8030_v33, %v16725_v45  ;;  %v8045_v40 = vrot.slane %v8030_v33, %v16882_v48  ;;  %v8049_v24 = vrot.slane %v8030_v33, %v16885_v4 }
 0xaa2   :  { %v8053_v54 = vrot.slane %v8030_v33, %v17028_v6  ;;  %v8057_v5 = vrot.slane %v8030_v33, %v17031_v46  ;;  %v8061_v34 = vrot.slane %v8030_v33, %v17061_v32  ;;  %v8065_v56 = vrot.slane %v8030_v33, %v17064_v49 }
 0xaa3   :  { %v8074_v3 = vmul.f32 %v8037_v60, %v17418_v12  ;;  %v8075_v17 = vmul.f32 %v8041_v37, %v17422_v22  ;;  %v8076_v36 = vmul.f32 %v8045_v40, %v17442_v16  ;;  %v8077_v47 = vmul.f32 %v8049_v24, %v17446_v13 }
 0xaa4   :  { %v8078_v63 = vmul.f32 %v8053_v54, %v17474_v30  ;;  %v8079_v18 = vmul.f32 %v8057_v5, %v17478_v0  ;;  %v8080_v9 = vmul.f32 %v8061_v34, %v7864_v59  ;;  %v8081_v57 = vmul.f32 %v8065_v56, %v7865_v28 }
 0xaa5   :  { %v8090_v41 = vcombine.low %v8074_v3, %v8075_v17  ;;  %v8091_v26 = vcombine.low %v8076_v36, %v8077_v47  ;;  %v8141_v20 = vmul.f32 %v8037_v60, %v17406_v19  ;;  %v8142_v15 = vmul.f32 %v8041_v37, %v17411_v8 }
 0xaa6   :  { %v8092_v10 = vcombine.low %v8078_v63, %v8079_v18  ;;  %v8093_v12 = vcombine.low %v8080_v9, %v8081_v57  ;;  %v8143_v22 = vmul.f32 %v8045_v40, %v17430_v23  ;;  %v8144_v16 = vmul.f32 %v8049_v24, %v17435_v27 }
 0xaa7   :  { %v8100_v13 = vrot.slane %v8090_v41, %v16736_v62  ;;  %v8107_v30 = vrot.slane %v8091_v26, %v16736_v62  ;;  %v8145_v0 = vmul.f32 %v8053_v54, %v17462_v39  ;;  %v8146_v59 = vmul.f32 %v8057_v5, %v17467_v50 }
 0xaa8   :  { %v8114_v28 = vrot.slane %v8092_v10, %v16736_v62  ;;  %v8121_v19 = vrot.slane %v8093_v12, %v16736_v62  ;;  %v8147_v8 = vmul.f32 %v8061_v34, %v17486_v25  ;;  %v8148_v11 = vmul.f32 %v8065_v56, %v17491_v31 }
 0xaa9   :  { %v8122_v51 = vcombine.low %v8100_v13, %v8107_v30 }
 0xaaa   :  { %v8123_v23 = vcombine.low %v8114_v28, %v8121_v19 }
 0xaab   :  { %v8130_v27 = vrot.slane %v8122_v51, %v16736_v62 }
 0xaac   :  { %v8137_v1 = vrot.slane %v8123_v23, %v16736_v62 }
 0xaae   :  { %v8138_v61 = vcombine.low %v8130_v27, %v8137_v1 }
 0xab0   :  { %v8140_v53 = vsub.f32 %v8032_v42, %v8138_v61 }
 0xab2   :  { %v8153_v39 = vrot.slane %v8140_v53, %v16722_v35  ;;  %v8157_v50 = vrot.slane %v8140_v53, %v16725_v45  ;;  %v8161_v55 = vrot.slane %v8140_v53, %v16882_v48  ;;  %v8165_v2 = vrot.slane %v8140_v53, %v16885_v4 }
 0xab3   :  { %v8169_v25 = vrot.slane %v8140_v53, %v17028_v6  ;;  %v8173_v31 = vrot.slane %v8140_v53, %v17031_v46  ;;  %v8177_v29 = vrot.slane %v8140_v53, %v17061_v32  ;;  %v8181_v43 = vrot.slane %v8140_v53, %v17064_v49 }
 0xab4   :  { %v17541_v52 = vadd.f32 %v8153_v39, %v8141_v20  ;;  %v8191_v21 = vadd.f32 %v8157_v50, %v8142_v15  ;;  %v17543_v38 = vadd.f32 %v8161_v55, %v8143_v22  ;;  %v8193_v58 = vadd.f32 %v8165_v2, %v8144_v16 }
 0xab5   :  { %v17545_v44 = vadd.f32 %v8169_v25, %v8145_v0  ;;  %v17547_v33 = vadd.f32 %v8173_v31, %v8146_v59  ;;  %v17549_v60 = vadd.f32 %v8177_v29, %v8147_v8  ;;  %v17551_v37 = vadd.f32 %v8181_v43, %v8148_v11 }
 0xab6   :  { %v8198_v40 = vmax.f32 %v17541_v52, 0.0  ;;  %v8199_v24 = vmax.f32 %v8191_v21, 0.0  ;;  %v8200_v54 = vmax.f32 %v17543_v38, 0.0  ;;  %v8201_v5 = vmax.f32 %v8193_v58, 0.0 }
 0xab7   :  { %v8202_v34 = vmax.f32 %v17545_v44, 0.0  ;;  %v8203_v56 = vmax.f32 %v17547_v33, 0.0  ;;  %v8204_v3 = vmax.f32 %v17549_v60, 0.0  ;;  %v8205_v17 = vmax.f32 %v17551_v37, 0.0 }
 0xab8   :  { %15186 = dma.done.wait [#allocation14 + $0x7], 8192 }
 0xab9   :  { %15187 = vsyncadd [#allocation14 + $0x7], 4294959104  ;;  %v8209_v36 = vpack.c.bf16 %v8199_v24, %v8199_v24  ;;  %v8211_v47 = vpack.c.bf16 %v8201_v5, %v8201_v5  ;;  %v14462_v63 = vld [vmem:[#allocation9 + $0x78] sm:$0xff]   ;;  %v14466_v41 = vld [vmem:[#allocation9 + $0x70] sm:$0xff]   ;;  %v8208_v31 = vpack.c.bf16 %v8198_v40, %v8198_v40  ;;  %v8210_v29 = vpack.c.bf16 %v8200_v54, %v8200_v54  ;;  %s15205_s0 = smov 64  }
 0xaba   :  { %v14463_v18 = vld [vmem:[#allocation9 + $0xf8] sm:$0xff]   ;;  %14213 = vmatprep.subr.bf16.mxu0 %v14462_v63  ;;  %v14467_v26 = vld [vmem:[#allocation9 + $0xf0] sm:$0xff]   ;;  %v14470_v10 = vld [vmem:[#allocation9 + $0x68] sm:$0xff]   ;;  %v8213_v58 = vpack.c.bf16 %v8203_v56, %v8203_v56  ;;  %v8215_v52 = vpack.c.bf16 %v8205_v17, %v8205_v17  ;;  %vm8897_vm2 = vcmask 523264  }
 0xabb   :  { %8765 = vmatprep.mubr.bf16.mxu0 %v8209_v36  ;;  %8805 = vmatprep.mubr.bf16.mxu1 %v8211_v47  ;;  %v14464_v9 = vld [vmem:[#allocation9 + $0x38] sm:$0xff]   ;;  %v14468_v20 = vld [vmem:[#allocation9 + $0x30] sm:$0xff]   ;;  %v14471_v12 = vld [vmem:[#allocation9 + $0xe8] sm:$0xff]  }
 0xabc   :  { %14235 = vmatprep.subr.bf16.mxu1 %v14463_v18  ;;  %v14465_v57 = vld [vmem:[#allocation9 + $0xb8] sm:$0xff]   ;;  %14214 = vmatpush3.bf16.msra.mxu0 %v14464_v9  ;;  %v14469_v15 = vld [vmem:[#allocation9 + $0xb0] sm:$0xff]   ;;  %v14472_v22 = vld [vmem:[#allocation9 + $0x28] sm:$0xff]  }
 0xabd   :  { %14236 = vmatpush3.bf16.msra.mxu1 %v14465_v57  ;;  %14215 = vmatprep.subr.bf16.mxu0 %v14466_v41  ;;  %v14473_v16 = vld [vmem:[#allocation9 + $0xa8] sm:$0xff]   ;;  %v14474_v13 = vld [vmem:[#allocation9 + $0x60] sm:$0xff]   ;;  %v14478_v28 = vld [vmem:[#allocation9 + $0x58] sm:$0xff]  }
 0xabe   :  { %14237 = vmatprep.subr.bf16.mxu1 %v14467_v26  ;;  %v14475_v30 = vld [vmem:[#allocation9 + $0xe0] sm:$0xff]   ;;  %v14479_v19 = vld [vmem:[#allocation9 + $0xd8] sm:$0xff]   ;;  %v14482_v51 = vld [vmem:[#allocation9 + $0x50] sm:$0xff]  }
 0xabf   :  { %v14476_v0 = vld [vmem:[#allocation9 + $0x20] sm:$0xff]   ;;  %v14480_v8 = vld [vmem:[#allocation9 + $0x18] sm:$0xff]   ;;  %v14483_v23 = vld [vmem:[#allocation9 + $0xd0] sm:$0xff]  }
 0xac0   :  { %14216 = vmatpush3.bf16.msra.mxu0 %v14468_v20  ;;  %v14477_v59 = vld [vmem:[#allocation9 + $0xa0] sm:$0xff]   ;;  %v14481_v11 = vld [vmem:[#allocation9 + $0x98] sm:$0xff]   ;;  %v14484_v27 = vld [vmem:[#allocation9 + $0x10] sm:$0xff]  }
 0xac1   :  { %14238 = vmatpush3.bf16.msra.mxu1 %v14469_v15  ;;  %14217 = vmatprep.subr.bf16.mxu0 %v14470_v10  ;;  %v14485_v1 = vld [vmem:[#allocation9 + $0x90] sm:$0xff]   ;;  %v14486_v42 = vld [vmem:[#allocation9 + $0x48] sm:$0xff]   ;;  %v14490_v50 = vld [vmem:[#allocation9 + $0x40] sm:$0xff]  }
 0xac2   :  { %14239 = vmatprep.subr.bf16.mxu1 %v14471_v12  ;;  %v14487_v61 = vld [vmem:[#allocation9 + $0xc8] sm:$0xff]   ;;  %v14491_v55 = vld [vmem:[#allocation9 + $0xc0] sm:$0xff]   ;;  %v14494_v43 = vld [vmem:[#allocation9 + $0x178] sm:$0xff]  }
 0xac3   :  { %v14488_v53 = vld [vmem:[#allocation9 + $0x8] sm:$0xff]   ;;  %v14492_v2 = vld [vmem:[#allocation9] sm:$0xff]   ;;  %v14495_v21 = vld [vmem:[#allocation9 + $0x1f8] sm:$0xff]  }
 0xac4   :  { %14218 = vmatpush3.bf16.msra.mxu0 %v14472_v22  ;;  %v14489_v39 = vld [vmem:[#allocation9 + $0x88] sm:$0xff]   ;;  %v14493_v25 = vld [vmem:[#allocation9 + $0x80] sm:$0xff]   ;;  %v14496_v24 = vld [vmem:[#allocation9 + $0x138] sm:$0xff]  }
 0xac5   :  { %14240 = vmatpush3.bf16.msra.mxu1 %v14473_v16  ;;  %14219 = vmatprep.subr.bf16.mxu0 %v14474_v13  ;;  %v14497_v40 = vld [vmem:[#allocation9 + $0x1b8] sm:$0xff]   ;;  %v14498_v38 = vld [vmem:[#allocation9 + $0x170] sm:$0xff]   ;;  %v14502_v56 = vld [vmem:[#allocation9 + $0x168] sm:$0xff]  }
 0xac6   :  { %14241 = vmatprep.subr.bf16.mxu1 %v14475_v30  ;;  %v14499_v54 = vld [vmem:[#allocation9 + $0x1f0] sm:$0xff]   ;;  %v14503_v37 = vld [vmem:[#allocation9 + $0x1e8] sm:$0xff]   ;;  %v14506_v47 = vld [vmem:[#allocation9 + $0x160] sm:$0xff]  }
 0xac7   :  { %v14500_v5 = vld [vmem:[#allocation9 + $0x130] sm:$0xff]   ;;  %v14504_v17 = vld [vmem:[#allocation9 + $0x128] sm:$0xff]   ;;  %v14507_v63 = vld [vmem:[#allocation9 + $0x1e0] sm:$0xff]  }
 0xac8   :  { %14220 = vmatpush3.bf16.msra.mxu0 %v14476_v0  ;;  %v14501_v33 = vld [vmem:[#allocation9 + $0x1b0] sm:$0xff]   ;;  %v14505_v36 = vld [vmem:[#allocation9 + $0x1a8] sm:$0xff]   ;;  %v14508_v18 = vld [vmem:[#allocation9 + $0x120] sm:$0xff]  }
 0xac9   :  { %14242 = vmatpush3.bf16.msra.mxu1 %v14477_v59  ;;  %14221 = vmatprep.subr.bf16.mxu0 %v14478_v28  ;;  %v14509_v9 = vld [vmem:[#allocation9 + $0x1a0] sm:$0xff]   ;;  %v14510_v57 = vld [vmem:[#allocation9 + $0x158] sm:$0xff]   ;;  %v14514_v15 = vld [vmem:[#allocation9 + $0x150] sm:$0xff]  }
 0xaca   :  { %14243 = vmatprep.subr.bf16.mxu1 %v14479_v19  ;;  %v14511_v41 = vld [vmem:[#allocation9 + $0x1d8] sm:$0xff]   ;;  %v14515_v10 = vld [vmem:[#allocation9 + $0x1d0] sm:$0xff]   ;;  %v14518_v16 = vld [vmem:[#allocation9 + $0x148] sm:$0xff]  }
 0xacb   :  { %v14512_v26 = vld [vmem:[#allocation9 + $0x118] sm:$0xff]   ;;  %v14516_v12 = vld [vmem:[#allocation9 + $0x110] sm:$0xff]   ;;  %v14519_v13 = vld [vmem:[#allocation9 + $0x1c8] sm:$0xff]  }
 0xacc   :  { %14222 = vmatpush3.bf16.msra.mxu0 %v14480_v8  ;;  %v14513_v20 = vld [vmem:[#allocation9 + $0x198] sm:$0xff]   ;;  %v14517_v22 = vld [vmem:[#allocation9 + $0x190] sm:$0xff]   ;;  %v14520_v30 = vld [vmem:[#allocation9 + $0x108] sm:$0xff]  }
 0xacd   :  { %14244 = vmatpush3.bf16.msra.mxu1 %v14481_v11  ;;  %14223 = vmatprep.subr.bf16.mxu0 %v14482_v51  ;;  %v14521_v0 = vld [vmem:[#allocation9 + $0x188] sm:$0xff]   ;;  %v14522_v59 = vld [vmem:[#allocation9 + $0x140] sm:$0xff]   ;;  %v8212_v11 = vpack.c.bf16 %v8202_v34, %v8202_v34  ;;  %v8214_v51 = vpack.c.bf16 %v8204_v3, %v8204_v3 }
 0xace   :  { %14245 = vmatprep.subr.bf16.mxu1 %v14483_v23  ;;  %v14523_v28 = vld [vmem:[#allocation9 + $0x1c0] sm:$0xff]   ;;  %v13647_v44 = vld [vmem:[#allocation15 + $0xa9] ss:$0 sm:$0xff] }
 0xacf   :  { %v14524_v19 = vld [vmem:[#allocation9 + $0x100] sm:$0xff]  }
 0xad0   :  { %14224 = vmatpush3.bf16.msra.mxu0 %v14484_v27  ;;  %v14525_v8 = vld [vmem:[#allocation9 + $0x180] sm:$0xff]  }
 0xad1   :  { %14246 = vmatpush3.bf16.msra.mxu1 %v14485_v1  ;;  %14225 = vmatprep.subr.bf16.mxu0 %v14486_v42 }
 0xad2   :  { %14247 = vmatprep.subr.bf16.mxu1 %v14487_v61 }
 0xad4   :  { %14226 = vmatpush3.bf16.msra.mxu0 %v14488_v53 }
 0xad5   :  { %14248 = vmatpush3.bf16.msra.mxu1 %v14489_v39  ;;  %14227 = vmatprep.subr.bf16.mxu0 %v14490_v50 }
 0xad6   :  { %14249 = vmatprep.subr.bf16.mxu1 %v14491_v55 }
 0xad8   :  { %14228 = vmatpush3.bf16.msra.mxu0 %v14492_v2 }
 0xad9   :  { %14250 = vmatpush3.bf16.msra.mxu1 %v14493_v25  ;;  %14257 = vmatprep.subr.bf16.mxu0 %v14494_v43 }
 0xada   :  { %14279 = vmatprep.subr.bf16.mxu1 %v14495_v21 }
 0xadb   :  { %8766 = vmatmul.mubr.bf16.vlgmr.msra.gmra.mxu0 %v8208_v31 }
 0xadc   :  { %8806 = vmatmul.mubr.bf16.vlgmr.msra.gmra.mxu1 %v8210_v29  ;;  %14258 = vmatpush3.bf16.msra.mxu0 %v14496_v24 }
 0xadd   :  { %14280 = vmatpush3.bf16.msra.mxu1 %v14497_v40  ;;  %8845 = vmatprep.mubr.bf16.mxu0 %v8213_v58 }
 0xade   :  { %14259 = vmatprep.subr.bf16.mxu0 %v14498_v38  ;;  %8885 = vmatprep.mubr.bf16.mxu1 %v8215_v52 }
 0xadf   :  { %14281 = vmatprep.subr.bf16.mxu1 %v14499_v54 }
 0xae0   :  { %14260 = vmatpush3.bf16.msra.mxu0 %v14500_v5 }
 0xae1   :  { %14282 = vmatpush3.bf16.msra.mxu1 %v14501_v33  ;;  %14261 = vmatprep.subr.bf16.mxu0 %v14502_v56  ;;  %v18481_v56 = vld [vmem:[#allocation207_spill] sm:$0xff] }
 0xae2   :  { %14283 = vmatprep.subr.bf16.mxu1 %v14503_v37  ;;  %v18482_v37 = vld [vmem:[#allocation203_spill] sm:$0xff] }
 0xae4   :  { %14262 = vmatpush3.bf16.msra.mxu0 %v14504_v17  ;;  %v13769_v17 = vcombine.high %v18482_v37, %v18481_v56 }
 0xae5   :  { %14284 = vmatpush3.bf16.msra.mxu1 %v14505_v36  ;;  %14263 = vmatprep.subr.bf16.mxu0 %v14506_v47  ;;  %v18483_v36 = vld [vmem:[#allocation208_spill] sm:$0xff] }
 0xae6   :  { %14285 = vmatprep.subr.bf16.mxu1 %v14507_v63  ;;  %v18484_v47 = vld [vmem:[#allocation204_spill] sm:$0xff] }
 0xae7   :  { %v13771_v63 = vcombine.high %v18484_v47, %v18483_v36 }
 0xae8   :  { %14264 = vmatpush3.bf16.msra.mxu0 %v14508_v18  ;;  %v13768_v18 = vcombine.low %v18482_v37, %v18481_v56 }
 0xae9   :  { %14286 = vmatpush3.bf16.msra.mxu1 %v14509_v9  ;;  %14265 = vmatprep.subr.bf16.mxu0 %v14510_v57  ;;  %v13770_v9 = vcombine.low %v18484_v47, %v18483_v36 }
 0xaea   :  { %14287 = vmatprep.subr.bf16.mxu1 %v14511_v41 }
 0xaec   :  { %14266 = vmatpush3.bf16.msra.mxu0 %v14512_v26 }
 0xaed   :  { %14288 = vmatpush3.bf16.msra.mxu1 %v14513_v20  ;;  %14267 = vmatprep.subr.bf16.mxu0 %v14514_v15 }
 0xaee   :  { %14289 = vmatprep.subr.bf16.mxu1 %v14515_v10 }
 0xaf0   :  { %14268 = vmatpush3.bf16.msra.mxu0 %v14516_v12 }
 0xaf1   :  { %14290 = vmatpush3.bf16.msra.mxu1 %v14517_v22  ;;  %14269 = vmatprep.subr.bf16.mxu0 %v14518_v16 }
 0xaf2   :  { %14291 = vmatprep.subr.bf16.mxu1 %v14519_v13 }
 0xaf4   :  { %14270 = vmatpush3.bf16.msra.mxu0 %v14520_v30 }
 0xaf5   :  { %14292 = vmatpush3.bf16.msra.mxu1 %v14521_v0  ;;  %14271 = vmatprep.subr.bf16.mxu0 %v14522_v59 }
 0xaf6   :  { %14293 = vmatprep.subr.bf16.mxu1 %v14523_v28 }
 0xaf8   :  { %14272 = vmatpush3.bf16.msra.mxu0 %v14524_v19 }
 0xaf9   :  { %14294 = vmatpush3.bf16.msra.mxu1 %v14525_v8 }
 0xafb   :  { %8846 = vmatmul.mubr.bf16.vlgmr.msra.gmra.mxu0 %v8212_v11 }
 0xafc   :  { %8886 = vmatmul.mubr.bf16.vlgmr.msra.gmra.mxu1 %v8214_v51  ;;  %9363 = vmatprep.mubr.bf16.mxu0 %v18416_v7 }
 0xb9b   :  { %v14229_v23 = vpop.f32.mrf.mxu0 }
 0xb9c   :  { %v14251_v27 = vpop.f32.mrf.mxu1 }
 0xb9d   :  { %v14230_v1 = vpop.f32.mrf.mxu0 }
 0xb9e   :  { %v14252_v42 = vpop.f32.mrf.mxu1  ;;  %v14231_v55 = vadd.f32 %v14230_v1, %v14229_v23 }
 0xb9f   :  { %v14232_v61 = vpop.f32.mrf.mxu0  ;;  %v14253_v34 = vadd.f32 %v14252_v42, %v14251_v27 }
 0xba0   :  { %v14254_v53 = vpop.f32.mrf.mxu1  ;;  %v8768_v2 = vadd.f32 %v14231_v55, %v13647_v44 }
 0xba1   :  { %v14233_v39 = vpop.f32.mrf.mxu0 }
 0xba2   :  { %v14255_v50 = vpop.f32.mrf.mxu1  ;;  %v8808_v29 = vadd.f32 %v14253_v34, %v8768_v2 }
 0xbbb   :  { %v14273_v25 = vpop.f32.mrf.mxu0 }
 0xbbc   :  { %v14295_v31 = vpop.f32.mrf.mxu1 }
 0xbbd   :  { %v14274_v60 = vpop.f32.mrf.mxu0 }
 0xbbe   :  { %v14275_v3 = vadd.f32 %v14274_v60, %v14273_v25  ;;  %v14296_v43 = vpop.f32.mrf.mxu1 }
 0xbbf   :  { %v14276_v21 = vpop.f32.mrf.mxu0  ;;  %v14297_v24 = vadd.f32 %v14296_v43, %v14295_v31 }
 0xbc0   :  { %v8848_v58 = vadd.f32 %v14275_v3, %v8808_v29  ;;  %v14298_v52 = vpop.f32.mrf.mxu1 }
 0xbc1   :  { %v14277_v40 = vpop.f32.mrf.mxu0 }
 0xbc2   :  { %v14299_v38 = vpop.f32.mrf.mxu1  ;;  %v8888_v54 = vadd.f32 %v14297_v24, %v8848_v58 }
 0xbc4   :  { %8894 = vrot.lane.b32.xlu0 %v8888_v54, %s15205_s0 }
 0xc36   :  { %v8895_v5 = vpop.permute.xlu0 %8894 }
 0xc37   :  { %v17578_v33 = vsel %vm8897_vm2, %v17166_v14, %v8895_v5 }
 0xc38   :  { %15188 = dma.done.wait [#allocation14 + $0x8], 8192 }
 0xc39   :  { %15189 = vsyncadd [#allocation14 + $0x8], 4294959104  ;;  %v18485_v57 = vld [vmem:[#allocation199_spill] sm:$0xff]  ;;  %v18487_v26 = vld [vmem:[#allocation200_spill] sm:$0xff]  ;;  %9404 = vmatprep.mubr.bf16.mxu1 %v18416_v7  ;;  %9331 = vmatprep.subr.bf16.mxu0 %v13769_v17 }
 0xc3a   :  { %v18486_v41 = vld [vmem:[#allocation195_spill] sm:$0xff]  ;;  %v18488_v20 = vld [vmem:[#allocation196_spill] sm:$0xff]  ;;  %9372 = vmatprep.subr.bf16.mxu1 %v13771_v63  ;;  %9332 = vmatpush1.bf16.msra.mxu0 %v13768_v18 }
 0xc3b   :  { %v13761_v14 = vcombine.high %v18486_v41, %v18485_v57  ;;  %v13763_v15 = vcombine.high %v18488_v20, %v18487_v26  ;;  %9373 = vmatpush1.bf16.msra.mxu1 %v13770_v9  ;;  %v13760_v10 = vcombine.low %v18486_v41, %v18485_v57  ;;  %v13762_v12 = vcombine.low %v18488_v20, %v18487_v26  ;;  %v18489_v22 = vld [vmem:[#allocation191_spill] sm:$0xff]  ;;  %v18491_v30 = vld [vmem:[#allocation192_spill] sm:$0xff]  ;;  %v18513_v26 = vld [vmem:[#allocation209_spill] sm:$0xff] }
 0xc3c   :  { %v18490_v16 = vld [vmem:[#allocation187_spill] sm:$0xff]  ;;  %v18492_v0 = vld [vmem:[#allocation188_spill] sm:$0xff]  ;;  %v18514_v20 = vld [vmem:[#allocation205_spill] sm:$0xff] }
 0xc3d   :  { %9333 = vmatprep.subr.bf16.mxu0 %v13761_v14  ;;  %9374 = vmatprep.subr.bf16.mxu1 %v13763_v15  ;;  %v13753_v13 = vcombine.high %v18490_v16, %v18489_v22  ;;  %v13755_v59 = vcombine.high %v18492_v0, %v18491_v30  ;;  %v13752_v28 = vcombine.low %v18490_v16, %v18489_v22  ;;  %v18493_v8 = vld [vmem:[#allocation183_spill] sm:$0xff]  ;;  %v18495_v23 = vld [vmem:[#allocation184_spill] sm:$0xff] }
 0xc3e   :  { %9334 = vmatpush1.bf16.msra.mxu0 %v13760_v10  ;;  %v13754_v19 = vcombine.low %v18492_v0, %v18491_v30  ;;  %v18494_v11 = vld [vmem:[#allocation179_spill] sm:$0xff]  ;;  %v18496_v27 = vld [vmem:[#allocation180_spill] sm:$0xff]  ;;  %v13773_v15 = vcombine.high %v18514_v20, %v18513_v26  ;;  %v18515_v10 = vld [vmem:[#allocation210_spill] sm:$0xff]  ;;  %v17652_v16 = vpack.c.bf16 %v17578_v33, %v17578_v33 }
 0xc3f   :  { %9375 = vmatpush1.bf16.msra.mxu1 %v13762_v12  ;;  %9335 = vmatprep.subr.bf16.mxu0 %v13753_v13  ;;  %v13745_v51 = vcombine.high %v18494_v11, %v18493_v8  ;;  %v13747_v1 = vcombine.high %v18496_v27, %v18495_v23  ;;  %v13744_v42 = vcombine.low %v18494_v11, %v18493_v8  ;;  %v18497_v53 = vld [vmem:[#allocation175_spill] sm:$0xff]  ;;  %v18499_v55 = vld [vmem:[#allocation176_spill] sm:$0xff]  ;;  %v18516_v12 = vld [vmem:[#allocation206_spill] sm:$0xff] }
 0xc40   :  { %9376 = vmatprep.subr.bf16.mxu1 %v13755_v59  ;;  %v13746_v61 = vcombine.low %v18496_v27, %v18495_v23  ;;  %v18498_v39 = vld [vmem:[#allocation171_spill] sm:$0xff]  ;;  %v18500_v44 = vld [vmem:[#allocation172_spill] sm:$0xff]  ;;  %v13775_v22 = vcombine.high %v18516_v12, %v18515_v10  ;;  %v13772_v13 = vcombine.low %v18514_v20, %v18513_v26  ;;  %v13774_v30 = vcombine.low %v18516_v12, %v18515_v10  ;;  %v18517_v0 = vld [vmem:[#allocation201_spill] sm:$0xff] }
 0xc41   :  { %v13737_v50 = vcombine.high %v18498_v39, %v18497_v53  ;;  %v13739_v2 = vcombine.high %v18500_v44, %v18499_v55  ;;  %v13736_v34 = vcombine.low %v18498_v39, %v18497_v53  ;;  %v13738_v25 = vcombine.low %v18500_v44, %v18499_v55  ;;  %v18501_v31 = vld [vmem:[#allocation167_spill] sm:$0xff]  ;;  %v18503_v3 = vld [vmem:[#allocation168_spill] sm:$0xff]  ;;  %v18518_v59 = vld [vmem:[#allocation197_spill] sm:$0xff] }
 0xc42   :  { %9336 = vmatpush1.bf16.msra.mxu0 %v13752_v28  ;;  %v18502_v60 = vld [vmem:[#allocation163_spill] sm:$0xff]  ;;  %v18504_v43 = vld [vmem:[#allocation164_spill] sm:$0xff]  ;;  %v13765_v28 = vcombine.high %v18518_v59, %v18517_v0  ;;  %v18520_v8 = vld [vmem:[#allocation198_spill] sm:$0xff]  ;;  %v13764_v33 = vcombine.low %v18518_v59, %v18517_v0 }
 0xc43   :  { %9377 = vmatpush1.bf16.msra.mxu1 %v13754_v19  ;;  %9337 = vmatprep.subr.bf16.mxu0 %v13745_v51  ;;  %v13729_v29 = vcombine.high %v18502_v60, %v18501_v31  ;;  %v13731_v21 = vcombine.high %v18504_v43, %v18503_v3  ;;  %v13728_v58 = vcombine.low %v18502_v60, %v18501_v31  ;;  %v18505_v52 = vld [vmem:[#allocation159_spill] sm:$0xff]  ;;  %v18507_v54 = vld [vmem:[#allocation160_spill] sm:$0xff]  ;;  %v18519_v19 = vld [vmem:[#allocation202_spill] sm:$0xff] }
 0xc44   :  { %9378 = vmatprep.subr.bf16.mxu1 %v13747_v1  ;;  %v13730_v24 = vcombine.low %v18504_v43, %v18503_v3  ;;  %v18506_v40 = vld [vmem:[#allocation155_spill] sm:$0xff]  ;;  %v18508_v5 = vld [vmem:[#allocation156_spill] sm:$0xff]  ;;  %v13767_v11 = vcombine.high %v18520_v8, %v18519_v19  ;;  %v13766_v51 = vcombine.low %v18520_v8, %v18519_v19  ;;  %v18521_v23 = vld [vmem:[#allocation193_spill] sm:$0xff] }
 0xc45   :  { %v13721_v38 = vcombine.high %v18506_v40, %v18505_v52  ;;  %v13723_v56 = vcombine.high %v18508_v5, %v18507_v54  ;;  %v13720_v37 = vcombine.low %v18506_v40, %v18505_v52  ;;  %v13722_v17 = vcombine.low %v18508_v5, %v18507_v54  ;;  %v18509_v36 = vld [vmem:[#allocation151_spill] sm:$0xff]  ;;  %v18511_v18 = vld [vmem:[#allocation152_spill] sm:$0xff]  ;;  %v18522_v27 = vld [vmem:[#allocation189_spill] sm:$0xff] }
 0xc46   :  { %9338 = vmatpush1.bf16.msra.mxu0 %v13744_v42  ;;  %v18510_v47 = vld [vmem:[#allocation147_spill] sm:$0xff]  ;;  %v18512_v9 = vld [vmem:[#allocation148_spill] sm:$0xff]  ;;  %v13757_v1 = vcombine.high %v18522_v27, %v18521_v23  ;;  %v18523_v42 = vld [vmem:[#allocation194_spill] sm:$0xff]  ;;  %v13756_v39 = vcombine.low %v18522_v27, %v18521_v23 }
 0xc47   :  { %9379 = vmatpush1.bf16.msra.mxu1 %v13746_v61  ;;  %9339 = vmatprep.subr.bf16.mxu0 %v13737_v50  ;;  %v13713_v63 = vcombine.high %v18510_v47, %v18509_v36  ;;  %v13715_v57 = vcombine.high %v18512_v9, %v18511_v18  ;;  %v13712_v41 = vcombine.low %v18510_v47, %v18509_v36  ;;  %v18524_v61 = vld [vmem:[#allocation190_spill] sm:$0xff]  ;;  %v18525_v55 = vld [vmem:[#allocation185_spill] sm:$0xff] }
 0xc48   :  { %9380 = vmatprep.subr.bf16.mxu1 %v13739_v2  ;;  %v13714_v14 = vcombine.low %v18512_v9, %v18511_v18  ;;  %v13759_v53 = vcombine.high %v18524_v61, %v18523_v42  ;;  %v13758_v50 = vcombine.low %v18524_v61, %v18523_v42  ;;  %v18526_v44 = vld [vmem:[#allocation181_spill] sm:$0xff] }
 0xc49   :  { %v13749_v2 = vcombine.high %v18526_v44, %v18525_v55  ;;  %v18530_v3 = vld [vmem:[#allocation173_spill] sm:$0xff] }
 0xc4a   :  { %9340 = vmatpush1.bf16.msra.mxu0 %v13736_v34  ;;  %v18527_v34 = vld [vmem:[#allocation186_spill] sm:$0xff]  ;;  %v18534_v54 = vld [vmem:[#allocation165_spill] sm:$0xff] }
 0xc4b   :  { %9381 = vmatpush1.bf16.msra.mxu1 %v13738_v25  ;;  %9341 = vmatprep.subr.bf16.mxu0 %v13729_v29  ;;  %v18528_v25 = vld [vmem:[#allocation182_spill] sm:$0xff]  ;;  %v18529_v29 = vld [vmem:[#allocation177_spill] sm:$0xff] }
 0xc4c   :  { %9382 = vmatprep.subr.bf16.mxu1 %v13731_v21  ;;  %v13751_v31 = vcombine.high %v18528_v25, %v18527_v34  ;;  %v13750_v60 = vcombine.low %v18528_v25, %v18527_v34  ;;  %v13741_v43 = vcombine.high %v18530_v3, %v18529_v29  ;;  %v18531_v21 = vld [vmem:[#allocation178_spill] sm:$0xff]  ;;  %v13740_v52 = vcombine.low %v18530_v3, %v18529_v29  ;;  %v18538_v18 = vld [vmem:[#allocation157_spill] sm:$0xff] }
 0xc4d   :  { %v18542_v10 = vld [vmem:[#allocation149_spill] sm:$0xff] }
 0xc4e   :  { %9342 = vmatpush1.bf16.msra.mxu0 %v13728_v58  ;;  %v18532_v58 = vld [vmem:[#allocation174_spill] sm:$0xff] }
 0xc4f   :  { %9383 = vmatpush1.bf16.msra.mxu1 %v13730_v24  ;;  %9343 = vmatprep.subr.bf16.mxu0 %v13721_v38  ;;  %v13743_v24 = vcombine.high %v18532_v58, %v18531_v21  ;;  %v13742_v40 = vcombine.low %v18532_v58, %v18531_v21  ;;  %v18533_v38 = vld [vmem:[#allocation169_spill] sm:$0xff] }
 0xc50   :  { %9384 = vmatprep.subr.bf16.mxu1 %v13723_v56  ;;  %v13733_v5 = vcombine.high %v18534_v54, %v18533_v38  ;;  %v18535_v56 = vld [vmem:[#allocation170_spill] sm:$0xff]  ;;  %v13732_v36 = vcombine.low %v18534_v54, %v18533_v38 }
 0xc52   :  { %9344 = vmatpush1.bf16.msra.mxu0 %v13720_v37  ;;  %v18536_v37 = vld [vmem:[#allocation166_spill] sm:$0xff] }
 0xc53   :  { %9385 = vmatpush1.bf16.msra.mxu1 %v13722_v17  ;;  %9345 = vmatprep.subr.bf16.mxu0 %v13713_v63  ;;  %v13735_v17 = vcombine.high %v18536_v37, %v18535_v56  ;;  %v13734_v47 = vcombine.low %v18536_v37, %v18535_v56  ;;  %v18537_v63 = vld [vmem:[#allocation161_spill] sm:$0xff] }
 0xc54   :  { %9386 = vmatprep.subr.bf16.mxu1 %v13715_v57  ;;  %v13725_v9 = vcombine.high %v18538_v18, %v18537_v63  ;;  %v18539_v57 = vld [vmem:[#allocation162_spill] sm:$0xff]  ;;  %v13724_v26 = vcombine.low %v18538_v18, %v18537_v63 }
 0xc56   :  { %9346 = vmatpush1.bf16.msra.mxu0 %v13712_v41  ;;  %v18540_v41 = vld [vmem:[#allocation158_spill] sm:$0xff] }
 0xc57   :  { %9387 = vmatpush1.bf16.msra.mxu1 %v13714_v14  ;;  %9413 = vmatprep.subr.bf16.mxu0 %v13773_v15  ;;  %v13727_v14 = vcombine.high %v18540_v41, %v18539_v57  ;;  %v13726_v20 = vcombine.low %v18540_v41, %v18539_v57  ;;  %v18541_v15 = vld [vmem:[#allocation153_spill] sm:$0xff] }
 0xc58   :  { %9454 = vmatprep.subr.bf16.mxu1 %v13775_v22  ;;  %v13717_v12 = vcombine.high %v18542_v10, %v18541_v15  ;;  %v18543_v22 = vld [vmem:[#allocation154_spill] sm:$0xff]  ;;  %v13716_v0 = vcombine.low %v18542_v10, %v18541_v15 }
 0xc59   :  { %9364 = vmatmul.mubr.bf16.vlgmr.msra.gmra.mxu0 %v17652_v16 }
 0xc5a   :  { %9405 = vmatmul.mubr.bf16.vlgmr.msra.gmra.mxu1 %v17652_v16  ;;  %9414 = vmatpush1.bf16.msra.mxu0 %v13772_v13  ;;  %v18544_v13 = vld [vmem:[#allocation150_spill] sm:$0xff] }
 0xc5b   :  { %9455 = vmatpush1.bf16.msra.mxu1 %v13774_v30  ;;  %9415 = vmatprep.subr.bf16.mxu0 %v13765_v28  ;;  %v13719_v30 = vcombine.high %v18544_v13, %v18543_v22  ;;  %v13718_v59 = vcombine.low %v18544_v13, %v18543_v22  ;;  %v17720_v28 = vld [vmem:[#allocation15 + $0x2] ss:$4 sm:$0xff] }
 0xc5c   :  { %9456 = vmatprep.subr.bf16.mxu1 %v13767_v11  ;;  %9445 = vmatprep.mubr.bf16.mxu0 %v18416_v7  ;;  %v8974_v19 = vrot.slane %v17720_v28, %v16722_v35  ;;  %v8982_v8 = vrot.slane %v17720_v28, %v16882_v48  ;;  %v8978_v27 = vrot.slane %v17720_v28, %v16725_v45 }
 0xc5d   :  { %9486 = vmatprep.mubr.bf16.mxu1 %v18416_v7  ;;  %v13748_v7 = vcombine.low %v18526_v44, %v18525_v55 }
 0xc5e   :  { %9416 = vmatpush1.bf16.msra.mxu0 %v13764_v33 }
 0xc5f   :  { %9457 = vmatpush1.bf16.msra.mxu1 %v13766_v51  ;;  %9417 = vmatprep.subr.bf16.mxu0 %v13757_v1 }
 0xc60   :  { %9458 = vmatprep.subr.bf16.mxu1 %v13759_v53 }
 0xc62   :  { %9418 = vmatpush1.bf16.msra.mxu0 %v13756_v39 }
 0xc63   :  { %9459 = vmatpush1.bf16.msra.mxu1 %v13758_v50  ;;  %9419 = vmatprep.subr.bf16.mxu0 %v13749_v2 }
 0xc64   :  { %9460 = vmatprep.subr.bf16.mxu1 %v13751_v31 }
 0xc66   :  { %9420 = vmatpush1.bf16.msra.mxu0 %v13748_v7 }
 0xc67   :  { %9461 = vmatpush1.bf16.msra.mxu1 %v13750_v60  ;;  %9421 = vmatprep.subr.bf16.mxu0 %v13741_v43 }
 0xc68   :  { %9462 = vmatprep.subr.bf16.mxu1 %v13743_v24 }
 0xc6a   :  { %9422 = vmatpush1.bf16.msra.mxu0 %v13740_v52 }
 0xc6b   :  { %9463 = vmatpush1.bf16.msra.mxu1 %v13742_v40  ;;  %9423 = vmatprep.subr.bf16.mxu0 %v13733_v5 }
 0xc6c   :  { %9464 = vmatprep.subr.bf16.mxu1 %v13735_v17 }
 0xc6e   :  { %9424 = vmatpush1.bf16.msra.mxu0 %v13732_v36 }
 0xc6f   :  { %9465 = vmatpush1.bf16.msra.mxu1 %v13734_v47  ;;  %9425 = vmatprep.subr.bf16.mxu0 %v13725_v9 }
 0xc70   :  { %9466 = vmatprep.subr.bf16.mxu1 %v13727_v14 }
 0xc72   :  { %9426 = vmatpush1.bf16.msra.mxu0 %v13724_v26 }
 0xc73   :  { %9467 = vmatpush1.bf16.msra.mxu1 %v13726_v20  ;;  %9427 = vmatprep.subr.bf16.mxu0 %v13717_v12 }
 0xc74   :  { %9468 = vmatprep.subr.bf16.mxu1 %v13719_v30 }
 0xc76   :  { %9428 = vmatpush1.bf16.msra.mxu0 %v13716_v0 }
 0xc77   :  { %9469 = vmatpush1.bf16.msra.mxu1 %v13718_v59 }
 0xc79   :  { %9446 = vmatmul.mubr.bf16.vlgmr.msra.gmra.mxu0 %v17652_v16 }
 0xc7a   :  { %9487 = vmatmul.mubr.bf16.vlgmr.msra.gmra.mxu1 %v17652_v16  ;;  %v8986_v16 = vrot.slane %v17720_v28, %v16885_v4 }
 0xd19   :  { %v9365_v11 = vpop.f32.mrf.mxu0 }
 0xd1a   :  { %v9406_v33 = vpop.f32.mrf.mxu1  ;;  %v17726_v51 = vadd.f32 %v9365_v11, %v8974_v19 }
 0xd1b   :  { %v17728_v23 = vadd.f32 %v9406_v33, %v8982_v8  ;;  %v9367_v1 = vpop.f32.mrf.mxu0 }
 0xd1c   :  { %v9408_v42 = vpop.f32.mrf.mxu1  ;;  %v9495_v61 = vrot.slane %v17726_v51, 4  ;;  %v9551_v53 = vmul.f32 %v17726_v51, %v17726_v51  ;;  %v17740_v2 = vadd.f32 %v9367_v1, %v8978_v27 }
 0xd1d   :  { %v9369_v39 = vpop.f32.mrf.mxu0  ;;  %v9553_v55 = vmul.f32 %v17728_v23, %v17728_v23  ;;  %v9507_v44 = vrot.slane %v17728_v23, 4  ;;  %v17742_v34 = vadd.f32 %v9408_v42, %v8986_v16 }
 0xd1e   :  { %v9410_v50 = vpop.f32.mrf.mxu1  ;;  %v9496_v7 = vadd.f32 %v9495_v61, %v17726_v51  ;;  %v9559_v60 = vrot.slane %v9551_v53, 4  ;;  %v9501_v43 = vrot.slane %v17740_v2, 4  ;;  %v9552_v21 = vmul.f32 %v17740_v2, %v17740_v2 }
 0xd1f   :  { %v9370_v25 = vpop.f32.mrf.mxu0  ;;  %v9571_v29 = vrot.slane %v9553_v55, 4  ;;  %v9508_v3 = vadd.f32 %v9507_v44, %v17728_v23  ;;  %v9513_v58 = vrot.slane %v17742_v34, 4  ;;  %v9554_v40 = vmul.f32 %v17742_v34, %v17742_v34 }
 0xd20   :  { %v9411_v31 = vpop.f32.mrf.mxu1  ;;  %v9497_v24 = vrot.slane %v9496_v7, 2  ;;  %v9560_v52 = vadd.f32 %v9559_v60, %v9551_v53  ;;  %v9502_v5 = vadd.f32 %v9501_v43, %v17740_v2  ;;  %v9565_v56 = vrot.slane %v9552_v21, 4 }
 0xd21   :  { %v9572_v38 = vadd.f32 %v9571_v29, %v9553_v55  ;;  %v9509_v54 = vrot.slane %v9508_v3, 2  ;;  %v9514_v37 = vadd.f32 %v9513_v58, %v17742_v34  ;;  %v9577_v47 = vrot.slane %v9554_v40, 4 }
 0xd22   :  { %v9498_v17 = vadd.f32 %v9497_v24, %v9496_v7  ;;  %v9561_v36 = vrot.slane %v9560_v52, 2  ;;  %v9503_v9 = vrot.slane %v9502_v5, 2  ;;  %v9566_v57 = vadd.f32 %v9565_v56, %v9552_v21 }
 0xd23   :  { %v9573_v63 = vrot.slane %v9572_v38, 2  ;;  %v9510_v18 = vadd.f32 %v9509_v54, %v9508_v3  ;;  %v9515_v41 = vrot.slane %v9514_v37, 2  ;;  %v9578_v20 = vadd.f32 %v9577_v47, %v9554_v40 }
 0xd24   :  { %v9499_v14 = vrot.slane %v9498_v17, 1  ;;  %v9562_v26 = vadd.f32 %v9561_v36, %v9560_v52  ;;  %v9504_v12 = vadd.f32 %v9503_v9, %v9502_v5  ;;  %v9567_v22 = vrot.slane %v9566_v57, 2 }
 0xd25   :  { %v9574_v15 = vadd.f32 %v9573_v63, %v9572_v38  ;;  %v9511_v10 = vrot.slane %v9510_v18, 1  ;;  %v9516_v13 = vadd.f32 %v9515_v41, %v9514_v37  ;;  %v9579_v59 = vrot.slane %v9578_v20, 2 }
 0xd26   :  { %v9500_v30 = vadd.f32 %v9499_v14, %v9498_v17  ;;  %v9563_v0 = vrot.slane %v9562_v26, 1  ;;  %v9505_v11 = vrot.slane %v9504_v12, 1  ;;  %v9568_v33 = vadd.f32 %v9567_v22, %v9566_v57 }
 0xd27   :  { %v9575_v19 = vrot.slane %v9574_v15, 1  ;;  %v9512_v8 = vadd.f32 %v9511_v10, %v9510_v18  ;;  %v9517_v27 = vrot.slane %v9516_v13, 1  ;;  %v9580_v42 = vadd.f32 %v9579_v59, %v9578_v20 }
 0xd28   :  { %v17754_v1 = vmul.f32 0.125, %v9500_v30  ;;  %v9564_v16 = vadd.f32 %v9563_v0, %v9562_v26  ;;  %v8990_v53 = vrot.slane %v17720_v28, %v17028_v6  ;;  %v8998_v39 = vrot.slane %v17720_v28, %v17061_v32 }
 0xd29   :  { %v9576_v61 = vadd.f32 %v9575_v19, %v9574_v15  ;;  %v17760_v50 = vmul.f32 0.125, %v9512_v8  ;;  %v9506_v55 = vadd.f32 %v9505_v11, %v9504_v12  ;;  %v9569_v44 = vrot.slane %v9568_v33, 1 }
 0xd2a   :  { %v9518_v25 = vadd.f32 %v9517_v27, %v9516_v13  ;;  %v8994_v31 = vrot.slane %v17720_v28, %v17031_v46  ;;  %v17764_v7 = vmul.f32 0.125, %v9564_v16  ;;  %v17768_v60 = vmul.f32 %v17754_v1, %v17754_v1 }
 0xd2b   :  { %v9581_v29 = vrot.slane %v9580_v42, 1  ;;  %v9002_v21 = vrot.slane %v17720_v28, %v17064_v49  ;;  %v17772_v58 = vmul.f32 0.125, %v9576_v61  ;;  %v17780_v40 = vmul.f32 %v17760_v50, %v17760_v50 }
 0xd2c   :  { %v17782_v38 = vmul.f32 0.125, %v9506_v55  ;;  %v9570_v54 = vadd.f32 %v9569_v44, %v9568_v33  ;;  %v17784_v5 = vmul.f32 0.125, %v9518_v25  ;;  %v9623_v63 = vsub.f32 %v17764_v7, %v17768_v60 }
 0xd2d   :  { %v9582_v18 = vadd.f32 %v9581_v29, %v9580_v42 }
 0xd2e   :  { %v9608_v12 = vmul.f32 0.125, %v9570_v54  ;;  %v9616_v27 = vmul.f32 %v17782_v38, %v17782_v38  ;;  %v9618_v54 = vmul.f32 %v17784_v5, %v17784_v5 }
 0xd2f   :  { %v9610_v25 = vmul.f32 0.125, %v9582_v18 }
 0xd39   :  { %v9447_v3 = vpop.f32.mrf.mxu0 }
 0xd3a   :  { %v9488_v43 = vpop.f32.mrf.mxu1  ;;  %v17774_v24 = vadd.f32 %v9447_v3, %v8990_v53 }
 0xd3b   :  { %v17776_v52 = vadd.f32 %v9488_v43, %v8998_v39  ;;  %v9449_v56 = vpop.f32.mrf.mxu0 }
 0xd3c   :  { %v9490_v37 = vpop.f32.mrf.mxu1  ;;  %v9519_v17 = vrot.slane %v17774_v24, 4  ;;  %v9555_v28 = vmul.f32 %v17774_v24, %v17774_v24  ;;  %v17794_v9 = vadd.f32 %v9449_v56, %v8994_v31 }
 0xd3d   :  { %v9531_v36 = vrot.slane %v17776_v52, 4  ;;  %v9557_v47 = vmul.f32 %v17776_v52, %v17776_v52  ;;  %v17796_v57 = vadd.f32 %v9490_v37, %v9002_v21  ;;  %v9451_v41 = vpop.f32.mrf.mxu0 }
 0xd3e   :  { %v9492_v14 = vpop.f32.mrf.mxu1  ;;  %v9520_v26 = vadd.f32 %v9519_v17, %v17774_v24  ;;  %v9583_v20 = vrot.slane %v9555_v28, 4  ;;  %v9525_v22 = vrot.slane %v17794_v9, 4  ;;  %v9556_v13 = vmul.f32 %v17794_v9, %v17794_v9 }
 0xd3f   :  { %v9532_v15 = vadd.f32 %v9531_v36, %v17776_v52  ;;  %v9595_v10 = vrot.slane %v9557_v47, 4  ;;  %v9537_v30 = vrot.slane %v17796_v57, 4  ;;  %v9452_v0 = vpop.f32.mrf.mxu0  ;;  %v9558_v21 = vmul.f32 %v17796_v57, %v17796_v57 }
 0xd40   :  { %v9493_v59 = vpop.f32.mrf.mxu1  ;;  %v9521_v19 = vrot.slane %v9520_v26, 2  ;;  %v9584_v8 = vadd.f32 %v9583_v20, %v9555_v28  ;;  %v9526_v16 = vadd.f32 %v9525_v22, %v17794_v9  ;;  %v9589_v42 = vrot.slane %v9556_v13, 4 }
 0xd41   :  { %v9533_v11 = vrot.slane %v9532_v15, 2  ;;  %v9596_v33 = vadd.f32 %v9595_v10, %v9557_v47  ;;  %v9538_v61 = vadd.f32 %v9537_v30, %v17796_v57  ;;  %v9624_v28 = vsub.f32 %v9608_v12, %v9616_v27 }
 0xd42   :  { %v9522_v53 = vadd.f32 %v9521_v19, %v9520_v26  ;;  %v9585_v39 = vrot.slane %v9584_v8, 2  ;;  %v9527_v31 = vrot.slane %v9526_v16, 2  ;;  %v9590_v7 = vadd.f32 %v9589_v42, %v9556_v13 }
 0xd43   :  { %v9534_v55 = vadd.f32 %v9533_v11, %v9532_v15  ;;  %v9597_v44 = vrot.slane %v9596_v33, 2  ;;  %v9539_v60 = vrot.slane %v9538_v61, 2  ;;  %v9601_v13 = vrot.slane %v9558_v21, 4 }
 0xd44   :  { %v9523_v29 = vrot.slane %v9522_v53, 1  ;;  %v9586_v3 = vadd.f32 %v9585_v39, %v9584_v8  ;;  %v9528_v37 = vadd.f32 %v9527_v31, %v9526_v16  ;;  %v9591_v17 = vrot.slane %v9590_v7, 2 }
 0xd45   :  { %v9535_v43 = vrot.slane %v9534_v55, 1  ;;  %v9598_v56 = vadd.f32 %v9597_v44, %v9596_v33  ;;  %v9540_v20 = vadd.f32 %v9539_v60, %v9538_v61  ;;  %v9626_v8 = vsub.f32 %v9610_v25, %v9618_v54 }
 0xd46   :  { %v9524_v36 = vadd.f32 %v9523_v29, %v9522_v53  ;;  %v9587_v47 = vrot.slane %v9586_v3, 1  ;;  %v9529_v14 = vrot.slane %v9528_v37, 1  ;;  %v9592_v26 = vadd.f32 %v9591_v17, %v9590_v7 }
 0xd47   :  { %v9536_v41 = vadd.f32 %v9535_v43, %v9534_v55  ;;  %v9599_v18 = vrot.slane %v9598_v56, 1  ;;  %v9541_v19 = vrot.slane %v9540_v20, 1  ;;  %v9625_v33 = vsub.f32 %v17772_v58, %v17780_v40 }
 0xd48   :  { %v17812_v15 = vmul.f32 0.125, %v9524_v36  ;;  %v9588_v10 = vadd.f32 %v9587_v47, %v9586_v3  ;;  %v9530_v0 = vadd.f32 %v9529_v14, %v9528_v37  ;;  %v9593_v59 = vrot.slane %v9592_v26, 1 }
 0xd49   :  { %v17814_v22 = vmul.f32 0.125, %v9536_v41  ;;  %v9600_v30 = vadd.f32 %v9599_v18, %v9598_v56  ;;  %v9631_v42 = vmax.f32 %v9623_v63, 0.0  ;;  %v9632_v61 = vmax.f32 %v9624_v28, 0.0 }
 0xd4a   :  { %v9611_v11 = vmul.f32 0.125, %v9588_v10  ;;  %v9619_v12 = vmul.f32 %v17812_v15, %v17812_v15  ;;  %v17820_v27 = vmul.f32 0.125, %v9530_v0  ;;  %v9594_v16 = vadd.f32 %v9593_v59, %v9592_v26 }
 0xd4b   :  { %v9542_v53 = vadd.f32 %v9541_v19, %v9540_v20  ;;  %v9602_v39 = vadd.f32 %v9601_v13, %v9558_v21  ;;  %v9613_v55 = vmul.f32 0.125, %v9600_v30  ;;  %v9621_v44 = vmul.f32 %v17814_v22, %v17814_v22 }
 0xd4c   :  { %v9612_v31 = vmul.f32 0.125, %v9594_v16  ;;  %v9620_v25 = vmul.f32 %v17820_v27, %v17820_v27  ;;  %v9634_v7 = vmax.f32 %v9626_v8, 0.0  ;;  %v9627_v60 = vsub.f32 %v9611_v11, %v9619_v12 }
 0xd4d   :  { %v9603_v29 = vrot.slane %v9602_v39, 2  ;;  %v9633_v3 = vmax.f32 %v9625_v33, 0.0  ;;  %v9641_v40 = vadd.f32 1e-05, %v9631_v42  ;;  %v17826_v43 = vmul.f32 0.125, %v9542_v53 }
 0xd4e   :  { %v9628_v58 = vsub.f32 %v9612_v31, %v9620_v25  ;;  %v9642_v54 = vadd.f32 1e-05, %v9632_v61  ;;  %v9629_v56 = vsub.f32 %v9613_v55, %v9621_v44  ;;  %v9644_v37 = vadd.f32 1e-05, %v9634_v7 }
 0xd4f   :  { %v9604_v63 = vadd.f32 %v9603_v29, %v9602_v39  ;;  %v9635_v17 = vmax.f32 %v9627_v60, 0.0  ;;  %v9643_v36 = vadd.f32 1e-05, %v9633_v3  ;;  %14526 = vrsqrt.f32 %v9641_v40  ;;  %v9640_v40 = vld [vmem:[#allocation15 + $0x22] ss:$4 sm:$0xff] }
 0xd50   :  { %v9636_v21 = vmax.f32 %v9628_v58, 0.0  ;;  %v9622_v18 = vmul.f32 %v17826_v43, %v17826_v43  ;;  %14528 = vrsqrt.f32 %v9642_v54  ;;  %v9637_v14 = vmax.f32 %v9629_v56, 0.0 }
 0xd51   :  { %v9605_v28 = vrot.slane %v9604_v63, 1  ;;  %14530 = vrsqrt.f32 %v9644_v37  ;;  %v9645_v26 = vadd.f32 1e-05, %v9635_v17 }
 0xd52   :  { %v9646_v47 = vadd.f32 1e-05, %v9636_v21  ;;  %14532 = vrsqrt.f32 %v9643_v36  ;;  %v9647_v13 = vadd.f32 1e-05, %v9637_v14 }
 0xd53   :  { %v9606_v41 = vadd.f32 %v9605_v28, %v9604_v63 }
 0xd54   :  { %14534 = vrsqrt.f32 %v9646_v47 }
 0xd55   :  { %v9614_v20 = vmul.f32 0.125, %v9606_v41  ;;  %14536 = vrsqrt.f32 %v9645_v26 }
 0xd56   :  { %14538 = vrsqrt.f32 %v9647_v13 }
 0xd57   :  { %v9630_v10 = vsub.f32 %v9614_v20, %v9622_v18 }
 0xd59   :  { %v9638_v30 = vmax.f32 %v9630_v10, 0.0 }
 0xd5b   :  { %v9648_v0 = vadd.f32 1e-05, %v9638_v30 }
 0xd5c   :  { %v14527_v59 = vpop.eup %14526 }
 0xd5d   :  { %14540 = vrsqrt.f32 %v9648_v0  ;;  %v14529_v19 = vpop.eup %14528 }
 0xd5e   :  { %v14531_v8 = vpop.eup %14530  ;;  %v9665_v33 = vcombine.low %v14527_v59, %v14529_v19 }
 0xd5f   :  { %v14533_v11 = vpop.eup %14532 }
 0xd60   :  { %v9666_v16 = vcombine.low %v14533_v11, %v14531_v8  ;;  %v9675_v39 = vrot.slane %v9665_v33, %v16736_v62  ;;  %v9717_v33 = vld [vmem:[#allocation15 + $0x42] ss:$4 sm:$0xff] }
 0xd61   :  { %v14535_v12 = vpop.eup %14534 }
 0xd62   :  { %v14537_v42 = vpop.eup %14536  ;;  %v9682_v55 = vrot.slane %v9666_v16, %v16736_v62 }
 0xd63   :  { %v9667_v61 = vcombine.low %v14537_v42, %v14535_v12  ;;  %v14539_v53 = vpop.eup %14538 }
 0xd64   :  { %v9697_v7 = vcombine.low %v9675_v39, %v9682_v55 }
 0xd65   :  { %v9689_v31 = vrot.slane %v9667_v61, %v16736_v62 }
 0xd66   :  { %v9705_v3 = vrot.slane %v9697_v7, %v16736_v62 }
 0xd6a   :  { %v14541_v44 = vpop.eup %14540 }
 0xd6b   :  { %v9668_v25 = vcombine.low %v14539_v53, %v14541_v44 }
 0xd6d   :  { %v9696_v60 = vrot.slane %v9668_v25, %v16736_v62 }
 0xd6f   :  { %v9698_v29 = vcombine.low %v9689_v31, %v9696_v60 }
 0xd71   :  { %v9712_v58 = vrot.slane %v9698_v29, %v16736_v62 }
 0xd73   :  { %v9713_v63 = vcombine.low %v9705_v3, %v9712_v58 }
 0xd75   :  { %v9715_v54 = vmul.f32 %v9713_v63, %v9640_v40 }
 0xd77   :  { %v9722_v56 = vrot.slane %v9715_v54, %v16722_v35  ;;  %v9726_v21 = vrot.slane %v9715_v54, %v16725_v45  ;;  %v9730_v37 = vrot.slane %v9715_v54, %v16882_v48  ;;  %v9734_v17 = vrot.slane %v9715_v54, %v16885_v4 }
 0xd78   :  { %v9738_v28 = vrot.slane %v9715_v54, %v17028_v6  ;;  %v9742_v36 = vrot.slane %v9715_v54, %v17031_v46  ;;  %v9746_v47 = vrot.slane %v9715_v54, %v17061_v32  ;;  %v9750_v41 = vrot.slane %v9715_v54, %v17064_v49 }
 0xd79   :  { %v9759_v18 = vmul.f32 %v9722_v56, %v17754_v1  ;;  %v9760_v14 = vmul.f32 %v9726_v21, %v17782_v38  ;;  %v9761_v26 = vmul.f32 %v9730_v37, %v17760_v50  ;;  %v9762_v20 = vmul.f32 %v9734_v17, %v17784_v5 }
 0xd7a   :  { %v9763_v10 = vmul.f32 %v9738_v28, %v17812_v15  ;;  %v9764_v13 = vmul.f32 %v9742_v36, %v17820_v27  ;;  %v9765_v30 = vmul.f32 %v9746_v47, %v17814_v22  ;;  %v9766_v0 = vmul.f32 %v9750_v41, %v17826_v43 }
 0xd7b   :  { %v9775_v59 = vcombine.low %v9759_v18, %v9760_v14  ;;  %v9776_v19 = vcombine.low %v9761_v26, %v9762_v20  ;;  %v9826_v16 = vmul.f32 %v9722_v56, %v17726_v51  ;;  %v9827_v61 = vmul.f32 %v9726_v21, %v17740_v2 }
 0xd7c   :  { %v9777_v8 = vcombine.low %v9763_v10, %v9764_v13  ;;  %v9778_v11 = vcombine.low %v9765_v30, %v9766_v0  ;;  %v9828_v53 = vmul.f32 %v9730_v37, %v17728_v23  ;;  %v9829_v39 = vmul.f32 %v9734_v17, %v17742_v34 }
 0xd7d   :  { %v9785_v1 = vrot.slane %v9775_v59, %v16736_v62  ;;  %v9792_v38 = vrot.slane %v9776_v19, %v16736_v62  ;;  %v9830_v55 = vmul.f32 %v9738_v28, %v17774_v24  ;;  %v9831_v44 = vmul.f32 %v9742_v36, %v17794_v9 }
 0xd7e   :  { %v9799_v50 = vrot.slane %v9777_v8, %v16736_v62  ;;  %v9806_v5 = vrot.slane %v9778_v11, %v16736_v62  ;;  %v9832_v31 = vmul.f32 %v9746_v47, %v17776_v52  ;;  %v9833_v25 = vmul.f32 %v9750_v41, %v17796_v57 }
 0xd7f   :  { %v9807_v12 = vcombine.low %v9785_v1, %v9792_v38 }
 0xd80   :  { %v9808_v15 = vcombine.low %v9799_v50, %v9806_v5 }
 0xd81   :  { %v9815_v27 = vrot.slane %v9807_v12, %v16736_v62 }
 0xd82   :  { %v9822_v22 = vrot.slane %v9808_v15, %v16736_v62 }
 0xd84   :  { %v9823_v43 = vcombine.low %v9815_v27, %v9822_v22 }
 0xd86   :  { %v9825_v42 = vsub.f32 %v9717_v33, %v9823_v43 }
 0xd88   :  { %v9838_v7 = vrot.slane %v9825_v42, %v16722_v35  ;;  %v9842_v60 = vrot.slane %v9825_v42, %v16725_v45  ;;  %v9846_v51 = vrot.slane %v9825_v42, %v16882_v48  ;;  %v9850_v2 = vrot.slane %v9825_v42, %v16885_v4 }
 0xd89   :  { %v9854_v23 = vrot.slane %v9825_v42, %v17028_v6  ;;  %v9858_v34 = vrot.slane %v9825_v42, %v17031_v46  ;;  %v9862_v24 = vrot.slane %v9825_v42, %v17061_v32  ;;  %v9866_v9 = vrot.slane %v9825_v42, %v17064_v49 }
 0xd8a   :  { %v17874_v29 = vadd.f32 %v9838_v7, %v9826_v16  ;;  %v9876_v52 = vadd.f32 %v9842_v60, %v9827_v61  ;;  %v17876_v57 = vadd.f32 %v9846_v51, %v9828_v53  ;;  %v9878_v3 = vadd.f32 %v9850_v2, %v9829_v39 }
 0xd8b   :  { %v17878_v58 = vadd.f32 %v9854_v23, %v9830_v55  ;;  %v17880_v40 = vadd.f32 %v9858_v34, %v9831_v44  ;;  %v17882_v63 = vadd.f32 %v9862_v24, %v9832_v31  ;;  %v17884_v54 = vadd.f32 %v9866_v9, %v9833_v25 }
 0xd8c   :  { %v9883_v6 = vmax.f32 %v17874_v29, 0.0  ;;  %v9884_v46 = vmax.f32 %v9876_v52, 0.0  ;;  %v9885_v32 = vmax.f32 %v17876_v57, 0.0  ;;  %v9886_v49 = vmax.f32 %v9878_v3, 0.0 }
 0xd8d   :  { %v9887_v56 = vmax.f32 %v17878_v58, 0.0  ;;  %v9888_v21 = vmax.f32 %v17880_v40, 0.0  ;;  %v9889_v37 = vmax.f32 %v17882_v63, 0.0  ;;  %v9890_v17 = vmax.f32 %v17884_v54, 0.0 }
 0xd8e   :  { %15190 = dma.done.wait [#allocation14 + $0x9], 32768 }
 0xd8f   :  { %15191 = vsyncadd [#allocation14 + $0x9], 4294934528  ;;  %v17892_v28 = vpack.c.bf16 %v9884_v46, %v9884_v46  ;;  %v17894_v36 = vpack.c.bf16 %v9886_v49, %v9886_v49  ;;  %v14542_v47 = vld [vmem:[#allocation11 + $0xe4] ss:$16 sps:$4 sm:$0xff]   ;;  %v14546_v18 = vld [vmem:[#allocation11 + $0xe0] ss:$16 sps:$4 sm:$0xff]   ;;  %v17911_v29 = vpack.c.bf16 %v9888_v21, %v9888_v21  ;;  %v17916_v57 = vpack.c.bf16 %v9890_v17, %v9890_v17 }
 0xd90   :  { %v14544_v41 = vld [vmem:[#allocation11 + $0x2e4] ss:$16 sps:$4 sm:$0xff]   ;;  %11461 = vmatprep.subr.bf16.mxu0 %v14542_v47  ;;  %v14547_v14 = vld [vmem:[#allocation11 + $0x2e0] ss:$16 sps:$4 sm:$0xff]   ;;  %v14740_v58 = vld [vmem:[#allocation11 + $0xc8] ss:$16 sps:$4 sm:$0xff]  }
 0xd91   :  { %11493 = vmatprep.mubr.bf16.mxu0 %v17892_v28  ;;  %11534 = vmatprep.mubr.bf16.mxu1 %v17894_v36  ;;  %v14548_v26 = vld [vmem:[#allocation11 + $0xc4] ss:$16 sps:$4 sm:$0xff]   ;;  %v14552_v10 = vld [vmem:[#allocation11 + $0xc0] ss:$16 sps:$4 sm:$0xff]   ;;  %v14748_v63 = vld [vmem:[#allocation11 + $0xac] ss:$16 sps:$4 sm:$0xff]  }
 0xd92   :  { %11502 = vmatprep.subr.bf16.mxu1 %v14544_v41  ;;  %11462 = vmatpush1.bf16.msra.mxu0 %v14546_v18  ;;  %v14550_v20 = vld [vmem:[#allocation11 + $0x2c4] ss:$16 sps:$4 sm:$0xff]   ;;  %v14553_v13 = vld [vmem:[#allocation11 + $0x2c0] ss:$16 sps:$4 sm:$0xff]  }
 0xd93   :  { %11503 = vmatpush1.bf16.msra.mxu1 %v14547_v14  ;;  %11463 = vmatprep.subr.bf16.mxu0 %v14548_v26  ;;  %v14554_v30 = vld [vmem:[#allocation11 + $0xa4] ss:$16 sps:$4 sm:$0xff]   ;;  %v14558_v59 = vld [vmem:[#allocation11 + $0xa0] ss:$16 sps:$4 sm:$0xff]  }
 0xd94   :  { %11504 = vmatprep.subr.bf16.mxu1 %v14550_v20  ;;  %v14556_v0 = vld [vmem:[#allocation11 + $0x2a4] ss:$16 sps:$4 sm:$0xff]   ;;  %v14559_v19 = vld [vmem:[#allocation11 + $0x2a0] ss:$16 sps:$4 sm:$0xff]  }
 0xd95   :  { %v14560_v8 = vld [vmem:[#allocation11 + $0x84] ss:$16 sps:$4 sm:$0xff]   ;;  %v14564_v1 = vld [vmem:[#allocation11 + $0x80] ss:$16 sps:$4 sm:$0xff]  }
 0xd96   :  { %11464 = vmatpush1.bf16.msra.mxu0 %v14552_v10  ;;  %v14562_v11 = vld [vmem:[#allocation11 + $0x284] ss:$16 sps:$4 sm:$0xff]   ;;  %v14565_v38 = vld [vmem:[#allocation11 + $0x280] ss:$16 sps:$4 sm:$0xff]  }
 0xd97   :  { %11505 = vmatpush1.bf16.msra.mxu1 %v14553_v13  ;;  %11465 = vmatprep.subr.bf16.mxu0 %v14554_v30  ;;  %v14566_v50 = vld [vmem:[#allocation11 + $0x64] ss:$16 sps:$4 sm:$0xff]   ;;  %v14570_v12 = vld [vmem:[#allocation11 + $0x60] ss:$16 sps:$4 sm:$0xff]  }
 0xd98   :  { %11506 = vmatprep.subr.bf16.mxu1 %v14556_v0  ;;  %v14568_v5 = vld [vmem:[#allocation11 + $0x264] ss:$16 sps:$4 sm:$0xff]   ;;  %v14571_v15 = vld [vmem:[#allocation11 + $0x260] ss:$16 sps:$4 sm:$0xff]  }
 0xd99   :  { %v14572_v27 = vld [vmem:[#allocation11 + $0x44] ss:$16 sps:$4 sm:$0xff]   ;;  %v14576_v33 = vld [vmem:[#allocation11 + $0x40] ss:$16 sps:$4 sm:$0xff]  }
 0xd9a   :  { %11466 = vmatpush1.bf16.msra.mxu0 %v14558_v59  ;;  %v14574_v22 = vld [vmem:[#allocation11 + $0x244] ss:$16 sps:$4 sm:$0xff]   ;;  %v14577_v43 = vld [vmem:[#allocation11 + $0x240] ss:$16 sps:$4 sm:$0xff]  }
 0xd9b   :  { %11507 = vmatpush1.bf16.msra.mxu1 %v14559_v19  ;;  %11467 = vmatprep.subr.bf16.mxu0 %v14560_v8  ;;  %v14578_v16 = vld [vmem:[#allocation11 + $0x24] ss:$16 sps:$4 sm:$0xff]   ;;  %v14582_v61 = vld [vmem:[#allocation11 + $0x20] ss:$16 sps:$4 sm:$0xff]  }
 0xd9c   :  { %11508 = vmatprep.subr.bf16.mxu1 %v14562_v11  ;;  %v14580_v42 = vld [vmem:[#allocation11 + $0x224] ss:$16 sps:$4 sm:$0xff]   ;;  %v14583_v53 = vld [vmem:[#allocation11 + $0x220] ss:$16 sps:$4 sm:$0xff]  }
 0xd9d   :  { %v14584_v39 = vld [vmem:[#allocation11 + $0x4] ss:$16 sps:$4 sm:$0xff]   ;;  %v14588_v44 = vld [vmem:[#allocation11] ss:$16 sps:$4 sm:$0xff]  }
 0xd9e   :  { %11468 = vmatpush1.bf16.msra.mxu0 %v14564_v1  ;;  %v14586_v55 = vld [vmem:[#allocation11 + $0x204] ss:$16 sps:$4 sm:$0xff]   ;;  %v14589_v31 = vld [vmem:[#allocation11 + $0x200] ss:$16 sps:$4 sm:$0xff]  }
 0xd9f   :  { %11509 = vmatpush1.bf16.msra.mxu1 %v14565_v38  ;;  %11469 = vmatprep.subr.bf16.mxu0 %v14566_v50  ;;  %v14590_v25 = vld [vmem:[#allocation11 + $0x1e4] ss:$16 sps:$4 sm:$0xff]   ;;  %v14594_v60 = vld [vmem:[#allocation11 + $0x1e0] ss:$16 sps:$4 sm:$0xff]  }
 0xda0   :  { %11510 = vmatprep.subr.bf16.mxu1 %v14568_v5  ;;  %v14592_v7 = vld [vmem:[#allocation11 + $0x3e4] ss:$16 sps:$4 sm:$0xff]   ;;  %v14595_v51 = vld [vmem:[#allocation11 + $0x3e0] ss:$16 sps:$4 sm:$0xff]  }
 0xda1   :  { %v14596_v2 = vld [vmem:[#allocation11 + $0x1c4] ss:$16 sps:$4 sm:$0xff]   ;;  %v14600_v34 = vld [vmem:[#allocation11 + $0x1c0] ss:$16 sps:$4 sm:$0xff]  }
 0xda2   :  { %11470 = vmatpush1.bf16.msra.mxu0 %v14570_v12  ;;  %v14598_v23 = vld [vmem:[#allocation11 + $0x3c4] ss:$16 sps:$4 sm:$0xff]   ;;  %v14601_v24 = vld [vmem:[#allocation11 + $0x3c0] ss:$16 sps:$4 sm:$0xff]  }
 0xda3   :  { %11511 = vmatpush1.bf16.msra.mxu1 %v14571_v15  ;;  %11471 = vmatprep.subr.bf16.mxu0 %v14572_v27  ;;  %v14602_v9 = vld [vmem:[#allocation11 + $0x1a4] ss:$16 sps:$4 sm:$0xff]   ;;  %v14606_v3 = vld [vmem:[#allocation11 + $0x1a0] ss:$16 sps:$4 sm:$0xff]  }
 0xda4   :  { %11512 = vmatprep.subr.bf16.mxu1 %v14574_v22  ;;  %v14604_v52 = vld [vmem:[#allocation11 + $0x3a4] ss:$16 sps:$4 sm:$0xff]   ;;  %v14607_v46 = vld [vmem:[#allocation11 + $0x3a0] ss:$16 sps:$4 sm:$0xff]   ;;  %v17901_v22 = vpack.c.bf16 %v9883_v6, %v9883_v6 }
 0xda5   :  { %v14608_v49 = vld [vmem:[#allocation11 + $0x184] ss:$16 sps:$4 sm:$0xff]   ;;  %v14612_v41 = vld [vmem:[#allocation11 + $0x180] ss:$16 sps:$4 sm:$0xff]  }
 0xda6   :  { %11472 = vmatpush1.bf16.msra.mxu0 %v14576_v33  ;;  %v14610_v47 = vld [vmem:[#allocation11 + $0x384] ss:$16 sps:$4 sm:$0xff]   ;;  %v14613_v18 = vld [vmem:[#allocation11 + $0x380] ss:$16 sps:$4 sm:$0xff]   ;;  %v17906_v33 = vpack.c.bf16 %v9885_v32, %v9885_v32 }
 0xda7   :  { %11513 = vmatpush1.bf16.msra.mxu1 %v14577_v43  ;;  %11473 = vmatprep.subr.bf16.mxu0 %v14578_v16  ;;  %v14614_v14 = vld [vmem:[#allocation11 + $0x164] ss:$16 sps:$4 sm:$0xff]   ;;  %v14618_v20 = vld [vmem:[#allocation11 + $0x160] ss:$16 sps:$4 sm:$0xff]  }
 0xda8   :  { %11514 = vmatprep.subr.bf16.mxu1 %v14580_v42  ;;  %v14616_v26 = vld [vmem:[#allocation11 + $0x364] ss:$16 sps:$4 sm:$0xff]   ;;  %v14619_v10 = vld [vmem:[#allocation11 + $0x360] ss:$16 sps:$4 sm:$0xff]  }
 0xda9   :  { %v14620_v13 = vld [vmem:[#allocation11 + $0x144] ss:$16 sps:$4 sm:$0xff]   ;;  %v14624_v0 = vld [vmem:[#allocation11 + $0x140] ss:$16 sps:$4 sm:$0xff]  }
 0xdaa   :  { %11474 = vmatpush1.bf16.msra.mxu0 %v14582_v61  ;;  %v14622_v30 = vld [vmem:[#allocation11 + $0x344] ss:$16 sps:$4 sm:$0xff]   ;;  %v14625_v59 = vld [vmem:[#allocation11 + $0x340] ss:$16 sps:$4 sm:$0xff]  }
 0xdab   :  { %11515 = vmatpush1.bf16.msra.mxu1 %v14583_v53  ;;  %11475 = vmatprep.subr.bf16.mxu0 %v14584_v39  ;;  %v14626_v19 = vld [vmem:[#allocation11 + $0x124] ss:$16 sps:$4 sm:$0xff]   ;;  %v14630_v11 = vld [vmem:[#allocation11 + $0x120] ss:$16 sps:$4 sm:$0xff]  }
 0xdac   :  { %11516 = vmatprep.subr.bf16.mxu1 %v14586_v55  ;;  %v14628_v8 = vld [vmem:[#allocation11 + $0x324] ss:$16 sps:$4 sm:$0xff]   ;;  %v14631_v1 = vld [vmem:[#allocation11 + $0x320] ss:$16 sps:$4 sm:$0xff]  }
 0xdad   :  { %v14632_v38 = vld [vmem:[#allocation11 + $0x104] ss:$16 sps:$4 sm:$0xff]   ;;  %v14636_v5 = vld [vmem:[#allocation11 + $0x100] ss:$16 sps:$4 sm:$0xff]  }
 0xdae   :  { %11476 = vmatpush1.bf16.msra.mxu0 %v14588_v44  ;;  %v14634_v50 = vld [vmem:[#allocation11 + $0x304] ss:$16 sps:$4 sm:$0xff]   ;;  %v14637_v12 = vld [vmem:[#allocation11 + $0x300] ss:$16 sps:$4 sm:$0xff]  }
 0xdaf   :  { %11517 = vmatpush1.bf16.msra.mxu1 %v14589_v31  ;;  %11477 = vmatprep.subr.bf16.mxu0 %v14590_v25  ;;  %v14640_v15 = vld [vmem:[#allocation11 + $0x4e4] ss:$16 sps:$4 sm:$0xff]   ;;  %v14638_v43 = vld [vmem:[#allocation11 + $0x4e0] ss:$16 sps:$4 sm:$0xff]  }
 0xdb0   :  { %11518 = vmatprep.subr.bf16.mxu1 %v14592_v7  ;;  %v14643_v27 = vld [vmem:[#allocation11 + $0x6e4] ss:$16 sps:$4 sm:$0xff]   ;;  %v14641_v16 = vld [vmem:[#allocation11 + $0x6e0] ss:$16 sps:$4 sm:$0xff]  }
 0xdb1   :  { %v14646_v42 = vld [vmem:[#allocation11 + $0x4c4] ss:$16 sps:$4 sm:$0xff]   ;;  %v14644_v6 = vld [vmem:[#allocation11 + $0x4c0] ss:$16 sps:$4 sm:$0xff]  }
 0xdb2   :  { %11478 = vmatpush2.bf16.msra.mxu0 %v14594_v60  ;;  %v14649_v61 = vld [vmem:[#allocation11 + $0x6c4] ss:$16 sps:$4 sm:$0xff]   ;;  %v14647_v32 = vld [vmem:[#allocation11 + $0x6c0] ss:$16 sps:$4 sm:$0xff]  }
 0xdb3   :  { %11519 = vmatpush2.bf16.msra.mxu1 %v14595_v51  ;;  %11479 = vmatprep.subr.bf16.mxu0 %v14596_v2  ;;  %v14652_v53 = vld [vmem:[#allocation11 + $0x4a4] ss:$16 sps:$4 sm:$0xff]   ;;  %v14650_v54 = vld [vmem:[#allocation11 + $0x4a0] ss:$16 sps:$4 sm:$0xff]  }
 0xdb4   :  { %11520 = vmatprep.subr.bf16.mxu1 %v14598_v23  ;;  %v14655_v40 = vld [vmem:[#allocation11 + $0x6a4] ss:$16 sps:$4 sm:$0xff]   ;;  %v14653_v21 = vld [vmem:[#allocation11 + $0x6a0] ss:$16 sps:$4 sm:$0xff]  }
 0xdb5   :  { %v14658_v17 = vld [vmem:[#allocation11 + $0x484] ss:$16 sps:$4 sm:$0xff]   ;;  %v14656_v55 = vld [vmem:[#allocation11 + $0x480] ss:$16 sps:$4 sm:$0xff]  }
 0xdb6   :  { %11480 = vmatpush2.bf16.msra.mxu0 %v14600_v34  ;;  %v14661_v39 = vld [vmem:[#allocation11 + $0x684] ss:$16 sps:$4 sm:$0xff]   ;;  %v14659_v44 = vld [vmem:[#allocation11 + $0x680] ss:$16 sps:$4 sm:$0xff]  }
 0xdb7   :  { %11521 = vmatpush2.bf16.msra.mxu1 %v14601_v24  ;;  %11481 = vmatprep.subr.bf16.mxu0 %v14602_v9  ;;  %v14664_v31 = vld [vmem:[#allocation11 + $0x464] ss:$16 sps:$4 sm:$0xff]   ;;  %v14662_v7 = vld [vmem:[#allocation11 + $0x460] ss:$16 sps:$4 sm:$0xff]  }
 0xdb8   :  { %11522 = vmatprep.subr.bf16.mxu1 %v14604_v52  ;;  %v14667_v25 = vld [vmem:[#allocation11 + $0x664] ss:$16 sps:$4 sm:$0xff]   ;;  %v14665_v60 = vld [vmem:[#allocation11 + $0x660] ss:$16 sps:$4 sm:$0xff]  }
 0xdb9   :  { %v14670_v51 = vld [vmem:[#allocation11 + $0x444] ss:$16 sps:$4 sm:$0xff]   ;;  %v14668_v23 = vld [vmem:[#allocation11 + $0x440] ss:$16 sps:$4 sm:$0xff]  }
 0xdba   :  { %11482 = vmatpush2.bf16.msra.mxu0 %v14606_v3  ;;  %v14673_v2 = vld [vmem:[#allocation11 + $0x644] ss:$16 sps:$4 sm:$0xff]   ;;  %v14671_v34 = vld [vmem:[#allocation11 + $0x640] ss:$16 sps:$4 sm:$0xff]  }
 0xdbb   :  { %11523 = vmatpush2.bf16.msra.mxu1 %v14607_v46  ;;  %11483 = vmatprep.subr.bf16.mxu0 %v14608_v49  ;;  %v14676_v24 = vld [vmem:[#allocation11 + $0x424] ss:$16 sps:$4 sm:$0xff]   ;;  %v14674_v52 = vld [vmem:[#allocation11 + $0x420] ss:$16 sps:$4 sm:$0xff]  }
 0xdbc   :  { %11524 = vmatprep.subr.bf16.mxu1 %v14610_v47  ;;  %v14679_v9 = vld [vmem:[#allocation11 + $0x624] ss:$16 sps:$4 sm:$0xff]   ;;  %v14677_v3 = vld [vmem:[#allocation11 + $0x620] ss:$16 sps:$4 sm:$0xff]  }
 0xdbd   :  { %v14682_v46 = vld [vmem:[#allocation11 + $0x404] ss:$16 sps:$4 sm:$0xff]   ;;  %v14680_v47 = vld [vmem:[#allocation11 + $0x400] ss:$16 sps:$4 sm:$0xff]  }
 0xdbe   :  { %11484 = vmatpush2.bf16.msra.mxu0 %v14612_v41  ;;  %v14685_v49 = vld [vmem:[#allocation11 + $0x604] ss:$16 sps:$4 sm:$0xff]   ;;  %v14683_v41 = vld [vmem:[#allocation11 + $0x600] ss:$16 sps:$4 sm:$0xff]  }
 0xdbf   :  { %11525 = vmatpush2.bf16.msra.mxu1 %v14613_v18  ;;  %11485 = vmatprep.subr.bf16.mxu0 %v14614_v14  ;;  %v14688_v18 = vld [vmem:[#allocation11 + $0x5e4] ss:$16 sps:$4 sm:$0xff]  }
 0xdc0   :  { %11526 = vmatprep.subr.bf16.mxu1 %v14616_v26  ;;  %v14691_v14 = vld [vmem:[#allocation11 + $0x7e4] ss:$16 sps:$4 sm:$0xff]   ;;  %v14686_v26 = vld [vmem:[#allocation11 + $0x5e0] ss:$16 sps:$4 sm:$0xff]  }
 0xdc2   :  { %11486 = vmatpush2.bf16.msra.mxu0 %v14618_v20  ;;  %v14689_v20 = vld [vmem:[#allocation11 + $0x7e0] ss:$16 sps:$4 sm:$0xff]  }
 0xdc3   :  { %11527 = vmatpush2.bf16.msra.mxu1 %v14619_v10  ;;  %11487 = vmatprep.subr.bf16.mxu0 %v14620_v13  ;;  %v14694_v10 = vld [vmem:[#allocation11 + $0x5c4] ss:$16 sps:$4 sm:$0xff]  }
 0xdc4   :  { %11528 = vmatprep.subr.bf16.mxu1 %v14622_v30  ;;  %v14697_v13 = vld [vmem:[#allocation11 + $0x7c4] ss:$16 sps:$4 sm:$0xff]   ;;  %v14692_v30 = vld [vmem:[#allocation11 + $0x5c0] ss:$16 sps:$4 sm:$0xff]  }
 0xdc6   :  { %11488 = vmatpush2.bf16.msra.mxu0 %v14624_v0  ;;  %v14695_v0 = vld [vmem:[#allocation11 + $0x7c0] ss:$16 sps:$4 sm:$0xff]  }
 0xdc7   :  { %11529 = vmatpush2.bf16.msra.mxu1 %v14625_v59  ;;  %11489 = vmatprep.subr.bf16.mxu0 %v14626_v19  ;;  %v14700_v59 = vld [vmem:[#allocation11 + $0x5a4] ss:$16 sps:$4 sm:$0xff]  }
 0xdc8   :  { %11530 = vmatprep.subr.bf16.mxu1 %v14628_v8  ;;  %v14703_v19 = vld [vmem:[#allocation11 + $0x7a4] ss:$16 sps:$4 sm:$0xff]   ;;  %v14698_v8 = vld [vmem:[#allocation11 + $0x5a0] ss:$16 sps:$4 sm:$0xff]  }
 0xdca   :  { %11490 = vmatpush2.bf16.msra.mxu0 %v14630_v11  ;;  %v14701_v11 = vld [vmem:[#allocation11 + $0x7a0] ss:$16 sps:$4 sm:$0xff]  }
 0xdcb   :  { %11531 = vmatpush2.bf16.msra.mxu1 %v14631_v1  ;;  %11491 = vmatprep.subr.bf16.mxu0 %v14632_v38  ;;  %v14706_v1 = vld [vmem:[#allocation11 + $0x584] ss:$16 sps:$4 sm:$0xff]  }
 0xdcc   :  { %11532 = vmatprep.subr.bf16.mxu1 %v14634_v50  ;;  %v14709_v38 = vld [vmem:[#allocation11 + $0x784] ss:$16 sps:$4 sm:$0xff]   ;;  %v14704_v50 = vld [vmem:[#allocation11 + $0x580] ss:$16 sps:$4 sm:$0xff]  }
 0xdce   :  { %11492 = vmatpush2.bf16.msra.mxu0 %v14636_v5  ;;  %v14707_v5 = vld [vmem:[#allocation11 + $0x780] ss:$16 sps:$4 sm:$0xff]  }
 0xdcf   :  { %11533 = vmatpush2.bf16.msra.mxu1 %v14637_v12  ;;  %11543 = vmatprep.subr.bf16.mxu0 %v14640_v15  ;;  %v14712_v12 = vld [vmem:[#allocation11 + $0x564] ss:$16 sps:$4 sm:$0xff]  }
 0xdd0   :  { %11584 = vmatprep.subr.bf16.mxu1 %v14643_v27  ;;  %v14715_v15 = vld [vmem:[#allocation11 + $0x764] ss:$16 sps:$4 sm:$0xff]   ;;  %v14710_v27 = vld [vmem:[#allocation11 + $0x560] ss:$16 sps:$4 sm:$0xff]  }
 0xdd1   :  { %11494 = vmatmul.mubr.bf16.vlgmr.msra.gmra.mxu0 %v17901_v22 }
 0xdd2   :  { %11535 = vmatmul.mubr.bf16.vlgmr.msra.gmra.mxu1 %v17906_v33  ;;  %11544 = vmatpush1.bf16.msra.mxu0 %v14638_v43  ;;  %v14713_v43 = vld [vmem:[#allocation11 + $0x760] ss:$16 sps:$4 sm:$0xff]  }
 0xdd3   :  { %11585 = vmatpush1.bf16.msra.mxu1 %v14641_v16  ;;  %11545 = vmatprep.subr.bf16.mxu0 %v14646_v42  ;;  %v14718_v16 = vld [vmem:[#allocation11 + $0x544] ss:$16 sps:$4 sm:$0xff]  }
 0xdd4   :  { %11586 = vmatprep.subr.bf16.mxu1 %v14649_v61  ;;  %11575 = vmatprep.mubr.bf16.mxu0 %v17911_v29  ;;  %v14721_v42 = vld [vmem:[#allocation11 + $0x744] ss:$16 sps:$4 sm:$0xff]   ;;  %v14716_v61 = vld [vmem:[#allocation11 + $0x540] ss:$16 sps:$4 sm:$0xff]  }
 0xdd5   :  { %11616 = vmatprep.mubr.bf16.mxu1 %v17916_v57 }
 0xdd6   :  { %11546 = vmatpush1.bf16.msra.mxu0 %v14644_v6  ;;  %v14719_v6 = vld [vmem:[#allocation11 + $0x740] ss:$16 sps:$4 sm:$0xff]  }
 0xdd7   :  { %11587 = vmatpush1.bf16.msra.mxu1 %v14647_v32  ;;  %11547 = vmatprep.subr.bf16.mxu0 %v14652_v53  ;;  %v14724_v32 = vld [vmem:[#allocation11 + $0x524] ss:$16 sps:$4 sm:$0xff]  }
 0xdd8   :  { %11588 = vmatprep.subr.bf16.mxu1 %v14655_v40  ;;  %v14727_v53 = vld [vmem:[#allocation11 + $0x724] ss:$16 sps:$4 sm:$0xff]   ;;  %v14722_v40 = vld [vmem:[#allocation11 + $0x520] ss:$16 sps:$4 sm:$0xff]  }
 0xdda   :  { %11548 = vmatpush1.bf16.msra.mxu0 %v14650_v54  ;;  %v14725_v54 = vld [vmem:[#allocation11 + $0x720] ss:$16 sps:$4 sm:$0xff]  }
 0xddb   :  { %11589 = vmatpush1.bf16.msra.mxu1 %v14653_v21  ;;  %11549 = vmatprep.subr.bf16.mxu0 %v14658_v17  ;;  %v14730_v21 = vld [vmem:[#allocation11 + $0x504] ss:$16 sps:$4 sm:$0xff]  }
 0xddc   :  { %11590 = vmatprep.subr.bf16.mxu1 %v14661_v39  ;;  %v14733_v17 = vld [vmem:[#allocation11 + $0x704] ss:$16 sps:$4 sm:$0xff]   ;;  %v14728_v39 = vld [vmem:[#allocation11 + $0x500] ss:$16 sps:$4 sm:$0xff]  }
 0xdde   :  { %11550 = vmatpush1.bf16.msra.mxu0 %v14656_v55  ;;  %v14731_v55 = vld [vmem:[#allocation11 + $0x700] ss:$16 sps:$4 sm:$0xff]  }
 0xddf   :  { %11591 = vmatpush1.bf16.msra.mxu1 %v14659_v44  ;;  %11551 = vmatprep.subr.bf16.mxu0 %v14664_v31  ;;  %v14736_v44 = vld [vmem:[#allocation11 + $0xec] ss:$16 sps:$4 sm:$0xff]  }
 0xde0   :  { %11592 = vmatprep.subr.bf16.mxu1 %v14667_v25  ;;  %v14739_v31 = vld [vmem:[#allocation11 + $0x2ec] ss:$16 sps:$4 sm:$0xff]   ;;  %v17925_v25 = vpack.c.bf16 %v9887_v56, %v9887_v56  ;;  %v14743_v56 = vld [vmem:[#allocation11 + $0x2c8] ss:$16 sps:$4 sm:$0xff]  }
 0xde2   :  { %11552 = vmatpush1.bf16.msra.mxu0 %v14662_v7  ;;  %v17930_v7 = vpack.c.bf16 %v9889_v37, %v9889_v37  ;;  %v14751_v37 = vld [vmem:[#allocation11 + $0x2ac] ss:$16 sps:$4 sm:$0xff]  }
 0xde3   :  { %11593 = vmatpush1.bf16.msra.mxu1 %v14665_v60  ;;  %11553 = vmatprep.subr.bf16.mxu0 %v14670_v51  ;;  %v14734_v60 = vld [vmem:[#allocation11 + $0xe8] ss:$16 sps:$4 sm:$0xff]  }
 0xde4   :  { %11594 = vmatprep.subr.bf16.mxu1 %v14673_v2  ;;  %v14737_v51 = vld [vmem:[#allocation11 + $0x2e8] ss:$16 sps:$4 sm:$0xff]   ;;  %v14742_v2 = vld [vmem:[#allocation11 + $0xcc] ss:$16 sps:$4 sm:$0xff]  }
 0xde6   :  { %11554 = vmatpush1.bf16.msra.mxu0 %v14668_v23  ;;  %v14745_v23 = vld [vmem:[#allocation11 + $0x2cc] ss:$16 sps:$4 sm:$0xff]  }
 0xde7   :  { %11595 = vmatpush1.bf16.msra.mxu1 %v14671_v34  ;;  %11555 = vmatprep.subr.bf16.mxu0 %v14676_v24  ;;  %v14746_v34 = vld [vmem:[#allocation11 + $0xa8] ss:$16 sps:$4 sm:$0xff]  }
 0xde8   :  { %11596 = vmatprep.subr.bf16.mxu1 %v14679_v9  ;;  %v14749_v24 = vld [vmem:[#allocation11 + $0x2a8] ss:$16 sps:$4 sm:$0xff]   ;;  %v14754_v9 = vld [vmem:[#allocation11 + $0x8c] ss:$16 sps:$4 sm:$0xff]  }
 0xdea   :  { %11556 = vmatpush1.bf16.msra.mxu0 %v14674_v52  ;;  %v14757_v52 = vld [vmem:[#allocation11 + $0x28c] ss:$16 sps:$4 sm:$0xff]  }
 0xdeb   :  { %11597 = vmatpush1.bf16.msra.mxu1 %v14677_v3  ;;  %11557 = vmatprep.subr.bf16.mxu0 %v14682_v46  ;;  %v14752_v3 = vld [vmem:[#allocation11 + $0x88] ss:$16 sps:$4 sm:$0xff]  }
 0xdec   :  { %11598 = vmatprep.subr.bf16.mxu1 %v14685_v49  ;;  %v14755_v46 = vld [vmem:[#allocation11 + $0x288] ss:$16 sps:$4 sm:$0xff]   ;;  %v14760_v49 = vld [vmem:[#allocation11 + $0x6c] ss:$16 sps:$4 sm:$0xff]  }
 0xdee   :  { %11558 = vmatpush1.bf16.msra.mxu0 %v14680_v47  ;;  %v14763_v47 = vld [vmem:[#allocation11 + $0x26c] ss:$16 sps:$4 sm:$0xff]  }
 0xdef   :  { %11599 = vmatpush1.bf16.msra.mxu1 %v14683_v41  ;;  %11559 = vmatprep.subr.bf16.mxu0 %v14688_v18  ;;  %v14758_v41 = vld [vmem:[#allocation11 + $0x68] ss:$16 sps:$4 sm:$0xff]   ;;  %v14769_v18 = vld [vmem:[#allocation11 + $0x24c] ss:$16 sps:$4 sm:$0xff]  }
 0xdf0   :  { %11600 = vmatprep.subr.bf16.mxu1 %v14691_v14  ;;  %v14764_v14 = vld [vmem:[#allocation11 + $0x48] ss:$16 sps:$4 sm:$0xff]  }
 0xdf2   :  { %11560 = vmatpush2.bf16.msra.mxu0 %v14686_v26  ;;  %v14767_v26 = vld [vmem:[#allocation11 + $0x248] ss:$16 sps:$4 sm:$0xff]  }
 0xdf3   :  { %11601 = vmatpush2.bf16.msra.mxu1 %v14689_v20  ;;  %11561 = vmatprep.subr.bf16.mxu0 %v14694_v10  ;;  %v14772_v20 = vld [vmem:[#allocation11 + $0x2c] ss:$16 sps:$4 sm:$0xff]  }
 0xdf4   :  { %11602 = vmatprep.subr.bf16.mxu1 %v14697_v13  ;;  %v14775_v10 = vld [vmem:[#allocation11 + $0x22c] ss:$16 sps:$4 sm:$0xff]   ;;  %v14770_v13 = vld [vmem:[#allocation11 + $0x28] ss:$16 sps:$4 sm:$0xff]  }
 0xdf6   :  { %11562 = vmatpush2.bf16.msra.mxu0 %v14692_v30  ;;  %v14773_v30 = vld [vmem:[#allocation11 + $0x228] ss:$16 sps:$4 sm:$0xff]  }
 0xdf7   :  { %11603 = vmatpush2.bf16.msra.mxu1 %v14695_v0  ;;  %11563 = vmatprep.subr.bf16.mxu0 %v14700_v59  ;;  %v14778_v0 = vld [vmem:[#allocation11 + $0xc] ss:$16 sps:$4 sm:$0xff]  }
 0xdf8   :  { %11604 = vmatprep.subr.bf16.mxu1 %v14703_v19  ;;  %v14781_v59 = vld [vmem:[#allocation11 + $0x20c] ss:$16 sps:$4 sm:$0xff]   ;;  %v14776_v19 = vld [vmem:[#allocation11 + $0x8] ss:$16 sps:$4 sm:$0xff]  }
 0xdfa   :  { %11564 = vmatpush2.bf16.msra.mxu0 %v14698_v8  ;;  %v14779_v8 = vld [vmem:[#allocation11 + $0x208] ss:$16 sps:$4 sm:$0xff]  }
 0xdfb   :  { %11605 = vmatpush2.bf16.msra.mxu1 %v14701_v11  ;;  %11565 = vmatprep.subr.bf16.mxu0 %v14706_v1  ;;  %v14784_v11 = vld [vmem:[#allocation11 + $0x1ec] ss:$16 sps:$4 sm:$0xff]  }
 0xdfc   :  { %11606 = vmatprep.subr.bf16.mxu1 %v14709_v38  ;;  %v14787_v1 = vld [vmem:[#allocation11 + $0x3ec] ss:$16 sps:$4 sm:$0xff]   ;;  %v14782_v38 = vld [vmem:[#allocation11 + $0x1e8] ss:$16 sps:$4 sm:$0xff]  }
 0xdfe   :  { %11566 = vmatpush2.bf16.msra.mxu0 %v14704_v50  ;;  %v14785_v50 = vld [vmem:[#allocation11 + $0x3e8] ss:$16 sps:$4 sm:$0xff]  }
 0xdff   :  { %11607 = vmatpush2.bf16.msra.mxu1 %v14707_v5  ;;  %11567 = vmatprep.subr.bf16.mxu0 %v14712_v12  ;;  %v14790_v5 = vld [vmem:[#allocation11 + $0x1cc] ss:$16 sps:$4 sm:$0xff]  }
 0xe00   :  { %11608 = vmatprep.subr.bf16.mxu1 %v14715_v15  ;;  %v14793_v12 = vld [vmem:[#allocation11 + $0x3cc] ss:$16 sps:$4 sm:$0xff]   ;;  %v14788_v15 = vld [vmem:[#allocation11 + $0x1c8] ss:$16 sps:$4 sm:$0xff]  }
 0xe02   :  { %11568 = vmatpush2.bf16.msra.mxu0 %v14710_v27  ;;  %v14791_v27 = vld [vmem:[#allocation11 + $0x3c8] ss:$16 sps:$4 sm:$0xff]  }
 0xe03   :  { %11609 = vmatpush2.bf16.msra.mxu1 %v14713_v43  ;;  %11569 = vmatprep.subr.bf16.mxu0 %v14718_v16  ;;  %v14796_v43 = vld [vmem:[#allocation11 + $0x1ac] ss:$16 sps:$4 sm:$0xff]  }
 0xe04   :  { %11610 = vmatprep.subr.bf16.mxu1 %v14721_v42  ;;  %v14799_v16 = vld [vmem:[#allocation11 + $0x3ac] ss:$16 sps:$4 sm:$0xff]   ;;  %v14794_v42 = vld [vmem:[#allocation11 + $0x1a8] ss:$16 sps:$4 sm:$0xff]  }
 0xe06   :  { %11570 = vmatpush2.bf16.msra.mxu0 %v14716_v61  ;;  %v14797_v61 = vld [vmem:[#allocation11 + $0x3a8] ss:$16 sps:$4 sm:$0xff]  }
 0xe07   :  { %11611 = vmatpush2.bf16.msra.mxu1 %v14719_v6  ;;  %11571 = vmatprep.subr.bf16.mxu0 %v14724_v32  ;;  %v14802_v6 = vld [vmem:[#allocation11 + $0x18c] ss:$16 sps:$4 sm:$0xff]  }
 0xe08   :  { %11612 = vmatprep.subr.bf16.mxu1 %v14727_v53  ;;  %v14805_v32 = vld [vmem:[#allocation11 + $0x38c] ss:$16 sps:$4 sm:$0xff]   ;;  %v14800_v53 = vld [vmem:[#allocation11 + $0x188] ss:$16 sps:$4 sm:$0xff]  }
 0xe0a   :  { %11572 = vmatpush2.bf16.msra.mxu0 %v14722_v40  ;;  %v14803_v40 = vld [vmem:[#allocation11 + $0x388] ss:$16 sps:$4 sm:$0xff]  }
 0xe0b   :  { %11613 = vmatpush2.bf16.msra.mxu1 %v14725_v54  ;;  %11573 = vmatprep.subr.bf16.mxu0 %v14730_v21  ;;  %v14808_v54 = vld [vmem:[#allocation11 + $0x16c] ss:$16 sps:$4 sm:$0xff]  }
 0xe0c   :  { %11614 = vmatprep.subr.bf16.mxu1 %v14733_v17  ;;  %v14811_v21 = vld [vmem:[#allocation11 + $0x36c] ss:$16 sps:$4 sm:$0xff]   ;;  %v14806_v17 = vld [vmem:[#allocation11 + $0x168] ss:$16 sps:$4 sm:$0xff]  }
 0xe0e   :  { %11574 = vmatpush2.bf16.msra.mxu0 %v14728_v39  ;;  %v14809_v39 = vld [vmem:[#allocation11 + $0x368] ss:$16 sps:$4 sm:$0xff]  }
 0xe0f   :  { %11615 = vmatpush2.bf16.msra.mxu1 %v14731_v55  ;;  %11625 = vmatprep.subr.bf16.mxu0 %v14736_v44  ;;  %v14814_v55 = vld [vmem:[#allocation11 + $0x14c] ss:$16 sps:$4 sm:$0xff]  }
 0xe10   :  { %11666 = vmatprep.subr.bf16.mxu1 %v14739_v31  ;;  %v14817_v44 = vld [vmem:[#allocation11 + $0x34c] ss:$16 sps:$4 sm:$0xff]   ;;  %v14812_v31 = vld [vmem:[#allocation11 + $0x148] ss:$16 sps:$4 sm:$0xff]  }
 0xe11   :  { %11576 = vmatmul.mubr.bf16.vlgmr.msra.gmra.mxu0 %v17925_v25 }
 0xe12   :  { %11617 = vmatmul.mubr.bf16.vlgmr.msra.gmra.mxu1 %v17930_v7  ;;  %11626 = vmatpush1.bf16.msra.mxu0 %v14734_v60  ;;  %v14815_v60 = vld [vmem:[#allocation11 + $0x348] ss:$16 sps:$4 sm:$0xff]  }
 0xe13   :  { %11667 = vmatpush1.bf16.msra.mxu1 %v14737_v51  ;;  %11627 = vmatprep.subr.bf16.mxu0 %v14742_v2  ;;  %v14820_v51 = vld [vmem:[#allocation11 + $0x12c] ss:$16 sps:$4 sm:$0xff]  }
 0xe14   :  { %11668 = vmatprep.subr.bf16.mxu1 %v14745_v23  ;;  %11657 = vmatprep.mubr.bf16.mxu0 %v17892_v28  ;;  %v14761_v28 = vld [vmem:[#allocation11 + $0x268] ss:$16 sps:$4 sm:$0xff]   ;;  %v14823_v2 = vld [vmem:[#allocation11 + $0x32c] ss:$16 sps:$4 sm:$0xff]  }
 0xe15   :  { %11698 = vmatprep.mubr.bf16.mxu1 %v17894_v36  ;;  %v14766_v36 = vld [vmem:[#allocation11 + $0x4c] ss:$16 sps:$4 sm:$0xff]   ;;  %v14818_v23 = vld [vmem:[#allocation11 + $0x128] ss:$16 sps:$4 sm:$0xff]  }
 0xe16   :  { %11628 = vmatpush1.bf16.msra.mxu0 %v14740_v58  ;;  %v14821_v58 = vld [vmem:[#allocation11 + $0x328] ss:$16 sps:$4 sm:$0xff]  }
 0xe17   :  { %11669 = vmatpush1.bf16.msra.mxu1 %v14743_v56  ;;  %11629 = vmatprep.subr.bf16.mxu0 %v14748_v63  ;;  %v14826_v56 = vld [vmem:[#allocation11 + $0x10c] ss:$16 sps:$4 sm:$0xff]  }
 0xe18   :  { %11670 = vmatprep.subr.bf16.mxu1 %v14751_v37  ;;  %v14829_v63 = vld [vmem:[#allocation11 + $0x30c] ss:$16 sps:$4 sm:$0xff]   ;;  %v14824_v37 = vld [vmem:[#allocation11 + $0x108] ss:$16 sps:$4 sm:$0xff]  }
 0xe1a   :  { %11630 = vmatpush1.bf16.msra.mxu0 %v14746_v34  ;;  %v14827_v34 = vld [vmem:[#allocation11 + $0x308] ss:$16 sps:$4 sm:$0xff]  }
 0xe1b   :  { %11671 = vmatpush1.bf16.msra.mxu1 %v14749_v24  ;;  %11631 = vmatprep.subr.bf16.mxu0 %v14754_v9  ;;  %v14832_v24 = vld [vmem:[#allocation11 + $0x4ec] ss:$16 sps:$4 sm:$0xff]  }
 0xe1c   :  { %11672 = vmatprep.subr.bf16.mxu1 %v14757_v52  ;;  %v14835_v9 = vld [vmem:[#allocation11 + $0x6ec] ss:$16 sps:$4 sm:$0xff]   ;;  %v14830_v52 = vld [vmem:[#allocation11 + $0x4e8] ss:$16 sps:$4 sm:$0xff]  }
 0xe1e   :  { %11632 = vmatpush1.bf16.msra.mxu0 %v14752_v3  ;;  %v14833_v3 = vld [vmem:[#allocation11 + $0x6e8] ss:$16 sps:$4 sm:$0xff]  }
 0xe1f   :  { %11673 = vmatpush1.bf16.msra.mxu1 %v14755_v46  ;;  %11633 = vmatprep.subr.bf16.mxu0 %v14760_v49  ;;  %v14838_v46 = vld [vmem:[#allocation11 + $0x4cc] ss:$16 sps:$4 sm:$0xff]  }
 0xe20   :  { %11674 = vmatprep.subr.bf16.mxu1 %v14763_v47  ;;  %v14841_v49 = vld [vmem:[#allocation11 + $0x6cc] ss:$16 sps:$4 sm:$0xff]   ;;  %v14836_v47 = vld [vmem:[#allocation11 + $0x4c8] ss:$16 sps:$4 sm:$0xff]  }
 0xe22   :  { %11634 = vmatpush1.bf16.msra.mxu0 %v14758_v41  ;;  %v14839_v41 = vld [vmem:[#allocation11 + $0x6c8] ss:$16 sps:$4 sm:$0xff]  }
 0xe23   :  { %11675 = vmatpush1.bf16.msra.mxu1 %v14761_v28  ;;  %11635 = vmatprep.subr.bf16.mxu0 %v14766_v36  ;;  %v14844_v28 = vld [vmem:[#allocation11 + $0x4ac] ss:$16 sps:$4 sm:$0xff]  }
 0xe24   :  { %11676 = vmatprep.subr.bf16.mxu1 %v14769_v18  ;;  %v14847_v36 = vld [vmem:[#allocation11 + $0x6ac] ss:$16 sps:$4 sm:$0xff]   ;;  %v14842_v18 = vld [vmem:[#allocation11 + $0x4a8] ss:$16 sps:$4 sm:$0xff]  }
 0xe26   :  { %11636 = vmatpush1.bf16.msra.mxu0 %v14764_v14  ;;  %v14845_v14 = vld [vmem:[#allocation11 + $0x6a8] ss:$16 sps:$4 sm:$0xff]  }
 0xe27   :  { %11677 = vmatpush1.bf16.msra.mxu1 %v14767_v26  ;;  %11637 = vmatprep.subr.bf16.mxu0 %v14772_v20  ;;  %v14848_v26 = vld [vmem:[#allocation11 + $0x488] ss:$16 sps:$4 sm:$0xff]  }
 0xe28   :  { %11678 = vmatprep.subr.bf16.mxu1 %v14775_v10  ;;  %v14851_v20 = vld [vmem:[#allocation11 + $0x688] ss:$16 sps:$4 sm:$0xff]   ;;  %v14856_v10 = vld [vmem:[#allocation11 + $0x46c] ss:$16 sps:$4 sm:$0xff]  }
 0xe2a   :  { %11638 = vmatpush1.bf16.msra.mxu0 %v14770_v13  ;;  %v14859_v13 = vld [vmem:[#allocation11 + $0x66c] ss:$16 sps:$4 sm:$0xff]  }
 0xe2b   :  { %11679 = vmatpush1.bf16.msra.mxu1 %v14773_v30  ;;  %11639 = vmatprep.subr.bf16.mxu0 %v14778_v0  ;;  %v14862_v30 = vld [vmem:[#allocation11 + $0x44c] ss:$16 sps:$4 sm:$0xff]  }
 0xe2c   :  { %11680 = vmatprep.subr.bf16.mxu1 %v14781_v59  ;;  %v14865_v0 = vld [vmem:[#allocation11 + $0x64c] ss:$16 sps:$4 sm:$0xff]   ;;  %v14860_v59 = vld [vmem:[#allocation11 + $0x448] ss:$16 sps:$4 sm:$0xff]  }
 0xe2e   :  { %11640 = vmatpush1.bf16.msra.mxu0 %v14776_v19  ;;  %v14863_v19 = vld [vmem:[#allocation11 + $0x648] ss:$16 sps:$4 sm:$0xff]  }
 0xe2f   :  { %11681 = vmatpush1.bf16.msra.mxu1 %v14779_v8  ;;  %11641 = vmatprep.subr.bf16.mxu0 %v14784_v11  ;;  %v14868_v8 = vld [vmem:[#allocation11 + $0x42c] ss:$16 sps:$4 sm:$0xff]  }
 0xe30   :  { %11682 = vmatprep.subr.bf16.mxu1 %v14787_v1  ;;  %v14871_v11 = vld [vmem:[#allocation11 + $0x62c] ss:$16 sps:$4 sm:$0xff]   ;;  %v14866_v1 = vld [vmem:[#allocation11 + $0x428] ss:$16 sps:$4 sm:$0xff]  }
 0xe32   :  { %11642 = vmatpush2.bf16.msra.mxu0 %v14782_v38  ;;  %v14869_v38 = vld [vmem:[#allocation11 + $0x628] ss:$16 sps:$4 sm:$0xff]  }
 0xe33   :  { %11683 = vmatpush2.bf16.msra.mxu1 %v14785_v50  ;;  %11643 = vmatprep.subr.bf16.mxu0 %v14790_v5  ;;  %v14874_v50 = vld [vmem:[#allocation11 + $0x40c] ss:$16 sps:$4 sm:$0xff]  }
 0xe34   :  { %11684 = vmatprep.subr.bf16.mxu1 %v14793_v12  ;;  %v14877_v5 = vld [vmem:[#allocation11 + $0x60c] ss:$16 sps:$4 sm:$0xff]   ;;  %v14872_v12 = vld [vmem:[#allocation11 + $0x408] ss:$16 sps:$4 sm:$0xff]  }
 0xe36   :  { %11644 = vmatpush2.bf16.msra.mxu0 %v14788_v15  ;;  %v14875_v15 = vld [vmem:[#allocation11 + $0x608] ss:$16 sps:$4 sm:$0xff]  }
 0xe37   :  { %11685 = vmatpush2.bf16.msra.mxu1 %v14791_v27  ;;  %11645 = vmatprep.subr.bf16.mxu0 %v14796_v43  ;;  %v14880_v27 = vld [vmem:[#allocation11 + $0x5ec] ss:$16 sps:$4 sm:$0xff]  }
 0xe38   :  { %11686 = vmatprep.subr.bf16.mxu1 %v14799_v16  ;;  %v14883_v43 = vld [vmem:[#allocation11 + $0x7ec] ss:$16 sps:$4 sm:$0xff]   ;;  %v14878_v16 = vld [vmem:[#allocation11 + $0x5e8] ss:$16 sps:$4 sm:$0xff]  }
 0xe3a   :  { %11646 = vmatpush2.bf16.msra.mxu0 %v14794_v42  ;;  %v14881_v42 = vld [vmem:[#allocation11 + $0x7e8] ss:$16 sps:$4 sm:$0xff]  }
 0xe3b   :  { %11687 = vmatpush2.bf16.msra.mxu1 %v14797_v61  ;;  %11647 = vmatprep.subr.bf16.mxu0 %v14802_v6  ;;  %v14886_v61 = vld [vmem:[#allocation11 + $0x5cc] ss:$16 sps:$4 sm:$0xff]  }
 0xe3c   :  { %11688 = vmatprep.subr.bf16.mxu1 %v14805_v32  ;;  %v14889_v6 = vld [vmem:[#allocation11 + $0x7cc] ss:$16 sps:$4 sm:$0xff]   ;;  %v14884_v32 = vld [vmem:[#allocation11 + $0x5c8] ss:$16 sps:$4 sm:$0xff]  }
 0xe3e   :  { %11648 = vmatpush2.bf16.msra.mxu0 %v14800_v53  ;;  %v14887_v53 = vld [vmem:[#allocation11 + $0x7c8] ss:$16 sps:$4 sm:$0xff]  }
 0xe3f   :  { %11689 = vmatpush2.bf16.msra.mxu1 %v14803_v40  ;;  %11649 = vmatprep.subr.bf16.mxu0 %v14808_v54  ;;  %v14892_v40 = vld [vmem:[#allocation11 + $0x5ac] ss:$16 sps:$4 sm:$0xff]  }
 0xe40   :  { %11690 = vmatprep.subr.bf16.mxu1 %v14811_v21  ;;  %v14895_v54 = vld [vmem:[#allocation11 + $0x7ac] ss:$16 sps:$4 sm:$0xff]   ;;  %v14890_v21 = vld [vmem:[#allocation11 + $0x5a8] ss:$16 sps:$4 sm:$0xff]  }
 0xe42   :  { %11650 = vmatpush2.bf16.msra.mxu0 %v14806_v17  ;;  %v14893_v17 = vld [vmem:[#allocation11 + $0x7a8] ss:$16 sps:$4 sm:$0xff]  }
 0xe43   :  { %11691 = vmatpush2.bf16.msra.mxu1 %v14809_v39  ;;  %11651 = vmatprep.subr.bf16.mxu0 %v14814_v55  ;;  %v14898_v39 = vld [vmem:[#allocation11 + $0x58c] ss:$16 sps:$4 sm:$0xff]  }
 0xe44   :  { %11692 = vmatprep.subr.bf16.mxu1 %v14817_v44  ;;  %v14901_v55 = vld [vmem:[#allocation11 + $0x78c] ss:$16 sps:$4 sm:$0xff]   ;;  %v14896_v44 = vld [vmem:[#allocation11 + $0x588] ss:$16 sps:$4 sm:$0xff]  }
 0xe46   :  { %11652 = vmatpush2.bf16.msra.mxu0 %v14812_v31  ;;  %v14899_v31 = vld [vmem:[#allocation11 + $0x788] ss:$16 sps:$4 sm:$0xff]  }
 0xe47   :  { %11693 = vmatpush2.bf16.msra.mxu1 %v14815_v60  ;;  %11653 = vmatprep.subr.bf16.mxu0 %v14820_v51  ;;  %v14904_v60 = vld [vmem:[#allocation11 + $0x56c] ss:$16 sps:$4 sm:$0xff]  }
 0xe48   :  { %11694 = vmatprep.subr.bf16.mxu1 %v14823_v2  ;;  %v14907_v51 = vld [vmem:[#allocation11 + $0x76c] ss:$16 sps:$4 sm:$0xff]   ;;  %v14902_v2 = vld [vmem:[#allocation11 + $0x568] ss:$16 sps:$4 sm:$0xff]  }
 0xe4a   :  { %11654 = vmatpush2.bf16.msra.mxu0 %v14818_v23  ;;  %v14905_v23 = vld [vmem:[#allocation11 + $0x768] ss:$16 sps:$4 sm:$0xff]  }
 0xe4b   :  { %11695 = vmatpush2.bf16.msra.mxu1 %v14821_v58  ;;  %11655 = vmatprep.subr.bf16.mxu0 %v14826_v56  ;;  %v14910_v58 = vld [vmem:[#allocation11 + $0x54c] ss:$16 sps:$4 sm:$0xff]  }
 0xe4c   :  { %11696 = vmatprep.subr.bf16.mxu1 %v14829_v63  ;;  %v14913_v56 = vld [vmem:[#allocation11 + $0x74c] ss:$16 sps:$4 sm:$0xff]   ;;  %v14908_v63 = vld [vmem:[#allocation11 + $0x548] ss:$16 sps:$4 sm:$0xff]  }
 0xe4e   :  { %11656 = vmatpush2.bf16.msra.mxu0 %v14824_v37  ;;  %v14911_v37 = vld [vmem:[#allocation11 + $0x748] ss:$16 sps:$4 sm:$0xff]  }
 0xe4f   :  { %11697 = vmatpush2.bf16.msra.mxu1 %v14827_v34  ;;  %11707 = vmatprep.subr.bf16.mxu0 %v14832_v24  ;;  %v14916_v34 = vld [vmem:[#allocation11 + $0x52c] ss:$16 sps:$4 sm:$0xff]  }
 0xe50   :  { %11748 = vmatprep.subr.bf16.mxu1 %v14835_v9  ;;  %v14919_v24 = vld [vmem:[#allocation11 + $0x72c] ss:$16 sps:$4 sm:$0xff]   ;;  %v14914_v9 = vld [vmem:[#allocation11 + $0x528] ss:$16 sps:$4 sm:$0xff]  }
 0xe51   :  { %11658 = vmatmul.mubr.bf16.vlgmr.msra.gmra.mxu0 %v17901_v22  ;;  %v14850_v22 = vld [vmem:[#allocation11 + $0x48c] ss:$16 sps:$4 sm:$0xff]  }
 0xe52   :  { %11699 = vmatmul.mubr.bf16.vlgmr.msra.gmra.mxu1 %v17906_v33  ;;  %11708 = vmatpush1.bf16.msra.mxu0 %v14830_v52  ;;  %v14853_v33 = vld [vmem:[#allocation11 + $0x68c] ss:$16 sps:$4 sm:$0xff]   ;;  %v14917_v52 = vld [vmem:[#allocation11 + $0x728] ss:$16 sps:$4 sm:$0xff]  }
 0xe53   :  { %11749 = vmatpush1.bf16.msra.mxu1 %v14833_v3  ;;  %11709 = vmatprep.subr.bf16.mxu0 %v14838_v46  ;;  %v14922_v3 = vld [vmem:[#allocation11 + $0x50c] ss:$16 sps:$4 sm:$0xff]  }
 0xe54   :  { %11750 = vmatprep.subr.bf16.mxu1 %v14841_v49  ;;  %11739 = vmatprep.mubr.bf16.mxu0 %v17911_v29  ;;  %v14854_v29 = vld [vmem:[#allocation11 + $0x468] ss:$16 sps:$4 sm:$0xff]   ;;  %v14925_v46 = vld [vmem:[#allocation11 + $0x70c] ss:$16 sps:$4 sm:$0xff]  }
 0xe55   :  { %11780 = vmatprep.mubr.bf16.mxu1 %v17916_v57  ;;  %v14857_v57 = vld [vmem:[#allocation11 + $0x668] ss:$16 sps:$4 sm:$0xff]  }
 0xe56   :  { %11710 = vmatpush1.bf16.msra.mxu0 %v14836_v47  ;;  %v14920_v49 = vld [vmem:[#allocation11 + $0x508] ss:$16 sps:$4 sm:$0xff]  }
 0xe57   :  { %11751 = vmatpush1.bf16.msra.mxu1 %v14839_v41  ;;  %11711 = vmatprep.subr.bf16.mxu0 %v14844_v28  ;;  %v14923_v47 = vld [vmem:[#allocation11 + $0x708] ss:$16 sps:$4 sm:$0xff]  }
 0xe58   :  { %11752 = vmatprep.subr.bf16.mxu1 %v14847_v36  ;;  %v17940_v41 = vld [vmem:[#allocation15 + $0x62] ss:$4 sm:$0xf] }
 0xe59   :  { %v10164_v28 = vrot.slane %v17940_v41, %v16722_v35  ;;  %v10168_v36 = vrot.slane %v17940_v41, %v16725_v45 }
 0xe5a   :  { %11712 = vmatpush1.bf16.msra.mxu0 %v14842_v18 }
 0xe5b   :  { %11753 = vmatpush1.bf16.msra.mxu1 %v14845_v14  ;;  %11713 = vmatprep.subr.bf16.mxu0 %v14850_v22 }
 0xe5c   :  { %11754 = vmatprep.subr.bf16.mxu1 %v14853_v33 }
 0xe5e   :  { %11714 = vmatpush1.bf16.msra.mxu0 %v14848_v26 }
 0xe5f   :  { %11755 = vmatpush1.bf16.msra.mxu1 %v14851_v20  ;;  %11715 = vmatprep.subr.bf16.mxu0 %v14856_v10 }
 0xe60   :  { %11756 = vmatprep.subr.bf16.mxu1 %v14859_v13 }
 0xe62   :  { %11716 = vmatpush1.bf16.msra.mxu0 %v14854_v29 }
 0xe63   :  { %11757 = vmatpush1.bf16.msra.mxu1 %v14857_v57  ;;  %11717 = vmatprep.subr.bf16.mxu0 %v14862_v30 }
 0xe64   :  { %11758 = vmatprep.subr.bf16.mxu1 %v14865_v0 }
 0xe66   :  { %11718 = vmatpush1.bf16.msra.mxu0 %v14860_v59 }
 0xe67   :  { %11759 = vmatpush1.bf16.msra.mxu1 %v14863_v19  ;;  %11719 = vmatprep.subr.bf16.mxu0 %v14868_v8 }
 0xe68   :  { %11760 = vmatprep.subr.bf16.mxu1 %v14871_v11 }
 0xe6a   :  { %11720 = vmatpush1.bf16.msra.mxu0 %v14866_v1 }
 0xe6b   :  { %11761 = vmatpush1.bf16.msra.mxu1 %v14869_v38  ;;  %11721 = vmatprep.subr.bf16.mxu0 %v14874_v50 }
 0xe6c   :  { %11762 = vmatprep.subr.bf16.mxu1 %v14877_v5 }
 0xe6e   :  { %11722 = vmatpush1.bf16.msra.mxu0 %v14872_v12 }
 0xe6f   :  { %11763 = vmatpush1.bf16.msra.mxu1 %v14875_v15  ;;  %11723 = vmatprep.subr.bf16.mxu0 %v14880_v27 }
 0xe70   :  { %11764 = vmatprep.subr.bf16.mxu1 %v14883_v43 }
 0xe72   :  { %11724 = vmatpush2.bf16.msra.mxu0 %v14878_v16 }
 0xe73   :  { %11765 = vmatpush2.bf16.msra.mxu1 %v14881_v42  ;;  %11725 = vmatprep.subr.bf16.mxu0 %v14886_v61 }
 0xe74   :  { %11766 = vmatprep.subr.bf16.mxu1 %v14889_v6 }
 0xe76   :  { %11726 = vmatpush2.bf16.msra.mxu0 %v14884_v32 }
 0xe77   :  { %11767 = vmatpush2.bf16.msra.mxu1 %v14887_v53  ;;  %11727 = vmatprep.subr.bf16.mxu0 %v14892_v40 }
 0xe78   :  { %11768 = vmatprep.subr.bf16.mxu1 %v14895_v54 }
 0xe7a   :  { %11728 = vmatpush2.bf16.msra.mxu0 %v14890_v21 }
 0xe7b   :  { %11769 = vmatpush2.bf16.msra.mxu1 %v14893_v17  ;;  %11729 = vmatprep.subr.bf16.mxu0 %v14898_v39 }
 0xe7c   :  { %11770 = vmatprep.subr.bf16.mxu1 %v14901_v55 }
 0xe7e   :  { %11730 = vmatpush2.bf16.msra.mxu0 %v14896_v44 }
 0xe7f   :  { %11771 = vmatpush2.bf16.msra.mxu1 %v14899_v31  ;;  %11731 = vmatprep.subr.bf16.mxu0 %v14904_v60 }
 0xe80   :  { %11772 = vmatprep.subr.bf16.mxu1 %v14907_v51 }
 0xe82   :  { %11732 = vmatpush2.bf16.msra.mxu0 %v14902_v2 }
 0xe83   :  { %11773 = vmatpush2.bf16.msra.mxu1 %v14905_v23  ;;  %11733 = vmatprep.subr.bf16.mxu0 %v14910_v58 }
 0xe84   :  { %11774 = vmatprep.subr.bf16.mxu1 %v14913_v56 }
 0xe86   :  { %11734 = vmatpush2.bf16.msra.mxu0 %v14908_v63 }
 0xe87   :  { %11775 = vmatpush2.bf16.msra.mxu1 %v14911_v37  ;;  %11735 = vmatprep.subr.bf16.mxu0 %v14916_v34 }
 0xe88   :  { %11776 = vmatprep.subr.bf16.mxu1 %v14919_v24 }
 0xe8a   :  { %11736 = vmatpush2.bf16.msra.mxu0 %v14914_v9 }
 0xe8b   :  { %11777 = vmatpush2.bf16.msra.mxu1 %v14917_v52  ;;  %11737 = vmatprep.subr.bf16.mxu0 %v14922_v3 }
 0xe8c   :  { %11778 = vmatprep.subr.bf16.mxu1 %v14925_v46 }
 0xe8e   :  { %11738 = vmatpush2.bf16.msra.mxu0 %v14920_v49 }
 0xe8f   :  { %11779 = vmatpush2.bf16.msra.mxu1 %v14923_v47 }
 0xe91   :  { %v11495_v18 = vpop.f32.mrf.mxu0  ;;  %11740 = vmatmul.mubr.bf16.vlgmr.msra.gmra.mxu0 %v17925_v25 }
 0xe92   :  { %v11536_v14 = vpop.f32.mrf.mxu1  ;;  %11781 = vmatmul.mubr.bf16.vlgmr.msra.gmra.mxu1 %v17930_v7  ;;  %v11496_v22 = vadd.f32 %v11495_v18, %v10164_v28 }
 0xe93   :  { %v11497_v33 = vpop.f32.mrf.mxu0 }
 0xe94   :  { %v11538_v26 = vpop.f32.mrf.mxu1  ;;  %v11537_v20 = vadd.f32 %v11536_v14, %v11496_v22  ;;  %v11498_v10 = vadd.f32 %v11497_v33, %v10168_v36 }
 0xe95   :  { %v11499_v13 = vpop.f32.mrf.mxu0 }
 0xe96   :  { %v11540_v29 = vpop.f32.mrf.mxu1  ;;  %v11539_v57 = vadd.f32 %v11538_v26, %v11498_v10 }
 0xe97   :  { %v11500_v30 = vpop.f32.mrf.mxu0 }
 0xe98   :  { %v11541_v0 = vpop.f32.mrf.mxu1 }
 0xed1   :  { %v11577_v59 = vpop.f32.mrf.mxu0 }
 0xed2   :  { %v11618_v19 = vpop.f32.mrf.mxu1  ;;  %v11578_v8 = vadd.f32 %v11577_v59, %v11537_v20 }
 0xed3   :  { %v11579_v11 = vpop.f32.mrf.mxu0 }
 0xed4   :  { %v11620_v1 = vpop.f32.mrf.mxu1  ;;  %v17948_v38 = vadd.f32 %v11618_v19, %v11578_v8  ;;  %v11580_v25 = vadd.f32 %v11579_v11, %v11539_v57  ;;  %v10172_v11 = vrot.slane %v17940_v41, %v16882_v48 }
 0xed5   :  { %v11581_v50 = vpop.f32.mrf.mxu0 }
 0xed6   :  { %v11622_v7 = vpop.f32.mrf.mxu1  ;;  %v11789_v5 = vrot.slane %v17948_v38, 4  ;;  %v11817_v12 = vmul.f32 %v17948_v38, %v17948_v38  ;;  %v17953_v15 = vadd.f32 %v11620_v1, %v11580_v25  ;;  %v10176_v1 = vrot.slane %v17940_v41, %v16885_v4 }
 0xed7   :  { %v11582_v27 = vpop.f32.mrf.mxu0 }
 0xed8   :  { %v11623_v43 = vpop.f32.mrf.mxu1  ;;  %v11790_v16 = vadd.f32 %v11789_v5, %v17948_v38  ;;  %v11821_v42 = vrot.slane %v11817_v12, 4  ;;  %v11795_v61 = vrot.slane %v17953_v15, 4  ;;  %v11818_v6 = vmul.f32 %v17953_v15, %v17953_v15 }
 0xeda   :  { %v11791_v32 = vrot.slane %v11790_v16, 2  ;;  %v11822_v53 = vadd.f32 %v11821_v42, %v11817_v12  ;;  %v11796_v40 = vadd.f32 %v11795_v61, %v17953_v15  ;;  %v11827_v54 = vrot.slane %v11818_v6, 4 }
 0xedc   :  { %v11792_v21 = vadd.f32 %v11791_v32, %v11790_v16  ;;  %v11823_v17 = vrot.slane %v11822_v53, 2  ;;  %v11797_v39 = vrot.slane %v11796_v40, 2  ;;  %v11828_v55 = vadd.f32 %v11827_v54, %v11818_v6 }
 0xede   :  { %v11793_v44 = vrot.slane %v11792_v21, 1  ;;  %v11824_v31 = vadd.f32 %v11823_v17, %v11822_v53  ;;  %v11798_v60 = vadd.f32 %v11797_v39, %v11796_v40  ;;  %v11829_v51 = vrot.slane %v11828_v55, 2 }
 0xee0   :  { %v11794_v2 = vadd.f32 %v11793_v44, %v11792_v21  ;;  %v11825_v23 = vrot.slane %v11824_v31, 1  ;;  %v11799_v58 = vrot.slane %v11798_v60, 1  ;;  %v11830_v56 = vadd.f32 %v11829_v51, %v11828_v55 }
 0xee2   :  { %v17960_v63 = vmul.f32 0.125, %v11794_v2  ;;  %v11826_v37 = vadd.f32 %v11825_v23, %v11824_v31  ;;  %v11800_v34 = vadd.f32 %v11799_v58, %v11798_v60  ;;  %v11831_v24 = vrot.slane %v11830_v56, 1 }
 0xee4   :  { %v11845_v9 = vmul.f32 0.125, %v11826_v37  ;;  %v11849_v52 = vmul.f32 %v17960_v63, %v17960_v63  ;;  %v17964_v3 = vmul.f32 0.125, %v11800_v34  ;;  %v11832_v46 = vadd.f32 %v11831_v24, %v11830_v56 }
 0xee6   :  { %v11853_v49 = vsub.f32 %v11845_v9, %v11849_v52  ;;  %v11846_v47 = vmul.f32 0.125, %v11832_v46  ;;  %v11850_v28 = vmul.f32 %v17964_v3, %v17964_v3 }
 0xee8   :  { %v11857_v36 = vmax.f32 %v11853_v49, 0.0  ;;  %v11854_v18 = vsub.f32 %v11846_v47, %v11850_v28 }
 0xeea   :  { %v11863_v14 = vadd.f32 1e-05, %v11857_v36  ;;  %v11858_v22 = vmax.f32 %v11854_v18, 0.0 }
 0xeec   :  { %v11864_v33 = vadd.f32 1e-05, %v11858_v22  ;;  %14926 = vrsqrt.f32 %v11863_v14 }
 0xeee   :  { %14928 = vrsqrt.f32 %v11864_v33 }
 0xef9   :  { %v17968_v26 = vpop.eup %14926 }
 0xefb   :  { %v17970_v20 = vpop.eup %14928 }
 0xefc   :  { %v11875_v10 = vcombine.low %v17968_v26, %v17970_v20 }
 0xf11   :  { %v11659_v13 = vpop.f32.mrf.mxu0 }
 0xf12   :  { %v11700_v29 = vpop.f32.mrf.mxu1  ;;  %v11660_v25 = vadd.f32 %v11659_v13, %v10172_v11 }
 0xf13   :  { %v11661_v57 = vpop.f32.mrf.mxu0 }
 0xf14   :  { %v11702_v30 = vpop.f32.mrf.mxu1  ;;  %v11662_v50 = vadd.f32 %v11661_v57, %v10176_v1  ;;  %v11701_v7 = vadd.f32 %v11700_v29, %v11660_v25 }
 0xf15   :  { %v11663_v0 = vpop.f32.mrf.mxu0 }
 0xf16   :  { %v11704_v59 = vpop.f32.mrf.mxu1  ;;  %v11703_v27 = vadd.f32 %v11702_v30, %v11662_v50 }
 0xf17   :  { %v11664_v19 = vpop.f32.mrf.mxu0 }
 0xf18   :  { %v11705_v8 = vpop.f32.mrf.mxu1 }
 0xf51   :  { %v11741_v5 = vpop.f32.mrf.mxu0 }
 0xf52   :  { %v11782_v12 = vpop.f32.mrf.mxu1  ;;  %v11742_v43 = vadd.f32 %v11741_v5, %v11701_v7 }
 0xf53   :  { %v11743_v16 = vpop.f32.mrf.mxu0 }
 0xf54   :  { %v11784_v42 = vpop.f32.mrf.mxu1  ;;  %v17978_v61 = vadd.f32 %v11782_v12, %v11742_v43  ;;  %v11744_v6 = vadd.f32 %v11743_v16, %v11703_v27  ;;  %v11883_v27 = vrot.slane %v11875_v10, %v16736_v62 }
 0xf55   :  { %v11745_v32 = vpop.f32.mrf.mxu0 }
 0xf56   :  { %v11786_v53 = vpop.f32.mrf.mxu1  ;;  %v11801_v40 = vrot.slane %v17978_v61, 4  ;;  %v11819_v54 = vmul.f32 %v17978_v61, %v17978_v61  ;;  %v17983_v41 = vadd.f32 %v11784_v42, %v11744_v6  ;;  %v11862_v42 = vld [vmem:[#allocation15 + $0x72] ss:$4 sm:$0xf] }
 0xf57   :  { %v11746_v21 = vpop.f32.mrf.mxu0 }
 0xf58   :  { %v11787_v17 = vpop.f32.mrf.mxu1  ;;  %v11802_v39 = vadd.f32 %v11801_v40, %v17978_v61  ;;  %v11833_v55 = vrot.slane %v11819_v54, 4  ;;  %v11807_v44 = vrot.slane %v17983_v41, 4  ;;  %v11820_v31 = vmul.f32 %v17983_v41, %v17983_v41 }
 0xf5a   :  { %v11803_v60 = vrot.slane %v11802_v39, 2  ;;  %v11834_v51 = vadd.f32 %v11833_v55, %v11819_v54  ;;  %v11808_v2 = vadd.f32 %v11807_v44, %v17983_v41  ;;  %v11839_v23 = vrot.slane %v11820_v31, 4 }
 0xf5c   :  { %v11804_v58 = vadd.f32 %v11803_v60, %v11802_v39  ;;  %v11835_v56 = vrot.slane %v11834_v51, 2  ;;  %v11809_v37 = vrot.slane %v11808_v2, 2  ;;  %v11840_v34 = vadd.f32 %v11839_v23, %v11820_v31 }
 0xf5e   :  { %v11805_v24 = vrot.slane %v11804_v58, 1  ;;  %v11836_v9 = vadd.f32 %v11835_v56, %v11834_v51  ;;  %v11810_v52 = vadd.f32 %v11809_v37, %v11808_v2  ;;  %v11841_v46 = vrot.slane %v11840_v34, 2 }
 0xf60   :  { %v11806_v49 = vadd.f32 %v11805_v24, %v11804_v58  ;;  %v11837_v47 = vrot.slane %v11836_v9, 1  ;;  %v11811_v28 = vrot.slane %v11810_v52, 1  ;;  %v11842_v36 = vadd.f32 %v11841_v46, %v11840_v34  ;;  %v11902_v58 = vld [vmem:[#allocation15 + $0x82] ss:$4 sm:$0xf] }
 0xf62   :  { %v11815_v18 = vmul.f32 0.125, %v11806_v49  ;;  %v11838_v14 = vadd.f32 %v11837_v47, %v11836_v9  ;;  %v11812_v22 = vadd.f32 %v11811_v28, %v11810_v52  ;;  %v11843_v33 = vrot.slane %v11842_v36, 1 }
 0xf64   :  { %v11847_v13 = vmul.f32 0.125, %v11838_v14  ;;  %v11851_v29 = vmul.f32 %v11815_v18, %v11815_v18  ;;  %v11816_v57 = vmul.f32 0.125, %v11812_v22  ;;  %v11844_v30 = vadd.f32 %v11843_v33, %v11842_v36 }
 0xf66   :  { %v11855_v0 = vsub.f32 %v11847_v13, %v11851_v29  ;;  %v11848_v59 = vmul.f32 0.125, %v11844_v30  ;;  %v11852_v19 = vmul.f32 %v11816_v57, %v11816_v57 }
 0xf68   :  { %v11859_v8 = vmax.f32 %v11855_v0, 0.0  ;;  %v11856_v11 = vsub.f32 %v11848_v59, %v11852_v19 }
 0xf6a   :  { %v11865_v1 = vadd.f32 1e-05, %v11859_v8  ;;  %v11860_v25 = vmax.f32 %v11856_v11, 0.0 }
 0xf6c   :  { %v11866_v50 = vadd.f32 1e-05, %v11860_v25  ;;  %14930 = vrsqrt.f32 %v11865_v1 }
 0xf6e   :  { %14932 = vrsqrt.f32 %v11866_v50 }
 0xf79   :  { %v14931_v7 = vpop.eup %14930 }
 0xf7b   :  { %v14933_v5 = vpop.eup %14932 }
 0xf7c   :  { %v11876_v12 = vcombine.low %v14931_v7, %v14933_v5 }
 0xf7e   :  { %v11890_v43 = vrot.slane %v11876_v12, %v16736_v62 }
 0xf80   :  { %v11891_v16 = vcombine.low %v11883_v27, %v11890_v43 }
 0xf82   :  { %v11898_v6 = vrot.slane %v11891_v16, %v16736_v62 }
 0xf84   :  { %v11900_v32 = vmul.f32 %v11898_v6, %v11862_v42 }
 0xf86   :  { %v11907_v53 = vrot.slane %v11900_v32, %v16722_v35  ;;  %v11911_v40 = vrot.slane %v11900_v32, %v16725_v45  ;;  %v11915_v54 = vrot.slane %v11900_v32, %v16882_v48  ;;  %v11919_v21 = vrot.slane %v11900_v32, %v16885_v4 }
 0xf88   :  { %v11924_v17 = vmul.f32 %v11907_v53, %v17960_v63  ;;  %v11925_v26 = vmul.f32 %v11911_v40, %v17964_v3  ;;  %v11926_v20 = vmul.f32 %v11915_v54, %v11815_v18  ;;  %v11927_v10 = vmul.f32 %v11919_v21, %v11816_v57 }
 0xf89   :  { %v11958_v39 = vmul.f32 %v11907_v53, %v17948_v38  ;;  %v11959_v55 = vmul.f32 %v11911_v40, %v17953_v15  ;;  %v11960_v44 = vmul.f32 %v11915_v54, %v17978_v61  ;;  %v11961_v3 = vmul.f32 %v11919_v21, %v17983_v41 }
 0xf8a   :  { %v11932_v31 = vcombine.low %v11924_v17, %v11925_v26  ;;  %v11933_v60 = vcombine.low %v11926_v20, %v11927_v10 }
 0xf8c   :  { %v11940_v51 = vrot.slane %v11932_v31, %v16736_v62  ;;  %v11947_v2 = vrot.slane %v11933_v60, %v16736_v62 }
 0xf8e   :  { %v11948_v23 = vcombine.low %v11940_v51, %v11947_v2 }
 0xf90   :  { %v11955_v63 = vrot.slane %v11948_v23, %v16736_v62 }
 0xf92   :  { %v11957_v56 = vsub.f32 %v11902_v58, %v11955_v63 }
 0xf94   :  { %v11966_v37 = vrot.slane %v11957_v56, %v16722_v35  ;;  %v11970_v38 = vrot.slane %v11957_v56, %v16725_v45  ;;  %v11974_v15 = vrot.slane %v11957_v56, %v16882_v48  ;;  %v11978_v61 = vrot.slane %v11957_v56, %v16885_v4 }
 0xf96   :  { %v18013_v34 = vadd.f32 %v11966_v37, %v11958_v39  ;;  %v11984_v24 = vadd.f32 %v11970_v38, %v11959_v55  ;;  %v18015_v9 = vadd.f32 %v11974_v15, %v11960_v44  ;;  %v11986_v52 = vadd.f32 %v11978_v61, %v11961_v3 }
 0xf98   :  { %v11987_v46 = vmax.f32 %v18013_v34, 0.0  ;;  %v11988_v49 = vmax.f32 %v11984_v24, 0.0  ;;  %v11989_v47 = vmax.f32 %v18015_v9, 0.0  ;;  %v11990_v41 = vmax.f32 %v11986_v52, 0.0 }
 0xf99   :  { %15192 = dma.done.wait [#allocation14 + $0xa], 8192 }
 0xf9a   :  { %15193 = vsyncadd [#allocation14 + $0xa], 4294959104  ;;  %v11995_v28 = vpack.c.bf16 %v11988_v49, %v11988_v49  ;;  %v11997_v36 = vpack.c.bf16 %v11990_v41, %v11990_v41  ;;  %v14934_v48 = vld [vmem:[#allocation12 + $0x74] ss:$8 sps:$4 sm:$0xff]   ;;  %v14938_v18 = vld [vmem:[#allocation12 + $0x70] ss:$8 sps:$4 sm:$0xff]  }
 0xf9b   :  { %v14936_v4 = vld [vmem:[#allocation12 + $0x174] ss:$8 sps:$4 sm:$0xff]   ;;  %12395 = vmatprep.subr.bf16.mxu0 %v14934_v48  ;;  %v14939_v14 = vld [vmem:[#allocation12 + $0x170] ss:$8 sps:$4 sm:$0xff]   ;;  %v14940_v22 = vld [vmem:[#allocation12 + $0x64] ss:$8 sps:$4 sm:$0xff]  }
 0xf9c   :  { %12427 = vmatprep.mubr.bf16.mxu0 %v11995_v28  ;;  %12468 = vmatprep.mubr.bf16.mxu1 %v11997_v36  ;;  %v14942_v33 = vld [vmem:[#allocation12 + $0x164] ss:$8 sps:$4 sm:$0xff]   ;;  %v14944_v13 = vld [vmem:[#allocation12 + $0x60] ss:$8 sps:$4 sm:$0xff]   ;;  %v14946_v57 = vld [vmem:[#allocation12 + $0x54] ss:$8 sps:$4 sm:$0xff]  }
 0xf9d   :  { %12436 = vmatprep.subr.bf16.mxu1 %v14936_v4  ;;  %12396 = vmatpush1.bf16.msra.mxu0 %v14938_v18  ;;  %v14945_v29 = vld [vmem:[#allocation12 + $0x160] ss:$8 sps:$4 sm:$0xff]   ;;  %v14948_v30 = vld [vmem:[#allocation12 + $0x154] ss:$8 sps:$4 sm:$0xff]   ;;  %v14950_v0 = vld [vmem:[#allocation12 + $0x50] ss:$8 sps:$4 sm:$0xff]  }
 0xf9e   :  { %12437 = vmatpush1.bf16.msra.mxu1 %v14939_v14  ;;  %12397 = vmatprep.subr.bf16.mxu0 %v14940_v22  ;;  %v14951_v59 = vld [vmem:[#allocation12 + $0x150] ss:$8 sps:$4 sm:$0xff]   ;;  %v14952_v19 = vld [vmem:[#allocation12 + $0x44] ss:$8 sps:$4 sm:$0xff]   ;;  %v14956_v11 = vld [vmem:[#allocation12 + $0x40] ss:$8 sps:$4 sm:$0xff]  }
 0xf9f   :  { %12438 = vmatprep.subr.bf16.mxu1 %v14942_v33  ;;  %v14954_v8 = vld [vmem:[#allocation12 + $0x144] ss:$8 sps:$4 sm:$0xff]   ;;  %v14957_v1 = vld [vmem:[#allocation12 + $0x140] ss:$8 sps:$4 sm:$0xff]   ;;  %v14958_v25 = vld [vmem:[#allocation12 + $0x34] ss:$8 sps:$4 sm:$0xff]  }
 0xfa0   :  { %v14960_v50 = vld [vmem:[#allocation12 + $0x134] ss:$8 sps:$4 sm:$0xff]   ;;  %v14962_v7 = vld [vmem:[#allocation12 + $0x30] ss:$8 sps:$4 sm:$0xff]   ;;  %v14964_v12 = vld [vmem:[#allocation12 + $0x24] ss:$8 sps:$4 sm:$0xff]  }
 0xfa1   :  { %12398 = vmatpush1.bf16.msra.mxu0 %v14944_v13  ;;  %v14963_v5 = vld [vmem:[#allocation12 + $0x130] ss:$8 sps:$4 sm:$0xff]   ;;  %v14966_v27 = vld [vmem:[#allocation12 + $0x124] ss:$8 sps:$4 sm:$0xff]   ;;  %v14968_v43 = vld [vmem:[#allocation12 + $0x20] ss:$8 sps:$4 sm:$0xff]  }
 0xfa2   :  { %12439 = vmatpush1.bf16.msra.mxu1 %v14945_v29  ;;  %12399 = vmatprep.subr.bf16.mxu0 %v14946_v57  ;;  %v14969_v16 = vld [vmem:[#allocation12 + $0x120] ss:$8 sps:$4 sm:$0xff]   ;;  %v14970_v42 = vld [vmem:[#allocation12 + $0x14] ss:$8 sps:$4 sm:$0xff]   ;;  %v14974_v32 = vld [vmem:[#allocation12 + $0x10] ss:$8 sps:$4 sm:$0xff]   ;;  %v11994_v29 = vpack.c.bf16 %v11987_v46, %v11987_v46  ;;  %v11996_v57 = vpack.c.bf16 %v11989_v47, %v11989_v47 }
 0xfa3   :  { %12440 = vmatprep.subr.bf16.mxu1 %v14948_v30  ;;  %v14972_v6 = vld [vmem:[#allocation12 + $0x114] ss:$8 sps:$4 sm:$0xff]   ;;  %v14975_v53 = vld [vmem:[#allocation12 + $0x110] ss:$8 sps:$4 sm:$0xff]   ;;  %v14976_v40 = vld [vmem:[#allocation12 + $0x4] ss:$8 sps:$4 sm:$0xff]  }
 0xfa4   :  { %v14978_v54 = vld [vmem:[#allocation12 + $0x104] ss:$8 sps:$4 sm:$0xff]   ;;  %v14980_v21 = vld [vmem:[#allocation12] ss:$8 sps:$4 sm:$0xff]   ;;  %v14982_v26 = vld [vmem:[#allocation12 + $0xf4] ss:$8 sps:$4 sm:$0xff]  }
 0xfa5   :  { %12400 = vmatpush1.bf16.msra.mxu0 %v14950_v0  ;;  %v14981_v17 = vld [vmem:[#allocation12 + $0x100] ss:$8 sps:$4 sm:$0xff]   ;;  %v14984_v20 = vld [vmem:[#allocation12 + $0x1f4] ss:$8 sps:$4 sm:$0xff]   ;;  %v14986_v10 = vld [vmem:[#allocation12 + $0xf0] ss:$8 sps:$4 sm:$0xff]  }
 0xfa6   :  { %12441 = vmatpush1.bf16.msra.mxu1 %v14951_v59  ;;  %12401 = vmatprep.subr.bf16.mxu0 %v14952_v19  ;;  %v14987_v39 = vld [vmem:[#allocation12 + $0x1f0] ss:$8 sps:$4 sm:$0xff]   ;;  %v14988_v55 = vld [vmem:[#allocation12 + $0xe4] ss:$8 sps:$4 sm:$0xff]   ;;  %v14992_v31 = vld [vmem:[#allocation12 + $0xe0] ss:$8 sps:$4 sm:$0xff]  }
 0xfa7   :  { %12442 = vmatprep.subr.bf16.mxu1 %v14954_v8  ;;  %v14990_v44 = vld [vmem:[#allocation12 + $0x1e4] ss:$8 sps:$4 sm:$0xff]   ;;  %v14993_v60 = vld [vmem:[#allocation12 + $0x1e0] ss:$8 sps:$4 sm:$0xff]   ;;  %v14994_v51 = vld [vmem:[#allocation12 + $0xd4] ss:$8 sps:$4 sm:$0xff]  }
 0xfa8   :  { %v14996_v2 = vld [vmem:[#allocation12 + $0x1d4] ss:$8 sps:$4 sm:$0xff]   ;;  %v14998_v23 = vld [vmem:[#allocation12 + $0xd0] ss:$8 sps:$4 sm:$0xff]   ;;  %v15000_v63 = vld [vmem:[#allocation12 + $0xc4] ss:$8 sps:$4 sm:$0xff]  }
 0xfa9   :  { %12402 = vmatpush1.bf16.msra.mxu0 %v14956_v11  ;;  %v14999_v58 = vld [vmem:[#allocation12 + $0x1d0] ss:$8 sps:$4 sm:$0xff]   ;;  %v15002_v56 = vld [vmem:[#allocation12 + $0x1c4] ss:$8 sps:$4 sm:$0xff]   ;;  %v15004_v3 = vld [vmem:[#allocation12 + $0xc0] ss:$8 sps:$4 sm:$0xff]  }
 0xfaa   :  { %12443 = vmatpush1.bf16.msra.mxu1 %v14957_v1  ;;  %12403 = vmatprep.subr.bf16.mxu0 %v14958_v25  ;;  %v15005_v37 = vld [vmem:[#allocation12 + $0x1c0] ss:$8 sps:$4 sm:$0xff]   ;;  %v15006_v38 = vld [vmem:[#allocation12 + $0xb4] ss:$8 sps:$4 sm:$0xff]   ;;  %v15010_v61 = vld [vmem:[#allocation12 + $0xb0] ss:$8 sps:$4 sm:$0xff]  }
 0xfab   :  { %12444 = vmatprep.subr.bf16.mxu1 %v14960_v50  ;;  %v15008_v15 = vld [vmem:[#allocation12 + $0x1b4] ss:$8 sps:$4 sm:$0xff]   ;;  %v15011_v24 = vld [vmem:[#allocation12 + $0x1b0] ss:$8 sps:$4 sm:$0xff]   ;;  %v15012_v52 = vld [vmem:[#allocation12 + $0xa4] ss:$8 sps:$4 sm:$0xff]  }
 0xfac   :  { %v15014_v49 = vld [vmem:[#allocation12 + $0x1a4] ss:$8 sps:$4 sm:$0xff]   ;;  %v15016_v41 = vld [vmem:[#allocation12 + $0xa0] ss:$8 sps:$4 sm:$0xff]   ;;  %v15018_v36 = vld [vmem:[#allocation12 + $0x94] ss:$8 sps:$4 sm:$0xff]  }
 0xfad   :  { %12404 = vmatpush1.bf16.msra.mxu0 %v14962_v7  ;;  %v15017_v28 = vld [vmem:[#allocation12 + $0x1a0] ss:$8 sps:$4 sm:$0xff]   ;;  %v15020_v48 = vld [vmem:[#allocation12 + $0x194] ss:$8 sps:$4 sm:$0xff]   ;;  %v15022_v4 = vld [vmem:[#allocation12 + $0x90] ss:$8 sps:$4 sm:$0xff]  }
 0xfae   :  { %12445 = vmatpush1.bf16.msra.mxu1 %v14963_v5  ;;  %12405 = vmatprep.subr.bf16.mxu0 %v14964_v12  ;;  %v15023_v18 = vld [vmem:[#allocation12 + $0x190] ss:$8 sps:$4 sm:$0xff]   ;;  %v15024_v14 = vld [vmem:[#allocation12 + $0x84] ss:$8 sps:$4 sm:$0xff]   ;;  %v15028_v33 = vld [vmem:[#allocation12 + $0x80] ss:$8 sps:$4 sm:$0xff]  }
 0xfaf   :  { %12446 = vmatprep.subr.bf16.mxu1 %v14966_v27  ;;  %v15026_v22 = vld [vmem:[#allocation12 + $0x184] ss:$8 sps:$4 sm:$0xff]   ;;  %v15029_v13 = vld [vmem:[#allocation12 + $0x180] ss:$8 sps:$4 sm:$0xff]  }
 0xfb0   :  { %v12063_v30 = vld [vmem:[#allocation15 + $0x92] ss:$4 sm:$0x3] }
 0xfb1   :  { %12406 = vmatpush1.bf16.msra.mxu0 %v14968_v43  ;;  %v12068_v0 = vrot.slane %v12063_v30, %v16722_v35  ;;  %v12072_v59 = vrot.slane %v12063_v30, %v16725_v45 }
 0xfb2   :  { %12447 = vmatpush1.bf16.msra.mxu1 %v14969_v16  ;;  %12407 = vmatprep.subr.bf16.mxu0 %v14970_v42 }
 0xfb3   :  { %12448 = vmatprep.subr.bf16.mxu1 %v14972_v6 }
 0xfb5   :  { %12408 = vmatpush1.bf16.msra.mxu0 %v14974_v32 }
 0xfb6   :  { %12449 = vmatpush1.bf16.msra.mxu1 %v14975_v53  ;;  %12409 = vmatprep.subr.bf16.mxu0 %v14976_v40 }
 0xfb7   :  { %12450 = vmatprep.subr.bf16.mxu1 %v14978_v54 }
 0xfb9   :  { %12410 = vmatpush1.bf16.msra.mxu0 %v14980_v21 }
 0xfba   :  { %12451 = vmatpush1.bf16.msra.mxu1 %v14981_v17  ;;  %12411 = vmatprep.subr.bf16.mxu0 %v14982_v26 }
 0xfbb   :  { %12452 = vmatprep.subr.bf16.mxu1 %v14984_v20 }
 0xfbd   :  { %12412 = vmatpush2.bf16.msra.mxu0 %v14986_v10 }
 0xfbe   :  { %12453 = vmatpush2.bf16.msra.mxu1 %v14987_v39  ;;  %12413 = vmatprep.subr.bf16.mxu0 %v14988_v55 }
 0xfbf   :  { %12454 = vmatprep.subr.bf16.mxu1 %v14990_v44 }
 0xfc1   :  { %12414 = vmatpush2.bf16.msra.mxu0 %v14992_v31 }
 0xfc2   :  { %12455 = vmatpush2.bf16.msra.mxu1 %v14993_v60  ;;  %12415 = vmatprep.subr.bf16.mxu0 %v14994_v51 }
 0xfc3   :  { %12456 = vmatprep.subr.bf16.mxu1 %v14996_v2 }
 0xfc5   :  { %12416 = vmatpush2.bf16.msra.mxu0 %v14998_v23 }
 0xfc6   :  { %12457 = vmatpush2.bf16.msra.mxu1 %v14999_v58  ;;  %12417 = vmatprep.subr.bf16.mxu0 %v15000_v63 }
 0xfc7   :  { %12458 = vmatprep.subr.bf16.mxu1 %v15002_v56 }
 0xfc9   :  { %12418 = vmatpush2.bf16.msra.mxu0 %v15004_v3 }
 0xfca   :  { %12459 = vmatpush2.bf16.msra.mxu1 %v15005_v37  ;;  %12419 = vmatprep.subr.bf16.mxu0 %v15006_v38 }
 0xfcb   :  { %12460 = vmatprep.subr.bf16.mxu1 %v15008_v15 }
 0xfcd   :  { %12420 = vmatpush2.bf16.msra.mxu0 %v15010_v61 }
 0xfce   :  { %12461 = vmatpush2.bf16.msra.mxu1 %v15011_v24  ;;  %12421 = vmatprep.subr.bf16.mxu0 %v15012_v52 }
 0xfcf   :  { %12462 = vmatprep.subr.bf16.mxu1 %v15014_v49 }
 0xfd1   :  { %12422 = vmatpush2.bf16.msra.mxu0 %v15016_v41 }
 0xfd2   :  { %12463 = vmatpush2.bf16.msra.mxu1 %v15017_v28  ;;  %12423 = vmatprep.subr.bf16.mxu0 %v15018_v36 }
 0xfd3   :  { %12464 = vmatprep.subr.bf16.mxu1 %v15020_v48 }
 0xfd5   :  { %12424 = vmatpush2.bf16.msra.mxu0 %v15022_v4 }
 0xfd6   :  { %12465 = vmatpush2.bf16.msra.mxu1 %v15023_v18  ;;  %12425 = vmatprep.subr.bf16.mxu0 %v15024_v14 }
 0xfd7   :  { %12466 = vmatprep.subr.bf16.mxu1 %v15026_v22 }
 0xfd9   :  { %12426 = vmatpush2.bf16.msra.mxu0 %v15028_v33  ;;  %v12514_v33 = vld [vmem:[#allocation15 + $0x9a] ss:$4 sm:$0x3] }
 0xfda   :  { %12467 = vmatpush2.bf16.msra.mxu1 %v15029_v13 }
 0xfdc   :  { %12428 = vmatmul.mubr.bf16.vlgmr.msra.gmra.mxu0 %v11994_v29 }
 0xfdd   :  { %12469 = vmatmul.mubr.bf16.vlgmr.msra.gmra.mxu1 %v11996_v57 }
0x109c   :  { %v12429_v19 = vpop.f32.mrf.mxu0 }
0x109d   :  { %v12470_v8 = vpop.f32.mrf.mxu1  ;;  %v12430_v11 = vadd.f32 %v12429_v19, %v12068_v0 }
0x109e   :  { %v12431_v1 = vpop.f32.mrf.mxu0 }
0x109f   :  { %v12472_v34 = vpop.f32.mrf.mxu1  ;;  %v18027_v25 = vadd.f32 %v12470_v8, %v12430_v11  ;;  %v12432_v46 = vadd.f32 %v12431_v1, %v12072_v59  ;;  %v12539_v11 = vld [vmem:[#allocation15 + $0xa2] ss:$4 sm:$0x3] }
0x10a0   :  { %v12433_v9 = vpop.f32.mrf.mxu0 }
0x10a1   :  { %v12474_v50 = vpop.f32.mrf.mxu1  ;;  %v12477_v47 = vrot.slane %v18027_v25, 4  ;;  %v12491_v7 = vmul.f32 %v18027_v25, %v18027_v25  ;;  %v12473_v5 = vadd.f32 %v12472_v34, %v12432_v46 }
0x10a2   :  { %v12434_v12 = vpop.f32.mrf.mxu0 }
0x10a3   :  { %v12475_v27 = vpop.f32.mrf.mxu1  ;;  %v12478_v43 = vadd.f32 %v12477_v47, %v18027_v25  ;;  %v12493_v16 = vrot.slane %v12491_v7, 4  ;;  %v12483_v42 = vrot.slane %v12473_v5, 4  ;;  %v12492_v6 = vmul.f32 %v12473_v5, %v12473_v5 }
0x10a5   :  { %v12479_v32 = vrot.slane %v12478_v43, 2  ;;  %v12494_v53 = vadd.f32 %v12493_v16, %v12491_v7  ;;  %v12484_v40 = vadd.f32 %v12483_v42, %v12473_v5  ;;  %v12499_v54 = vrot.slane %v12492_v6, 4 }
0x10a7   :  { %v12480_v21 = vadd.f32 %v12479_v32, %v12478_v43  ;;  %v12495_v17 = vrot.slane %v12494_v53, 2  ;;  %v12485_v26 = vrot.slane %v12484_v40, 2  ;;  %v12500_v20 = vadd.f32 %v12499_v54, %v12492_v6 }
0x10a9   :  { %v12481_v10 = vrot.slane %v12480_v21, 1  ;;  %v12496_v39 = vadd.f32 %v12495_v17, %v12494_v53  ;;  %v12486_v55 = vadd.f32 %v12485_v26, %v12484_v40  ;;  %v12501_v44 = vrot.slane %v12500_v20, 2 }
0x10ab   :  { %v12482_v31 = vadd.f32 %v12481_v10, %v12480_v21  ;;  %v12497_v60 = vrot.slane %v12496_v39, 1  ;;  %v12487_v51 = vrot.slane %v12486_v55, 1  ;;  %v12502_v2 = vadd.f32 %v12501_v44, %v12500_v20 }
0x10ad   :  { %v12489_v23 = vmul.f32 0.125, %v12482_v31  ;;  %v12498_v58 = vadd.f32 %v12497_v60, %v12496_v39  ;;  %v12488_v63 = vadd.f32 %v12487_v51, %v12486_v55  ;;  %v12503_v56 = vrot.slane %v12502_v2, 1 }
0x10af   :  { %v12505_v3 = vmul.f32 0.125, %v12498_v58  ;;  %v12507_v37 = vmul.f32 %v12489_v23, %v12489_v23  ;;  %v12490_v38 = vmul.f32 0.125, %v12488_v63  ;;  %v12504_v15 = vadd.f32 %v12503_v56, %v12502_v2 }
0x10b1   :  { %v12509_v61 = vsub.f32 %v12505_v3, %v12507_v37  ;;  %v12506_v24 = vmul.f32 0.125, %v12504_v15  ;;  %v12508_v52 = vmul.f32 %v12490_v38, %v12490_v38 }
0x10b3   :  { %v12511_v49 = vmax.f32 %v12509_v61, 0.0  ;;  %v12510_v41 = vsub.f32 %v12506_v24, %v12508_v52 }
0x10b5   :  { %v12515_v28 = vadd.f32 1e-05, %v12511_v49  ;;  %v12512_v36 = vmax.f32 %v12510_v41, 0.0 }
0x10b7   :  { %v12516_v48 = vadd.f32 1e-05, %v12512_v36  ;;  %15030 = vrsqrt.f32 %v12515_v28 }
0x10b9   :  { %15032 = vrsqrt.f32 %v12516_v48 }
0x10c4   :  { %v15031_v4 = vpop.eup %15030 }
0x10c6   :  { %v15033_v18 = vpop.eup %15032 }
0x10c7   :  { %v12521_v14 = vcombine.low %v15031_v4, %v15033_v18 }
0x10c9   :  { %v12528_v22 = vrot.slane %v12521_v14, %v16736_v62 }
0x10cb   :  { %v12535_v13 = vrot.slane %v12528_v22, %v16736_v62 }
0x10cd   :  { %v12537_v29 = vmul.f32 %v12535_v13, %v12514_v33 }
0x10cf   :  { %v12544_v57 = vrot.slane %v12537_v29, %v16722_v35  ;;  %v12548_v30 = vrot.slane %v12537_v29, %v16725_v45 }
0x10d1   :  { %v12551_v0 = vmul.f32 %v12544_v57, %v12489_v23  ;;  %v12552_v59 = vmul.f32 %v12548_v30, %v12490_v38  ;;  %v12572_v46 = vmul.f32 %v12544_v57, %v18027_v25  ;;  %v12573_v9 = vmul.f32 %v12548_v30, %v12473_v5 }
0x10d3   :  { %v12555_v19 = vcombine.low %v12551_v0, %v12552_v59 }
0x10d5   :  { %v12562_v8 = vrot.slane %v12555_v19, %v16736_v62 }
0x10d7   :  { %v12569_v1 = vrot.slane %v12562_v8, %v16736_v62 }
0x10d9   :  { %v12571_v34 = vsub.f32 %v12539_v11, %v12569_v1 }
0x10db   :  { %v12578_v50 = vrot.slane %v12571_v34, %v16722_v35  ;;  %v12582_v47 = vrot.slane %v12571_v34, %v16725_v45 }
0x10dd   :  { %v12585_v7 = vadd.f32 %v12578_v50, %v12572_v46  ;;  %v12586_v12 = vadd.f32 %v12582_v47, %v12573_v9 }
0x10df   :  { %v12587_v27 = vmax.f32 %v12585_v7, 0.0  ;;  %v12588_v43 = vmax.f32 %v12586_v12, 0.0 }
0x10e0   :  { %15194 = dma.done.wait [#allocation14 + $0xb], 2048 }
0x10e1   :  { %15195 = vsyncadd [#allocation14 + $0xb], 4294965248  ;;  %v12593_v16 = vpack.c.bf16 %v12588_v43, %v12588_v43  ;;  %v15034_v42 = vld [vmem:[#allocation13 + $0x78] sm:$0xff]   ;;  %v15036_v62 = vld [vmem:[#allocation13 + $0x70] sm:$0xff]   ;;  %v12592_v39 = vpack.c.bf16 %v12587_v27, %v12587_v27  ;;  %s15206_s27 = smov [#allocation18]  }
0x10e2   :  { %v15035_v6 = vld [vmem:[#allocation13 + $0x38] sm:$0xff]   ;;  %14301 = vmatprep.subr.bf16.mxu0 %v15034_v42  ;;  %v15037_v32 = vld [vmem:[#allocation13 + $0x30] sm:$0xff]   ;;  %v15038_v25 = vld [vmem:[#allocation13 + $0x68] sm:$0xff]   ;;  %s12774_s28 = sshll.u32 %s15206_s27, 4  ;;  %s12775_s28 = int_to_ptr.vmem [resolvable:$true] %s12774_s28 }
0x10e3   :  { %12759 = vmatprep.mubr.bf16.mxu0 %v12593_v16  ;;  %14302 = vmatpush3.bf16.msra.mxu0 %v15035_v6  ;;  %v15039_v35 = vld [vmem:[#allocation13 + $0x28] sm:$0xff]   ;;  %v15040_v45 = vld [vmem:[#allocation13 + $0x60] sm:$0xff]   ;;  %v15042_v53 = vld [vmem:[#allocation13 + $0x58] sm:$0xff]   ;;  %s15150_s6 = scalar_lea.vmem %s12775_s28, 128  ;;  %p15155_p12 = scmp.lt.s32.totalorder %s12775_s28, %s12775_s28 }
0x10e4   :  { %14303 = vmatprep.subr.bf16.mxu0 %v15036_v62  ;;  %v15041_v5 = vld [vmem:[#allocation13 + $0x20] sm:$0xff]   ;;  %v15043_v40 = vld [vmem:[#allocation13 + $0x18] sm:$0xff]   ;;  %v15044_v54 = vld [vmem:[#allocation13 + $0x50] sm:$0xff]   ;;  %p15151_p11 = scmp.ne.s32.totalorder %s12775_s28, %s15150_s6  ;;  %p15156_p13 = scmp.lt.s32.totalorder %s15150_s6, %s15150_s6 }
0x10e5   :  { %v15045_v21 = vld [vmem:[#allocation13 + $0x10] sm:$0xff]   ;;  %v15046_v17 = vld [vmem:[#allocation13 + $0x48] sm:$0xff]   ;;  %v15048_v20 = vld [vmem:[#allocation13 + $0x40] sm:$0xff]  }
0x10e6   :  { %v15047_v26 = vld [vmem:[#allocation13 + $0x8] sm:$0xff]   ;;  %v15049_v10 = vld [vmem:[#allocation13] sm:$0xff]   ;;  %p15157_p0 = por %p15156_p13, %p15155_p12 }
0x10e7   :  { %14304 = vmatpush3.bf16.msra.mxu0 %v15037_v32  ;;  %v14096_v44 = vld [vmem:[#allocation15 + $0xaa] ss:$0 sm:$0xff] }
0x10e8   :  { %14305 = vmatprep.subr.bf16.mxu0 %v15038_v25  ;;  %p15158_p1 = pnand %p15157_p0, %p15151_p11 }
0x10eb   :  { %14306 = vmatpush3.bf16.msra.mxu0 %v15039_v35 }
0x10ec   :  { %14307 = vmatprep.subr.bf16.mxu0 %v15040_v45 }
0x10ef   :  { %14308 = vmatpush3.bf16.msra.mxu0 %v15041_v5 }
0x10f0   :  { %14309 = vmatprep.subr.bf16.mxu0 %v15042_v53 }
0x10f3   :  { %14310 = vmatpush3.bf16.msra.mxu0 %v15043_v40 }
0x10f4   :  { %14311 = vmatprep.subr.bf16.mxu0 %v15044_v54 }
0x10f7   :  { %14312 = vmatpush3.bf16.msra.mxu0 %v15045_v21 }
0x10f8   :  { %14313 = vmatprep.subr.bf16.mxu0 %v15046_v17 }
0x10fb   :  { %14314 = vmatpush3.bf16.msra.mxu0 %v15047_v26 }
0x10fc   :  { %14315 = vmatprep.subr.bf16.mxu0 %v15048_v20 }
0x10ff   :  { %14316 = vmatpush3.bf16.msra.mxu0 %v15049_v10 }
0x1102   :  { %12760 = vmatmul.mubr.bf16.vlgmr.msra.gmra.mxu0 %v12592_v39 }
0x11c2   :  { %v14317_v55 = vpop.f32.mrf.mxu0 }
0x11c4   :  { %v14318_v31 = vpop.f32.mrf.mxu0 }
0x11c5   :  { %v14319_v60 = vadd.f32 %v14318_v31, %v14317_v55 }
0x11c6   :  { %v14320_v51 = vpop.f32.mrf.mxu0 }
0x11c7   :  { %v12762_v2 = vadd.f32 %v14319_v60, %v14096_v44 }
0x11c8   :  { %v14321_v23 = vpop.f32.mrf.mxu0 }
0x11c9   :  { %12767 = vst.msk [vmem:[#allocation18] sm:$0xff] %vm1143_vm1, %v12762_v2 }
0x11ca   :  { %15161 = shalt.err (!%p15158_p1)
}
0x11cb   :  { %12777 = dma.vmem_to_hbm [thread:$0]  %s12775_s28, 128, %s18061_s15, [#allocation17]  }
0x11cc   :  { %15196 = dma.done.wait [#allocation17], 128  }
0x11cd   :  { %15197 = vsyncadd [#allocation17], 4294967168 }
0x11ce   :  { %12781 = vsyncpa [#allocation16], 1 }
0x11cf   :  { %12782 = vsyncpa [#allocation17], 1 }
0x11d0   :  { %12783 = vsyncmov [#allocation14] }
0x11d3   :  { %s12784_s2 = vpop.sfrf %12783 }
0x11d4   :  { %p14113_p2 = scmp.ne.s32.totalorder %s12784_s2, 0 }
0x11d6   :  { %12788 = shalt.err (%p14113_p2)  }
0x11d7   :  { %12790 = vsyncmov [#allocation14 + $0x1] }
0x11da   :  { %s12791_s5 = vpop.sfrf %12790 }
0x11db   :  { %p14114_p3 = scmp.ne.s32.totalorder %s12791_s5, 0 }
0x11dd   :  { %12795 = shalt.err (%p14114_p3)  }
0x11de   :  { %12797 = vsyncmov [#allocation14 + $0x2] }
0x11e1   :  { %s12798_s10 = vpop.sfrf %12797 }
0x11e2   :  { %p14115_p4 = scmp.ne.s32.totalorder %s12798_s10, 0 }
0x11e4   :  { %12802 = shalt.err (%p14115_p4)  }
0x11e5   :  { %12804 = vsyncmov [#allocation14 + $0x3] }
0x11e8   :  { %s12805_s26 = vpop.sfrf %12804 }
0x11e9   :  { %p14116_p5 = scmp.ne.s32.totalorder %s12805_s26, 0 }
0x11eb   :  { %12809 = shalt.err (%p14116_p5)  }
0x11ec   :  { %12811 = vsyncmov [#allocation14 + $0x4] }
0x11ef   :  { %s12812_s15 = vpop.sfrf %12811 }
0x11f0   :  { %p14117_p6 = scmp.ne.s32.totalorder %s12812_s15, 0 }
0x11f2   :  { %12816 = shalt.err (%p14117_p6)  }
0x11f3   :  { %12818 = vsyncmov [#allocation14 + $0x5] }
0x11f6   :  { %s12819_s30 = vpop.sfrf %12818 }
0x11f7   :  { %p14118_p7 = scmp.ne.s32.totalorder %s12819_s30, 0 }
0x11f9   :  { %12823 = shalt.err (%p14118_p7)  }
0x11fa   :  { %12825 = vsyncmov [#allocation14 + $0x6] }
0x11fd   :  { %s12826_s7 = vpop.sfrf %12825 }
0x11fe   :  { %p14119_p8 = scmp.ne.s32.totalorder %s12826_s7, 0 }
0x1200   :  { %12830 = shalt.err (%p14119_p8)  }
0x1201   :  { %12832 = vsyncmov [#allocation14 + $0x7] }
0x1204   :  { %s12833_s9 = vpop.sfrf %12832 }
0x1205   :  { %p14120_p9 = scmp.ne.s32.totalorder %s12833_s9, 0 }
0x1207   :  { %12837 = shalt.err (%p14120_p9)  }
0x1208   :  { %12839 = vsyncmov [#allocation14 + $0x8] }
0x120b   :  { %s12840_s16 = vpop.sfrf %12839 }
0x120c   :  { %p14121_p10 = scmp.ne.s32.totalorder %s12840_s16, 0 }
0x120e   :  { %12844 = shalt.err (%p14121_p10)  }
0x120f   :  { %12846 = vsyncmov [#allocation14 + $0x9] }
0x1212   :  { %s12847_s12 = vpop.sfrf %12846 }
0x1213   :  { %p14122_p11 = scmp.ne.s32.totalorder %s12847_s12, 0 }
0x1215   :  { %12851 = shalt.err (%p14122_p11)  }
0x1216   :  { %12853 = vsyncmov [#allocation14 + $0xa] }
0x1219   :  { %s12854_s17 = vpop.sfrf %12853 }
0x121a   :  { %p14123_p12 = scmp.ne.s32.totalorder %s12854_s17, 0 }
0x121c   :  { %12858 = shalt.err (%p14123_p12)  }
0x121d   :  { %12860 = vsyncmov [#allocation14 + $0xb] }
0x1220   :  { %s12861_s18 = vpop.sfrf %12860 }
0x1221   :  { %p14124_p13 = scmp.ne.s32.totalorder %s12861_s18, 0 }
0x1223   :  { %12865 = shalt.err (%p14124_p13)  }

</bundles_post_ra>
